<compile_context>
chip_gen: v6e
topology: v6e:2x2x1
jax: 0.10.0
libtpu: 0.0.40
codegen_flags: <defaults>
</compile_context>

<pallas_src>
import functools

import jax
import jax.numpy as jnp
import numpy as np
from jax.experimental import pallas as pl
from jax.experimental.pallas import tpu as pltpu


# ----------------------------------------------------------------------------
# Single fused kernel: LSTM stack + attention + biLSTM + dense head.
# Time loop statically unrolled (T small) so all slices are static and the
# whole recurrence is one basic block for the LLO scheduler.
# ----------------------------------------------------------------------------
def _fused_kernel(emb_ref,
                  wx1_ref, wh1_ref, b1_ref,
                  wx2_ref, wh2_ref, b2_ref,
                  wx3_ref, wh3_ref, b3_ref,
                  attn_w_ref, attn_b_ref,
                  wx4f_ref, wh4f_ref, b4f_ref,
                  wx4b_ref, wh4b_ref, b4b_ref,
                  h1w_hbm_ref, h1b_ref, h2w_hbm_ref, h2b_ref,
                  h3w_ref, h3b_ref, how_ref, hob_ref,
                  attn_out_ref, tag_out_ref,
                  flat_ref, h1w_vmem, h2w_vmem, dma_sem):
    T, B, E = emb_ref.shape
    H = b1_ref.shape[-1] // 4

    # Kick off epilogue-only head-weight DMAs now; they overlap the recurrence.
    h1w_cp = pltpu.make_async_copy(h1w_hbm_ref, h1w_vmem, dma_sem.at[0])
    h2w_cp = pltpu.make_async_copy(h2w_hbm_ref, h2w_vmem, dma_sem.at[1])
    h1w_cp.start()
    h2w_cp.start()

    def lstm_cell(x, h, c, wx_ref, wh_ref, b_ref):
        # Two back-to-back MXU pushes; no lane-concat relayout.
        gates = (jnp.dot(x, wx_ref[...], preferred_element_type=jnp.float32)
                 + jnp.dot(h, wh_ref[...], preferred_element_type=jnp.float32)
                 + b_ref[...])
        # One sigmoid over the whole (B, 4H) tile, then slice.  PyTorch gate
        # order is [i, f, g, o]; only g needs tanh.
        sg = jax.nn.sigmoid(gates)
        i = sg[:, 0:H]
        f = sg[:, H:2 * H]
        o = sg[:, 3 * H:4 * H]
        g = jnp.tanh(gates[:, 2 * H:3 * H])
        c_new = f * c + i * g
        h_new = o * jnp.tanh(c_new)
        return h_new, c_new

    zeros = jnp.zeros((B, H), jnp.float32)
    h1 = c1 = h2 = c2 = h3 = c3 = hf = cf = zeros
    attn_steps = []   # vreg-resident copies only for the backward lstm_four sweep

    # ---- forward sweep: lstm1 -> lstm2 -> lstm3 -> attention -> lstm4(fwd) ----
    for t in range(T):
        x = emb_ref[t]                                               # (B, E)
        h1, c1 = lstm_cell(x, h1, c1, wx1_ref, wh1_ref, b1_ref)
        h2, c2 = lstm_cell(h1, h2, c2, wx2_ref, wh2_ref, b2_ref)
        h3, c3 = lstm_cell(h2, h3, c3, wx3_ref, wh3_ref, b3_ref)

        # per-timestep Linear(H, H) + softmax over the feature dim (torch dim=2)
        logits = (jnp.dot(h3, attn_w_ref[t],
                          preferred_element_type=jnp.float32) + attn_b_ref[t])
        logits = logits - jnp.max(logits, axis=-1, keepdims=True)
        expv = jnp.exp(logits)
        inv = pl.reciprocal(jnp.sum(expv, axis=-1, keepdims=True), approx=True)
        aa = (expv * inv) * x                      # attn_applied_t  (E == H)
        attn_steps.append(aa)
        # store straight into the lane-dense output (spare vst slot)
        attn_out_ref[:, t * H:(t + 1) * H] = aa.astype(attn_out_ref.dtype)

        hf, cf = lstm_cell(aa, hf, cf, wx4f_ref, wh4f_ref, b4f_ref)
        # torch flatten layout of the bi-LSTM output: [.., t_fwd(H), t_bwd(H), ..]
        flat_ref[:, t * 2 * H:t * 2 * H + H] = hf

    # ---- backward sweep: lstm4(bwd) over the vreg-resident attn_applied ----
    hb, cb = zeros, zeros
    for t in range(T - 1, -1, -1):
        hb, cb = lstm_cell(attn_steps[t], hb, cb, wx4b_ref, wh4b_ref, b4b_ref)
        flat_ref[:, t * 2 * H + H:(t + 1) * 2 * H] = hb

    # ---- dense head epilogue (dropouts identity in eval mode) ----
    h1w_cp.wait()
    h2w_cp.wait()
    d = (jnp.dot(flat_ref[...], h1w_vmem[...],
                 preferred_element_type=jnp.float32) + h1b_ref[...])
    d = jnp.maximum(d, 0.0)
    d = jnp.maximum(jnp.dot(d, h2w_vmem[...],
                            preferred_element_type=jnp.float32) + h2b_ref[...], 0.0)
    d = jnp.maximum(jnp.dot(d, h3w_ref[...],
                            preferred_element_type=jnp.float32) + h3b_ref[...], 0.0)
    tag = jnp.dot(d, how_ref[...],
                  preferred_element_type=jnp.float32) + hob_ref[...]
    tag_out_ref[...] = tag.astype(tag_out_ref.dtype)


def _fused_forward(emb_tbe, p):
    T, B, E = emb_tbe.shape
    H = E
    d1 = p["h1w"].shape[1]
    d2 = p["h2w"].shape[1]
    tag_pad = p["hob"].shape[-1]

    vmem = pl.BlockSpec()                         # default: whole array in VMEM
    hbm = pl.BlockSpec(memory_space=pl.ANY)       # epilogue-only weights, manual DMA
    in_specs = ([vmem] * 18) + [hbm, vmem, hbm, vmem, vmem, vmem, vmem, vmem]

    return pl.pallas_call(
        _fused_kernel,
        out_shape=(jax.ShapeDtypeStruct((B, T * H), jnp.float32),
                   jax.ShapeDtypeStruct((B, tag_pad), jnp.float32)),
        in_specs=in_specs,
        scratch_shapes=[
            pltpu.VMEM((B, T * 2 * H), jnp.float32),    # bi-LSTM flat outputs
            pltpu.VMEM((T * 2 * H, d1), jnp.float32),   # staged head W1^T
            pltpu.VMEM((d1, d2), jnp.float32),          # staged head W2^T
            pltpu.SemaphoreType.DMA((2,)),
        ],
    )(emb_tbe,
      p["wx1"], p["wh1"], p["b1"],
      p["wx2"], p["wh2"], p["b2"],
      p["wx3"], p["wh3"], p["b3"],
      p["attn_w"], p["attn_b"],
      p["wx4f"], p["wh4f"], p["b4f"],
      p["wx4b"], p["wh4b"], p["b4b"],
      p["h1w"], p["h1b"], p["h2w"], p["h2b"],
      p["h3w"], p["h3b"], p["how"], p["hob"])


# ----------------------------------------------------------------------------
# Full forward (matches AttnDecoderRNN.forward, eval-mode dropout).
# ----------------------------------------------------------------------------
@functools.partial(jax.jit, static_argnames=("tagset_size",))
def attn_decoder_forward(prepped, tokens, *, tagset_size):
    B, T = tokens.shape
    E = prepped["embedding"].shape[1]
    # Embedding gather kept as XLA glue (data-dependent gather), time-major.
    emb_tbe = jnp.take(prepped["embedding"], jnp.transpose(tokens), axis=0)  # (T,B,E)
    attn_flat, tag_padded = _fused_forward(emb_tbe, prepped)
    attn_applied = attn_flat.reshape(B, T, E)        # (B, T, E), torch layout
    tag_space = tag_padded[:, :tagset_size]          # unpad lane-padded head out
    return tag_space, attn_applied


# ----------------------------------------------------------------------------
# One-time host-side weight preprocessing (hoisted out of the forward pass).
# ----------------------------------------------------------------------------
def prepare_params(params):
    H = params["lstm_one"][1].shape[1]
    T = params["attn_w"].shape[0]

    def split_lstm(w_ih, w_hh, b_ih, b_hh):
        # Wx (in, 4H) and Wh (H, 4H) kept separate (no per-step lane concat);
        # bias pre-summed (b_ih + b_hh).
        return (jnp.transpose(w_ih), jnp.transpose(w_hh),
                (b_ih + b_hh).reshape(1, -1))

    wx1, wh1, b1 = split_lstm(*params["lstm_one"])
    wx2, wh2, b2 = split_lstm(*params["lstm_two"])
    wx3, wh3, b3 = split_lstm(*params["lstm_three"])
    wx4f, wh4f, b4f = split_lstm(*params["lstm_four_fwd"])
    wx4b, wh4b, b4b = split_lstm(*params["lstm_four_bwd"])

    attn_w = jnp.transpose(params["attn_w"], (0, 2, 1))      # (T, H_in, H_out)
    attn_b = params["attn_b"].reshape(T, 1, H)

    hw1, hb1, hw2, hb2, hw3, hb3, hw4, hb4 = params["head"]
    # torch flatten is (B, T, 2H).view(B, -1): column index t*2H + d matches the
    # kernel's flat buffer layout exactly, so W1 only needs a transpose.
    h1w = jnp.transpose(hw1)                                 # (T*2H, 512)

    tagset = hw4.shape[0]
    tag_pad = ((tagset + 127) // 128) * 128
    how = jnp.zeros((hw4.shape[1], tag_pad), jnp.float32).at[:, :tagset].set(
        jnp.transpose(hw4))
    hob = jnp.zeros((1, tag_pad), jnp.float32).at[:, :tagset].set(
        hb4.reshape(1, -1))

    return {
        "embedding": params["embedding"],
        "wx1": wx1, "wh1": wh1, "b1": b1,
        "wx2": wx2, "wh2": wh2, "b2": b2,
        "wx3": wx3, "wh3": wh3, "b3": b3,
        "attn_w": attn_w, "attn_b": attn_b,
        "wx4f": wx4f, "wh4f": wh4f, "b4f": b4f,
        "wx4b": wx4b, "wh4b": wh4b, "b4b": b4b,
        "h1w": h1w, "h1b": hb1.reshape(1, -1),
        "h2w": jnp.transpose(hw2), "h2b": hb2.reshape(1, -1),
        "h3w": jnp.transpose(hw3), "h3b": hb3.reshape(1, -1),
        "how": how, "hob": hob,
    }


# ----------------------------------------------------------------------------
# Deterministic parameter construction (torch-layout shapes from __init__).
# hidden_dim must equal embedding_dim (same constraint as the torch module:
# attn_weights * init_embed broadcast).
# ----------------------------------------------------------------------------
def init_params(key, vocab_size, embedding_dim, hidden_dim, time_steps,
                tagset_size):
    assert embedding_dim == hidden_dim
    H, E, T = hidden_dim, embedding_dim, time_steps
    keys = iter(jax.random.split(key, 64))

    def rnd(shape, scale=0.1):
        return jax.random.normal(next(keys), shape, jnp.float32) * scale

    def lstm_params(in_dim, h_dim):
        return (rnd((4 * h_dim, in_dim)), rnd((4 * h_dim, h_dim)),
                rnd((4 * h_dim,)), rnd((4 * h_dim,)))

    params = {
        "embedding": rnd((vocab_size, E)),
        "lstm_one": lstm_params(E, H),
        "lstm_two": lstm_params(H, H),
        "lstm_three": lstm_params(H, H),
        "attn_w": rnd((T, H, H)),
        "attn_b": rnd((T, H)),
        "lstm_four_fwd": lstm_params(H, H),
        "lstm_four_bwd": lstm_params(H, H),
        "head": (
            rnd((512, 2 * H * T)), rnd((512,)),
            rnd((128, 512)), rnd((128,)),
            rnd((64, 128)), rnd((64,)),
            rnd((tagset_size, 64)), rnd((tagset_size,)),
        ),
    }
    return params


# ----------------------------------------------------------------------------
# Pure-JAX reference of the torch forward (eval-mode dropout) for validation.
# ----------------------------------------------------------------------------
def _reference_forward(params, tokens):
    emb = params["embedding"][tokens]                        # (B, T, E)
    B, T, E = emb.shape

    def run_lstm(x_bth, lstm_p, reverse=False):
        w_ih, w_hh, b_ih, b_hh = lstm_p
        Hh = w_hh.shape[1]

        def step(carry, x_t):
            h, c = carry
            gates = x_t @ w_ih.T + h @ w_hh.T + b_ih + b_hh
            i, f, g, o = jnp.split(gates, 4, axis=-1)
            i, f, o = jax.nn.sigmoid(i), jax.nn.sigmoid(f), jax.nn.sigmoid(o)
            g = jnp.tanh(g)
            c = f * c + i * g
            h = o * jnp.tanh(c)
            return (h, c), h

        xs = jnp.swapaxes(x_bth, 0, 1)                       # (T, B, in)
        if reverse:
            xs = xs[::-1]
        init = (jnp.zeros((B, Hh), jnp.float32), jnp.zeros((B, Hh), jnp.float32))
        _, hs = jax.lax.scan(step, init, xs)
        if reverse:
            hs = hs[::-1]
        return jnp.swapaxes(hs, 0, 1)                        # (B, T, H)

    l1 = run_lstm(emb, params["lstm_one"])
    l2 = run_lstm(l1, params["lstm_two"])
    l3 = run_lstm(l2, params["lstm_three"])

    attn = jnp.einsum("bti,toi->bto", l3, params["attn_w"]) + params["attn_b"][None]
    attn_weights = jax.nn.softmax(attn, axis=2)
    attn_applied = attn_weights * emb

    fwd = run_lstm(attn_applied, params["lstm_four_fwd"])
    bwd = run_lstm(attn_applied, params["lstm_four_bwd"], reverse=True)
    flat = jnp.concatenate([fwd, bwd], axis=-1).reshape(B, -1)

    hw1, hb1, hw2, hb2, hw3, hb3, hw4, hb4 = params["head"]
    d = jax.nn.relu(flat @ hw1.T + hb1)
    d = jax.nn.relu(d @ hw2.T + hb2)
    d = jax.nn.relu(d @ hw3.T + hb3)
    tag = d @ hw4.T + hb4
    return tag, attn_applied


if __name__ == "__main__":
    vocab_size = 50
    embedding_dim = 32
    hidden_dim = 32
    time_steps = 8
    tagset_size = 1
    batch = 4

    key = jax.random.PRNGKey(0)
    pkey, tkey = jax.random.split(key)
    params = init_params(pkey, vocab_size, embedding_dim, hidden_dim,
                         time_steps, tagset_size)
    prepped = prepare_params(params)          # one-time weight preprocessing
    tokens = jax.random.randint(tkey, (batch, time_steps), 0, vocab_size,
                                dtype=jnp.int32)

    tag_space, attn_applied = attn_decoder_forward(prepped, tokens,
                                                   tagset_size=tagset_size)
    jax.block_until_ready((tag_space, attn_applied))

    assert tag_space.shape == (batch, tagset_size)
    assert attn_applied.shape == (batch, time_steps, embedding_dim)

    # Validate against the pure-JAX reference (approx EUP reciprocal in the
    # kernel softmax => loose-ish tolerance).
    ref_tag, ref_attn = _reference_forward(params, tokens)
    np.testing.assert_allclose(np.asarray(attn_applied), np.asarray(ref_attn),
                               rtol=5e-2, atol=5e-3)
    np.testing.assert_allclose(np.asarray(tag_space), np.asarray(ref_tag),
                               rtol=5e-2, atol=5e-3)

    print("KERNEL_OK")
</pallas_src>

<mosaic_0001>
module attributes {stable_mosaic.version = 11 : i64} {
  func.func @_fused_kernel(%arg0: memref<8x4x32xf32, #tpu.memory_space<vmem>>, %arg1: memref<32x128xf32, #tpu.memory_space<vmem>>, %arg2: memref<32x128xf32, #tpu.memory_space<vmem>>, %arg3: memref<1x128xf32, #tpu.memory_space<vmem>>, %arg4: memref<32x128xf32, #tpu.memory_space<vmem>>, %arg5: memref<32x128xf32, #tpu.memory_space<vmem>>, %arg6: memref<1x128xf32, #tpu.memory_space<vmem>>, %arg7: memref<32x128xf32, #tpu.memory_space<vmem>>, %arg8: memref<32x128xf32, #tpu.memory_space<vmem>>, %arg9: memref<1x128xf32, #tpu.memory_space<vmem>>, %arg10: memref<8x32x32xf32, #tpu.memory_space<vmem>>, %arg11: memref<8x1x32xf32, #tpu.memory_space<vmem>>, %arg12: memref<32x128xf32, #tpu.memory_space<vmem>>, %arg13: memref<32x128xf32, #tpu.memory_space<vmem>>, %arg14: memref<1x128xf32, #tpu.memory_space<vmem>>, %arg15: memref<32x128xf32, #tpu.memory_space<vmem>>, %arg16: memref<32x128xf32, #tpu.memory_space<vmem>>, %arg17: memref<1x128xf32, #tpu.memory_space<vmem>>, %arg18: memref<512x512xf32, #tpu.memory_space<any>>, %arg19: memref<1x512xf32, #tpu.memory_space<vmem>>, %arg20: memref<512x128xf32, #tpu.memory_space<any>>, %arg21: memref<1x128xf32, #tpu.memory_space<vmem>>, %arg22: memref<128x64xf32, #tpu.memory_space<vmem>>, %arg23: memref<1x64xf32, #tpu.memory_space<vmem>>, %arg24: memref<64x128xf32, #tpu.memory_space<vmem>>, %arg25: memref<1x128xf32, #tpu.memory_space<vmem>>, %arg26: memref<4x256xf32, #tpu.memory_space<vmem>>, %arg27: memref<4x128xf32, #tpu.memory_space<vmem>>, %arg28: memref<4x512xf32, #tpu.memory_space<vmem>>, %arg29: memref<512x512xf32, #tpu.memory_space<vmem>>, %arg30: memref<512x128xf32, #tpu.memory_space<vmem>>, %arg31: memref<2x!tpu.dma_semaphore, #tpu.memory_space<semaphore_mem>>) attributes {dimension_semantics = [], scalar_prefetch = 0 : i64, scratch_operands = 4 : i64, tpu.core_type = #tpu.core_type<tc>} {
    %c0_i32 = arith.constant 0 : i32
    %0 = tpu.memref_slice %arg31[%c0_i32] : memref<2x!tpu.dma_semaphore, #tpu.memory_space<semaphore_mem>> -> memref<1x!tpu.dma_semaphore, #tpu.memory_space<semaphore_mem>>
    %1 = tpu.memref_squeeze %0 : memref<1x!tpu.dma_semaphore, #tpu.memory_space<semaphore_mem>> -> memref<!tpu.dma_semaphore, #tpu.memory_space<semaphore_mem>>
    tpu.enqueue_dma source(%arg18 : memref<512x512xf32, #tpu.memory_space<any>>) target(%arg29 : memref<512x512xf32, #tpu.memory_space<vmem>>) target_semaphore(%1 : memref<!tpu.dma_semaphore, #tpu.memory_space<semaphore_mem>>)
    %c1_i32 = arith.constant 1 : i32
    %2 = tpu.memref_slice %arg31[%c1_i32] : memref<2x!tpu.dma_semaphore, #tpu.memory_space<semaphore_mem>> -> memref<1x!tpu.dma_semaphore, #tpu.memory_space<semaphore_mem>>
    %3 = tpu.memref_squeeze %2 : memref<1x!tpu.dma_semaphore, #tpu.memory_space<semaphore_mem>> -> memref<!tpu.dma_semaphore, #tpu.memory_space<semaphore_mem>>
    tpu.enqueue_dma source(%arg20 : memref<512x128xf32, #tpu.memory_space<any>>) target(%arg30 : memref<512x128xf32, #tpu.memory_space<vmem>>) target_semaphore(%3 : memref<!tpu.dma_semaphore, #tpu.memory_space<semaphore_mem>>)
    %cst = arith.constant 0.000000e+00 : f32
    %4 = vector.broadcast %cst : f32 to vector<4x32xf32>
    %c0 = arith.constant 0 : index
    %c0_0 = arith.constant 0 : index
    %c0_1 = arith.constant 0 : index
    %5 = vector.load %arg0[%c0, %c0_0, %c0_1] : memref<8x4x32xf32, #tpu.memory_space<vmem>>, vector<1x4x32xf32>
    %6 = vector.shape_cast %5 : vector<1x4x32xf32> to vector<4x32xf32>
    %c0_2 = arith.constant 0 : index
    %c0_3 = arith.constant 0 : index
    %7 = vector.load %arg1[%c0_2, %c0_3] : memref<32x128xf32, #tpu.memory_space<vmem>>, vector<32x128xf32>
    %cst_4 = arith.constant dense<0.000000e+00> : vector<4x128xf32>
    %8 = tpu.matmul %6, %7, %cst_4 {dimension_numbers = #tpu.dot_dimension_numbers<[1], [0], [0], [1], [0, 0, 1, 1], [], []>} : vector<4x32xf32>, vector<32x128xf32>, vector<4x128xf32> -> vector<4x128xf32>
    %c0_5 = arith.constant 0 : index
    %c0_6 = arith.constant 0 : index
    %9 = vector.load %arg2[%c0_5, %c0_6] : memref<32x128xf32, #tpu.memory_space<vmem>>, vector<32x128xf32>
    %cst_7 = arith.constant dense<0.000000e+00> : vector<4x128xf32>
    %10 = tpu.matmul %4, %9, %cst_7 {dimension_numbers = #tpu.dot_dimension_numbers<[1], [0], [0], [1], [0, 0, 1, 1], [], []>} : vector<4x32xf32>, vector<32x128xf32>, vector<4x128xf32> -> vector<4x128xf32>
    %11 = arith.addf %8, %10 : vector<4x128xf32>
    %c0_8 = arith.constant 0 : index
    %c0_9 = arith.constant 0 : index
    %12 = vector.load %arg3[%c0_8, %c0_9] : memref<1x128xf32, #tpu.memory_space<vmem>>, vector<1x128xf32>
    %13 = vector.broadcast %12 : vector<1x128xf32> to vector<4x128xf32>
    %14 = arith.addf %11, %13 : vector<4x128xf32>
    %15 = arith.negf %14 : vector<4x128xf32>
    %16 = math.exp %15 : vector<4x128xf32>
    %cst_10 = arith.constant 1.000000e+00 : f32
    %17 = vector.broadcast %cst_10 : f32 to vector<4x128xf32>
    %18 = arith.addf %17, %16 : vector<4x128xf32>
    %19 = arith.divf %17, %18 : vector<4x128xf32>
    %20 = vector.extract_strided_slice %19 {offsets = [0, 0], sizes = [4, 32], strides = [1, 1]} : vector<4x128xf32> to vector<4x32xf32>
    %21 = vector.extract_strided_slice %19 {offsets = [0, 32], sizes = [4, 32], strides = [1, 1]} : vector<4x128xf32> to vector<4x32xf32>
    %22 = vector.extract_strided_slice %19 {offsets = [0, 96], sizes = [4, 32], strides = [1, 1]} : vector<4x128xf32> to vector<4x32xf32>
    %23 = vector.extract_strided_slice %14 {offsets = [0, 64], sizes = [4, 32], strides = [1, 1]} : vector<4x128xf32> to vector<4x32xf32>
    %24 = math.tanh %23 : vector<4x32xf32>
    %25 = arith.mulf %21, %4 : vector<4x32xf32>
    %26 = arith.mulf %20, %24 : vector<4x32xf32>
    %27 = arith.addf %25, %26 : vector<4x32xf32>
    %28 = math.tanh %27 : vector<4x32xf32>
    %29 = arith.mulf %22, %28 : vector<4x32xf32>
    %c0_11 = arith.constant 0 : index
    %c0_12 = arith.constant 0 : index
    %30 = vector.load %arg4[%c0_11, %c0_12] : memref<32x128xf32, #tpu.memory_space<vmem>>, vector<32x128xf32>
    %cst_13 = arith.constant dense<0.000000e+00> : vector<4x128xf32>
    %31 = tpu.matmul %29, %30, %cst_13 {dimension_numbers = #tpu.dot_dimension_numbers<[1], [0], [0], [1], [0, 0, 1, 1], [], []>} : vector<4x32xf32>, vector<32x128xf32>, vector<4x128xf32> -> vector<4x128xf32>
    %c0_14 = arith.constant 0 : index
    %c0_15 = arith.constant 0 : index
    %32 = vector.load %arg5[%c0_14, %c0_15] : memref<32x128xf32, #tpu.memory_space<vmem>>, vector<32x128xf32>
    %cst_16 = arith.constant dense<0.000000e+00> : vector<4x128xf32>
    %33 = tpu.matmul %4, %32, %cst_16 {dimension_numbers = #tpu.dot_dimension_numbers<[1], [0], [0], [1], [0, 0, 1, 1], [], []>} : vector<4x32xf32>, vector<32x128xf32>, vector<4x128xf32> -> vector<4x128xf32>
    %34 = arith.addf %31, %33 : vector<4x128xf32>
    %c0_17 = arith.constant 0 : index
    %c0_18 = arith.constant 0 : index
    %35 = vector.load %arg6[%c0_17, %c0_18] : memref<1x128xf32, #tpu.memory_space<vmem>>, vector<1x128xf32>
    %36 = vector.broadcast %35 : vector<1x128xf32> to vector<4x128xf32>
    %37 = arith.addf %34, %36 : vector<4x128xf32>
    %38 = arith.negf %37 : vector<4x128xf32>
    %39 = math.exp %38 : vector<4x128xf32>
    %cst_19 = arith.constant 1.000000e+00 : f32
    %40 = vector.broadcast %cst_19 : f32 to vector<4x128xf32>
    %41 = arith.addf %40, %39 : vector<4x128xf32>
    %42 = arith.divf %40, %41 : vector<4x128xf32>
    %43 = vector.extract_strided_slice %42 {offsets = [0, 0], sizes = [4, 32], strides = [1, 1]} : vector<4x128xf32> to vector<4x32xf32>
    %44 = vector.extract_strided_slice %42 {offsets = [0, 32], sizes = [4, 32], strides = [1, 1]} : vector<4x128xf32> to vector<4x32xf32>
    %45 = vector.extract_strided_slice %42 {offsets = [0, 96], sizes = [4, 32], strides = [1, 1]} : vector<4x128xf32> to vector<4x32xf32>
    %46 = vector.extract_strided_slice %37 {offsets = [0, 64], sizes = [4, 32], strides = [1, 1]} : vector<4x128xf32> to vector<4x32xf32>
    %47 = math.tanh %46 : vector<4x32xf32>
    %48 = arith.mulf %44, %4 : vector<4x32xf32>
    %49 = arith.mulf %43, %47 : vector<4x32xf32>
    %50 = arith.addf %48, %49 : vector<4x32xf32>
    %51 = math.tanh %50 : vector<4x32xf32>
    %52 = arith.mulf %45, %51 : vector<4x32xf32>
    %c0_20 = arith.constant 0 : index
    %c0_21 = arith.constant 0 : index
    %53 = vector.load %arg7[%c0_20, %c0_21] : memref<32x128xf32, #tpu.memory_space<vmem>>, vector<32x128xf32>
    %cst_22 = arith.constant dense<0.000000e+00> : vector<4x128xf32>
    %54 = tpu.matmul %52, %53, %cst_22 {dimension_numbers = #tpu.dot_dimension_numbers<[1], [0], [0], [1], [0, 0, 1, 1], [], []>} : vector<4x32xf32>, vector<32x128xf32>, vector<4x128xf32> -> vector<4x128xf32>
    %c0_23 = arith.constant 0 : index
    %c0_24 = arith.constant 0 : index
    %55 = vector.load %arg8[%c0_23, %c0_24] : memref<32x128xf32, #tpu.memory_space<vmem>>, vector<32x128xf32>
    %cst_25 = arith.constant dense<0.000000e+00> : vector<4x128xf32>
    %56 = tpu.matmul %4, %55, %cst_25 {dimension_numbers = #tpu.dot_dimension_numbers<[1], [0], [0], [1], [0, 0, 1, 1], [], []>} : vector<4x32xf32>, vector<32x128xf32>, vector<4x128xf32> -> vector<4x128xf32>
    %57 = arith.addf %54, %56 : vector<4x128xf32>
    %c0_26 = arith.constant 0 : index
    %c0_27 = arith.constant 0 : index
    %58 = vector.load %arg9[%c0_26, %c0_27] : memref<1x128xf32, #tpu.memory_space<vmem>>, vector<1x128xf32>
    %59 = vector.broadcast %58 : vector<1x128xf32> to vector<4x128xf32>
    %60 = arith.addf %57, %59 : vector<4x128xf32>
    %61 = arith.negf %60 : vector<4x128xf32>
    %62 = math.exp %61 : vector<4x128xf32>
    %cst_28 = arith.constant 1.000000e+00 : f32
    %63 = vector.broadcast %cst_28 : f32 to vector<4x128xf32>
    %64 = arith.addf %63, %62 : vector<4x128xf32>
    %65 = arith.divf %63, %64 : vector<4x128xf32>
    %66 = vector.extract_strided_slice %65 {offsets = [0, 0], sizes = [4, 32], strides = [1, 1]} : vector<4x128xf32> to vector<4x32xf32>
    %67 = vector.extract_strided_slice %65 {offsets = [0, 32], sizes = [4, 32], strides = [1, 1]} : vector<4x128xf32> to vector<4x32xf32>
    %68 = vector.extract_strided_slice %65 {offsets = [0, 96], sizes = [4, 32], strides = [1, 1]} : vector<4x128xf32> to vector<4x32xf32>
    %69 = vector.extract_strided_slice %60 {offsets = [0, 64], sizes = [4, 32], strides = [1, 1]} : vector<4x128xf32> to vector<4x32xf32>
    %70 = math.tanh %69 : vector<4x32xf32>
    %71 = arith.mulf %67, %4 : vector<4x32xf32>
    %72 = arith.mulf %66, %70 : vector<4x32xf32>
    %73 = arith.addf %71, %72 : vector<4x32xf32>
    %74 = math.tanh %73 : vector<4x32xf32>
    %75 = arith.mulf %68, %74 : vector<4x32xf32>
    %c0_29 = arith.constant 0 : index
    %c0_30 = arith.constant 0 : index
    %c0_31 = arith.constant 0 : index
    %76 = vector.load %arg10[%c0_29, %c0_30, %c0_31] : memref<8x32x32xf32, #tpu.memory_space<vmem>>, vector<1x32x32xf32>
    %77 = vector.shape_cast %76 : vector<1x32x32xf32> to vector<32x32xf32>
    %cst_32 = arith.constant dense<0.000000e+00> : vector<4x32xf32>
    %78 = tpu.matmul %75, %77, %cst_32 {dimension_numbers = #tpu.dot_dimension_numbers<[1], [0], [0], [1], [0, 0, 1, 1], [], []>} : vector<4x32xf32>, vector<32x32xf32>, vector<4x32xf32> -> vector<4x32xf32>
    %c0_33 = arith.constant 0 : index
    %c0_34 = arith.constant 0 : index
    %c0_35 = arith.constant 0 : index
    %79 = vector.load %arg11[%c0_33, %c0_34, %c0_35] : memref<8x1x32xf32, #tpu.memory_space<vmem>>, vector<1x1x32xf32>
    %80 = vector.shape_cast %79 : vector<1x1x32xf32> to vector<1x32xf32>
    %81 = vector.broadcast %80 : vector<1x32xf32> to vector<4x32xf32>
    %82 = arith.addf %78, %81 : vector<4x32xf32>
    %cst_36 = arith.constant dense<0xFF800000> : vector<4xf32>
    %83 = vector.multi_reduction <maximumf>, %82, %cst_36 [1] : vector<4x32xf32> to vector<4xf32>
    %84 = vector.shape_cast %83 : vector<4xf32> to vector<4x1xf32>
    %85 = vector.broadcast %84 : vector<4x1xf32> to vector<4x32xf32>
    %86 = arith.subf %82, %85 : vector<4x32xf32>
    %87 = math.exp %86 : vector<4x32xf32>
    %cst_37 = arith.constant dense<0.000000e+00> : vector<4xf32>
    %88 = vector.multi_reduction <add>, %87, %cst_37 [1] : vector<4x32xf32> to vector<4xf32>
    %89 = vector.shape_cast %88 : vector<4xf32> to vector<4x1xf32>
    %90 = tpu.reciprocal %89 {approx = true} : vector<4x1xf32> -> vector<4x1xf32>
    %91 = vector.broadcast %90 : vector<4x1xf32> to vector<4x32xf32>
    %92 = arith.mulf %87, %91 : vector<4x32xf32>
    %93 = arith.mulf %92, %6 : vector<4x32xf32>
    %c0_38 = arith.constant 0 : index
    %c0_39 = arith.constant 0 : index
    %94 = vector.load %arg26[%c0_38, %c0_39] : memref<4x256xf32, #tpu.memory_space<vmem>>, vector<4x32xf32>
    tpu.vector_store %arg26[%c0_38, %c0_39], %93 {strides = array<i32>} : memref<4x256xf32, #tpu.memory_space<vmem>>, vector<4x32xf32>,
    %c0_40 = arith.constant 0 : index
    %c0_41 = arith.constant 0 : index
    %95 = vector.load %arg12[%c0_40, %c0_41] : memref<32x128xf32, #tpu.memory_space<vmem>>, vector<32x128xf32>
    %cst_42 = arith.constant dense<0.000000e+00> : vector<4x128xf32>
    %96 = tpu.matmul %93, %95, %cst_42 {dimension_numbers = #tpu.dot_dimension_numbers<[1], [0], [0], [1], [0, 0, 1, 1], [], []>} : vector<4x32xf32>, vector<32x128xf32>, vector<4x128xf32> -> vector<4x128xf32>
    %c0_43 = arith.constant 0 : index
    %c0_44 = arith.constant 0 : index
    %97 = vector.load %arg13[%c0_43, %c0_44] : memref<32x128xf32, #tpu.memory_space<vmem>>, vector<32x128xf32>
    %cst_45 = arith.constant dense<0.000000e+00> : vector<4x128xf32>
    %98 = tpu.matmul %4, %97, %cst_45 {dimension_numbers = #tpu.dot_dimension_numbers<[1], [0], [0], [1], [0, 0, 1, 1], [], []>} : vector<4x32xf32>, vector<32x128xf32>, vector<4x128xf32> -> vector<4x128xf32>
    %99 = arith.addf %96, %98 : vector<4x128xf32>
    %c0_46 = arith.constant 0 : index
    %c0_47 = arith.constant 0 : index
    %100 = vector.load %arg14[%c0_46, %c0_47] : memref<1x128xf32, #tpu.memory_space<vmem>>, vector<1x128xf32>
    %101 = vector.broadcast %100 : vector<1x128xf32> to vector<4x128xf32>
    %102 = arith.addf %99, %101 : vector<4x128xf32>
    %103 = arith.negf %102 : vector<4x128xf32>
    %104 = math.exp %103 : vector<4x128xf32>
    %cst_48 = arith.constant 1.000000e+00 : f32
    %105 = vector.broadcast %cst_48 : f32 to vector<4x128xf32>
    %106 = arith.addf %105, %104 : vector<4x128xf32>
    %107 = arith.divf %105, %106 : vector<4x128xf32>
    %108 = vector.extract_strided_slice %107 {offsets = [0, 0], sizes = [4, 32], strides = [1, 1]} : vector<4x128xf32> to vector<4x32xf32>
    %109 = vector.extract_strided_slice %107 {offsets = [0, 32], sizes = [4, 32], strides = [1, 1]} : vector<4x128xf32> to vector<4x32xf32>
    %110 = vector.extract_strided_slice %107 {offsets = [0, 96], sizes = [4, 32], strides = [1, 1]} : vector<4x128xf32> to vector<4x32xf32>
    %111 = vector.extract_strided_slice %102 {offsets = [0, 64], sizes = [4, 32], strides = [1, 1]} : vector<4x128xf32> to vector<4x32xf32>
    %112 = math.tanh %111 : vector<4x32xf32>
    %113 = arith.mulf %109, %4 : vector<4x32xf32>
    %114 = arith.mulf %108, %112 : vector<4x32xf32>
    %115 = arith.addf %113, %114 : vector<4x32xf32>
    %116 = math.tanh %115 : vector<4x32xf32>
    %117 = arith.mulf %110, %116 : vector<4x32xf32>
    %c0_49 = arith.constant 0 : index
    %c0_50 = arith.constant 0 : index
    %118 = vector.load %arg28[%c0_49, %c0_50] : memref<4x512xf32, #tpu.memory_space<vmem>>, vector<4x32xf32>
    tpu.vector_store %arg28[%c0_49, %c0_50], %117 {strides = array<i32>} : memref<4x512xf32, #tpu.memory_space<vmem>>, vector<4x32xf32>,
    %c1 = arith.constant 1 : index
    %c0_51 = arith.constant 0 : index
    %c0_52 = arith.constant 0 : index
    %119 = vector.load %arg0[%c1, %c0_51, %c0_52] : memref<8x4x32xf32, #tpu.memory_space<vmem>>, vector<1x4x32xf32>
    %120 = vector.shape_cast %119 : vector<1x4x32xf32> to vector<4x32xf32>
    %c0_53 = arith.constant 0 : index
    %c0_54 = arith.constant 0 : index
    %121 = vector.load %arg1[%c0_53, %c0_54] : memref<32x128xf32, #tpu.memory_space<vmem>>, vector<32x128xf32>
    %cst_55 = arith.constant dense<0.000000e+00> : vector<4x128xf32>
    %122 = tpu.matmul %120, %121, %cst_55 {dimension_numbers = #tpu.dot_dimension_numbers<[1], [0], [0], [1], [0, 0, 1, 1], [], []>} : vector<4x32xf32>, vector<32x128xf32>, vector<4x128xf32> -> vector<4x128xf32>
    %c0_56 = arith.constant 0 : index
    %c0_57 = arith.constant 0 : index
    %123 = vector.load %arg2[%c0_56, %c0_57] : memref<32x128xf32, #tpu.memory_space<vmem>>, vector<32x128xf32>
    %cst_58 = arith.constant dense<0.000000e+00> : vector<4x128xf32>
    %124 = tpu.matmul %29, %123, %cst_58 {dimension_numbers = #tpu.dot_dimension_numbers<[1], [0], [0], [1], [0, 0, 1, 1], [], []>} : vector<4x32xf32>, vector<32x128xf32>, vector<4x128xf32> -> vector<4x128xf32>
    %125 = arith.addf %122, %124 : vector<4x128xf32>
    %c0_59 = arith.constant 0 : index
    %c0_60 = arith.constant 0 : index
    %126 = vector.load %arg3[%c0_59, %c0_60] : memref<1x128xf32, #tpu.memory_space<vmem>>, vector<1x128xf32>
    %127 = vector.broadcast %126 : vector<1x128xf32> to vector<4x128xf32>
    %128 = arith.addf %125, %127 : vector<4x128xf32>
    %129 = arith.negf %128 : vector<4x128xf32>
    %130 = math.exp %129 : vector<4x128xf32>
    %cst_61 = arith.constant 1.000000e+00 : f32
    %131 = vector.broadcast %cst_61 : f32 to vector<4x128xf32>
    %132 = arith.addf %131, %130 : vector<4x128xf32>
    %133 = arith.divf %131, %132 : vector<4x128xf32>
    %134 = vector.extract_strided_slice %133 {offsets = [0, 0], sizes = [4, 32], strides = [1, 1]} : vector<4x128xf32> to vector<4x32xf32>
    %135 = vector.extract_strided_slice %133 {offsets = [0, 32], sizes = [4, 32], strides = [1, 1]} : vector<4x128xf32> to vector<4x32xf32>
    %136 = vector.extract_strided_slice %133 {offsets = [0, 96], sizes = [4, 32], strides = [1, 1]} : vector<4x128xf32> to vector<4x32xf32>
    %137 = vector.extract_strided_slice %128 {offsets = [0, 64], sizes = [4, 32], strides = [1, 1]} : vector<4x128xf32> to vector<4x32xf32>
    %138 = math.tanh %137 : vector<4x32xf32>
    %139 = arith.mulf %135, %27 : vector<4x32xf32>
    %140 = arith.mulf %134, %138 : vector<4x32xf32>
    %141 = arith.addf %139, %140 : vector<4x32xf32>
    %142 = math.tanh %141 : vector<4x32xf32>
    %143 = arith.mulf %136, %142 : vector<4x32xf32>
    %c0_62 = arith.constant 0 : index
    %c0_63 = arith.constant 0 : index
    %144 = vector.load %arg4[%c0_62, %c0_63] : memref<32x128xf32, #tpu.memory_space<vmem>>, vector<32x128xf32>
    %cst_64 = arith.constant dense<0.000000e+00> : vector<4x128xf32>
    %145 = tpu.matmul %143, %144, %cst_64 {dimension_numbers = #tpu.dot_dimension_numbers<[1], [0], [0], [1], [0, 0, 1, 1], [], []>} : vector<4x32xf32>, vector<32x128xf32>, vector<4x128xf32> -> vector<4x128xf32>
    %c0_65 = arith.constant 0 : index
    %c0_66 = arith.constant 0 : index
    %146 = vector.load %arg5[%c0_65, %c0_66] : memref<32x128xf32, #tpu.memory_space<vmem>>, vector<32x128xf32>
    %cst_67 = arith.constant dense<0.000000e+00> : vector<4x128xf32>
    %147 = tpu.matmul %52, %146, %cst_67 {dimension_numbers = #tpu.dot_dimension_numbers<[1], [0], [0], [1], [0, 0, 1, 1], [], []>} : vector<4x32xf32>, vector<32x128xf32>, vector<4x128xf32> -> vector<4x128xf32>
    %148 = arith.addf %145, %147 : vector<4x128xf32>
    %c0_68 = arith.constant 0 : index
    %c0_69 = arith.constant 0 : index
    %149 = vector.load %arg6[%c0_68, %c0_69] : memref<1x128xf32, #tpu.memory_space<vmem>>, vector<1x128xf32>
    %150 = vector.broadcast %149 : vector<1x128xf32> to vector<4x128xf32>
    %151 = arith.addf %148, %150 : vector<4x128xf32>
    %152 = arith.negf %151 : vector<4x128xf32>
    %153 = math.exp %152 : vector<4x128xf32>
    %cst_70 = arith.constant 1.000000e+00 : f32
    %154 = vector.broadcast %cst_70 : f32 to vector<4x128xf32>
    %155 = arith.addf %154, %153 : vector<4x128xf32>
    %156 = arith.divf %154, %155 : vector<4x128xf32>
    %157 = vector.extract_strided_slice %156 {offsets = [0, 0], sizes = [4, 32], strides = [1, 1]} : vector<4x128xf32> to vector<4x32xf32>
    %158 = vector.extract_strided_slice %156 {offsets = [0, 32], sizes = [4, 32], strides = [1, 1]} : vector<4x128xf32> to vector<4x32xf32>
    %159 = vector.extract_strided_slice %156 {offsets = [0, 96], sizes = [4, 32], strides = [1, 1]} : vector<4x128xf32> to vector<4x32xf32>
    %160 = vector.extract_strided_slice %151 {offsets = [0, 64], sizes = [4, 32], strides = [1, 1]} : vector<4x128xf32> to vector<4x32xf32>
    %161 = math.tanh %160 : vector<4x32xf32>
    %162 = arith.mulf %158, %50 : vector<4x32xf32>
    %163 = arith.mulf %157, %161 : vector<4x32xf32>
    %164 = arith.addf %162, %163 : vector<4x32xf32>
    %165 = math.tanh %164 : vector<4x32xf32>
    %166 = arith.mulf %159, %165 : vector<4x32xf32>
    %c0_71 = arith.constant 0 : index
    %c0_72 = arith.constant 0 : index
    %167 = vector.load %arg7[%c0_71, %c0_72] : memref<32x128xf32, #tpu.memory_space<vmem>>, vector<32x128xf32>
    %cst_73 = arith.constant dense<0.000000e+00> : vector<4x128xf32>
    %168 = tpu.matmul %166, %167, %cst_73 {dimension_numbers = #tpu.dot_dimension_numbers<[1], [0], [0], [1], [0, 0, 1, 1], [], []>} : vector<4x32xf32>, vector<32x128xf32>, vector<4x128xf32> -> vector<4x128xf32>
    %c0_74 = arith.constant 0 : index
    %c0_75 = arith.constant 0 : index
    %169 = vector.load %arg8[%c0_74, %c0_75] : memref<32x128xf32, #tpu.memory_space<vmem>>, vector<32x128xf32>
    %cst_76 = arith.constant dense<0.000000e+00> : vector<4x128xf32>
    %170 = tpu.matmul %75, %169, %cst_76 {dimension_numbers = #tpu.dot_dimension_numbers<[1], [0], [0], [1], [0, 0, 1, 1], [], []>} : vector<4x32xf32>, vector<32x128xf32>, vector<4x128xf32> -> vector<4x128xf32>
    %171 = arith.addf %168, %170 : vector<4x128xf32>
    %c0_77 = arith.constant 0 : index
    %c0_78 = arith.constant 0 : index
    %172 = vector.load %arg9[%c0_77, %c0_78] : memref<1x128xf32, #tpu.memory_space<vmem>>, vector<1x128xf32>
    %173 = vector.broadcast %172 : vector<1x128xf32> to vector<4x128xf32>
    %174 = arith.addf %171, %173 : vector<4x128xf32>
    %175 = arith.negf %174 : vector<4x128xf32>
    %176 = math.exp %175 : vector<4x128xf32>
    %cst_79 = arith.constant 1.000000e+00 : f32
    %177 = vector.broadcast %cst_79 : f32 to vector<4x128xf32>
    %178 = arith.addf %177, %176 : vector<4x128xf32>
    %179 = arith.divf %177, %178 : vector<4x128xf32>
    %180 = vector.extract_strided_slice %179 {offsets = [0, 0], sizes = [4, 32], strides = [1, 1]} : vector<4x128xf32> to vector<4x32xf32>
    %181 = vector.extract_strided_slice %179 {offsets = [0, 32], sizes = [4, 32], strides = [1, 1]} : vector<4x128xf32> to vector<4x32xf32>
    %182 = vector.extract_strided_slice %179 {offsets = [0, 96], sizes = [4, 32], strides = [1, 1]} : vector<4x128xf32> to vector<4x32xf32>
    %183 = vector.extract_strided_slice %174 {offsets = [0, 64], sizes = [4, 32], strides = [1, 1]} : vector<4x128xf32> to vector<4x32xf32>
    %184 = math.tanh %183 : vector<4x32xf32>
    %185 = arith.mulf %181, %73 : vector<4x32xf32>
    %186 = arith.mulf %180, %184 : vector<4x32xf32>
    %187 = arith.addf %185, %186 : vector<4x32xf32>
    %188 = math.tanh %187 : vector<4x32xf32>
    %189 = arith.mulf %182, %188 : vector<4x32xf32>
    %c1_80 = arith.constant 1 : index
    %c0_81 = arith.constant 0 : index
    %c0_82 = arith.constant 0 : index
    %190 = vector.load %arg10[%c1_80, %c0_81, %c0_82] : memref<8x32x32xf32, #tpu.memory_space<vmem>>, vector<1x32x32xf32>
    %191 = vector.shape_cast %190 : vector<1x32x32xf32> to vector<32x32xf32>
    %cst_83 = arith.constant dense<0.000000e+00> : vector<4x32xf32>
    %192 = tpu.matmul %189, %191, %cst_83 {dimension_numbers = #tpu.dot_dimension_numbers<[1], [0], [0], [1], [0, 0, 1, 1], [], []>} : vector<4x32xf32>, vector<32x32xf32>, vector<4x32xf32> -> vector<4x32xf32>
    %c1_84 = arith.constant 1 : index
    %c0_85 = arith.constant 0 : index
    %c0_86 = arith.constant 0 : index
    %193 = vector.load %arg11[%c1_84, %c0_85, %c0_86] : memref<8x1x32xf32, #tpu.memory_space<vmem>>, vector<1x1x32xf32>
    %194 = vector.shape_cast %193 : vector<1x1x32xf32> to vector<1x32xf32>
    %195 = vector.broadcast %194 : vector<1x32xf32> to vector<4x32xf32>
    %196 = arith.addf %192, %195 : vector<4x32xf32>
    %cst_87 = arith.constant dense<0xFF800000> : vector<4xf32>
    %197 = vector.multi_reduction <maximumf>, %196, %cst_87 [1] : vector<4x32xf32> to vector<4xf32>
    %198 = vector.shape_cast %197 : vector<4xf32> to vector<4x1xf32>
    %199 = vector.broadcast %198 : vector<4x1xf32> to vector<4x32xf32>
    %200 = arith.subf %196, %199 : vector<4x32xf32>
    %201 = math.exp %200 : vector<4x32xf32>
    %cst_88 = arith.constant dense<0.000000e+00> : vector<4xf32>
    %202 = vector.multi_reduction <add>, %201, %cst_88 [1] : vector<4x32xf32> to vector<4xf32>
    %203 = vector.shape_cast %202 : vector<4xf32> to vector<4x1xf32>
    %204 = tpu.reciprocal %203 {approx = true} : vector<4x1xf32> -> vector<4x1xf32>
    %205 = vector.broadcast %204 : vector<4x1xf32> to vector<4x32xf32>
    %206 = arith.mulf %201, %205 : vector<4x32xf32>
    %207 = arith.mulf %206, %120 : vector<4x32xf32>
    %c0_89 = arith.constant 0 : index
    %c32 = arith.constant 32 : index
    %208 = vector.load %arg26[%c0_89, %c32] : memref<4x256xf32, #tpu.memory_space<vmem>>, vector<4x32xf32>
    tpu.vector_store %arg26[%c0_89, %c32], %207 {strides = array<i32>} : memref<4x256xf32, #tpu.memory_space<vmem>>, vector<4x32xf32>,
    %c0_90 = arith.constant 0 : index
    %c0_91 = arith.constant 0 : index
    %209 = vector.load %arg12[%c0_90, %c0_91] : memref<32x128xf32, #tpu.memory_space<vmem>>, vector<32x128xf32>
    %cst_92 = arith.constant dense<0.000000e+00> : vector<4x128xf32>
    %210 = tpu.matmul %207, %209, %cst_92 {dimension_numbers = #tpu.dot_dimension_numbers<[1], [0], [0], [1], [0, 0, 1, 1], [], []>} : vector<4x32xf32>, vector<32x128xf32>, vector<4x128xf32> -> vector<4x128xf32>
    %c0_93 = arith.constant 0 : index
    %c0_94 = arith.constant 0 : index
    %211 = vector.load %arg13[%c0_93, %c0_94] : memref<32x128xf32, #tpu.memory_space<vmem>>, vector<32x128xf32>
    %cst_95 = arith.constant dense<0.000000e+00> : vector<4x128xf32>
    %212 = tpu.matmul %117, %211, %cst_95 {dimension_numbers = #tpu.dot_dimension_numbers<[1], [0], [0], [1], [0, 0, 1, 1], [], []>} : vector<4x32xf32>, vector<32x128xf32>, vector<4x128xf32> -> vector<4x128xf32>
    %213 = arith.addf %210, %212 : vector<4x128xf32>
    %c0_96 = arith.constant 0 : index
    %c0_97 = arith.constant 0 : index
    %214 = vector.load %arg14[%c0_96, %c0_97] : memref<1x128xf32, #tpu.memory_space<vmem>>, vector<1x128xf32>
    %215 = vector.broadcast %214 : vector<1x128xf32> to vector<4x128xf32>
    %216 = arith.addf %213, %215 : vector<4x128xf32>
    %217 = arith.negf %216 : vector<4x128xf32>
    %218 = math.exp %217 : vector<4x128xf32>
    %cst_98 = arith.constant 1.000000e+00 : f32
    %219 = vector.broadcast %cst_98 : f32 to vector<4x128xf32>
    %220 = arith.addf %219, %218 : vector<4x128xf32>
    %221 = arith.divf %219, %220 : vector<4x128xf32>
    %222 = vector.extract_strided_slice %221 {offsets = [0, 0], sizes = [4, 32], strides = [1, 1]} : vector<4x128xf32> to vector<4x32xf32>
    %223 = vector.extract_strided_slice %221 {offsets = [0, 32], sizes = [4, 32], strides = [1, 1]} : vector<4x128xf32> to vector<4x32xf32>
    %224 = vector.extract_strided_slice %221 {offsets = [0, 96], sizes = [4, 32], strides = [1, 1]} : vector<4x128xf32> to vector<4x32xf32>
    %225 = vector.extract_strided_slice %216 {offsets = [0, 64], sizes = [4, 32], strides = [1, 1]} : vector<4x128xf32> to vector<4x32xf32>
    %226 = math.tanh %225 : vector<4x32xf32>
    %227 = arith.mulf %223, %115 : vector<4x32xf32>
    %228 = arith.mulf %222, %226 : vector<4x32xf32>
    %229 = arith.addf %227, %228 : vector<4x32xf32>
    %230 = math.tanh %229 : vector<4x32xf32>
    %231 = arith.mulf %224, %230 : vector<4x32xf32>
    %c0_99 = arith.constant 0 : index
    %c64 = arith.constant 64 : index
    %232 = vector.load %arg28[%c0_99, %c64] : memref<4x512xf32, #tpu.memory_space<vmem>>, vector<4x32xf32>
    tpu.vector_store %arg28[%c0_99, %c64], %231 {strides = array<i32>} : memref<4x512xf32, #tpu.memory_space<vmem>>, vector<4x32xf32>,
    %c2 = arith.constant 2 : index
    %c0_100 = arith.constant 0 : index
    %c0_101 = arith.constant 0 : index
    %233 = vector.load %arg0[%c2, %c0_100, %c0_101] : memref<8x4x32xf32, #tpu.memory_space<vmem>>, vector<1x4x32xf32>
    %234 = vector.shape_cast %233 : vector<1x4x32xf32> to vector<4x32xf32>
    %c0_102 = arith.constant 0 : index
    %c0_103 = arith.constant 0 : index
    %235 = vector.load %arg1[%c0_102, %c0_103] : memref<32x128xf32, #tpu.memory_space<vmem>>, vector<32x128xf32>
    %cst_104 = arith.constant dense<0.000000e+00> : vector<4x128xf32>
    %236 = tpu.matmul %234, %235, %cst_104 {dimension_numbers = #tpu.dot_dimension_numbers<[1], [0], [0], [1], [0, 0, 1, 1], [], []>} : vector<4x32xf32>, vector<32x128xf32>, vector<4x128xf32> -> vector<4x128xf32>
    %c0_105 = arith.constant 0 : index
    %c0_106 = arith.constant 0 : index
    %237 = vector.load %arg2[%c0_105, %c0_106] : memref<32x128xf32, #tpu.memory_space<vmem>>, vector<32x128xf32>
    %cst_107 = arith.constant dense<0.000000e+00> : vector<4x128xf32>
    %238 = tpu.matmul %143, %237, %cst_107 {dimension_numbers = #tpu.dot_dimension_numbers<[1], [0], [0], [1], [0, 0, 1, 1], [], []>} : vector<4x32xf32>, vector<32x128xf32>, vector<4x128xf32> -> vector<4x128xf32>
    %239 = arith.addf %236, %238 : vector<4x128xf32>
    %c0_108 = arith.constant 0 : index
    %c0_109 = arith.constant 0 : index
    %240 = vector.load %arg3[%c0_108, %c0_109] : memref<1x128xf32, #tpu.memory_space<vmem>>, vector<1x128xf32>
    %241 = vector.broadcast %240 : vector<1x128xf32> to vector<4x128xf32>
    %242 = arith.addf %239, %241 : vector<4x128xf32>
    %243 = arith.negf %242 : vector<4x128xf32>
    %244 = math.exp %243 : vector<4x128xf32>
    %cst_110 = arith.constant 1.000000e+00 : f32
    %245 = vector.broadcast %cst_110 : f32 to vector<4x128xf32>
    %246 = arith.addf %245, %244 : vector<4x128xf32>
    %247 = arith.divf %245, %246 : vector<4x128xf32>
    %248 = vector.extract_strided_slice %247 {offsets = [0, 0], sizes = [4, 32], strides = [1, 1]} : vector<4x128xf32> to vector<4x32xf32>
    %249 = vector.extract_strided_slice %247 {offsets = [0, 32], sizes = [4, 32], strides = [1, 1]} : vector<4x128xf32> to vector<4x32xf32>
    %250 = vector.extract_strided_slice %247 {offsets = [0, 96], sizes = [4, 32], strides = [1, 1]} : vector<4x128xf32> to vector<4x32xf32>
    %251 = vector.extract_strided_slice %242 {offsets = [0, 64], sizes = [4, 32], strides = [1, 1]} : vector<4x128xf32> to vector<4x32xf32>
    %252 = math.tanh %251 : vector<4x32xf32>
    %253 = arith.mulf %249, %141 : vector<4x32xf32>
    %254 = arith.mulf %248, %252 : vector<4x32xf32>
    %255 = arith.addf %253, %254 : vector<4x32xf32>
    %256 = math.tanh %255 : vector<4x32xf32>
    %257 = arith.mulf %250, %256 : vector<4x32xf32>
    %c0_111 = arith.constant 0 : index
    %c0_112 = arith.constant 0 : index
    %258 = vector.load %arg4[%c0_111, %c0_112] : memref<32x128xf32, #tpu.memory_space<vmem>>, vector<32x128xf32>
    %cst_113 = arith.constant dense<0.000000e+00> : vector<4x128xf32>
    %259 = tpu.matmul %257, %258, %cst_113 {dimension_numbers = #tpu.dot_dimension_numbers<[1], [0], [0], [1], [0, 0, 1, 1], [], []>} : vector<4x32xf32>, vector<32x128xf32>, vector<4x128xf32> -> vector<4x128xf32>
    %c0_114 = arith.constant 0 : index
    %c0_115 = arith.constant 0 : index
    %260 = vector.load %arg5[%c0_114, %c0_115] : memref<32x128xf32, #tpu.memory_space<vmem>>, vector<32x128xf32>
    %cst_116 = arith.constant dense<0.000000e+00> : vector<4x128xf32>
    %261 = tpu.matmul %166, %260, %cst_116 {dimension_numbers = #tpu.dot_dimension_numbers<[1], [0], [0], [1], [0, 0, 1, 1], [], []>} : vector<4x32xf32>, vector<32x128xf32>, vector<4x128xf32> -> vector<4x128xf32>
    %262 = arith.addf %259, %261 : vector<4x128xf32>
    %c0_117 = arith.constant 0 : index
    %c0_118 = arith.constant 0 : index
    %263 = vector.load %arg6[%c0_117, %c0_118] : memref<1x128xf32, #tpu.memory_space<vmem>>, vector<1x128xf32>
    %264 = vector.broadcast %263 : vector<1x128xf32> to vector<4x128xf32>
    %265 = arith.addf %262, %264 : vector<4x128xf32>
    %266 = arith.negf %265 : vector<4x128xf32>
    %267 = math.exp %266 : vector<4x128xf32>
    %cst_119 = arith.constant 1.000000e+00 : f32
    %268 = vector.broadcast %cst_119 : f32 to vector<4x128xf32>
    %269 = arith.addf %268, %267 : vector<4x128xf32>
    %270 = arith.divf %268, %269 : vector<4x128xf32>
    %271 = vector.extract_strided_slice %270 {offsets = [0, 0], sizes = [4, 32], strides = [1, 1]} : vector<4x128xf32> to vector<4x32xf32>
    %272 = vector.extract_strided_slice %270 {offsets = [0, 32], sizes = [4, 32], strides = [1, 1]} : vector<4x128xf32> to vector<4x32xf32>
    %273 = vector.extract_strided_slice %270 {offsets = [0, 96], sizes = [4, 32], strides = [1, 1]} : vector<4x128xf32> to vector<4x32xf32>
    %274 = vector.extract_strided_slice %265 {offsets = [0, 64], sizes = [4, 32], strides = [1, 1]} : vector<4x128xf32> to vector<4x32xf32>
    %275 = math.tanh %274 : vector<4x32xf32>
    %276 = arith.mulf %272, %164 : vector<4x32xf32>
    %277 = arith.mulf %271, %275 : vector<4x32xf32>
    %278 = arith.addf %276, %277 : vector<4x32xf32>
    %279 = math.tanh %278 : vector<4x32xf32>
    %280 = arith.mulf %273, %279 : vector<4x32xf32>
    %c0_120 = arith.constant 0 : index
    %c0_121 = arith.constant 0 : index
    %281 = vector.load %arg7[%c0_120, %c0_121] : memref<32x128xf32, #tpu.memory_space<vmem>>, vector<32x128xf32>
    %cst_122 = arith.constant dense<0.000000e+00> : vector<4x128xf32>
    %282 = tpu.matmul %280, %281, %cst_122 {dimension_numbers = #tpu.dot_dimension_numbers<[1], [0], [0], [1], [0, 0, 1, 1], [], []>} : vector<4x32xf32>, vector<32x128xf32>, vector<4x128xf32> -> vector<4x128xf32>
    %c0_123 = arith.constant 0 : index
    %c0_124 = arith.constant 0 : index
    %283 = vector.load %arg8[%c0_123, %c0_124] : memref<32x128xf32, #tpu.memory_space<vmem>>, vector<32x128xf32>
    %cst_125 = arith.constant dense<0.000000e+00> : vector<4x128xf32>
    %284 = tpu.matmul %189, %283, %cst_125 {dimension_numbers = #tpu.dot_dimension_numbers<[1], [0], [0], [1], [0, 0, 1, 1], [], []>} : vector<4x32xf32>, vector<32x128xf32>, vector<4x128xf32> -> vector<4x128xf32>
    %285 = arith.addf %282, %284 : vector<4x128xf32>
    %c0_126 = arith.constant 0 : index
    %c0_127 = arith.constant 0 : index
    %286 = vector.load %arg9[%c0_126, %c0_127] : memref<1x128xf32, #tpu.memory_space<vmem>>, vector<1x128xf32>
    %287 = vector.broadcast %286 : vector<1x128xf32> to vector<4x128xf32>
    %288 = arith.addf %285, %287 : vector<4x128xf32>
    %289 = arith.negf %288 : vector<4x128xf32>
    %290 = math.exp %289 : vector<4x128xf32>
    %cst_128 = arith.constant 1.000000e+00 : f32
    %291 = vector.broadcast %cst_128 : f32 to vector<4x128xf32>
    %292 = arith.addf %291, %290 : vector<4x128xf32>
    %293 = arith.divf %291, %292 : vector<4x128xf32>
    %294 = vector.extract_strided_slice %293 {offsets = [0, 0], sizes = [4, 32], strides = [1, 1]} : vector<4x128xf32> to vector<4x32xf32>
    %295 = vector.extract_strided_slice %293 {offsets = [0, 32], sizes = [4, 32], strides = [1, 1]} : vector<4x128xf32> to vector<4x32xf32>
    %296 = vector.extract_strided_slice %293 {offsets = [0, 96], sizes = [4, 32], strides = [1, 1]} : vector<4x128xf32> to vector<4x32xf32>
    %297 = vector.extract_strided_slice %288 {offsets = [0, 64], sizes = [4, 32], strides = [1, 1]} : vector<4x128xf32> to vector<4x32xf32>
    %298 = math.tanh %297 : vector<4x32xf32>
    %299 = arith.mulf %295, %187 : vector<4x32xf32>
    %300 = arith.mulf %294, %298 : vector<4x32xf32>
    %301 = arith.addf %299, %300 : vector<4x32xf32>
    %302 = math.tanh %301 : vector<4x32xf32>
    %303 = arith.mulf %296, %302 : vector<4x32xf32>
    %c2_129 = arith.constant 2 : index
    %c0_130 = arith.constant 0 : index
    %c0_131 = arith.constant 0 : index
    %304 = vector.load %arg10[%c2_129, %c0_130, %c0_131] : memref<8x32x32xf32, #tpu.memory_space<vmem>>, vector<1x32x32xf32>
    %305 = vector.shape_cast %304 : vector<1x32x32xf32> to vector<32x32xf32>
    %cst_132 = arith.constant dense<0.000000e+00> : vector<4x32xf32>
    %306 = tpu.matmul %303, %305, %cst_132 {dimension_numbers = #tpu.dot_dimension_numbers<[1], [0], [0], [1], [0, 0, 1, 1], [], []>} : vector<4x32xf32>, vector<32x32xf32>, vector<4x32xf32> -> vector<4x32xf32>
    %c2_133 = arith.constant 2 : index
    %c0_134 = arith.constant 0 : index
    %c0_135 = arith.constant 0 : index
    %307 = vector.load %arg11[%c2_133, %c0_134, %c0_135] : memref<8x1x32xf32, #tpu.memory_space<vmem>>, vector<1x1x32xf32>
    %308 = vector.shape_cast %307 : vector<1x1x32xf32> to vector<1x32xf32>
    %309 = vector.broadcast %308 : vector<1x32xf32> to vector<4x32xf32>
    %310 = arith.addf %306, %309 : vector<4x32xf32>
    %cst_136 = arith.constant dense<0xFF800000> : vector<4xf32>
    %311 = vector.multi_reduction <maximumf>, %310, %cst_136 [1] : vector<4x32xf32> to vector<4xf32>
    %312 = vector.shape_cast %311 : vector<4xf32> to vector<4x1xf32>
    %313 = vector.broadcast %312 : vector<4x1xf32> to vector<4x32xf32>
    %314 = arith.subf %310, %313 : vector<4x32xf32>
    %315 = math.exp %314 : vector<4x32xf32>
    %cst_137 = arith.constant dense<0.000000e+00> : vector<4xf32>
    %316 = vector.multi_reduction <add>, %315, %cst_137 [1] : vector<4x32xf32> to vector<4xf32>
    %317 = vector.shape_cast %316 : vector<4xf32> to vector<4x1xf32>
    %318 = tpu.reciprocal %317 {approx = true} : vector<4x1xf32> -> vector<4x1xf32>
    %319 = vector.broadcast %318 : vector<4x1xf32> to vector<4x32xf32>
    %320 = arith.mulf %315, %319 : vector<4x32xf32>
    %321 = arith.mulf %320, %234 : vector<4x32xf32>
    %c0_138 = arith.constant 0 : index
    %c64_139 = arith.constant 64 : index
    %322 = vector.load %arg26[%c0_138, %c64_139] : memref<4x256xf32, #tpu.memory_space<vmem>>, vector<4x32xf32>
    tpu.vector_store %arg26[%c0_138, %c64_139], %321 {strides = array<i32>} : memref<4x256xf32, #tpu.memory_space<vmem>>, vector<4x32xf32>,
    %c0_140 = arith.constant 0 : index
    %c0_141 = arith.constant 0 : index
    %323 = vector.load %arg12[%c0_140, %c0_141] : memref<32x128xf32, #tpu.memory_space<vmem>>, vector<32x128xf32>
    %cst_142 = arith.constant dense<0.000000e+00> : vector<4x128xf32>
    %324 = tpu.matmul %321, %323, %cst_142 {dimension_numbers = #tpu.dot_dimension_numbers<[1], [0], [0], [1], [0, 0, 1, 1], [], []>} : vector<4x32xf32>, vector<32x128xf32>, vector<4x128xf32> -> vector<4x128xf32>
    %c0_143 = arith.constant 0 : index
    %c0_144 = arith.constant 0 : index
    %325 = vector.load %arg13[%c0_143, %c0_144] : memref<32x128xf32, #tpu.memory_space<vmem>>, vector<32x128xf32>
    %cst_145 = arith.constant dense<0.000000e+00> : vector<4x128xf32>
    %326 = tpu.matmul %231, %325, %cst_145 {dimension_numbers = #tpu.dot_dimension_numbers<[1], [0], [0], [1], [0, 0, 1, 1], [], []>} : vector<4x32xf32>, vector<32x128xf32>, vector<4x128xf32> -> vector<4x128xf32>
    %327 = arith.addf %324, %326 : vector<4x128xf32>
    %c0_146 = arith.constant 0 : index
    %c0_147 = arith.constant 0 : index
    %328 = vector.load %arg14[%c0_146, %c0_147] : memref<1x128xf32, #tpu.memory_space<vmem>>, vector<1x128xf32>
    %329 = vector.broadcast %328 : vector<1x128xf32> to vector<4x128xf32>
    %330 = arith.addf %327, %329 : vector<4x128xf32>
    %331 = arith.negf %330 : vector<4x128xf32>
    %332 = math.exp %331 : vector<4x128xf32>
    %cst_148 = arith.constant 1.000000e+00 : f32
    %333 = vector.broadcast %cst_148 : f32 to vector<4x128xf32>
    %334 = arith.addf %333, %332 : vector<4x128xf32>
    %335 = arith.divf %333, %334 : vector<4x128xf32>
    %336 = vector.extract_strided_slice %335 {offsets = [0, 0], sizes = [4, 32], strides = [1, 1]} : vector<4x128xf32> to vector<4x32xf32>
    %337 = vector.extract_strided_slice %335 {offsets = [0, 32], sizes = [4, 32], strides = [1, 1]} : vector<4x128xf32> to vector<4x32xf32>
    %338 = vector.extract_strided_slice %335 {offsets = [0, 96], sizes = [4, 32], strides = [1, 1]} : vector<4x128xf32> to vector<4x32xf32>
    %339 = vector.extract_strided_slice %330 {offsets = [0, 64], sizes = [4, 32], strides = [1, 1]} : vector<4x128xf32> to vector<4x32xf32>
    %340 = math.tanh %339 : vector<4x32xf32>
    %341 = arith.mulf %337, %229 : vector<4x32xf32>
    %342 = arith.mulf %336, %340 : vector<4x32xf32>
    %343 = arith.addf %341, %342 : vector<4x32xf32>
    %344 = math.tanh %343 : vector<4x32xf32>
    %345 = arith.mulf %338, %344 : vector<4x32xf32>
    %c0_149 = arith.constant 0 : index
    %c128 = arith.constant 128 : index
    %346 = vector.load %arg28[%c0_149, %c128] : memref<4x512xf32, #tpu.memory_space<vmem>>, vector<4x32xf32>
    tpu.vector_store %arg28[%c0_149, %c128], %345 {strides = array<i32>} : memref<4x512xf32, #tpu.memory_space<vmem>>, vector<4x32xf32>,
    %c3 = arith.constant 3 : index
    %c0_150 = arith.constant 0 : index
    %c0_151 = arith.constant 0 : index
    %347 = vector.load %arg0[%c3, %c0_150, %c0_151] : memref<8x4x32xf32, #tpu.memory_space<vmem>>, vector<1x4x32xf32>
    %348 = vector.shape_cast %347 : vector<1x4x32xf32> to vector<4x32xf32>
    %c0_152 = arith.constant 0 : index
    %c0_153 = arith.constant 0 : index
    %349 = vector.load %arg1[%c0_152, %c0_153] : memref<32x128xf32, #tpu.memory_space<vmem>>, vector<32x128xf32>
    %cst_154 = arith.constant dense<0.000000e+00> : vector<4x128xf32>
    %350 = tpu.matmul %348, %349, %cst_154 {dimension_numbers = #tpu.dot_dimension_numbers<[1], [0], [0], [1], [0, 0, 1, 1], [], []>} : vector<4x32xf32>, vector<32x128xf32>, vector<4x128xf32> -> vector<4x128xf32>
    %c0_155 = arith.constant 0 : index
    %c0_156 = arith.constant 0 : index
    %351 = vector.load %arg2[%c0_155, %c0_156] : memref<32x128xf32, #tpu.memory_space<vmem>>, vector<32x128xf32>
    %cst_157 = arith.constant dense<0.000000e+00> : vector<4x128xf32>
    %352 = tpu.matmul %257, %351, %cst_157 {dimension_numbers = #tpu.dot_dimension_numbers<[1], [0], [0], [1], [0, 0, 1, 1], [], []>} : vector<4x32xf32>, vector<32x128xf32>, vector<4x128xf32> -> vector<4x128xf32>
    %353 = arith.addf %350, %352 : vector<4x128xf32>
    %c0_158 = arith.constant 0 : index
    %c0_159 = arith.constant 0 : index
    %354 = vector.load %arg3[%c0_158, %c0_159] : memref<1x128xf32, #tpu.memory_space<vmem>>, vector<1x128xf32>
    %355 = vector.broadcast %354 : vector<1x128xf32> to vector<4x128xf32>
    %356 = arith.addf %353, %355 : vector<4x128xf32>
    %357 = arith.negf %356 : vector<4x128xf32>
    %358 = math.exp %357 : vector<4x128xf32>
    %cst_160 = arith.constant 1.000000e+00 : f32
    %359 = vector.broadcast %cst_160 : f32 to vector<4x128xf32>
    %360 = arith.addf %359, %358 : vector<4x128xf32>
    %361 = arith.divf %359, %360 : vector<4x128xf32>
    %362 = vector.extract_strided_slice %361 {offsets = [0, 0], sizes = [4, 32], strides = [1, 1]} : vector<4x128xf32> to vector<4x32xf32>
    %363 = vector.extract_strided_slice %361 {offsets = [0, 32], sizes = [4, 32], strides = [1, 1]} : vector<4x128xf32> to vector<4x32xf32>
    %364 = vector.extract_strided_slice %361 {offsets = [0, 96], sizes = [4, 32], strides = [1, 1]} : vector<4x128xf32> to vector<4x32xf32>
    %365 = vector.extract_strided_slice %356 {offsets = [0, 64], sizes = [4, 32], strides = [1, 1]} : vector<4x128xf32> to vector<4x32xf32>
    %366 = math.tanh %365 : vector<4x32xf32>
    %367 = arith.mulf %363, %255 : vector<4x32xf32>
    %368 = arith.mulf %362, %366 : vector<4x32xf32>
    %369 = arith.addf %367, %368 : vector<4x32xf32>
    %370 = math.tanh %369 : vector<4x32xf32>
    %371 = arith.mulf %364, %370 : vector<4x32xf32>
    %c0_161 = arith.constant 0 : index
    %c0_162 = arith.constant 0 : index
    %372 = vector.load %arg4[%c0_161, %c0_162] : memref<32x128xf32, #tpu.memory_space<vmem>>, vector<32x128xf32>
    %cst_163 = arith.constant dense<0.000000e+00> : vector<4x128xf32>
    %373 = tpu.matmul %371, %372, %cst_163 {dimension_numbers = #tpu.dot_dimension_numbers<[1], [0], [0], [1], [0, 0, 1, 1], [], []>} : vector<4x32xf32>, vector<32x128xf32>, vector<4x128xf32> -> vector<4x128xf32>
    %c0_164 = arith.constant 0 : index
    %c0_165 = arith.constant 0 : index
    %374 = vector.load %arg5[%c0_164, %c0_165] : memref<32x128xf32, #tpu.memory_space<vmem>>, vector<32x128xf32>
    %cst_166 = arith.constant dense<0.000000e+00> : vector<4x128xf32>
    %375 = tpu.matmul %280, %374, %cst_166 {dimension_numbers = #tpu.dot_dimension_numbers<[1], [0], [0], [1], [0, 0, 1, 1], [], []>} : vector<4x32xf32>, vector<32x128xf32>, vector<4x128xf32> -> vector<4x128xf32>
    %376 = arith.addf %373, %375 : vector<4x128xf32>
    %c0_167 = arith.constant 0 : index
    %c0_168 = arith.constant 0 : index
    %377 = vector.load %arg6[%c0_167, %c0_168] : memref<1x128xf32, #tpu.memory_space<vmem>>, vector<1x128xf32>
    %378 = vector.broadcast %377 : vector<1x128xf32> to vector<4x128xf32>
    %379 = arith.addf %376, %378 : vector<4x128xf32>
    %380 = arith.negf %379 : vector<4x128xf32>
    %381 = math.exp %380 : vector<4x128xf32>
    %cst_169 = arith.constant 1.000000e+00 : f32
    %382 = vector.broadcast %cst_169 : f32 to vector<4x128xf32>
    %383 = arith.addf %382, %381 : vector<4x128xf32>
    %384 = arith.divf %382, %383 : vector<4x128xf32>
    %385 = vector.extract_strided_slice %384 {offsets = [0, 0], sizes = [4, 32], strides = [1, 1]} : vector<4x128xf32> to vector<4x32xf32>
    %386 = vector.extract_strided_slice %384 {offsets = [0, 32], sizes = [4, 32], strides = [1, 1]} : vector<4x128xf32> to vector<4x32xf32>
    %387 = vector.extract_strided_slice %384 {offsets = [0, 96], sizes = [4, 32], strides = [1, 1]} : vector<4x128xf32> to vector<4x32xf32>
    %388 = vector.extract_strided_slice %379 {offsets = [0, 64], sizes = [4, 32], strides = [1, 1]} : vector<4x128xf32> to vector<4x32xf32>
    %389 = math.tanh %388 : vector<4x32xf32>
    %390 = arith.mulf %386, %278 : vector<4x32xf32>
    %391 = arith.mulf %385, %389 : vector<4x32xf32>
    %392 = arith.addf %390, %391 : vector<4x32xf32>
    %393 = math.tanh %392 : vector<4x32xf32>
    %394 = arith.mulf %387, %393 : vector<4x32xf32>
    %c0_170 = arith.constant 0 : index
    %c0_171 = arith.constant 0 : index
    %395 = vector.load %arg7[%c0_170, %c0_171] : memref<32x128xf32, #tpu.memory_space<vmem>>, vector<32x128xf32>
    %cst_172 = arith.constant dense<0.000000e+00> : vector<4x128xf32>
    %396 = tpu.matmul %394, %395, %cst_172 {dimension_numbers = #tpu.dot_dimension_numbers<[1], [0], [0], [1], [0, 0, 1, 1], [], []>} : vector<4x32xf32>, vector<32x128xf32>, vector<4x128xf32> -> vector<4x128xf32>
    %c0_173 = arith.constant 0 : index
    %c0_174 = arith.constant 0 : index
    %397 = vector.load %arg8[%c0_173, %c0_174] : memref<32x128xf32, #tpu.memory_space<vmem>>, vector<32x128xf32>
    %cst_175 = arith.constant dense<0.000000e+00> : vector<4x128xf32>
    %398 = tpu.matmul %303, %397, %cst_175 {dimension_numbers = #tpu.dot_dimension_numbers<[1], [0], [0], [1], [0, 0, 1, 1], [], []>} : vector<4x32xf32>, vector<32x128xf32>, vector<4x128xf32> -> vector<4x128xf32>
    %399 = arith.addf %396, %398 : vector<4x128xf32>
    %c0_176 = arith.constant 0 : index
    %c0_177 = arith.constant 0 : index
    %400 = vector.load %arg9[%c0_176, %c0_177] : memref<1x128xf32, #tpu.memory_space<vmem>>, vector<1x128xf32>
    %401 = vector.broadcast %400 : vector<1x128xf32> to vector<4x128xf32>
    %402 = arith.addf %399, %401 : vector<4x128xf32>
    %403 = arith.negf %402 : vector<4x128xf32>
    %404 = math.exp %403 : vector<4x128xf32>
    %cst_178 = arith.constant 1.000000e+00 : f32
    %405 = vector.broadcast %cst_178 : f32 to vector<4x128xf32>
    %406 = arith.addf %405, %404 : vector<4x128xf32>
    %407 = arith.divf %405, %406 : vector<4x128xf32>
    %408 = vector.extract_strided_slice %407 {offsets = [0, 0], sizes = [4, 32], strides = [1, 1]} : vector<4x128xf32> to vector<4x32xf32>
    %409 = vector.extract_strided_slice %407 {offsets = [0, 32], sizes = [4, 32], strides = [1, 1]} : vector<4x128xf32> to vector<4x32xf32>
    %410 = vector.extract_strided_slice %407 {offsets = [0, 96], sizes = [4, 32], strides = [1, 1]} : vector<4x128xf32> to vector<4x32xf32>
    %411 = vector.extract_strided_slice %402 {offsets = [0, 64], sizes = [4, 32], strides = [1, 1]} : vector<4x128xf32> to vector<4x32xf32>
    %412 = math.tanh %411 : vector<4x32xf32>
    %413 = arith.mulf %409, %301 : vector<4x32xf32>
    %414 = arith.mulf %408, %412 : vector<4x32xf32>
    %415 = arith.addf %413, %414 : vector<4x32xf32>
    %416 = math.tanh %415 : vector<4x32xf32>
    %417 = arith.mulf %410, %416 : vector<4x32xf32>
    %c3_179 = arith.constant 3 : index
    %c0_180 = arith.constant 0 : index
    %c0_181 = arith.constant 0 : index
    %418 = vector.load %arg10[%c3_179, %c0_180, %c0_181] : memref<8x32x32xf32, #tpu.memory_space<vmem>>, vector<1x32x32xf32>
    %419 = vector.shape_cast %418 : vector<1x32x32xf32> to vector<32x32xf32>
    %cst_182 = arith.constant dense<0.000000e+00> : vector<4x32xf32>
    %420 = tpu.matmul %417, %419, %cst_182 {dimension_numbers = #tpu.dot_dimension_numbers<[1], [0], [0], [1], [0, 0, 1, 1], [], []>} : vector<4x32xf32>, vector<32x32xf32>, vector<4x32xf32> -> vector<4x32xf32>
    %c3_183 = arith.constant 3 : index
    %c0_184 = arith.constant 0 : index
    %c0_185 = arith.constant 0 : index
    %421 = vector.load %arg11[%c3_183, %c0_184, %c0_185] : memref<8x1x32xf32, #tpu.memory_space<vmem>>, vector<1x1x32xf32>
    %422 = vector.shape_cast %421 : vector<1x1x32xf32> to vector<1x32xf32>
    %423 = vector.broadcast %422 : vector<1x32xf32> to vector<4x32xf32>
    %424 = arith.addf %420, %423 : vector<4x32xf32>
    %cst_186 = arith.constant dense<0xFF800000> : vector<4xf32>
    %425 = vector.multi_reduction <maximumf>, %424, %cst_186 [1] : vector<4x32xf32> to vector<4xf32>
    %426 = vector.shape_cast %425 : vector<4xf32> to vector<4x1xf32>
    %427 = vector.broadcast %426 : vector<4x1xf32> to vector<4x32xf32>
    %428 = arith.subf %424, %427 : vector<4x32xf32>
    %429 = math.exp %428 : vector<4x32xf32>
    %cst_187 = arith.constant dense<0.000000e+00> : vector<4xf32>
    %430 = vector.multi_reduction <add>, %429, %cst_187 [1] : vector<4x32xf32> to vector<4xf32>
    %431 = vector.shape_cast %430 : vector<4xf32> to vector<4x1xf32>
    %432 = tpu.reciprocal %431 {approx = true} : vector<4x1xf32> -> vector<4x1xf32>
    %433 = vector.broadcast %432 : vector<4x1xf32> to vector<4x32xf32>
    %434 = arith.mulf %429, %433 : vector<4x32xf32>
    %435 = arith.mulf %434, %348 : vector<4x32xf32>
    %c0_188 = arith.constant 0 : index
    %c96 = arith.constant 96 : index
    %436 = vector.load %arg26[%c0_188, %c96] : memref<4x256xf32, #tpu.memory_space<vmem>>, vector<4x32xf32>
    tpu.vector_store %arg26[%c0_188, %c96], %435 {strides = array<i32>} : memref<4x256xf32, #tpu.memory_space<vmem>>, vector<4x32xf32>,
    %c0_189 = arith.constant 0 : index
    %c0_190 = arith.constant 0 : index
    %437 = vector.load %arg12[%c0_189, %c0_190] : memref<32x128xf32, #tpu.memory_space<vmem>>, vector<32x128xf32>
    %cst_191 = arith.constant dense<0.000000e+00> : vector<4x128xf32>
    %438 = tpu.matmul %435, %437, %cst_191 {dimension_numbers = #tpu.dot_dimension_numbers<[1], [0], [0], [1], [0, 0, 1, 1], [], []>} : vector<4x32xf32>, vector<32x128xf32>, vector<4x128xf32> -> vector<4x128xf32>
    %c0_192 = arith.constant 0 : index
    %c0_193 = arith.constant 0 : index
    %439 = vector.load %arg13[%c0_192, %c0_193] : memref<32x128xf32, #tpu.memory_space<vmem>>, vector<32x128xf32>
    %cst_194 = arith.constant dense<0.000000e+00> : vector<4x128xf32>
    %440 = tpu.matmul %345, %439, %cst_194 {dimension_numbers = #tpu.dot_dimension_numbers<[1], [0], [0], [1], [0, 0, 1, 1], [], []>} : vector<4x32xf32>, vector<32x128xf32>, vector<4x128xf32> -> vector<4x128xf32>
    %441 = arith.addf %438, %440 : vector<4x128xf32>
    %c0_195 = arith.constant 0 : index
    %c0_196 = arith.constant 0 : index
    %442 = vector.load %arg14[%c0_195, %c0_196] : memref<1x128xf32, #tpu.memory_space<vmem>>, vector<1x128xf32>
    %443 = vector.broadcast %442 : vector<1x128xf32> to vector<4x128xf32>
    %444 = arith.addf %441, %443 : vector<4x128xf32>
    %445 = arith.negf %444 : vector<4x128xf32>
    %446 = math.exp %445 : vector<4x128xf32>
    %cst_197 = arith.constant 1.000000e+00 : f32
    %447 = vector.broadcast %cst_197 : f32 to vector<4x128xf32>
    %448 = arith.addf %447, %446 : vector<4x128xf32>
    %449 = arith.divf %447, %448 : vector<4x128xf32>
    %450 = vector.extract_strided_slice %449 {offsets = [0, 0], sizes = [4, 32], strides = [1, 1]} : vector<4x128xf32> to vector<4x32xf32>
    %451 = vector.extract_strided_slice %449 {offsets = [0, 32], sizes = [4, 32], strides = [1, 1]} : vector<4x128xf32> to vector<4x32xf32>
    %452 = vector.extract_strided_slice %449 {offsets = [0, 96], sizes = [4, 32], strides = [1, 1]} : vector<4x128xf32> to vector<4x32xf32>
    %453 = vector.extract_strided_slice %444 {offsets = [0, 64], sizes = [4, 32], strides = [1, 1]} : vector<4x128xf32> to vector<4x32xf32>
    %454 = math.tanh %453 : vector<4x32xf32>
    %455 = arith.mulf %451, %343 : vector<4x32xf32>
    %456 = arith.mulf %450, %454 : vector<4x32xf32>
    %457 = arith.addf %455, %456 : vector<4x32xf32>
    %458 = math.tanh %457 : vector<4x32xf32>
    %459 = arith.mulf %452, %458 : vector<4x32xf32>
    %c0_198 = arith.constant 0 : index
    %c192 = arith.constant 192 : index
    %460 = vector.load %arg28[%c0_198, %c192] : memref<4x512xf32, #tpu.memory_space<vmem>>, vector<4x32xf32>
    tpu.vector_store %arg28[%c0_198, %c192], %459 {strides = array<i32>} : memref<4x512xf32, #tpu.memory_space<vmem>>, vector<4x32xf32>,
    %c4 = arith.constant 4 : index
    %c0_199 = arith.constant 0 : index
    %c0_200 = arith.constant 0 : index
    %461 = vector.load %arg0[%c4, %c0_199, %c0_200] : memref<8x4x32xf32, #tpu.memory_space<vmem>>, vector<1x4x32xf32>
    %462 = vector.shape_cast %461 : vector<1x4x32xf32> to vector<4x32xf32>
    %c0_201 = arith.constant 0 : index
    %c0_202 = arith.constant 0 : index
    %463 = vector.load %arg1[%c0_201, %c0_202] : memref<32x128xf32, #tpu.memory_space<vmem>>, vector<32x128xf32>
    %cst_203 = arith.constant dense<0.000000e+00> : vector<4x128xf32>
    %464 = tpu.matmul %462, %463, %cst_203 {dimension_numbers = #tpu.dot_dimension_numbers<[1], [0], [0], [1], [0, 0, 1, 1], [], []>} : vector<4x32xf32>, vector<32x128xf32>, vector<4x128xf32> -> vector<4x128xf32>
    %c0_204 = arith.constant 0 : index
    %c0_205 = arith.constant 0 : index
    %465 = vector.load %arg2[%c0_204, %c0_205] : memref<32x128xf32, #tpu.memory_space<vmem>>, vector<32x128xf32>
    %cst_206 = arith.constant dense<0.000000e+00> : vector<4x128xf32>
    %466 = tpu.matmul %371, %465, %cst_206 {dimension_numbers = #tpu.dot_dimension_numbers<[1], [0], [0], [1], [0, 0, 1, 1], [], []>} : vector<4x32xf32>, vector<32x128xf32>, vector<4x128xf32> -> vector<4x128xf32>
    %467 = arith.addf %464, %466 : vector<4x128xf32>
    %c0_207 = arith.constant 0 : index
    %c0_208 = arith.constant 0 : index
    %468 = vector.load %arg3[%c0_207, %c0_208] : memref<1x128xf32, #tpu.memory_space<vmem>>, vector<1x128xf32>
    %469 = vector.broadcast %468 : vector<1x128xf32> to vector<4x128xf32>
    %470 = arith.addf %467, %469 : vector<4x128xf32>
    %471 = arith.negf %470 : vector<4x128xf32>
    %472 = math.exp %471 : vector<4x128xf32>
    %cst_209 = arith.constant 1.000000e+00 : f32
    %473 = vector.broadcast %cst_209 : f32 to vector<4x128xf32>
    %474 = arith.addf %473, %472 : vector<4x128xf32>
    %475 = arith.divf %473, %474 : vector<4x128xf32>
    %476 = vector.extract_strided_slice %475 {offsets = [0, 0], sizes = [4, 32], strides = [1, 1]} : vector<4x128xf32> to vector<4x32xf32>
    %477 = vector.extract_strided_slice %475 {offsets = [0, 32], sizes = [4, 32], strides = [1, 1]} : vector<4x128xf32> to vector<4x32xf32>
    %478 = vector.extract_strided_slice %475 {offsets = [0, 96], sizes = [4, 32], strides = [1, 1]} : vector<4x128xf32> to vector<4x32xf32>
    %479 = vector.extract_strided_slice %470 {offsets = [0, 64], sizes = [4, 32], strides = [1, 1]} : vector<4x128xf32> to vector<4x32xf32>
    %480 = math.tanh %479 : vector<4x32xf32>
    %481 = arith.mulf %477, %369 : vector<4x32xf32>
    %482 = arith.mulf %476, %480 : vector<4x32xf32>
    %483 = arith.addf %481, %482 : vector<4x32xf32>
    %484 = math.tanh %483 : vector<4x32xf32>
    %485 = arith.mulf %478, %484 : vector<4x32xf32>
    %c0_210 = arith.constant 0 : index
    %c0_211 = arith.constant 0 : index
    %486 = vector.load %arg4[%c0_210, %c0_211] : memref<32x128xf32, #tpu.memory_space<vmem>>, vector<32x128xf32>
    %cst_212 = arith.constant dense<0.000000e+00> : vector<4x128xf32>
    %487 = tpu.matmul %485, %486, %cst_212 {dimension_numbers = #tpu.dot_dimension_numbers<[1], [0], [0], [1], [0, 0, 1, 1], [], []>} : vector<4x32xf32>, vector<32x128xf32>, vector<4x128xf32> -> vector<4x128xf32>
    %c0_213 = arith.constant 0 : index
    %c0_214 = arith.constant 0 : index
    %488 = vector.load %arg5[%c0_213, %c0_214] : memref<32x128xf32, #tpu.memory_space<vmem>>, vector<32x128xf32>
    %cst_215 = arith.constant dense<0.000000e+00> : vector<4x128xf32>
    %489 = tpu.matmul %394, %488, %cst_215 {dimension_numbers = #tpu.dot_dimension_numbers<[1], [0], [0], [1], [0, 0, 1, 1], [], []>} : vector<4x32xf32>, vector<32x128xf32>, vector<4x128xf32> -> vector<4x128xf32>
    %490 = arith.addf %487, %489 : vector<4x128xf32>
    %c0_216 = arith.constant 0 : index
    %c0_217 = arith.constant 0 : index
    %491 = vector.load %arg6[%c0_216, %c0_217] : memref<1x128xf32, #tpu.memory_space<vmem>>, vector<1x128xf32>
    %492 = vector.broadcast %491 : vector<1x128xf32> to vector<4x128xf32>
    %493 = arith.addf %490, %492 : vector<4x128xf32>
    %494 = arith.negf %493 : vector<4x128xf32>
    %495 = math.exp %494 : vector<4x128xf32>
    %cst_218 = arith.constant 1.000000e+00 : f32
    %496 = vector.broadcast %cst_218 : f32 to vector<4x128xf32>
    %497 = arith.addf %496, %495 : vector<4x128xf32>
    %498 = arith.divf %496, %497 : vector<4x128xf32>
    %499 = vector.extract_strided_slice %498 {offsets = [0, 0], sizes = [4, 32], strides = [1, 1]} : vector<4x128xf32> to vector<4x32xf32>
    %500 = vector.extract_strided_slice %498 {offsets = [0, 32], sizes = [4, 32], strides = [1, 1]} : vector<4x128xf32> to vector<4x32xf32>
    %501 = vector.extract_strided_slice %498 {offsets = [0, 96], sizes = [4, 32], strides = [1, 1]} : vector<4x128xf32> to vector<4x32xf32>
    %502 = vector.extract_strided_slice %493 {offsets = [0, 64], sizes = [4, 32], strides = [1, 1]} : vector<4x128xf32> to vector<4x32xf32>
    %503 = math.tanh %502 : vector<4x32xf32>
    %504 = arith.mulf %500, %392 : vector<4x32xf32>
    %505 = arith.mulf %499, %503 : vector<4x32xf32>
    %506 = arith.addf %504, %505 : vector<4x32xf32>
    %507 = math.tanh %506 : vector<4x32xf32>
    %508 = arith.mulf %501, %507 : vector<4x32xf32>
    %c0_219 = arith.constant 0 : index
    %c0_220 = arith.constant 0 : index
    %509 = vector.load %arg7[%c0_219, %c0_220] : memref<32x128xf32, #tpu.memory_space<vmem>>, vector<32x128xf32>
    %cst_221 = arith.constant dense<0.000000e+00> : vector<4x128xf32>
    %510 = tpu.matmul %508, %509, %cst_221 {dimension_numbers = #tpu.dot_dimension_numbers<[1], [0], [0], [1], [0, 0, 1, 1], [], []>} : vector<4x32xf32>, vector<32x128xf32>, vector<4x128xf32> -> vector<4x128xf32>
    %c0_222 = arith.constant 0 : index
    %c0_223 = arith.constant 0 : index
    %511 = vector.load %arg8[%c0_222, %c0_223] : memref<32x128xf32, #tpu.memory_space<vmem>>, vector<32x128xf32>
    %cst_224 = arith.constant dense<0.000000e+00> : vector<4x128xf32>
    %512 = tpu.matmul %417, %511, %cst_224 {dimension_numbers = #tpu.dot_dimension_numbers<[1], [0], [0], [1], [0, 0, 1, 1], [], []>} : vector<4x32xf32>, vector<32x128xf32>, vector<4x128xf32> -> vector<4x128xf32>
    %513 = arith.addf %510, %512 : vector<4x128xf32>
    %c0_225 = arith.constant 0 : index
    %c0_226 = arith.constant 0 : index
    %514 = vector.load %arg9[%c0_225, %c0_226] : memref<1x128xf32, #tpu.memory_space<vmem>>, vector<1x128xf32>
    %515 = vector.broadcast %514 : vector<1x128xf32> to vector<4x128xf32>
    %516 = arith.addf %513, %515 : vector<4x128xf32>
    %517 = arith.negf %516 : vector<4x128xf32>
    %518 = math.exp %517 : vector<4x128xf32>
    %cst_227 = arith.constant 1.000000e+00 : f32
    %519 = vector.broadcast %cst_227 : f32 to vector<4x128xf32>
    %520 = arith.addf %519, %518 : vector<4x128xf32>
    %521 = arith.divf %519, %520 : vector<4x128xf32>
    %522 = vector.extract_strided_slice %521 {offsets = [0, 0], sizes = [4, 32], strides = [1, 1]} : vector<4x128xf32> to vector<4x32xf32>
    %523 = vector.extract_strided_slice %521 {offsets = [0, 32], sizes = [4, 32], strides = [1, 1]} : vector<4x128xf32> to vector<4x32xf32>
    %524 = vector.extract_strided_slice %521 {offsets = [0, 96], sizes = [4, 32], strides = [1, 1]} : vector<4x128xf32> to vector<4x32xf32>
    %525 = vector.extract_strided_slice %516 {offsets = [0, 64], sizes = [4, 32], strides = [1, 1]} : vector<4x128xf32> to vector<4x32xf32>
    %526 = math.tanh %525 : vector<4x32xf32>
    %527 = arith.mulf %523, %415 : vector<4x32xf32>
    %528 = arith.mulf %522, %526 : vector<4x32xf32>
    %529 = arith.addf %527, %528 : vector<4x32xf32>
    %530 = math.tanh %529 : vector<4x32xf32>
    %531 = arith.mulf %524, %530 : vector<4x32xf32>
    %c4_228 = arith.constant 4 : index
    %c0_229 = arith.constant 0 : index
    %c0_230 = arith.constant 0 : index
    %532 = vector.load %arg10[%c4_228, %c0_229, %c0_230] : memref<8x32x32xf32, #tpu.memory_space<vmem>>, vector<1x32x32xf32>
    %533 = vector.shape_cast %532 : vector<1x32x32xf32> to vector<32x32xf32>
    %cst_231 = arith.constant dense<0.000000e+00> : vector<4x32xf32>
    %534 = tpu.matmul %531, %533, %cst_231 {dimension_numbers = #tpu.dot_dimension_numbers<[1], [0], [0], [1], [0, 0, 1, 1], [], []>} : vector<4x32xf32>, vector<32x32xf32>, vector<4x32xf32> -> vector<4x32xf32>
    %c4_232 = arith.constant 4 : index
    %c0_233 = arith.constant 0 : index
    %c0_234 = arith.constant 0 : index
    %535 = vector.load %arg11[%c4_232, %c0_233, %c0_234] : memref<8x1x32xf32, #tpu.memory_space<vmem>>, vector<1x1x32xf32>
    %536 = vector.shape_cast %535 : vector<1x1x32xf32> to vector<1x32xf32>
    %537 = vector.broadcast %536 : vector<1x32xf32> to vector<4x32xf32>
    %538 = arith.addf %534, %537 : vector<4x32xf32>
    %cst_235 = arith.constant dense<0xFF800000> : vector<4xf32>
    %539 = vector.multi_reduction <maximumf>, %538, %cst_235 [1] : vector<4x32xf32> to vector<4xf32>
    %540 = vector.shape_cast %539 : vector<4xf32> to vector<4x1xf32>
    %541 = vector.broadcast %540 : vector<4x1xf32> to vector<4x32xf32>
    %542 = arith.subf %538, %541 : vector<4x32xf32>
    %543 = math.exp %542 : vector<4x32xf32>
    %cst_236 = arith.constant dense<0.000000e+00> : vector<4xf32>
    %544 = vector.multi_reduction <add>, %543, %cst_236 [1] : vector<4x32xf32> to vector<4xf32>
    %545 = vector.shape_cast %544 : vector<4xf32> to vector<4x1xf32>
    %546 = tpu.reciprocal %545 {approx = true} : vector<4x1xf32> -> vector<4x1xf32>
    %547 = vector.broadcast %546 : vector<4x1xf32> to vector<4x32xf32>
    %548 = arith.mulf %543, %547 : vector<4x32xf32>
    %549 = arith.mulf %548, %462 : vector<4x32xf32>
    %c0_237 = arith.constant 0 : index
    %c128_238 = arith.constant 128 : index
    %550 = vector.load %arg26[%c0_237, %c128_238] : memref<4x256xf32, #tpu.memory_space<vmem>>, vector<4x32xf32>
    tpu.vector_store %arg26[%c0_237, %c128_238], %549 {strides = array<i32>} : memref<4x256xf32, #tpu.memory_space<vmem>>, vector<4x32xf32>,
    %c0_239 = arith.constant 0 : index
    %c0_240 = arith.constant 0 : index
    %551 = vector.load %arg12[%c0_239, %c0_240] : memref<32x128xf32, #tpu.memory_space<vmem>>, vector<32x128xf32>
    %cst_241 = arith.constant dense<0.000000e+00> : vector<4x128xf32>
    %552 = tpu.matmul %549, %551, %cst_241 {dimension_numbers = #tpu.dot_dimension_numbers<[1], [0], [0], [1], [0, 0, 1, 1], [], []>} : vector<4x32xf32>, vector<32x128xf32>, vector<4x128xf32> -> vector<4x128xf32>
    %c0_242 = arith.constant 0 : index
    %c0_243 = arith.constant 0 : index
    %553 = vector.load %arg13[%c0_242, %c0_243] : memref<32x128xf32, #tpu.memory_space<vmem>>, vector<32x128xf32>
    %cst_244 = arith.constant dense<0.000000e+00> : vector<4x128xf32>
    %554 = tpu.matmul %459, %553, %cst_244 {dimension_numbers = #tpu.dot_dimension_numbers<[1], [0], [0], [1], [0, 0, 1, 1], [], []>} : vector<4x32xf32>, vector<32x128xf32>, vector<4x128xf32> -> vector<4x128xf32>
    %555 = arith.addf %552, %554 : vector<4x128xf32>
    %c0_245 = arith.constant 0 : index
    %c0_246 = arith.constant 0 : index
    %556 = vector.load %arg14[%c0_245, %c0_246] : memref<1x128xf32, #tpu.memory_space<vmem>>, vector<1x128xf32>
    %557 = vector.broadcast %556 : vector<1x128xf32> to vector<4x128xf32>
    %558 = arith.addf %555, %557 : vector<4x128xf32>
    %559 = arith.negf %558 : vector<4x128xf32>
    %560 = math.exp %559 : vector<4x128xf32>
    %cst_247 = arith.constant 1.000000e+00 : f32
    %561 = vector.broadcast %cst_247 : f32 to vector<4x128xf32>
    %562 = arith.addf %561, %560 : vector<4x128xf32>
    %563 = arith.divf %561, %562 : vector<4x128xf32>
    %564 = vector.extract_strided_slice %563 {offsets = [0, 0], sizes = [4, 32], strides = [1, 1]} : vector<4x128xf32> to vector<4x32xf32>
    %565 = vector.extract_strided_slice %563 {offsets = [0, 32], sizes = [4, 32], strides = [1, 1]} : vector<4x128xf32> to vector<4x32xf32>
    %566 = vector.extract_strided_slice %563 {offsets = [0, 96], sizes = [4, 32], strides = [1, 1]} : vector<4x128xf32> to vector<4x32xf32>
    %567 = vector.extract_strided_slice %558 {offsets = [0, 64], sizes = [4, 32], strides = [1, 1]} : vector<4x128xf32> to vector<4x32xf32>
    %568 = math.tanh %567 : vector<4x32xf32>
    %569 = arith.mulf %565, %457 : vector<4x32xf32>
    %570 = arith.mulf %564, %568 : vector<4x32xf32>
    %571 = arith.addf %569, %570 : vector<4x32xf32>
    %572 = math.tanh %571 : vector<4x32xf32>
    %573 = arith.mulf %566, %572 : vector<4x32xf32>
    %c0_248 = arith.constant 0 : index
    %c256 = arith.constant 256 : index
    %574 = vector.load %arg28[%c0_248, %c256] : memref<4x512xf32, #tpu.memory_space<vmem>>, vector<4x32xf32>
    tpu.vector_store %arg28[%c0_248, %c256], %573 {strides = array<i32>} : memref<4x512xf32, #tpu.memory_space<vmem>>, vector<4x32xf32>,
    %c5 = arith.constant 5 : index
    %c0_249 = arith.constant 0 : index
    %c0_250 = arith.constant 0 : index
    %575 = vector.load %arg0[%c5, %c0_249, %c0_250] : memref<8x4x32xf32, #tpu.memory_space<vmem>>, vector<1x4x32xf32>
    %576 = vector.shape_cast %575 : vector<1x4x32xf32> to vector<4x32xf32>
    %c0_251 = arith.constant 0 : index
    %c0_252 = arith.constant 0 : index
    %577 = vector.load %arg1[%c0_251, %c0_252] : memref<32x128xf32, #tpu.memory_space<vmem>>, vector<32x128xf32>
    %cst_253 = arith.constant dense<0.000000e+00> : vector<4x128xf32>
    %578 = tpu.matmul %576, %577, %cst_253 {dimension_numbers = #tpu.dot_dimension_numbers<[1], [0], [0], [1], [0, 0, 1, 1], [], []>} : vector<4x32xf32>, vector<32x128xf32>, vector<4x128xf32> -> vector<4x128xf32>
    %c0_254 = arith.constant 0 : index
    %c0_255 = arith.constant 0 : index
    %579 = vector.load %arg2[%c0_254, %c0_255] : memref<32x128xf32, #tpu.memory_space<vmem>>, vector<32x128xf32>
    %cst_256 = arith.constant dense<0.000000e+00> : vector<4x128xf32>
    %580 = tpu.matmul %485, %579, %cst_256 {dimension_numbers = #tpu.dot_dimension_numbers<[1], [0], [0], [1], [0, 0, 1, 1], [], []>} : vector<4x32xf32>, vector<32x128xf32>, vector<4x128xf32> -> vector<4x128xf32>
    %581 = arith.addf %578, %580 : vector<4x128xf32>
    %c0_257 = arith.constant 0 : index
    %c0_258 = arith.constant 0 : index
    %582 = vector.load %arg3[%c0_257, %c0_258] : memref<1x128xf32, #tpu.memory_space<vmem>>, vector<1x128xf32>
    %583 = vector.broadcast %582 : vector<1x128xf32> to vector<4x128xf32>
    %584 = arith.addf %581, %583 : vector<4x128xf32>
    %585 = arith.negf %584 : vector<4x128xf32>
    %586 = math.exp %585 : vector<4x128xf32>
    %cst_259 = arith.constant 1.000000e+00 : f32
    %587 = vector.broadcast %cst_259 : f32 to vector<4x128xf32>
    %588 = arith.addf %587, %586 : vector<4x128xf32>
    %589 = arith.divf %587, %588 : vector<4x128xf32>
    %590 = vector.extract_strided_slice %589 {offsets = [0, 0], sizes = [4, 32], strides = [1, 1]} : vector<4x128xf32> to vector<4x32xf32>
    %591 = vector.extract_strided_slice %589 {offsets = [0, 32], sizes = [4, 32], strides = [1, 1]} : vector<4x128xf32> to vector<4x32xf32>
    %592 = vector.extract_strided_slice %589 {offsets = [0, 96], sizes = [4, 32], strides = [1, 1]} : vector<4x128xf32> to vector<4x32xf32>
    %593 = vector.extract_strided_slice %584 {offsets = [0, 64], sizes = [4, 32], strides = [1, 1]} : vector<4x128xf32> to vector<4x32xf32>
    %594 = math.tanh %593 : vector<4x32xf32>
    %595 = arith.mulf %591, %483 : vector<4x32xf32>
    %596 = arith.mulf %590, %594 : vector<4x32xf32>
    %597 = arith.addf %595, %596 : vector<4x32xf32>
    %598 = math.tanh %597 : vector<4x32xf32>
    %599 = arith.mulf %592, %598 : vector<4x32xf32>
    %c0_260 = arith.constant 0 : index
    %c0_261 = arith.constant 0 : index
    %600 = vector.load %arg4[%c0_260, %c0_261] : memref<32x128xf32, #tpu.memory_space<vmem>>, vector<32x128xf32>
    %cst_262 = arith.constant dense<0.000000e+00> : vector<4x128xf32>
    %601 = tpu.matmul %599, %600, %cst_262 {dimension_numbers = #tpu.dot_dimension_numbers<[1], [0], [0], [1], [0, 0, 1, 1], [], []>} : vector<4x32xf32>, vector<32x128xf32>, vector<4x128xf32> -> vector<4x128xf32>
    %c0_263 = arith.constant 0 : index
    %c0_264 = arith.constant 0 : index
    %602 = vector.load %arg5[%c0_263, %c0_264] : memref<32x128xf32, #tpu.memory_space<vmem>>, vector<32x128xf32>
    %cst_265 = arith.constant dense<0.000000e+00> : vector<4x128xf32>
    %603 = tpu.matmul %508, %602, %cst_265 {dimension_numbers = #tpu.dot_dimension_numbers<[1], [0], [0], [1], [0, 0, 1, 1], [], []>} : vector<4x32xf32>, vector<32x128xf32>, vector<4x128xf32> -> vector<4x128xf32>
    %604 = arith.addf %601, %603 : vector<4x128xf32>
    %c0_266 = arith.constant 0 : index
    %c0_267 = arith.constant 0 : index
    %605 = vector.load %arg6[%c0_266, %c0_267] : memref<1x128xf32, #tpu.memory_space<vmem>>, vector<1x128xf32>
    %606 = vector.broadcast %605 : vector<1x128xf32> to vector<4x128xf32>
    %607 = arith.addf %604, %606 : vector<4x128xf32>
    %608 = arith.negf %607 : vector<4x128xf32>
    %609 = math.exp %608 : vector<4x128xf32>
    %cst_268 = arith.constant 1.000000e+00 : f32
    %610 = vector.broadcast %cst_268 : f32 to vector<4x128xf32>
    %611 = arith.addf %610, %609 : vector<4x128xf32>
    %612 = arith.divf %610, %611 : vector<4x128xf32>
    %613 = vector.extract_strided_slice %612 {offsets = [0, 0], sizes = [4, 32], strides = [1, 1]} : vector<4x128xf32> to vector<4x32xf32>
    %614 = vector.extract_strided_slice %612 {offsets = [0, 32], sizes = [4, 32], strides = [1, 1]} : vector<4x128xf32> to vector<4x32xf32>
    %615 = vector.extract_strided_slice %612 {offsets = [0, 96], sizes = [4, 32], strides = [1, 1]} : vector<4x128xf32> to vector<4x32xf32>
    %616 = vector.extract_strided_slice %607 {offsets = [0, 64], sizes = [4, 32], strides = [1, 1]} : vector<4x128xf32> to vector<4x32xf32>
    %617 = math.tanh %616 : vector<4x32xf32>
    %618 = arith.mulf %614, %506 : vector<4x32xf32>
    %619 = arith.mulf %613, %617 : vector<4x32xf32>
    %620 = arith.addf %618, %619 : vector<4x32xf32>
    %621 = math.tanh %620 : vector<4x32xf32>
    %622 = arith.mulf %615, %621 : vector<4x32xf32>
    %c0_269 = arith.constant 0 : index
    %c0_270 = arith.constant 0 : index
    %623 = vector.load %arg7[%c0_269, %c0_270] : memref<32x128xf32, #tpu.memory_space<vmem>>, vector<32x128xf32>
    %cst_271 = arith.constant dense<0.000000e+00> : vector<4x128xf32>
    %624 = tpu.matmul %622, %623, %cst_271 {dimension_numbers = #tpu.dot_dimension_numbers<[1], [0], [0], [1], [0, 0, 1, 1], [], []>} : vector<4x32xf32>, vector<32x128xf32>, vector<4x128xf32> -> vector<4x128xf32>
    %c0_272 = arith.constant 0 : index
    %c0_273 = arith.constant 0 : index
    %625 = vector.load %arg8[%c0_272, %c0_273] : memref<32x128xf32, #tpu.memory_space<vmem>>, vector<32x128xf32>
    %cst_274 = arith.constant dense<0.000000e+00> : vector<4x128xf32>
    %626 = tpu.matmul %531, %625, %cst_274 {dimension_numbers = #tpu.dot_dimension_numbers<[1], [0], [0], [1], [0, 0, 1, 1], [], []>} : vector<4x32xf32>, vector<32x128xf32>, vector<4x128xf32> -> vector<4x128xf32>
    %627 = arith.addf %624, %626 : vector<4x128xf32>
    %c0_275 = arith.constant 0 : index
    %c0_276 = arith.constant 0 : index
    %628 = vector.load %arg9[%c0_275, %c0_276] : memref<1x128xf32, #tpu.memory_space<vmem>>, vector<1x128xf32>
    %629 = vector.broadcast %628 : vector<1x128xf32> to vector<4x128xf32>
    %630 = arith.addf %627, %629 : vector<4x128xf32>
    %631 = arith.negf %630 : vector<4x128xf32>
    %632 = math.exp %631 : vector<4x128xf32>
    %cst_277 = arith.constant 1.000000e+00 : f32
    %633 = vector.broadcast %cst_277 : f32 to vector<4x128xf32>
    %634 = arith.addf %633, %632 : vector<4x128xf32>
    %635 = arith.divf %633, %634 : vector<4x128xf32>
    %636 = vector.extract_strided_slice %635 {offsets = [0, 0], sizes = [4, 32], strides = [1, 1]} : vector<4x128xf32> to vector<4x32xf32>
    %637 = vector.extract_strided_slice %635 {offsets = [0, 32], sizes = [4, 32], strides = [1, 1]} : vector<4x128xf32> to vector<4x32xf32>
    %638 = vector.extract_strided_slice %635 {offsets = [0, 96], sizes = [4, 32], strides = [1, 1]} : vector<4x128xf32> to vector<4x32xf32>
    %639 = vector.extract_strided_slice %630 {offsets = [0, 64], sizes = [4, 32], strides = [1, 1]} : vector<4x128xf32> to vector<4x32xf32>
    %640 = math.tanh %639 : vector<4x32xf32>
    %641 = arith.mulf %637, %529 : vector<4x32xf32>
    %642 = arith.mulf %636, %640 : vector<4x32xf32>
    %643 = arith.addf %641, %642 : vector<4x32xf32>
    %644 = math.tanh %643 : vector<4x32xf32>
    %645 = arith.mulf %638, %644 : vector<4x32xf32>
    %c5_278 = arith.constant 5 : index
    %c0_279 = arith.constant 0 : index
    %c0_280 = arith.constant 0 : index
    %646 = vector.load %arg10[%c5_278, %c0_279, %c0_280] : memref<8x32x32xf32, #tpu.memory_space<vmem>>, vector<1x32x32xf32>
    %647 = vector.shape_cast %646 : vector<1x32x32xf32> to vector<32x32xf32>
    %cst_281 = arith.constant dense<0.000000e+00> : vector<4x32xf32>
    %648 = tpu.matmul %645, %647, %cst_281 {dimension_numbers = #tpu.dot_dimension_numbers<[1], [0], [0], [1], [0, 0, 1, 1], [], []>} : vector<4x32xf32>, vector<32x32xf32>, vector<4x32xf32> -> vector<4x32xf32>
    %c5_282 = arith.constant 5 : index
    %c0_283 = arith.constant 0 : index
    %c0_284 = arith.constant 0 : index
    %649 = vector.load %arg11[%c5_282, %c0_283, %c0_284] : memref<8x1x32xf32, #tpu.memory_space<vmem>>, vector<1x1x32xf32>
    %650 = vector.shape_cast %649 : vector<1x1x32xf32> to vector<1x32xf32>
    %651 = vector.broadcast %650 : vector<1x32xf32> to vector<4x32xf32>
    %652 = arith.addf %648, %651 : vector<4x32xf32>
    %cst_285 = arith.constant dense<0xFF800000> : vector<4xf32>
    %653 = vector.multi_reduction <maximumf>, %652, %cst_285 [1] : vector<4x32xf32> to vector<4xf32>
    %654 = vector.shape_cast %653 : vector<4xf32> to vector<4x1xf32>
    %655 = vector.broadcast %654 : vector<4x1xf32> to vector<4x32xf32>
    %656 = arith.subf %652, %655 : vector<4x32xf32>
    %657 = math.exp %656 : vector<4x32xf32>
    %cst_286 = arith.constant dense<0.000000e+00> : vector<4xf32>
    %658 = vector.multi_reduction <add>, %657, %cst_286 [1] : vector<4x32xf32> to vector<4xf32>
    %659 = vector.shape_cast %658 : vector<4xf32> to vector<4x1xf32>
    %660 = tpu.reciprocal %659 {approx = true} : vector<4x1xf32> -> vector<4x1xf32>
    %661 = vector.broadcast %660 : vector<4x1xf32> to vector<4x32xf32>
    %662 = arith.mulf %657, %661 : vector<4x32xf32>
    %663 = arith.mulf %662, %576 : vector<4x32xf32>
    %c0_287 = arith.constant 0 : index
    %c160 = arith.constant 160 : index
    %664 = vector.load %arg26[%c0_287, %c160] : memref<4x256xf32, #tpu.memory_space<vmem>>, vector<4x32xf32>
    tpu.vector_store %arg26[%c0_287, %c160], %663 {strides = array<i32>} : memref<4x256xf32, #tpu.memory_space<vmem>>, vector<4x32xf32>,
    %c0_288 = arith.constant 0 : index
    %c0_289 = arith.constant 0 : index
    %665 = vector.load %arg12[%c0_288, %c0_289] : memref<32x128xf32, #tpu.memory_space<vmem>>, vector<32x128xf32>
    %cst_290 = arith.constant dense<0.000000e+00> : vector<4x128xf32>
    %666 = tpu.matmul %663, %665, %cst_290 {dimension_numbers = #tpu.dot_dimension_numbers<[1], [0], [0], [1], [0, 0, 1, 1], [], []>} : vector<4x32xf32>, vector<32x128xf32>, vector<4x128xf32> -> vector<4x128xf32>
    %c0_291 = arith.constant 0 : index
    %c0_292 = arith.constant 0 : index
    %667 = vector.load %arg13[%c0_291, %c0_292] : memref<32x128xf32, #tpu.memory_space<vmem>>, vector<32x128xf32>
    %cst_293 = arith.constant dense<0.000000e+00> : vector<4x128xf32>
    %668 = tpu.matmul %573, %667, %cst_293 {dimension_numbers = #tpu.dot_dimension_numbers<[1], [0], [0], [1], [0, 0, 1, 1], [], []>} : vector<4x32xf32>, vector<32x128xf32>, vector<4x128xf32> -> vector<4x128xf32>
    %669 = arith.addf %666, %668 : vector<4x128xf32>
    %c0_294 = arith.constant 0 : index
    %c0_295 = arith.constant 0 : index
    %670 = vector.load %arg14[%c0_294, %c0_295] : memref<1x128xf32, #tpu.memory_space<vmem>>, vector<1x128xf32>
    %671 = vector.broadcast %670 : vector<1x128xf32> to vector<4x128xf32>
    %672 = arith.addf %669, %671 : vector<4x128xf32>
    %673 = arith.negf %672 : vector<4x128xf32>
    %674 = math.exp %673 : vector<4x128xf32>
    %cst_296 = arith.constant 1.000000e+00 : f32
    %675 = vector.broadcast %cst_296 : f32 to vector<4x128xf32>
    %676 = arith.addf %675, %674 : vector<4x128xf32>
    %677 = arith.divf %675, %676 : vector<4x128xf32>
    %678 = vector.extract_strided_slice %677 {offsets = [0, 0], sizes = [4, 32], strides = [1, 1]} : vector<4x128xf32> to vector<4x32xf32>
    %679 = vector.extract_strided_slice %677 {offsets = [0, 32], sizes = [4, 32], strides = [1, 1]} : vector<4x128xf32> to vector<4x32xf32>
    %680 = vector.extract_strided_slice %677 {offsets = [0, 96], sizes = [4, 32], strides = [1, 1]} : vector<4x128xf32> to vector<4x32xf32>
    %681 = vector.extract_strided_slice %672 {offsets = [0, 64], sizes = [4, 32], strides = [1, 1]} : vector<4x128xf32> to vector<4x32xf32>
    %682 = math.tanh %681 : vector<4x32xf32>
    %683 = arith.mulf %679, %571 : vector<4x32xf32>
    %684 = arith.mulf %678, %682 : vector<4x32xf32>
    %685 = arith.addf %683, %684 : vector<4x32xf32>
    %686 = math.tanh %685 : vector<4x32xf32>
    %687 = arith.mulf %680, %686 : vector<4x32xf32>
    %c0_297 = arith.constant 0 : index
    %c320 = arith.constant 320 : index
    %688 = vector.load %arg28[%c0_297, %c320] : memref<4x512xf32, #tpu.memory_space<vmem>>, vector<4x32xf32>
    tpu.vector_store %arg28[%c0_297, %c320], %687 {strides = array<i32>} : memref<4x512xf32, #tpu.memory_space<vmem>>, vector<4x32xf32>,
    %c6 = arith.constant 6 : index
    %c0_298 = arith.constant 0 : index
    %c0_299 = arith.constant 0 : index
    %689 = vector.load %arg0[%c6, %c0_298, %c0_299] : memref<8x4x32xf32, #tpu.memory_space<vmem>>, vector<1x4x32xf32>
    %690 = vector.shape_cast %689 : vector<1x4x32xf32> to vector<4x32xf32>
    %c0_300 = arith.constant 0 : index
    %c0_301 = arith.constant 0 : index
    %691 = vector.load %arg1[%c0_300, %c0_301] : memref<32x128xf32, #tpu.memory_space<vmem>>, vector<32x128xf32>
    %cst_302 = arith.constant dense<0.000000e+00> : vector<4x128xf32>
    %692 = tpu.matmul %690, %691, %cst_302 {dimension_numbers = #tpu.dot_dimension_numbers<[1], [0], [0], [1], [0, 0, 1, 1], [], []>} : vector<4x32xf32>, vector<32x128xf32>, vector<4x128xf32> -> vector<4x128xf32>
    %c0_303 = arith.constant 0 : index
    %c0_304 = arith.constant 0 : index
    %693 = vector.load %arg2[%c0_303, %c0_304] : memref<32x128xf32, #tpu.memory_space<vmem>>, vector<32x128xf32>
    %cst_305 = arith.constant dense<0.000000e+00> : vector<4x128xf32>
    %694 = tpu.matmul %599, %693, %cst_305 {dimension_numbers = #tpu.dot_dimension_numbers<[1], [0], [0], [1], [0, 0, 1, 1], [], []>} : vector<4x32xf32>, vector<32x128xf32>, vector<4x128xf32> -> vector<4x128xf32>
    %695 = arith.addf %692, %694 : vector<4x128xf32>
    %c0_306 = arith.constant 0 : index
    %c0_307 = arith.constant 0 : index
    %696 = vector.load %arg3[%c0_306, %c0_307] : memref<1x128xf32, #tpu.memory_space<vmem>>, vector<1x128xf32>
    %697 = vector.broadcast %696 : vector<1x128xf32> to vector<4x128xf32>
    %698 = arith.addf %695, %697 : vector<4x128xf32>
    %699 = arith.negf %698 : vector<4x128xf32>
    %700 = math.exp %699 : vector<4x128xf32>
    %cst_308 = arith.constant 1.000000e+00 : f32
    %701 = vector.broadcast %cst_308 : f32 to vector<4x128xf32>
    %702 = arith.addf %701, %700 : vector<4x128xf32>
    %703 = arith.divf %701, %702 : vector<4x128xf32>
    %704 = vector.extract_strided_slice %703 {offsets = [0, 0], sizes = [4, 32], strides = [1, 1]} : vector<4x128xf32> to vector<4x32xf32>
    %705 = vector.extract_strided_slice %703 {offsets = [0, 32], sizes = [4, 32], strides = [1, 1]} : vector<4x128xf32> to vector<4x32xf32>
    %706 = vector.extract_strided_slice %703 {offsets = [0, 96], sizes = [4, 32], strides = [1, 1]} : vector<4x128xf32> to vector<4x32xf32>
    %707 = vector.extract_strided_slice %698 {offsets = [0, 64], sizes = [4, 32], strides = [1, 1]} : vector<4x128xf32> to vector<4x32xf32>
    %708 = math.tanh %707 : vector<4x32xf32>
    %709 = arith.mulf %705, %597 : vector<4x32xf32>
    %710 = arith.mulf %704, %708 : vector<4x32xf32>
    %711 = arith.addf %709, %710 : vector<4x32xf32>
    %712 = math.tanh %711 : vector<4x32xf32>
    %713 = arith.mulf %706, %712 : vector<4x32xf32>
    %c0_309 = arith.constant 0 : index
    %c0_310 = arith.constant 0 : index
    %714 = vector.load %arg4[%c0_309, %c0_310] : memref<32x128xf32, #tpu.memory_space<vmem>>, vector<32x128xf32>
    %cst_311 = arith.constant dense<0.000000e+00> : vector<4x128xf32>
    %715 = tpu.matmul %713, %714, %cst_311 {dimension_numbers = #tpu.dot_dimension_numbers<[1], [0], [0], [1], [0, 0, 1, 1], [], []>} : vector<4x32xf32>, vector<32x128xf32>, vector<4x128xf32> -> vector<4x128xf32>
    %c0_312 = arith.constant 0 : index
    %c0_313 = arith.constant 0 : index
    %716 = vector.load %arg5[%c0_312, %c0_313] : memref<32x128xf32, #tpu.memory_space<vmem>>, vector<32x128xf32>
    %cst_314 = arith.constant dense<0.000000e+00> : vector<4x128xf32>
    %717 = tpu.matmul %622, %716, %cst_314 {dimension_numbers = #tpu.dot_dimension_numbers<[1], [0], [0], [1], [0, 0, 1, 1], [], []>} : vector<4x32xf32>, vector<32x128xf32>, vector<4x128xf32> -> vector<4x128xf32>
    %718 = arith.addf %715, %717 : vector<4x128xf32>
    %c0_315 = arith.constant 0 : index
    %c0_316 = arith.constant 0 : index
    %719 = vector.load %arg6[%c0_315, %c0_316] : memref<1x128xf32, #tpu.memory_space<vmem>>, vector<1x128xf32>
    %720 = vector.broadcast %719 : vector<1x128xf32> to vector<4x128xf32>
    %721 = arith.addf %718, %720 : vector<4x128xf32>
    %722 = arith.negf %721 : vector<4x128xf32>
    %723 = math.exp %722 : vector<4x128xf32>
    %cst_317 = arith.constant 1.000000e+00 : f32
    %724 = vector.broadcast %cst_317 : f32 to vector<4x128xf32>
    %725 = arith.addf %724, %723 : vector<4x128xf32>
    %726 = arith.divf %724, %725 : vector<4x128xf32>
    %727 = vector.extract_strided_slice %726 {offsets = [0, 0], sizes = [4, 32], strides = [1, 1]} : vector<4x128xf32> to vector<4x32xf32>
    %728 = vector.extract_strided_slice %726 {offsets = [0, 32], sizes = [4, 32], strides = [1, 1]} : vector<4x128xf32> to vector<4x32xf32>
    %729 = vector.extract_strided_slice %726 {offsets = [0, 96], sizes = [4, 32], strides = [1, 1]} : vector<4x128xf32> to vector<4x32xf32>
    %730 = vector.extract_strided_slice %721 {offsets = [0, 64], sizes = [4, 32], strides = [1, 1]} : vector<4x128xf32> to vector<4x32xf32>
    %731 = math.tanh %730 : vector<4x32xf32>
    %732 = arith.mulf %728, %620 : vector<4x32xf32>
    %733 = arith.mulf %727, %731 : vector<4x32xf32>
    %734 = arith.addf %732, %733 : vector<4x32xf32>
    %735 = math.tanh %734 : vector<4x32xf32>
    %736 = arith.mulf %729, %735 : vector<4x32xf32>
    %c0_318 = arith.constant 0 : index
    %c0_319 = arith.constant 0 : index
    %737 = vector.load %arg7[%c0_318, %c0_319] : memref<32x128xf32, #tpu.memory_space<vmem>>, vector<32x128xf32>
    %cst_320 = arith.constant dense<0.000000e+00> : vector<4x128xf32>
    %738 = tpu.matmul %736, %737, %cst_320 {dimension_numbers = #tpu.dot_dimension_numbers<[1], [0], [0], [1], [0, 0, 1, 1], [], []>} : vector<4x32xf32>, vector<32x128xf32>, vector<4x128xf32> -> vector<4x128xf32>
    %c0_321 = arith.constant 0 : index
    %c0_322 = arith.constant 0 : index
    %739 = vector.load %arg8[%c0_321, %c0_322] : memref<32x128xf32, #tpu.memory_space<vmem>>, vector<32x128xf32>
    %cst_323 = arith.constant dense<0.000000e+00> : vector<4x128xf32>
    %740 = tpu.matmul %645, %739, %cst_323 {dimension_numbers = #tpu.dot_dimension_numbers<[1], [0], [0], [1], [0, 0, 1, 1], [], []>} : vector<4x32xf32>, vector<32x128xf32>, vector<4x128xf32> -> vector<4x128xf32>
    %741 = arith.addf %738, %740 : vector<4x128xf32>
    %c0_324 = arith.constant 0 : index
    %c0_325 = arith.constant 0 : index
    %742 = vector.load %arg9[%c0_324, %c0_325] : memref<1x128xf32, #tpu.memory_space<vmem>>, vector<1x128xf32>
    %743 = vector.broadcast %742 : vector<1x128xf32> to vector<4x128xf32>
    %744 = arith.addf %741, %743 : vector<4x128xf32>
    %745 = arith.negf %744 : vector<4x128xf32>
    %746 = math.exp %745 : vector<4x128xf32>
    %cst_326 = arith.constant 1.000000e+00 : f32
    %747 = vector.broadcast %cst_326 : f32 to vector<4x128xf32>
    %748 = arith.addf %747, %746 : vector<4x128xf32>
    %749 = arith.divf %747, %748 : vector<4x128xf32>
    %750 = vector.extract_strided_slice %749 {offsets = [0, 0], sizes = [4, 32], strides = [1, 1]} : vector<4x128xf32> to vector<4x32xf32>
    %751 = vector.extract_strided_slice %749 {offsets = [0, 32], sizes = [4, 32], strides = [1, 1]} : vector<4x128xf32> to vector<4x32xf32>
    %752 = vector.extract_strided_slice %749 {offsets = [0, 96], sizes = [4, 32], strides = [1, 1]} : vector<4x128xf32> to vector<4x32xf32>
    %753 = vector.extract_strided_slice %744 {offsets = [0, 64], sizes = [4, 32], strides = [1, 1]} : vector<4x128xf32> to vector<4x32xf32>
    %754 = math.tanh %753 : vector<4x32xf32>
    %755 = arith.mulf %751, %643 : vector<4x32xf32>
    %756 = arith.mulf %750, %754 : vector<4x32xf32>
    %757 = arith.addf %755, %756 : vector<4x32xf32>
    %758 = math.tanh %757 : vector<4x32xf32>
    %759 = arith.mulf %752, %758 : vector<4x32xf32>
    %c6_327 = arith.constant 6 : index
    %c0_328 = arith.constant 0 : index
    %c0_329 = arith.constant 0 : index
    %760 = vector.load %arg10[%c6_327, %c0_328, %c0_329] : memref<8x32x32xf32, #tpu.memory_space<vmem>>, vector<1x32x32xf32>
    %761 = vector.shape_cast %760 : vector<1x32x32xf32> to vector<32x32xf32>
    %cst_330 = arith.constant dense<0.000000e+00> : vector<4x32xf32>
    %762 = tpu.matmul %759, %761, %cst_330 {dimension_numbers = #tpu.dot_dimension_numbers<[1], [0], [0], [1], [0, 0, 1, 1], [], []>} : vector<4x32xf32>, vector<32x32xf32>, vector<4x32xf32> -> vector<4x32xf32>
    %c6_331 = arith.constant 6 : index
    %c0_332 = arith.constant 0 : index
    %c0_333 = arith.constant 0 : index
    %763 = vector.load %arg11[%c6_331, %c0_332, %c0_333] : memref<8x1x32xf32, #tpu.memory_space<vmem>>, vector<1x1x32xf32>
    %764 = vector.shape_cast %763 : vector<1x1x32xf32> to vector<1x32xf32>
    %765 = vector.broadcast %764 : vector<1x32xf32> to vector<4x32xf32>
    %766 = arith.addf %762, %765 : vector<4x32xf32>
    %cst_334 = arith.constant dense<0xFF800000> : vector<4xf32>
    %767 = vector.multi_reduction <maximumf>, %766, %cst_334 [1] : vector<4x32xf32> to vector<4xf32>
    %768 = vector.shape_cast %767 : vector<4xf32> to vector<4x1xf32>
    %769 = vector.broadcast %768 : vector<4x1xf32> to vector<4x32xf32>
    %770 = arith.subf %766, %769 : vector<4x32xf32>
    %771 = math.exp %770 : vector<4x32xf32>
    %cst_335 = arith.constant dense<0.000000e+00> : vector<4xf32>
    %772 = vector.multi_reduction <add>, %771, %cst_335 [1] : vector<4x32xf32> to vector<4xf32>
    %773 = vector.shape_cast %772 : vector<4xf32> to vector<4x1xf32>
    %774 = tpu.reciprocal %773 {approx = true} : vector<4x1xf32> -> vector<4x1xf32>
    %775 = vector.broadcast %774 : vector<4x1xf32> to vector<4x32xf32>
    %776 = arith.mulf %771, %775 : vector<4x32xf32>
    %777 = arith.mulf %776, %690 : vector<4x32xf32>
    %c0_336 = arith.constant 0 : index
    %c192_337 = arith.constant 192 : index
    %778 = vector.load %arg26[%c0_336, %c192_337] : memref<4x256xf32, #tpu.memory_space<vmem>>, vector<4x32xf32>
    tpu.vector_store %arg26[%c0_336, %c192_337], %777 {strides = array<i32>} : memref<4x256xf32, #tpu.memory_space<vmem>>, vector<4x32xf32>,
    %c0_338 = arith.constant 0 : index
    %c0_339 = arith.constant 0 : index
    %779 = vector.load %arg12[%c0_338, %c0_339] : memref<32x128xf32, #tpu.memory_space<vmem>>, vector<32x128xf32>
    %cst_340 = arith.constant dense<0.000000e+00> : vector<4x128xf32>
    %780 = tpu.matmul %777, %779, %cst_340 {dimension_numbers = #tpu.dot_dimension_numbers<[1], [0], [0], [1], [0, 0, 1, 1], [], []>} : vector<4x32xf32>, vector<32x128xf32>, vector<4x128xf32> -> vector<4x128xf32>
    %c0_341 = arith.constant 0 : index
    %c0_342 = arith.constant 0 : index
    %781 = vector.load %arg13[%c0_341, %c0_342] : memref<32x128xf32, #tpu.memory_space<vmem>>, vector<32x128xf32>
    %cst_343 = arith.constant dense<0.000000e+00> : vector<4x128xf32>
    %782 = tpu.matmul %687, %781, %cst_343 {dimension_numbers = #tpu.dot_dimension_numbers<[1], [0], [0], [1], [0, 0, 1, 1], [], []>} : vector<4x32xf32>, vector<32x128xf32>, vector<4x128xf32> -> vector<4x128xf32>
    %783 = arith.addf %780, %782 : vector<4x128xf32>
    %c0_344 = arith.constant 0 : index
    %c0_345 = arith.constant 0 : index
    %784 = vector.load %arg14[%c0_344, %c0_345] : memref<1x128xf32, #tpu.memory_space<vmem>>, vector<1x128xf32>
    %785 = vector.broadcast %784 : vector<1x128xf32> to vector<4x128xf32>
    %786 = arith.addf %783, %785 : vector<4x128xf32>
    %787 = arith.negf %786 : vector<4x128xf32>
    %788 = math.exp %787 : vector<4x128xf32>
    %cst_346 = arith.constant 1.000000e+00 : f32
    %789 = vector.broadcast %cst_346 : f32 to vector<4x128xf32>
    %790 = arith.addf %789, %788 : vector<4x128xf32>
    %791 = arith.divf %789, %790 : vector<4x128xf32>
    %792 = vector.extract_strided_slice %791 {offsets = [0, 0], sizes = [4, 32], strides = [1, 1]} : vector<4x128xf32> to vector<4x32xf32>
    %793 = vector.extract_strided_slice %791 {offsets = [0, 32], sizes = [4, 32], strides = [1, 1]} : vector<4x128xf32> to vector<4x32xf32>
    %794 = vector.extract_strided_slice %791 {offsets = [0, 96], sizes = [4, 32], strides = [1, 1]} : vector<4x128xf32> to vector<4x32xf32>
    %795 = vector.extract_strided_slice %786 {offsets = [0, 64], sizes = [4, 32], strides = [1, 1]} : vector<4x128xf32> to vector<4x32xf32>
    %796 = math.tanh %795 : vector<4x32xf32>
    %797 = arith.mulf %793, %685 : vector<4x32xf32>
    %798 = arith.mulf %792, %796 : vector<4x32xf32>
    %799 = arith.addf %797, %798 : vector<4x32xf32>
    %800 = math.tanh %799 : vector<4x32xf32>
    %801 = arith.mulf %794, %800 : vector<4x32xf32>
    %c0_347 = arith.constant 0 : index
    %c384 = arith.constant 384 : index
    %802 = vector.load %arg28[%c0_347, %c384] : memref<4x512xf32, #tpu.memory_space<vmem>>, vector<4x32xf32>
    tpu.vector_store %arg28[%c0_347, %c384], %801 {strides = array<i32>} : memref<4x512xf32, #tpu.memory_space<vmem>>, vector<4x32xf32>,
    %c7 = arith.constant 7 : index
    %c0_348 = arith.constant 0 : index
    %c0_349 = arith.constant 0 : index
    %803 = vector.load %arg0[%c7, %c0_348, %c0_349] : memref<8x4x32xf32, #tpu.memory_space<vmem>>, vector<1x4x32xf32>
    %804 = vector.shape_cast %803 : vector<1x4x32xf32> to vector<4x32xf32>
    %c0_350 = arith.constant 0 : index
    %c0_351 = arith.constant 0 : index
    %805 = vector.load %arg1[%c0_350, %c0_351] : memref<32x128xf32, #tpu.memory_space<vmem>>, vector<32x128xf32>
    %cst_352 = arith.constant dense<0.000000e+00> : vector<4x128xf32>
    %806 = tpu.matmul %804, %805, %cst_352 {dimension_numbers = #tpu.dot_dimension_numbers<[1], [0], [0], [1], [0, 0, 1, 1], [], []>} : vector<4x32xf32>, vector<32x128xf32>, vector<4x128xf32> -> vector<4x128xf32>
    %c0_353 = arith.constant 0 : index
    %c0_354 = arith.constant 0 : index
    %807 = vector.load %arg2[%c0_353, %c0_354] : memref<32x128xf32, #tpu.memory_space<vmem>>, vector<32x128xf32>
    %cst_355 = arith.constant dense<0.000000e+00> : vector<4x128xf32>
    %808 = tpu.matmul %713, %807, %cst_355 {dimension_numbers = #tpu.dot_dimension_numbers<[1], [0], [0], [1], [0, 0, 1, 1], [], []>} : vector<4x32xf32>, vector<32x128xf32>, vector<4x128xf32> -> vector<4x128xf32>
    %809 = arith.addf %806, %808 : vector<4x128xf32>
    %c0_356 = arith.constant 0 : index
    %c0_357 = arith.constant 0 : index
    %810 = vector.load %arg3[%c0_356, %c0_357] : memref<1x128xf32, #tpu.memory_space<vmem>>, vector<1x128xf32>
    %811 = vector.broadcast %810 : vector<1x128xf32> to vector<4x128xf32>
    %812 = arith.addf %809, %811 : vector<4x128xf32>
    %813 = arith.negf %812 : vector<4x128xf32>
    %814 = math.exp %813 : vector<4x128xf32>
    %cst_358 = arith.constant 1.000000e+00 : f32
    %815 = vector.broadcast %cst_358 : f32 to vector<4x128xf32>
    %816 = arith.addf %815, %814 : vector<4x128xf32>
    %817 = arith.divf %815, %816 : vector<4x128xf32>
    %818 = vector.extract_strided_slice %817 {offsets = [0, 0], sizes = [4, 32], strides = [1, 1]} : vector<4x128xf32> to vector<4x32xf32>
    %819 = vector.extract_strided_slice %817 {offsets = [0, 32], sizes = [4, 32], strides = [1, 1]} : vector<4x128xf32> to vector<4x32xf32>
    %820 = vector.extract_strided_slice %817 {offsets = [0, 96], sizes = [4, 32], strides = [1, 1]} : vector<4x128xf32> to vector<4x32xf32>
    %821 = vector.extract_strided_slice %812 {offsets = [0, 64], sizes = [4, 32], strides = [1, 1]} : vector<4x128xf32> to vector<4x32xf32>
    %822 = math.tanh %821 : vector<4x32xf32>
    %823 = arith.mulf %819, %711 : vector<4x32xf32>
    %824 = arith.mulf %818, %822 : vector<4x32xf32>
    %825 = arith.addf %823, %824 : vector<4x32xf32>
    %826 = math.tanh %825 : vector<4x32xf32>
    %827 = arith.mulf %820, %826 : vector<4x32xf32>
    %c0_359 = arith.constant 0 : index
    %c0_360 = arith.constant 0 : index
    %828 = vector.load %arg4[%c0_359, %c0_360] : memref<32x128xf32, #tpu.memory_space<vmem>>, vector<32x128xf32>
    %cst_361 = arith.constant dense<0.000000e+00> : vector<4x128xf32>
    %829 = tpu.matmul %827, %828, %cst_361 {dimension_numbers = #tpu.dot_dimension_numbers<[1], [0], [0], [1], [0, 0, 1, 1], [], []>} : vector<4x32xf32>, vector<32x128xf32>, vector<4x128xf32> -> vector<4x128xf32>
    %c0_362 = arith.constant 0 : index
    %c0_363 = arith.constant 0 : index
    %830 = vector.load %arg5[%c0_362, %c0_363] : memref<32x128xf32, #tpu.memory_space<vmem>>, vector<32x128xf32>
    %cst_364 = arith.constant dense<0.000000e+00> : vector<4x128xf32>
    %831 = tpu.matmul %736, %830, %cst_364 {dimension_numbers = #tpu.dot_dimension_numbers<[1], [0], [0], [1], [0, 0, 1, 1], [], []>} : vector<4x32xf32>, vector<32x128xf32>, vector<4x128xf32> -> vector<4x128xf32>
    %832 = arith.addf %829, %831 : vector<4x128xf32>
    %c0_365 = arith.constant 0 : index
    %c0_366 = arith.constant 0 : index
    %833 = vector.load %arg6[%c0_365, %c0_366] : memref<1x128xf32, #tpu.memory_space<vmem>>, vector<1x128xf32>
    %834 = vector.broadcast %833 : vector<1x128xf32> to vector<4x128xf32>
    %835 = arith.addf %832, %834 : vector<4x128xf32>
    %836 = arith.negf %835 : vector<4x128xf32>
    %837 = math.exp %836 : vector<4x128xf32>
    %cst_367 = arith.constant 1.000000e+00 : f32
    %838 = vector.broadcast %cst_367 : f32 to vector<4x128xf32>
    %839 = arith.addf %838, %837 : vector<4x128xf32>
    %840 = arith.divf %838, %839 : vector<4x128xf32>
    %841 = vector.extract_strided_slice %840 {offsets = [0, 0], sizes = [4, 32], strides = [1, 1]} : vector<4x128xf32> to vector<4x32xf32>
    %842 = vector.extract_strided_slice %840 {offsets = [0, 32], sizes = [4, 32], strides = [1, 1]} : vector<4x128xf32> to vector<4x32xf32>
    %843 = vector.extract_strided_slice %840 {offsets = [0, 96], sizes = [4, 32], strides = [1, 1]} : vector<4x128xf32> to vector<4x32xf32>
    %844 = vector.extract_strided_slice %835 {offsets = [0, 64], sizes = [4, 32], strides = [1, 1]} : vector<4x128xf32> to vector<4x32xf32>
    %845 = math.tanh %844 : vector<4x32xf32>
    %846 = arith.mulf %842, %734 : vector<4x32xf32>
    %847 = arith.mulf %841, %845 : vector<4x32xf32>
    %848 = arith.addf %846, %847 : vector<4x32xf32>
    %849 = math.tanh %848 : vector<4x32xf32>
    %850 = arith.mulf %843, %849 : vector<4x32xf32>
    %c0_368 = arith.constant 0 : index
    %c0_369 = arith.constant 0 : index
    %851 = vector.load %arg7[%c0_368, %c0_369] : memref<32x128xf32, #tpu.memory_space<vmem>>, vector<32x128xf32>
    %cst_370 = arith.constant dense<0.000000e+00> : vector<4x128xf32>
    %852 = tpu.matmul %850, %851, %cst_370 {dimension_numbers = #tpu.dot_dimension_numbers<[1], [0], [0], [1], [0, 0, 1, 1], [], []>} : vector<4x32xf32>, vector<32x128xf32>, vector<4x128xf32> -> vector<4x128xf32>
    %c0_371 = arith.constant 0 : index
    %c0_372 = arith.constant 0 : index
    %853 = vector.load %arg8[%c0_371, %c0_372] : memref<32x128xf32, #tpu.memory_space<vmem>>, vector<32x128xf32>
    %cst_373 = arith.constant dense<0.000000e+00> : vector<4x128xf32>
    %854 = tpu.matmul %759, %853, %cst_373 {dimension_numbers = #tpu.dot_dimension_numbers<[1], [0], [0], [1], [0, 0, 1, 1], [], []>} : vector<4x32xf32>, vector<32x128xf32>, vector<4x128xf32> -> vector<4x128xf32>
    %855 = arith.addf %852, %854 : vector<4x128xf32>
    %c0_374 = arith.constant 0 : index
    %c0_375 = arith.constant 0 : index
    %856 = vector.load %arg9[%c0_374, %c0_375] : memref<1x128xf32, #tpu.memory_space<vmem>>, vector<1x128xf32>
    %857 = vector.broadcast %856 : vector<1x128xf32> to vector<4x128xf32>
    %858 = arith.addf %855, %857 : vector<4x128xf32>
    %859 = arith.negf %858 : vector<4x128xf32>
    %860 = math.exp %859 : vector<4x128xf32>
    %cst_376 = arith.constant 1.000000e+00 : f32
    %861 = vector.broadcast %cst_376 : f32 to vector<4x128xf32>
    %862 = arith.addf %861, %860 : vector<4x128xf32>
    %863 = arith.divf %861, %862 : vector<4x128xf32>
    %864 = vector.extract_strided_slice %863 {offsets = [0, 0], sizes = [4, 32], strides = [1, 1]} : vector<4x128xf32> to vector<4x32xf32>
    %865 = vector.extract_strided_slice %863 {offsets = [0, 32], sizes = [4, 32], strides = [1, 1]} : vector<4x128xf32> to vector<4x32xf32>
    %866 = vector.extract_strided_slice %863 {offsets = [0, 96], sizes = [4, 32], strides = [1, 1]} : vector<4x128xf32> to vector<4x32xf32>
    %867 = vector.extract_strided_slice %858 {offsets = [0, 64], sizes = [4, 32], strides = [1, 1]} : vector<4x128xf32> to vector<4x32xf32>
    %868 = math.tanh %867 : vector<4x32xf32>
    %869 = arith.mulf %865, %757 : vector<4x32xf32>
    %870 = arith.mulf %864, %868 : vector<4x32xf32>
    %871 = arith.addf %869, %870 : vector<4x32xf32>
    %872 = math.tanh %871 : vector<4x32xf32>
    %873 = arith.mulf %866, %872 : vector<4x32xf32>
    %c7_377 = arith.constant 7 : index
    %c0_378 = arith.constant 0 : index
    %c0_379 = arith.constant 0 : index
    %874 = vector.load %arg10[%c7_377, %c0_378, %c0_379] : memref<8x32x32xf32, #tpu.memory_space<vmem>>, vector<1x32x32xf32>
    %875 = vector.shape_cast %874 : vector<1x32x32xf32> to vector<32x32xf32>
    %cst_380 = arith.constant dense<0.000000e+00> : vector<4x32xf32>
    %876 = tpu.matmul %873, %875, %cst_380 {dimension_numbers = #tpu.dot_dimension_numbers<[1], [0], [0], [1], [0, 0, 1, 1], [], []>} : vector<4x32xf32>, vector<32x32xf32>, vector<4x32xf32> -> vector<4x32xf32>
    %c7_381 = arith.constant 7 : index
    %c0_382 = arith.constant 0 : index
    %c0_383 = arith.constant 0 : index
    %877 = vector.load %arg11[%c7_381, %c0_382, %c0_383] : memref<8x1x32xf32, #tpu.memory_space<vmem>>, vector<1x1x32xf32>
    %878 = vector.shape_cast %877 : vector<1x1x32xf32> to vector<1x32xf32>
    %879 = vector.broadcast %878 : vector<1x32xf32> to vector<4x32xf32>
    %880 = arith.addf %876, %879 : vector<4x32xf32>
    %cst_384 = arith.constant dense<0xFF800000> : vector<4xf32>
    %881 = vector.multi_reduction <maximumf>, %880, %cst_384 [1] : vector<4x32xf32> to vector<4xf32>
    %882 = vector.shape_cast %881 : vector<4xf32> to vector<4x1xf32>
    %883 = vector.broadcast %882 : vector<4x1xf32> to vector<4x32xf32>
    %884 = arith.subf %880, %883 : vector<4x32xf32>
    %885 = math.exp %884 : vector<4x32xf32>
    %cst_385 = arith.constant dense<0.000000e+00> : vector<4xf32>
    %886 = vector.multi_reduction <add>, %885, %cst_385 [1] : vector<4x32xf32> to vector<4xf32>
    %887 = vector.shape_cast %886 : vector<4xf32> to vector<4x1xf32>
    %888 = tpu.reciprocal %887 {approx = true} : vector<4x1xf32> -> vector<4x1xf32>
    %889 = vector.broadcast %888 : vector<4x1xf32> to vector<4x32xf32>
    %890 = arith.mulf %885, %889 : vector<4x32xf32>
    %891 = arith.mulf %890, %804 : vector<4x32xf32>
    %c0_386 = arith.constant 0 : index
    %c224 = arith.constant 224 : index
    %892 = vector.load %arg26[%c0_386, %c224] : memref<4x256xf32, #tpu.memory_space<vmem>>, vector<4x32xf32>
    tpu.vector_store %arg26[%c0_386, %c224], %891 {strides = array<i32>} : memref<4x256xf32, #tpu.memory_space<vmem>>, vector<4x32xf32>,
    %c0_387 = arith.constant 0 : index
    %c0_388 = arith.constant 0 : index
    %893 = vector.load %arg12[%c0_387, %c0_388] : memref<32x128xf32, #tpu.memory_space<vmem>>, vector<32x128xf32>
    %cst_389 = arith.constant dense<0.000000e+00> : vector<4x128xf32>
    %894 = tpu.matmul %891, %893, %cst_389 {dimension_numbers = #tpu.dot_dimension_numbers<[1], [0], [0], [1], [0, 0, 1, 1], [], []>} : vector<4x32xf32>, vector<32x128xf32>, vector<4x128xf32> -> vector<4x128xf32>
    %c0_390 = arith.constant 0 : index
    %c0_391 = arith.constant 0 : index
    %895 = vector.load %arg13[%c0_390, %c0_391] : memref<32x128xf32, #tpu.memory_space<vmem>>, vector<32x128xf32>
    %cst_392 = arith.constant dense<0.000000e+00> : vector<4x128xf32>
    %896 = tpu.matmul %801, %895, %cst_392 {dimension_numbers = #tpu.dot_dimension_numbers<[1], [0], [0], [1], [0, 0, 1, 1], [], []>} : vector<4x32xf32>, vector<32x128xf32>, vector<4x128xf32> -> vector<4x128xf32>
    %897 = arith.addf %894, %896 : vector<4x128xf32>
    %c0_393 = arith.constant 0 : index
    %c0_394 = arith.constant 0 : index
    %898 = vector.load %arg14[%c0_393, %c0_394] : memref<1x128xf32, #tpu.memory_space<vmem>>, vector<1x128xf32>
    %899 = vector.broadcast %898 : vector<1x128xf32> to vector<4x128xf32>
    %900 = arith.addf %897, %899 : vector<4x128xf32>
    %901 = arith.negf %900 : vector<4x128xf32>
    %902 = math.exp %901 : vector<4x128xf32>
    %cst_395 = arith.constant 1.000000e+00 : f32
    %903 = vector.broadcast %cst_395 : f32 to vector<4x128xf32>
    %904 = arith.addf %903, %902 : vector<4x128xf32>
    %905 = arith.divf %903, %904 : vector<4x128xf32>
    %906 = vector.extract_strided_slice %905 {offsets = [0, 0], sizes = [4, 32], strides = [1, 1]} : vector<4x128xf32> to vector<4x32xf32>
    %907 = vector.extract_strided_slice %905 {offsets = [0, 32], sizes = [4, 32], strides = [1, 1]} : vector<4x128xf32> to vector<4x32xf32>
    %908 = vector.extract_strided_slice %905 {offsets = [0, 96], sizes = [4, 32], strides = [1, 1]} : vector<4x128xf32> to vector<4x32xf32>
    %909 = vector.extract_strided_slice %900 {offsets = [0, 64], sizes = [4, 32], strides = [1, 1]} : vector<4x128xf32> to vector<4x32xf32>
    %910 = math.tanh %909 : vector<4x32xf32>
    %911 = arith.mulf %907, %799 : vector<4x32xf32>
    %912 = arith.mulf %906, %910 : vector<4x32xf32>
    %913 = arith.addf %911, %912 : vector<4x32xf32>
    %914 = math.tanh %913 : vector<4x32xf32>
    %915 = arith.mulf %908, %914 : vector<4x32xf32>
    %c0_396 = arith.constant 0 : index
    %c448 = arith.constant 448 : index
    %916 = vector.load %arg28[%c0_396, %c448] : memref<4x512xf32, #tpu.memory_space<vmem>>, vector<4x32xf32>
    tpu.vector_store %arg28[%c0_396, %c448], %915 {strides = array<i32>} : memref<4x512xf32, #tpu.memory_space<vmem>>, vector<4x32xf32>,
    %c0_397 = arith.constant 0 : index
    %c0_398 = arith.constant 0 : index
    %917 = vector.load %arg15[%c0_397, %c0_398] : memref<32x128xf32, #tpu.memory_space<vmem>>, vector<32x128xf32>
    %cst_399 = arith.constant dense<0.000000e+00> : vector<4x128xf32>
    %918 = tpu.matmul %891, %917, %cst_399 {dimension_numbers = #tpu.dot_dimension_numbers<[1], [0], [0], [1], [0, 0, 1, 1], [], []>} : vector<4x32xf32>, vector<32x128xf32>, vector<4x128xf32> -> vector<4x128xf32>
    %c0_400 = arith.constant 0 : index
    %c0_401 = arith.constant 0 : index
    %919 = vector.load %arg16[%c0_400, %c0_401] : memref<32x128xf32, #tpu.memory_space<vmem>>, vector<32x128xf32>
    %cst_402 = arith.constant dense<0.000000e+00> : vector<4x128xf32>
    %920 = tpu.matmul %4, %919, %cst_402 {dimension_numbers = #tpu.dot_dimension_numbers<[1], [0], [0], [1], [0, 0, 1, 1], [], []>} : vector<4x32xf32>, vector<32x128xf32>, vector<4x128xf32> -> vector<4x128xf32>
    %921 = arith.addf %918, %920 : vector<4x128xf32>
    %c0_403 = arith.constant 0 : index
    %c0_404 = arith.constant 0 : index
    %922 = vector.load %arg17[%c0_403, %c0_404] : memref<1x128xf32, #tpu.memory_space<vmem>>, vector<1x128xf32>
    %923 = vector.broadcast %922 : vector<1x128xf32> to vector<4x128xf32>
    %924 = arith.addf %921, %923 : vector<4x128xf32>
    %925 = arith.negf %924 : vector<4x128xf32>
    %926 = math.exp %925 : vector<4x128xf32>
    %cst_405 = arith.constant 1.000000e+00 : f32
    %927 = vector.broadcast %cst_405 : f32 to vector<4x128xf32>
    %928 = arith.addf %927, %926 : vector<4x128xf32>
    %929 = arith.divf %927, %928 : vector<4x128xf32>
    %930 = vector.extract_strided_slice %929 {offsets = [0, 0], sizes = [4, 32], strides = [1, 1]} : vector<4x128xf32> to vector<4x32xf32>
    %931 = vector.extract_strided_slice %929 {offsets = [0, 32], sizes = [4, 32], strides = [1, 1]} : vector<4x128xf32> to vector<4x32xf32>
    %932 = vector.extract_strided_slice %929 {offsets = [0, 96], sizes = [4, 32], strides = [1, 1]} : vector<4x128xf32> to vector<4x32xf32>
    %933 = vector.extract_strided_slice %924 {offsets = [0, 64], sizes = [4, 32], strides = [1, 1]} : vector<4x128xf32> to vector<4x32xf32>
    %934 = math.tanh %933 : vector<4x32xf32>
    %935 = arith.mulf %931, %4 : vector<4x32xf32>
    %936 = arith.mulf %930, %934 : vector<4x32xf32>
    %937 = arith.addf %935, %936 : vector<4x32xf32>
    %938 = math.tanh %937 : vector<4x32xf32>
    %939 = arith.mulf %932, %938 : vector<4x32xf32>
    %c0_406 = arith.constant 0 : index
    %c480 = arith.constant 480 : index
    %940 = vector.load %arg28[%c0_406, %c480] : memref<4x512xf32, #tpu.memory_space<vmem>>, vector<4x32xf32>
    tpu.vector_store %arg28[%c0_406, %c480], %939 {strides = array<i32>} : memref<4x512xf32, #tpu.memory_space<vmem>>, vector<4x32xf32>,
    %c0_407 = arith.constant 0 : index
    %c0_408 = arith.constant 0 : index
    %941 = vector.load %arg15[%c0_407, %c0_408] : memref<32x128xf32, #tpu.memory_space<vmem>>, vector<32x128xf32>
    %cst_409 = arith.constant dense<0.000000e+00> : vector<4x128xf32>
    %942 = tpu.matmul %777, %941, %cst_409 {dimension_numbers = #tpu.dot_dimension_numbers<[1], [0], [0], [1], [0, 0, 1, 1], [], []>} : vector<4x32xf32>, vector<32x128xf32>, vector<4x128xf32> -> vector<4x128xf32>
    %c0_410 = arith.constant 0 : index
    %c0_411 = arith.constant 0 : index
    %943 = vector.load %arg16[%c0_410, %c0_411] : memref<32x128xf32, #tpu.memory_space<vmem>>, vector<32x128xf32>
    %cst_412 = arith.constant dense<0.000000e+00> : vector<4x128xf32>
    %944 = tpu.matmul %939, %943, %cst_412 {dimension_numbers = #tpu.dot_dimension_numbers<[1], [0], [0], [1], [0, 0, 1, 1], [], []>} : vector<4x32xf32>, vector<32x128xf32>, vector<4x128xf32> -> vector<4x128xf32>
    %945 = arith.addf %942, %944 : vector<4x128xf32>
    %c0_413 = arith.constant 0 : index
    %c0_414 = arith.constant 0 : index
    %946 = vector.load %arg17[%c0_413, %c0_414] : memref<1x128xf32, #tpu.memory_space<vmem>>, vector<1x128xf32>
    %947 = vector.broadcast %946 : vector<1x128xf32> to vector<4x128xf32>
    %948 = arith.addf %945, %947 : vector<4x128xf32>
    %949 = arith.negf %948 : vector<4x128xf32>
    %950 = math.exp %949 : vector<4x128xf32>
    %cst_415 = arith.constant 1.000000e+00 : f32
    %951 = vector.broadcast %cst_415 : f32 to vector<4x128xf32>
    %952 = arith.addf %951, %950 : vector<4x128xf32>
    %953 = arith.divf %951, %952 : vector<4x128xf32>
    %954 = vector.extract_strided_slice %953 {offsets = [0, 0], sizes = [4, 32], strides = [1, 1]} : vector<4x128xf32> to vector<4x32xf32>
    %955 = vector.extract_strided_slice %953 {offsets = [0, 32], sizes = [4, 32], strides = [1, 1]} : vector<4x128xf32> to vector<4x32xf32>
    %956 = vector.extract_strided_slice %953 {offsets = [0, 96], sizes = [4, 32], strides = [1, 1]} : vector<4x128xf32> to vector<4x32xf32>
    %957 = vector.extract_strided_slice %948 {offsets = [0, 64], sizes = [4, 32], strides = [1, 1]} : vector<4x128xf32> to vector<4x32xf32>
    %958 = math.tanh %957 : vector<4x32xf32>
    %959 = arith.mulf %955, %937 : vector<4x32xf32>
    %960 = arith.mulf %954, %958 : vector<4x32xf32>
    %961 = arith.addf %959, %960 : vector<4x32xf32>
    %962 = math.tanh %961 : vector<4x32xf32>
    %963 = arith.mulf %956, %962 : vector<4x32xf32>
    %c0_416 = arith.constant 0 : index
    %c416 = arith.constant 416 : index
    %964 = vector.load %arg28[%c0_416, %c416] : memref<4x512xf32, #tpu.memory_space<vmem>>, vector<4x32xf32>
    tpu.vector_store %arg28[%c0_416, %c416], %963 {strides = array<i32>} : memref<4x512xf32, #tpu.memory_space<vmem>>, vector<4x32xf32>,
    %c0_417 = arith.constant 0 : index
    %c0_418 = arith.constant 0 : index
    %965 = vector.load %arg15[%c0_417, %c0_418] : memref<32x128xf32, #tpu.memory_space<vmem>>, vector<32x128xf32>
    %cst_419 = arith.constant dense<0.000000e+00> : vector<4x128xf32>
    %966 = tpu.matmul %663, %965, %cst_419 {dimension_numbers = #tpu.dot_dimension_numbers<[1], [0], [0], [1], [0, 0, 1, 1], [], []>} : vector<4x32xf32>, vector<32x128xf32>, vector<4x128xf32> -> vector<4x128xf32>
    %c0_420 = arith.constant 0 : index
    %c0_421 = arith.constant 0 : index
    %967 = vector.load %arg16[%c0_420, %c0_421] : memref<32x128xf32, #tpu.memory_space<vmem>>, vector<32x128xf32>
    %cst_422 = arith.constant dense<0.000000e+00> : vector<4x128xf32>
    %968 = tpu.matmul %963, %967, %cst_422 {dimension_numbers = #tpu.dot_dimension_numbers<[1], [0], [0], [1], [0, 0, 1, 1], [], []>} : vector<4x32xf32>, vector<32x128xf32>, vector<4x128xf32> -> vector<4x128xf32>
    %969 = arith.addf %966, %968 : vector<4x128xf32>
    %c0_423 = arith.constant 0 : index
    %c0_424 = arith.constant 0 : index
    %970 = vector.load %arg17[%c0_423, %c0_424] : memref<1x128xf32, #tpu.memory_space<vmem>>, vector<1x128xf32>
    %971 = vector.broadcast %970 : vector<1x128xf32> to vector<4x128xf32>
    %972 = arith.addf %969, %971 : vector<4x128xf32>
    %973 = arith.negf %972 : vector<4x128xf32>
    %974 = math.exp %973 : vector<4x128xf32>
    %cst_425 = arith.constant 1.000000e+00 : f32
    %975 = vector.broadcast %cst_425 : f32 to vector<4x128xf32>
    %976 = arith.addf %975, %974 : vector<4x128xf32>
    %977 = arith.divf %975, %976 : vector<4x128xf32>
    %978 = vector.extract_strided_slice %977 {offsets = [0, 0], sizes = [4, 32], strides = [1, 1]} : vector<4x128xf32> to vector<4x32xf32>
    %979 = vector.extract_strided_slice %977 {offsets = [0, 32], sizes = [4, 32], strides = [1, 1]} : vector<4x128xf32> to vector<4x32xf32>
    %980 = vector.extract_strided_slice %977 {offsets = [0, 96], sizes = [4, 32], strides = [1, 1]} : vector<4x128xf32> to vector<4x32xf32>
    %981 = vector.extract_strided_slice %972 {offsets = [0, 64], sizes = [4, 32], strides = [1, 1]} : vector<4x128xf32> to vector<4x32xf32>
    %982 = math.tanh %981 : vector<4x32xf32>
    %983 = arith.mulf %979, %961 : vector<4x32xf32>
    %984 = arith.mulf %978, %982 : vector<4x32xf32>
    %985 = arith.addf %983, %984 : vector<4x32xf32>
    %986 = math.tanh %985 : vector<4x32xf32>
    %987 = arith.mulf %980, %986 : vector<4x32xf32>
    %c0_426 = arith.constant 0 : index
    %c352 = arith.constant 352 : index
    %988 = vector.load %arg28[%c0_426, %c352] : memref<4x512xf32, #tpu.memory_space<vmem>>, vector<4x32xf32>
    tpu.vector_store %arg28[%c0_426, %c352], %987 {strides = array<i32>} : memref<4x512xf32, #tpu.memory_space<vmem>>, vector<4x32xf32>,
    %c0_427 = arith.constant 0 : index
    %c0_428 = arith.constant 0 : index
    %989 = vector.load %arg15[%c0_427, %c0_428] : memref<32x128xf32, #tpu.memory_space<vmem>>, vector<32x128xf32>
    %cst_429 = arith.constant dense<0.000000e+00> : vector<4x128xf32>
    %990 = tpu.matmul %549, %989, %cst_429 {dimension_numbers = #tpu.dot_dimension_numbers<[1], [0], [0], [1], [0, 0, 1, 1], [], []>} : vector<4x32xf32>, vector<32x128xf32>, vector<4x128xf32> -> vector<4x128xf32>
    %c0_430 = arith.constant 0 : index
    %c0_431 = arith.constant 0 : index
    %991 = vector.load %arg16[%c0_430, %c0_431] : memref<32x128xf32, #tpu.memory_space<vmem>>, vector<32x128xf32>
    %cst_432 = arith.constant dense<0.000000e+00> : vector<4x128xf32>
    %992 = tpu.matmul %987, %991, %cst_432 {dimension_numbers = #tpu.dot_dimension_numbers<[1], [0], [0], [1], [0, 0, 1, 1], [], []>} : vector<4x32xf32>, vector<32x128xf32>, vector<4x128xf32> -> vector<4x128xf32>
    %993 = arith.addf %990, %992 : vector<4x128xf32>
    %c0_433 = arith.constant 0 : index
    %c0_434 = arith.constant 0 : index
    %994 = vector.load %arg17[%c0_433, %c0_434] : memref<1x128xf32, #tpu.memory_space<vmem>>, vector<1x128xf32>
    %995 = vector.broadcast %994 : vector<1x128xf32> to vector<4x128xf32>
    %996 = arith.addf %993, %995 : vector<4x128xf32>
    %997 = arith.negf %996 : vector<4x128xf32>
    %998 = math.exp %997 : vector<4x128xf32>
    %cst_435 = arith.constant 1.000000e+00 : f32
    %999 = vector.broadcast %cst_435 : f32 to vector<4x128xf32>
    %1000 = arith.addf %999, %998 : vector<4x128xf32>
    %1001 = arith.divf %999, %1000 : vector<4x128xf32>
    %1002 = vector.extract_strided_slice %1001 {offsets = [0, 0], sizes = [4, 32], strides = [1, 1]} : vector<4x128xf32> to vector<4x32xf32>
    %1003 = vector.extract_strided_slice %1001 {offsets = [0, 32], sizes = [4, 32], strides = [1, 1]} : vector<4x128xf32> to vector<4x32xf32>
    %1004 = vector.extract_strided_slice %1001 {offsets = [0, 96], sizes = [4, 32], strides = [1, 1]} : vector<4x128xf32> to vector<4x32xf32>
    %1005 = vector.extract_strided_slice %996 {offsets = [0, 64], sizes = [4, 32], strides = [1, 1]} : vector<4x128xf32> to vector<4x32xf32>
    %1006 = math.tanh %1005 : vector<4x32xf32>
    %1007 = arith.mulf %1003, %985 : vector<4x32xf32>
    %1008 = arith.mulf %1002, %1006 : vector<4x32xf32>
    %1009 = arith.addf %1007, %1008 : vector<4x32xf32>
    %1010 = math.tanh %1009 : vector<4x32xf32>
    %1011 = arith.mulf %1004, %1010 : vector<4x32xf32>
    %c0_436 = arith.constant 0 : index
    %c288 = arith.constant 288 : index
    %1012 = vector.load %arg28[%c0_436, %c288] : memref<4x512xf32, #tpu.memory_space<vmem>>, vector<4x32xf32>
    tpu.vector_store %arg28[%c0_436, %c288], %1011 {strides = array<i32>} : memref<4x512xf32, #tpu.memory_space<vmem>>, vector<4x32xf32>,
    %c0_437 = arith.constant 0 : index
    %c0_438 = arith.constant 0 : index
    %1013 = vector.load %arg15[%c0_437, %c0_438] : memref<32x128xf32, #tpu.memory_space<vmem>>, vector<32x128xf32>
    %cst_439 = arith.constant dense<0.000000e+00> : vector<4x128xf32>
    %1014 = tpu.matmul %435, %1013, %cst_439 {dimension_numbers = #tpu.dot_dimension_numbers<[1], [0], [0], [1], [0, 0, 1, 1], [], []>} : vector<4x32xf32>, vector<32x128xf32>, vector<4x128xf32> -> vector<4x128xf32>
    %c0_440 = arith.constant 0 : index
    %c0_441 = arith.constant 0 : index
    %1015 = vector.load %arg16[%c0_440, %c0_441] : memref<32x128xf32, #tpu.memory_space<vmem>>, vector<32x128xf32>
    %cst_442 = arith.constant dense<0.000000e+00> : vector<4x128xf32>
    %1016 = tpu.matmul %1011, %1015, %cst_442 {dimension_numbers = #tpu.dot_dimension_numbers<[1], [0], [0], [1], [0, 0, 1, 1], [], []>} : vector<4x32xf32>, vector<32x128xf32>, vector<4x128xf32> -> vector<4x128xf32>
    %1017 = arith.addf %1014, %1016 : vector<4x128xf32>
    %c0_443 = arith.constant 0 : index
    %c0_444 = arith.constant 0 : index
    %1018 = vector.load %arg17[%c0_443, %c0_444] : memref<1x128xf32, #tpu.memory_space<vmem>>, vector<1x128xf32>
    %1019 = vector.broadcast %1018 : vector<1x128xf32> to vector<4x128xf32>
    %1020 = arith.addf %1017, %1019 : vector<4x128xf32>
    %1021 = arith.negf %1020 : vector<4x128xf32>
    %1022 = math.exp %1021 : vector<4x128xf32>
    %cst_445 = arith.constant 1.000000e+00 : f32
    %1023 = vector.broadcast %cst_445 : f32 to vector<4x128xf32>
    %1024 = arith.addf %1023, %1022 : vector<4x128xf32>
    %1025 = arith.divf %1023, %1024 : vector<4x128xf32>
    %1026 = vector.extract_strided_slice %1025 {offsets = [0, 0], sizes = [4, 32], strides = [1, 1]} : vector<4x128xf32> to vector<4x32xf32>
    %1027 = vector.extract_strided_slice %1025 {offsets = [0, 32], sizes = [4, 32], strides = [1, 1]} : vector<4x128xf32> to vector<4x32xf32>
    %1028 = vector.extract_strided_slice %1025 {offsets = [0, 96], sizes = [4, 32], strides = [1, 1]} : vector<4x128xf32> to vector<4x32xf32>
    %1029 = vector.extract_strided_slice %1020 {offsets = [0, 64], sizes = [4, 32], strides = [1, 1]} : vector<4x128xf32> to vector<4x32xf32>
    %1030 = math.tanh %1029 : vector<4x32xf32>
    %1031 = arith.mulf %1027, %1009 : vector<4x32xf32>
    %1032 = arith.mulf %1026, %1030 : vector<4x32xf32>
    %1033 = arith.addf %1031, %1032 : vector<4x32xf32>
    %1034 = math.tanh %1033 : vector<4x32xf32>
    %1035 = arith.mulf %1028, %1034 : vector<4x32xf32>
    %c0_446 = arith.constant 0 : index
    %c224_447 = arith.constant 224 : index
    %1036 = vector.load %arg28[%c0_446, %c224_447] : memref<4x512xf32, #tpu.memory_space<vmem>>, vector<4x32xf32>
    tpu.vector_store %arg28[%c0_446, %c224_447], %1035 {strides = array<i32>} : memref<4x512xf32, #tpu.memory_space<vmem>>, vector<4x32xf32>,
    %c0_448 = arith.constant 0 : index
    %c0_449 = arith.constant 0 : index
    %1037 = vector.load %arg15[%c0_448, %c0_449] : memref<32x128xf32, #tpu.memory_space<vmem>>, vector<32x128xf32>
    %cst_450 = arith.constant dense<0.000000e+00> : vector<4x128xf32>
    %1038 = tpu.matmul %321, %1037, %cst_450 {dimension_numbers = #tpu.dot_dimension_numbers<[1], [0], [0], [1], [0, 0, 1, 1], [], []>} : vector<4x32xf32>, vector<32x128xf32>, vector<4x128xf32> -> vector<4x128xf32>
    %c0_451 = arith.constant 0 : index
    %c0_452 = arith.constant 0 : index
    %1039 = vector.load %arg16[%c0_451, %c0_452] : memref<32x128xf32, #tpu.memory_space<vmem>>, vector<32x128xf32>
    %cst_453 = arith.constant dense<0.000000e+00> : vector<4x128xf32>
    %1040 = tpu.matmul %1035, %1039, %cst_453 {dimension_numbers = #tpu.dot_dimension_numbers<[1], [0], [0], [1], [0, 0, 1, 1], [], []>} : vector<4x32xf32>, vector<32x128xf32>, vector<4x128xf32> -> vector<4x128xf32>
    %1041 = arith.addf %1038, %1040 : vector<4x128xf32>
    %c0_454 = arith.constant 0 : index
    %c0_455 = arith.constant 0 : index
    %1042 = vector.load %arg17[%c0_454, %c0_455] : memref<1x128xf32, #tpu.memory_space<vmem>>, vector<1x128xf32>
    %1043 = vector.broadcast %1042 : vector<1x128xf32> to vector<4x128xf32>
    %1044 = arith.addf %1041, %1043 : vector<4x128xf32>
    %1045 = arith.negf %1044 : vector<4x128xf32>
    %1046 = math.exp %1045 : vector<4x128xf32>
    %cst_456 = arith.constant 1.000000e+00 : f32
    %1047 = vector.broadcast %cst_456 : f32 to vector<4x128xf32>
    %1048 = arith.addf %1047, %1046 : vector<4x128xf32>
    %1049 = arith.divf %1047, %1048 : vector<4x128xf32>
    %1050 = vector.extract_strided_slice %1049 {offsets = [0, 0], sizes = [4, 32], strides = [1, 1]} : vector<4x128xf32> to vector<4x32xf32>
    %1051 = vector.extract_strided_slice %1049 {offsets = [0, 32], sizes = [4, 32], strides = [1, 1]} : vector<4x128xf32> to vector<4x32xf32>
    %1052 = vector.extract_strided_slice %1049 {offsets = [0, 96], sizes = [4, 32], strides = [1, 1]} : vector<4x128xf32> to vector<4x32xf32>
    %1053 = vector.extract_strided_slice %1044 {offsets = [0, 64], sizes = [4, 32], strides = [1, 1]} : vector<4x128xf32> to vector<4x32xf32>
    %1054 = math.tanh %1053 : vector<4x32xf32>
    %1055 = arith.mulf %1051, %1033 : vector<4x32xf32>
    %1056 = arith.mulf %1050, %1054 : vector<4x32xf32>
    %1057 = arith.addf %1055, %1056 : vector<4x32xf32>
    %1058 = math.tanh %1057 : vector<4x32xf32>
    %1059 = arith.mulf %1052, %1058 : vector<4x32xf32>
    %c0_457 = arith.constant 0 : index
    %c160_458 = arith.constant 160 : index
    %1060 = vector.load %arg28[%c0_457, %c160_458] : memref<4x512xf32, #tpu.memory_space<vmem>>, vector<4x32xf32>
    tpu.vector_store %arg28[%c0_457, %c160_458], %1059 {strides = array<i32>} : memref<4x512xf32, #tpu.memory_space<vmem>>, vector<4x32xf32>,
    %c0_459 = arith.constant 0 : index
    %c0_460 = arith.constant 0 : index
    %1061 = vector.load %arg15[%c0_459, %c0_460] : memref<32x128xf32, #tpu.memory_space<vmem>>, vector<32x128xf32>
    %cst_461 = arith.constant dense<0.000000e+00> : vector<4x128xf32>
    %1062 = tpu.matmul %207, %1061, %cst_461 {dimension_numbers = #tpu.dot_dimension_numbers<[1], [0], [0], [1], [0, 0, 1, 1], [], []>} : vector<4x32xf32>, vector<32x128xf32>, vector<4x128xf32> -> vector<4x128xf32>
    %c0_462 = arith.constant 0 : index
    %c0_463 = arith.constant 0 : index
    %1063 = vector.load %arg16[%c0_462, %c0_463] : memref<32x128xf32, #tpu.memory_space<vmem>>, vector<32x128xf32>
    %cst_464 = arith.constant dense<0.000000e+00> : vector<4x128xf32>
    %1064 = tpu.matmul %1059, %1063, %cst_464 {dimension_numbers = #tpu.dot_dimension_numbers<[1], [0], [0], [1], [0, 0, 1, 1], [], []>} : vector<4x32xf32>, vector<32x128xf32>, vector<4x128xf32> -> vector<4x128xf32>
    %1065 = arith.addf %1062, %1064 : vector<4x128xf32>
    %c0_465 = arith.constant 0 : index
    %c0_466 = arith.constant 0 : index
    %1066 = vector.load %arg17[%c0_465, %c0_466] : memref<1x128xf32, #tpu.memory_space<vmem>>, vector<1x128xf32>
    %1067 = vector.broadcast %1066 : vector<1x128xf32> to vector<4x128xf32>
    %1068 = arith.addf %1065, %1067 : vector<4x128xf32>
    %1069 = arith.negf %1068 : vector<4x128xf32>
    %1070 = math.exp %1069 : vector<4x128xf32>
    %cst_467 = arith.constant 1.000000e+00 : f32
    %1071 = vector.broadcast %cst_467 : f32 to vector<4x128xf32>
    %1072 = arith.addf %1071, %1070 : vector<4x128xf32>
    %1073 = arith.divf %1071, %1072 : vector<4x128xf32>
    %1074 = vector.extract_strided_slice %1073 {offsets = [0, 0], sizes = [4, 32], strides = [1, 1]} : vector<4x128xf32> to vector<4x32xf32>
    %1075 = vector.extract_strided_slice %1073 {offsets = [0, 32], sizes = [4, 32], strides = [1, 1]} : vector<4x128xf32> to vector<4x32xf32>
    %1076 = vector.extract_strided_slice %1073 {offsets = [0, 96], sizes = [4, 32], strides = [1, 1]} : vector<4x128xf32> to vector<4x32xf32>
    %1077 = vector.extract_strided_slice %1068 {offsets = [0, 64], sizes = [4, 32], strides = [1, 1]} : vector<4x128xf32> to vector<4x32xf32>
    %1078 = math.tanh %1077 : vector<4x32xf32>
    %1079 = arith.mulf %1075, %1057 : vector<4x32xf32>
    %1080 = arith.mulf %1074, %1078 : vector<4x32xf32>
    %1081 = arith.addf %1079, %1080 : vector<4x32xf32>
    %1082 = math.tanh %1081 : vector<4x32xf32>
    %1083 = arith.mulf %1076, %1082 : vector<4x32xf32>
    %c0_468 = arith.constant 0 : index
    %c96_469 = arith.constant 96 : index
    %1084 = vector.load %arg28[%c0_468, %c96_469] : memref<4x512xf32, #tpu.memory_space<vmem>>, vector<4x32xf32>
    tpu.vector_store %arg28[%c0_468, %c96_469], %1083 {strides = array<i32>} : memref<4x512xf32, #tpu.memory_space<vmem>>, vector<4x32xf32>,
    %c0_470 = arith.constant 0 : index
    %c0_471 = arith.constant 0 : index
    %1085 = vector.load %arg15[%c0_470, %c0_471] : memref<32x128xf32, #tpu.memory_space<vmem>>, vector<32x128xf32>
    %cst_472 = arith.constant dense<0.000000e+00> : vector<4x128xf32>
    %1086 = tpu.matmul %93, %1085, %cst_472 {dimension_numbers = #tpu.dot_dimension_numbers<[1], [0], [0], [1], [0, 0, 1, 1], [], []>} : vector<4x32xf32>, vector<32x128xf32>, vector<4x128xf32> -> vector<4x128xf32>
    %c0_473 = arith.constant 0 : index
    %c0_474 = arith.constant 0 : index
    %1087 = vector.load %arg16[%c0_473, %c0_474] : memref<32x128xf32, #tpu.memory_space<vmem>>, vector<32x128xf32>
    %cst_475 = arith.constant dense<0.000000e+00> : vector<4x128xf32>
    %1088 = tpu.matmul %1083, %1087, %cst_475 {dimension_numbers = #tpu.dot_dimension_numbers<[1], [0], [0], [1], [0, 0, 1, 1], [], []>} : vector<4x32xf32>, vector<32x128xf32>, vector<4x128xf32> -> vector<4x128xf32>
    %1089 = arith.addf %1086, %1088 : vector<4x128xf32>
    %c0_476 = arith.constant 0 : index
    %c0_477 = arith.constant 0 : index
    %1090 = vector.load %arg17[%c0_476, %c0_477] : memref<1x128xf32, #tpu.memory_space<vmem>>, vector<1x128xf32>
    %1091 = vector.broadcast %1090 : vector<1x128xf32> to vector<4x128xf32>
    %1092 = arith.addf %1089, %1091 : vector<4x128xf32>
    %1093 = arith.negf %1092 : vector<4x128xf32>
    %1094 = math.exp %1093 : vector<4x128xf32>
    %cst_478 = arith.constant 1.000000e+00 : f32
    %1095 = vector.broadcast %cst_478 : f32 to vector<4x128xf32>
    %1096 = arith.addf %1095, %1094 : vector<4x128xf32>
    %1097 = arith.divf %1095, %1096 : vector<4x128xf32>
    %1098 = vector.extract_strided_slice %1097 {offsets = [0, 0], sizes = [4, 32], strides = [1, 1]} : vector<4x128xf32> to vector<4x32xf32>
    %1099 = vector.extract_strided_slice %1097 {offsets = [0, 32], sizes = [4, 32], strides = [1, 1]} : vector<4x128xf32> to vector<4x32xf32>
    %1100 = vector.extract_strided_slice %1097 {offsets = [0, 96], sizes = [4, 32], strides = [1, 1]} : vector<4x128xf32> to vector<4x32xf32>
    %1101 = vector.extract_strided_slice %1092 {offsets = [0, 64], sizes = [4, 32], strides = [1, 1]} : vector<4x128xf32> to vector<4x32xf32>
    %1102 = math.tanh %1101 : vector<4x32xf32>
    %1103 = arith.mulf %1099, %1081 : vector<4x32xf32>
    %1104 = arith.mulf %1098, %1102 : vector<4x32xf32>
    %1105 = arith.addf %1103, %1104 : vector<4x32xf32>
    %1106 = math.tanh %1105 : vector<4x32xf32>
    %1107 = arith.mulf %1100, %1106 : vector<4x32xf32>
    %c0_479 = arith.constant 0 : index
    %c32_480 = arith.constant 32 : index
    %1108 = vector.load %arg28[%c0_479, %c32_480] : memref<4x512xf32, #tpu.memory_space<vmem>>, vector<4x32xf32>
    tpu.vector_store %arg28[%c0_479, %c32_480], %1107 {strides = array<i32>} : memref<4x512xf32, #tpu.memory_space<vmem>>, vector<4x32xf32>,
    %c0_i32_481 = arith.constant 0 : i32
    %1109 = tpu.memref_slice %arg31[%c0_i32_481] : memref<2x!tpu.dma_semaphore, #tpu.memory_space<semaphore_mem>> -> memref<1x!tpu.dma_semaphore, #tpu.memory_space<semaphore_mem>>
    %1110 = tpu.memref_squeeze %1109 : memref<1x!tpu.dma_semaphore, #tpu.memory_space<semaphore_mem>> -> memref<!tpu.dma_semaphore, #tpu.memory_space<semaphore_mem>>
    tpu.wait_dma2 semaphore(%1110 : memref<!tpu.dma_semaphore, #tpu.memory_space<semaphore_mem>>) src(%arg18 : memref<512x512xf32, #tpu.memory_space<any>>) dst(%arg29 : memref<512x512xf32, #tpu.memory_space<vmem>>)
    %c1_i32_482 = arith.constant 1 : i32
    %1111 = tpu.memref_slice %arg31[%c1_i32_482] : memref<2x!tpu.dma_semaphore, #tpu.memory_space<semaphore_mem>> -> memref<1x!tpu.dma_semaphore, #tpu.memory_space<semaphore_mem>>
    %1112 = tpu.memref_squeeze %1111 : memref<1x!tpu.dma_semaphore, #tpu.memory_space<semaphore_mem>> -> memref<!tpu.dma_semaphore, #tpu.memory_space<semaphore_mem>>
    tpu.wait_dma2 semaphore(%1112 : memref<!tpu.dma_semaphore, #tpu.memory_space<semaphore_mem>>) src(%arg20 : memref<512x128xf32, #tpu.memory_space<any>>) dst(%arg30 : memref<512x128xf32, #tpu.memory_space<vmem>>)
    %c0_483 = arith.constant 0 : index
    %c0_484 = arith.constant 0 : index
    %1113 = vector.load %arg28[%c0_483, %c0_484] : memref<4x512xf32, #tpu.memory_space<vmem>>, vector<4x512xf32>
    %c0_485 = arith.constant 0 : index
    %c0_486 = arith.constant 0 : index
    %1114 = vector.load %arg29[%c0_485, %c0_486] : memref<512x512xf32, #tpu.memory_space<vmem>>, vector<512x512xf32>
    %cst_487 = arith.constant dense<0.000000e+00> : vector<4x512xf32>
    %1115 = tpu.matmul %1113, %1114, %cst_487 {dimension_numbers = #tpu.dot_dimension_numbers<[1], [0], [0], [1], [0, 0, 1, 1], [], []>} : vector<4x512xf32>, vector<512x512xf32>, vector<4x512xf32> -> vector<4x512xf32>
    %c0_488 = arith.constant 0 : index
    %c0_489 = arith.constant 0 : index
    %1116 = vector.load %arg19[%c0_488, %c0_489] : memref<1x512xf32, #tpu.memory_space<vmem>>, vector<1x512xf32>
    %1117 = vector.broadcast %1116 : vector<1x512xf32> to vector<4x512xf32>
    %1118 = arith.addf %1115, %1117 : vector<4x512xf32>
    %cst_490 = arith.constant 0.000000e+00 : f32
    %1119 = vector.broadcast %cst_490 : f32 to vector<4x512xf32>
    %1120 = arith.maximumf %1118, %1119 : vector<4x512xf32>
    %c0_491 = arith.constant 0 : index
    %c0_492 = arith.constant 0 : index
    %1121 = vector.load %arg30[%c0_491, %c0_492] : memref<512x128xf32, #tpu.memory_space<vmem>>, vector<512x128xf32>
    %cst_493 = arith.constant dense<0.000000e+00> : vector<4x128xf32>
    %1122 = tpu.matmul %1120, %1121, %cst_493 {dimension_numbers = #tpu.dot_dimension_numbers<[1], [0], [0], [1], [0, 0, 1, 1], [], []>} : vector<4x512xf32>, vector<512x128xf32>, vector<4x128xf32> -> vector<4x128xf32>
    %c0_494 = arith.constant 0 : index
    %c0_495 = arith.constant 0 : index
    %1123 = vector.load %arg21[%c0_494, %c0_495] : memref<1x128xf32, #tpu.memory_space<vmem>>, vector<1x128xf32>
    %1124 = vector.broadcast %1123 : vector<1x128xf32> to vector<4x128xf32>
    %1125 = arith.addf %1122, %1124 : vector<4x128xf32>
    %cst_496 = arith.constant 0.000000e+00 : f32
    %1126 = vector.broadcast %cst_496 : f32 to vector<4x128xf32>
    %1127 = arith.maximumf %1125, %1126 : vector<4x128xf32>
    %c0_497 = arith.constant 0 : index
    %c0_498 = arith.constant 0 : index
    %1128 = vector.load %arg22[%c0_497, %c0_498] : memref<128x64xf32, #tpu.memory_space<vmem>>, vector<128x64xf32>
    %cst_499 = arith.constant dense<0.000000e+00> : vector<4x64xf32>
    %1129 = tpu.matmul %1127, %1128, %cst_499 {dimension_numbers = #tpu.dot_dimension_numbers<[1], [0], [0], [1], [0, 0, 1, 1], [], []>} : vector<4x128xf32>, vector<128x64xf32>, vector<4x64xf32> -> vector<4x64xf32>
    %c0_500 = arith.constant 0 : index
    %c0_501 = arith.constant 0 : index
    %1130 = vector.load %arg23[%c0_500, %c0_501] : memref<1x64xf32, #tpu.memory_space<vmem>>, vector<1x64xf32>
    %1131 = vector.broadcast %1130 : vector<1x64xf32> to vector<4x64xf32>
    %1132 = arith.addf %1129, %1131 : vector<4x64xf32>
    %cst_502 = arith.constant 0.000000e+00 : f32
    %1133 = vector.broadcast %cst_502 : f32 to vector<4x64xf32>
    %1134 = arith.maximumf %1132, %1133 : vector<4x64xf32>
    %c0_503 = arith.constant 0 : index
    %c0_504 = arith.constant 0 : index
    %1135 = vector.load %arg24[%c0_503, %c0_504] : memref<64x128xf32, #tpu.memory_space<vmem>>, vector<64x128xf32>
    %cst_505 = arith.constant dense<0.000000e+00> : vector<4x128xf32>
    %1136 = tpu.matmul %1134, %1135, %cst_505 {dimension_numbers = #tpu.dot_dimension_numbers<[1], [0], [0], [1], [0, 0, 1, 1], [], []>} : vector<4x64xf32>, vector<64x128xf32>, vector<4x128xf32> -> vector<4x128xf32>
    %c0_506 = arith.constant 0 : index
    %c0_507 = arith.constant 0 : index
    %1137 = vector.load %arg25[%c0_506, %c0_507] : memref<1x128xf32, #tpu.memory_space<vmem>>, vector<1x128xf32>
    %1138 = vector.broadcast %1137 : vector<1x128xf32> to vector<4x128xf32>
    %1139 = arith.addf %1136, %1138 : vector<4x128xf32>
    %c0_508 = arith.constant 0 : index
    %c0_509 = arith.constant 0 : index
    %1140 = vector.load %arg27[%c0_508, %c0_509] : memref<4x128xf32, #tpu.memory_space<vmem>>, vector<4x128xf32>
    tpu.vector_store %arg27[%c0_508, %c0_509], %1139 {strides = array<i32>} : memref<4x128xf32, #tpu.memory_space<vmem>>, vector<4x128xf32>,
    return
  }
}

</mosaic_0001>

<bundles_post_ra>
// kernel: attn_decoder_forward.1
= control target key start
LH: loop header
LB: loop body
LE: loop exit
PB: predicated region body
PF: predicated region fallthrough
CT: control target
= control target key end

     0   :  { %s14992_s0 = inlined_call_operand.vmem [shape: f32[8,4,32], index: 0, kind: input, shape index: {}]   ;;  %s14993_s1 = inlined_call_operand.vmem [shape: f32[32,128], index: 1, kind: input, shape index: {}]   ;;  %s14994_s2 = inlined_call_operand.vmem [shape: f32[32,128], index: 2, kind: input, shape index: {}]   ;;  %s14995_s3 = inlined_call_operand.vmem [shape: f32[1,128], index: 3, kind: input, shape index: {}]   ;;  %s14996_s4 = inlined_call_operand.hbm [shape: f32[32,128], index: 4, kind: input, shape index: {}]   ;;  %s14997_s5 = inlined_call_operand.hbm [shape: f32[32,128], index: 5, kind: input, shape index: {}]   ;;  %s14998_s6 = inlined_call_operand.hbm [shape: f32[1,128], index: 6, kind: input, shape index: {}]   ;;  %s14999_s7 = inlined_call_operand.hbm [shape: f32[32,128], index: 7, kind: input, shape index: {}]   ;;  %s15000_s8 = inlined_call_operand.hbm [shape: f32[32,128], index: 8, kind: input, shape index: {}]   ;;  %s15001_s9 = inlined_call_operand.hbm [shape: f32[1,128], index: 9, kind: input, shape index: {}]   ;;  %s15002_s10 = inlined_call_operand.hbm [shape: f32[8,32,32], index: 10, kind: input, shape index: {}]   ;;  %s15003_s11 = inlined_call_operand.hbm [shape: f32[8,1,32], index: 11, kind: input, shape index: {}]   ;;  %s15004_s12 = inlined_call_operand.hbm [shape: f32[32,128], index: 12, kind: input, shape index: {}]   ;;  %s15005_s13 = inlined_call_operand.hbm [shape: f32[32,128], index: 13, kind: input, shape index: {}]   ;;  %s15006_s14 = inlined_call_operand.hbm [shape: f32[1,128], index: 14, kind: input, shape index: {}]   ;;  %s15007_s15 = inlined_call_operand.hbm [shape: f32[32,128], index: 15, kind: input, shape index: {}]   ;;  %s15008_s16 = inlined_call_operand.hbm [shape: f32[32,128], index: 16, kind: input, shape index: {}]   ;;  %s15009_s17 = inlined_call_operand.hbm [shape: f32[1,128], index: 17, kind: input, shape index: {}]   ;;  %s15010_s18 = inlined_call_operand.hbm [shape: f32[512,512], index: 18, kind: input, shape index: {}]   ;;  %s15011_s19 = inlined_call_operand.vmem [shape: f32[1,512], index: 19, kind: input, shape index: {}]   ;;  %s15012_s20 = inlined_call_operand.vmem [shape: f32[512,128], index: 20, kind: input, shape index: {}]   ;;  %s15013_s21 = inlined_call_operand.hbm [shape: f32[1,128], index: 21, kind: input, shape index: {}]   ;;  %s15014_s22 = inlined_call_operand.vmem [shape: f32[128,64], index: 22, kind: input, shape index: {}]   ;;  %s15015_s23 = inlined_call_operand.hbm [shape: f32[1,64], index: 23, kind: input, shape index: {}]   ;;  %s15016_s24 = inlined_call_operand.vmem [shape: f32[64,128], index: 24, kind: input, shape index: {}]   ;;  %s15017_s25 = inlined_call_operand.hbm [shape: f32[1,128], index: 25, kind: input, shape index: {}]   ;;  %s15018_s26 = inlined_call_operand.vmem [shape: f32[4,256], index: 26, kind: output, shape index: {0}]   ;;  %s15019_s27 = inlined_call_operand.vmem [shape: f32[4,128], index: 27, kind: output, shape index: {1}]  }
   0x1   :  { %15030 = sst [smem:[#allocation111_spill]] %s14992_s0 }
   0x2   :  { %15031 = sst [smem:[#allocation112_spill]] %s14993_s1 }
   0x3   :  { %15032 = sst [smem:[#allocation113_spill]] %s14994_s2 }
   0x4   :  { %15033 = sst [smem:[#allocation114_spill]] %s14995_s3 }
   0x5   :  { %15034 = sst [smem:[#allocation115_spill]] %s14996_s4 }
   0x6   :  { %15035 = sst [smem:[#allocation116_spill]] %s14997_s5 }
   0x7   :  { %15036 = sst [smem:[#allocation117_spill]] %s14998_s6 }
   0x8   :  { %15037 = sst [smem:[#allocation118_spill]] %s14999_s7 }
   0x9   :  { %15038 = sst [smem:[#allocation119_spill]] %s15000_s8 }
   0xa   :  { %15039 = sst [smem:[#allocation120_spill]] %s15001_s9 }
   0xb   :  { %15040 = sst [smem:[#allocation121_spill]] %s15002_s10 }
   0xc   :  { %15041 = sst [smem:[#allocation122_spill]] %s15003_s11 }
   0xd   :  { %33 = vsyncpa [#allocation7], 0 }
   0xe   :  { %34 = vsyncpa [#allocation9], 0 }
   0xf   :  { %35 = vsyncpa [#allocation12], 0 }
  0x10   :  { %36 = vsyncpa [#allocation15], 0 }
  0x11   :  { %37 = vsyncpa [#allocation18], 0 }
  0x12   :  { %38 = vsyncpa [#allocation21], 0 }
  0x13   :  { %39 = vsyncpa [#allocation24], 0 }
  0x14   :  { %40 = vsyncpa [#allocation27], 0 }
  0x15   :  { %41 = vsyncpa [#allocation30], 0  ;;  %s12289_s7 = smov [#allocation8]   ;;  %s12290_s8 = smov [#allocation11]  }
  0x16   :  { %s67_s4 = sshll.u32 %s12289_s7, 4  ;;  %s89_s30 = sshll.u32 %s12290_s8, 4  ;;  %s68_s4 = int_to_ptr.vmem [resolvable:$true] %s67_s4  ;;  %s90_s30 = int_to_ptr.vmem [resolvable:$true] %s89_s30 }
  0x17   :  { %s11915_s9 = scalar_lea.vmem %s68_s4, 512  ;;  %p11920_p1 = scmp.lt.s32.totalorder %s68_s4, %s68_s4 }
  0x18   :  { %p11916_p0 = scmp.ne.s32.totalorder %s68_s4, %s11915_s9  ;;  %p11921_p2 = scmp.lt.s32.totalorder %s11915_s9, %s11915_s9 }
  0x1a   :  { %p11922_p3 = por %p11921_p2, %p11920_p1 }
  0x1c   :  { %p11923_p4 = pnand %p11922_p3, %p11916_p0 }
  0x1e   :  { %11926 = shalt.err (!%p11923_p4)
}
  0x1f   :  { %s15024_s5 = smov 128   ;;  %s15026_s28 = smov 8  }
  0x20   :  { %s15042_s29 = sld [smem:[#allocation116_spill]]  ;;  %s11935_s1 = scalar_lea.vmem %s90_s30, 512 }
  0x21   :  { %p11936_p5 = scmp.ne.s32.totalorder %s90_s30, %s11935_s1  ;;  %p11940_p6 = scmp.lt.s32.totalorder %s90_s30, %s90_s30 }
  0x22   :  { %p11941_p7 = scmp.lt.s32.totalorder %s11935_s1, %s11935_s1 }
  0x24   :  { %p11942_p8 = por %p11941_p7, %p11940_p6 }
  0x26   :  { %73 = dma.hbm_to_vmem [thread:$0]  %s15042_s29, 512, %s68_s4, [#allocation9], %s15024_s5, %s15024_s5, %s15026_s28  }
  0x27   :  { %p11943_p9 = pnand %p11942_p8, %p11936_p5 }
  0x29   :  { %11946 = shalt.err (!%p11943_p9)
}
  0x2a   :  { %s15043_s2 = sld [smem:[#allocation118_spill]]  ;;  %s12293_s3 = smov [#allocation14]  }
  0x2b   :  { %s114_s7 = sshll.u32 %s12293_s3, 4  ;;  %s12294_s8 = smov [#allocation17]   ;;  %s115_s7 = int_to_ptr.vmem [resolvable:$true] %s114_s7 }
  0x2c   :  { %s135_s9 = sshll.u32 %s12294_s8, 4  ;;  %s11955_s4 = scalar_lea.vmem %s115_s7, 16  ;;  %s136_s9 = int_to_ptr.vmem [resolvable:$true] %s135_s9 }
  0x2d   :  { %p11956_p10 = scmp.ne.s32.totalorder %s115_s7, %s11955_s4  ;;  %s11959_s0 = scalar_lea.vmem %s115_s7, 32 }
  0x2e   :  { %p11960_p11 = scmp.lt.s32.totalorder %s115_s7, %s115_s7  ;;  %p11961_p12 = scmp.lt.s32.totalorder %s11959_s0, %s11955_s4 }
  0x30   :  { %95 = dma.hbm_to_vmem [thread:$0]  %s15043_s2, 512, %s90_s30, [#allocation12], %s15024_s5, %s15024_s5, %s15026_s28  }
  0x31   :  { %p11962_p13 = por %p11961_p12, %p11960_p11 }
  0x33   :  { %p11963_p0 = pnand %p11962_p13, %p11956_p10 }
  0x35   :  { %11966 = shalt.err (!%p11963_p0)
}
  0x36   :  { %s15044_s1 = sld [smem:[#allocation120_spill]]  ;;  %s11975_s6 = scalar_lea.vmem %s136_s9, 128 }
  0x37   :  { %p11976_p1 = scmp.ne.s32.totalorder %s136_s9, %s11975_s6  ;;  %p11980_p2 = scmp.lt.s32.totalorder %s136_s9, %s136_s9 }
  0x38   :  { %p11981_p3 = scmp.lt.s32.totalorder %s11975_s6, %s11975_s6 }
  0x3a   :  { %p11982_p4 = por %p11981_p3, %p11980_p2 }
  0x3c   :  { %117 = dma.hbm_to_vmem [thread:$0]  %s15044_s1, 16, %s115_s7, [#allocation15]  }
  0x3d   :  { %p11983_p5 = pnand %p11982_p4, %p11976_p1 }
  0x3f   :  { %11986 = shalt.err (!%p11983_p5)
}
  0x40   :  { %s12295_s30 = smov 16   ;;  %s12296_s11 = smov 1  }
  0x41   :  { %s15045_s8 = sld [smem:[#allocation122_spill]]  ;;  %s12297_s4 = smov [#allocation20]  }
  0x42   :  { %s159_s0 = sshll.u32 %s12297_s4, 4  ;;  %s12298_s5 = smov [#allocation23]   ;;  %s160_s0 = int_to_ptr.vmem [resolvable:$true] %s159_s0 }
  0x43   :  { %s181_s28 = sshll.u32 %s12298_s5, 4  ;;  %s11995_s7 = scalar_lea.vmem %s160_s0, 512  ;;  %s182_s28 = int_to_ptr.vmem [resolvable:$true] %s181_s28 }
  0x44   :  { %p11996_p6 = scmp.ne.s32.totalorder %s160_s0, %s11995_s7  ;;  %p12000_p7 = scmp.lt.s32.totalorder %s160_s0, %s160_s0 }
  0x45   :  { %p12001_p8 = scmp.lt.s32.totalorder %s11995_s7, %s11995_s7 }
  0x47   :  { %141 = dma.hbm_to_vmem [thread:$0]  %s15045_s8, 128, %s136_s9, [#allocation18], %s12295_s30, %s12295_s30, %s12296_s11  }
  0x48   :  { %p12002_p9 = por %p12001_p8, %p12000_p7 }
  0x4a   :  { %p12003_p10 = pnand %p12002_p9, %p11996_p6 }
  0x4c   :  { %12006 = shalt.err (!%p12003_p10)
}
  0x4d   :  { %s15046_s10 = smov 8   ;;  %s15047_s29 = smov 128  }
  0x4e   :  { %165 = dma.hbm_to_vmem [thread:$0]  %s15005_s13, 512, %s160_s0, [#allocation21], %s15047_s29, %s15047_s29, %s15046_s10  }
  0x4f   :  { %s12015_s9 = scalar_lea.vmem %s182_s28, 512  ;;  %p12020_p12 = scmp.lt.s32.totalorder %s182_s28, %s182_s28 }
  0x50   :  { %p12016_p11 = scmp.ne.s32.totalorder %s182_s28, %s12015_s9  ;;  %p12021_p13 = scmp.lt.s32.totalorder %s12015_s9, %s12015_s9 }
  0x52   :  { %p12022_p0 = por %p12021_p13, %p12020_p12 }
  0x54   :  { %p12023_p1 = pnand %p12022_p0, %p12016_p11 }
  0x56   :  { %12026 = shalt.err (!%p12023_p1)
}
  0x57   :  { %187 = dma.hbm_to_vmem [thread:$0]  %s15007_s15, 512, %s182_s28, [#allocation24], %s15047_s29, %s15047_s29, %s15046_s10  }
  0x58   :  { %s12299_s11 = smov [#allocation26]   ;;  %s12300_s3 = smov [#allocation29]  }
  0x59   :  { %s206_s2 = sshll.u32 %s12299_s11, 4  ;;  %s230_s8 = sshll.u32 %s12300_s3, 4  ;;  %s207_s2 = int_to_ptr.vmem [resolvable:$true] %s206_s2  ;;  %s231_s8 = int_to_ptr.vmem [resolvable:$true] %s230_s8 }
  0x5a   :  { %s12035_s13 = scalar_lea.vmem %s207_s2, 16  ;;  %s12039_s4 = scalar_lea.vmem %s207_s2, 32 }
  0x5b   :  { %p12036_p2 = scmp.ne.s32.totalorder %s207_s2, %s12035_s13  ;;  %p12040_p3 = scmp.lt.s32.totalorder %s207_s2, %s207_s2 }
  0x5c   :  { %p12041_p4 = scmp.lt.s32.totalorder %s12039_s4, %s12035_s13 }
  0x5e   :  { %p12042_p5 = por %p12041_p4, %p12040_p3 }
  0x60   :  { %p12043_p6 = pnand %p12042_p5, %p12036_p2 }
  0x62   :  { %12046 = shalt.err (!%p12043_p6)
}
  0x63   :  { %209 = dma.hbm_to_vmem [thread:$0]  %s15009_s17, 16, %s207_s2, [#allocation27]  }
  0x64   :  { %s12055_s1 = scalar_lea.vmem %s231_s8, 16  ;;  %s12059_s15 = scalar_lea.vmem %s231_s8, 32 }
  0x65   :  { %p12056_p7 = scmp.ne.s32.totalorder %s231_s8, %s12055_s1  ;;  %p12060_p8 = scmp.lt.s32.totalorder %s231_s8, %s231_s8 }
  0x66   :  { %p12061_p9 = scmp.lt.s32.totalorder %s12059_s15, %s12055_s1 }
  0x68   :  { %p12062_p10 = por %p12061_p9, %p12060_p8 }
  0x6a   :  { %p12063_p11 = pnand %p12062_p10, %p12056_p7 }
  0x6c   :  { %12066 = shalt.err (!%p12063_p11)
}
  0x6d   :  { %233 = dma.hbm_to_vmem [thread:$0]  %s15015_s23, 16, %s231_s8, [#allocation30]  }
  0x6e   :  { %s12301_s9 = smov [#allocation6]   ;;  %s12302_s30 = smov [#allocation10]  }
  0x6f   :  { %s55_s5 = sshll.u32 %s12301_s9, 4  ;;  %s80_s11 = sshll.u32 %s12302_s30, 4  ;;  %s56_s5 = int_to_ptr.vmem [resolvable:$true] %s55_s5  ;;  %s81_s11 = int_to_ptr.vmem [resolvable:$true] %s80_s11 }
  0x70   :  { %s12075_s3 = scalar_lea.vmem %s56_s5, 512  ;;  %p12080_p13 = scmp.lt.s32.totalorder %s56_s5, %s56_s5 }
  0x71   :  { %p12076_p12 = scmp.ne.s32.totalorder %s56_s5, %s12075_s3  ;;  %p12081_p0 = scmp.lt.s32.totalorder %s12075_s3, %s12075_s3 }
  0x73   :  { %p12082_p1 = por %p12081_p0, %p12080_p13 }
  0x75   :  { %p12083_p2 = pnand %p12082_p1, %p12076_p12 }
  0x77   :  { %12086 = shalt.err (!%p12083_p2)
}
  0x78   :  { %s15048_s13 = sld [smem:[#allocation115_spill]]  ;;  %s12095_s23 = scalar_lea.vmem %s81_s11, 16 }
  0x79   :  { %p12096_p3 = scmp.ne.s32.totalorder %s81_s11, %s12095_s23  ;;  %s12099_s8 = scalar_lea.vmem %s81_s11, 32 }
  0x7a   :  { %p12100_p4 = scmp.lt.s32.totalorder %s81_s11, %s81_s11  ;;  %p12101_p5 = scmp.lt.s32.totalorder %s12099_s8, %s12095_s23 }
  0x7c   :  { %p12102_p6 = por %p12101_p5, %p12100_p4 }
  0x7e   :  { %61 = dma.hbm_to_vmem [thread:$0]  %s15048_s13, 512, %s56_s5, [#allocation7], %s15047_s29, %s15047_s29, %s15046_s10  }
  0x7f   :  { %p12103_p7 = pnand %p12102_p6, %p12096_p3 }
  0x81   :  { %12106 = shalt.err (!%p12103_p7)
}
  0x82   :  { %s15049_s7 = sld [smem:[#allocation117_spill]]  ;;  %s12303_s1 = smov [#allocation13]  }
  0x83   :  { %s101_s15 = sshll.u32 %s12303_s1, 4  ;;  %s12304_s28 = smov [#allocation16]   ;;  %s102_s15 = int_to_ptr.vmem [resolvable:$true] %s101_s15 }
  0x84   :  { %s123_s6 = sshll.u32 %s12304_s28, 4  ;;  %s12115_s9 = scalar_lea.vmem %s102_s15, 512  ;;  %s124_s6 = int_to_ptr.vmem [resolvable:$true] %s123_s6 }
  0x85   :  { %p12116_p8 = scmp.ne.s32.totalorder %s102_s15, %s12115_s9  ;;  %p12120_p9 = scmp.lt.s32.totalorder %s102_s15, %s102_s15 }
  0x86   :  { %p12121_p10 = scmp.lt.s32.totalorder %s12115_s9, %s12115_s9 }
  0x88   :  { %83 = dma.hbm_to_vmem [thread:$0]  %s15049_s7, 16, %s81_s11, [#allocation9]  }
  0x89   :  { %p12122_p11 = por %p12121_p10, %p12120_p9 }
  0x8b   :  { %p12123_p12 = pnand %p12122_p11, %p12116_p8 }
  0x8d   :  { %12126 = shalt.err (!%p12123_p12)
}
  0x8e   :  { %s15050_s3 = sld [smem:[#allocation119_spill]]  ;;  %s12135_s11 = scalar_lea.vmem %s124_s6, 4096 }
  0x8f   :  { %p12136_p13 = scmp.ne.s32.totalorder %s124_s6, %s12135_s11  ;;  %p12140_p0 = scmp.lt.s32.totalorder %s124_s6, %s124_s6 }
  0x90   :  { %p12141_p1 = scmp.lt.s32.totalorder %s12135_s11, %s12135_s11 }
  0x92   :  { %p12142_p2 = por %p12141_p1, %p12140_p0 }
  0x94   :  { %107 = dma.hbm_to_vmem [thread:$0]  %s15050_s3, 512, %s102_s15, [#allocation12], %s15047_s29, %s15047_s29, %s15046_s10  }
  0x95   :  { %p12143_p3 = pnand %p12142_p2, %p12136_p13 }
  0x97   :  { %12146 = shalt.err (!%p12143_p3)
}
  0x98   :  { %s15051_s13 = sld [smem:[#allocation121_spill]]  ;;  %s12305_s23 = smov [#allocation19]  }
  0x99   :  { %s147_s8 = sshll.u32 %s12305_s23, 4  ;;  %s12306_s4 = smov [#allocation22]   ;;  %s148_s8 = int_to_ptr.vmem [resolvable:$true] %s147_s8 }
  0x9a   :  { %s172_s0 = sshll.u32 %s12306_s4, 4  ;;  %s12155_s7 = scalar_lea.vmem %s148_s8, 512  ;;  %s173_s0 = int_to_ptr.vmem [resolvable:$true] %s172_s0 }
  0x9b   :  { %p12156_p4 = scmp.ne.s32.totalorder %s148_s8, %s12155_s7  ;;  %p12160_p5 = scmp.lt.s32.totalorder %s148_s8, %s148_s8 }
  0x9c   :  { %p12161_p6 = scmp.lt.s32.totalorder %s12155_s7, %s12155_s7 }
  0x9e   :  { %129 = dma.hbm_to_vmem [thread:$0]  %s15051_s13, 4096, %s124_s6, [#allocation15], %s15047_s29, %s15047_s29, %s15046_s10  }
  0x9f   :  { %p12162_p7 = por %p12161_p6, %p12160_p5 }
  0xa1   :  { %p12163_p8 = pnand %p12162_p7, %p12156_p4 }
  0xa3   :  { %12166 = shalt.err (!%p12163_p8)
}
  0xa4   :  { %153 = dma.hbm_to_vmem [thread:$0]  %s15004_s12, 512, %s148_s8, [#allocation18], %s15047_s29, %s15047_s29, %s15046_s10  }
  0xa5   :  { %s12175_s28 = scalar_lea.vmem %s173_s0, 16  ;;  %s12179_s6 = scalar_lea.vmem %s173_s0, 32 }
  0xa6   :  { %p12176_p9 = scmp.ne.s32.totalorder %s173_s0, %s12175_s28  ;;  %p12180_p10 = scmp.lt.s32.totalorder %s173_s0, %s173_s0 }
  0xa7   :  { %p12181_p11 = scmp.lt.s32.totalorder %s12179_s6, %s12175_s28 }
  0xa9   :  { %p12182_p12 = por %p12181_p11, %p12180_p10 }
  0xab   :  { %p12183_p13 = pnand %p12182_p12, %p12176_p9 }
  0xad   :  { %12186 = shalt.err (!%p12183_p13)
}
  0xae   :  { %175 = dma.hbm_to_vmem [thread:$0]  %s15006_s14, 16, %s173_s0, [#allocation21]  }
  0xaf   :  { %s12307_s30 = smov [#allocation25]   ;;  %s12308_s11 = smov [#allocation28]  }
  0xb0   :  { %s193_s3 = sshll.u32 %s12307_s30, 4  ;;  %s218_s17 = sshll.u32 %s12308_s11, 4  ;;  %s194_s3 = int_to_ptr.vmem [resolvable:$true] %s193_s3  ;;  %s219_s17 = int_to_ptr.vmem [resolvable:$true] %s218_s17 }
  0xb1   :  { %s12195_s2 = scalar_lea.vmem %s194_s3, 512  ;;  %p12200_p1 = scmp.lt.s32.totalorder %s194_s3, %s194_s3 }
  0xb2   :  { %p12196_p0 = scmp.ne.s32.totalorder %s194_s3, %s12195_s2  ;;  %p12201_p2 = scmp.lt.s32.totalorder %s12195_s2, %s12195_s2 }
  0xb4   :  { %p12202_p3 = por %p12201_p2, %p12200_p1 }
  0xb6   :  { %p12203_p4 = pnand %p12202_p3, %p12196_p0 }
  0xb8   :  { %12206 = shalt.err (!%p12203_p4)
}
  0xb9   :  { %199 = dma.hbm_to_vmem [thread:$0]  %s15008_s16, 512, %s194_s3, [#allocation24], %s15047_s29, %s15047_s29, %s15046_s10  }
  0xba   :  { %s12215_s14 = scalar_lea.vmem %s219_s17, 16  ;;  %s12219_s23 = scalar_lea.vmem %s219_s17, 32 }
  0xbb   :  { %p12216_p5 = scmp.ne.s32.totalorder %s219_s17, %s12215_s14  ;;  %p12220_p6 = scmp.lt.s32.totalorder %s219_s17, %s219_s17 }
  0xbc   :  { %p12221_p7 = scmp.lt.s32.totalorder %s12219_s23, %s12215_s14 }
  0xbe   :  { %p12222_p8 = por %p12221_p7, %p12220_p6 }
  0xc0   :  { %p12223_p9 = pnand %p12222_p8, %p12216_p5 }
  0xc2   :  { %12226 = shalt.err (!%p12223_p9)
}
  0xc3   :  { %221 = dma.hbm_to_vmem [thread:$0]  %s15013_s21, 16, %s219_s17, [#allocation27]  }
  0xc4   :  { %s12309_s0 = smov [#allocation31]  }
  0xc5   :  { %s242_s7 = sshll.u32 %s12309_s0, 4  ;;  %s243_s7 = int_to_ptr.vmem [resolvable:$true] %s242_s7 }
  0xc6   :  { %s12235_s1 = scalar_lea.vmem %s243_s7, 16  ;;  %s12239_s15 = scalar_lea.vmem %s243_s7, 32 }
  0xc7   :  { %p12236_p10 = scmp.ne.s32.totalorder %s243_s7, %s12235_s1  ;;  %p12240_p11 = scmp.lt.s32.totalorder %s243_s7, %s243_s7 }
  0xc8   :  { %p12241_p12 = scmp.lt.s32.totalorder %s12239_s15, %s12235_s1 }
  0xca   :  { %p12242_p13 = por %p12241_p12, %p12240_p11 }
  0xcc   :  { %p12243_p0 = pnand %p12242_p13, %p12236_p10 }
  0xce   :  { %12246 = shalt.err (!%p12243_p0)
}
  0xcf   :  { %245 = dma.hbm_to_vmem [thread:$0]  %s15017_s25, 16, %s243_s7, [#allocation30]  }
  0xd0   :  { %12267 = dma.done.wait [#allocation7], 512  }
  0xd1   :  { %12268 = vsyncadd [#allocation7], 4294966784 }
  0xd2   :  { %12269 = dma.done.wait [#allocation9], 528  }
  0xd3   :  { %12270 = vsyncadd [#allocation9], 4294966768 }
  0xd4   :  { %12271 = dma.done.wait [#allocation12], 1024  }
  0xd5   :  { %12272 = vsyncadd [#allocation12], 4294966272 }
  0xd6   :  { %12273 = dma.done.wait [#allocation15], 4112  }
  0xd7   :  { %12274 = vsyncadd [#allocation15], 4294963184 }
  0xd8   :  { %12275 = dma.done.wait [#allocation18], 640  }
  0xd9   :  { %12276 = vsyncadd [#allocation18], 4294966656 }
  0xda   :  { %12277 = dma.done.wait [#allocation21], 528  }
  0xdb   :  { %12278 = vsyncadd [#allocation21], 4294966768 }
  0xdc   :  { %12279 = dma.done.wait [#allocation24], 1024  }
  0xdd   :  { %12280 = vsyncadd [#allocation24], 4294966272 }
  0xde   :  { %12281 = dma.done.wait [#allocation27], 32  }
  0xdf   :  { %12282 = vsyncadd [#allocation27], 4294967264 }
  0xe0   :  { %12283 = dma.done.wait [#allocation30], 32  }
  0xe1   :  { %12284 = vsyncadd [#allocation30], 4294967264  ;;  %s12310_s21 = smov [#allocation3]  }
  0xe2   :  { %s304_s25 = sshll.u32 %s12310_s21, 4  ;;  %s305_s25 = int_to_ptr.vmem [resolvable:$true] %s304_s25 }
  0xe3   :  { %s12255_s29 = scalar_lea.vmem %s305_s25, 32768  ;;  %p12260_p2 = scmp.lt.s32.totalorder %s305_s25, %s305_s25 }
  0xe4   :  { %p12256_p1 = scmp.ne.s32.totalorder %s305_s25, %s12255_s29  ;;  %p12261_p3 = scmp.lt.s32.totalorder %s12255_s29, %s12255_s29 }
  0xe6   :  { %p12262_p4 = por %p12261_p3, %p12260_p2 }
  0xe8   :  { %p12263_p5 = pnand %p12262_p4, %p12256_p1 }
  0xea   :  { %12266 = shalt.err (!%p12263_p5)  }
  0xeb   :  { %307 = dma.hbm_to_vmem [thread:$0]  %s15010_s18, 32768, %s305_s25, [#allocation5]  ;;  %v12540_v0 = vld [vmem:[%s15012_s20] sm:$0xff]  ;;  %v12545_v1 = vld [vmem:[%s15012_s20 + $0x8] sm:$0xff]  ;;  %v12550_v2 = vld [vmem:[%s15012_s20 + $0x10] sm:$0xff] }
  0xec   :  { %15052 = vst [vmem:[#allocation48_spill] sm:$0xff] %v12540_v0  ;;  %15053 = vst [vmem:[#allocation49_spill] sm:$0xff] %v12545_v1  ;;  %v12555_v3 = vld [vmem:[%s15012_s20 + $0x18] sm:$0xff]  ;;  %v12560_v4 = vld [vmem:[%s15012_s20 + $0x20] sm:$0xff] }
  0xed   :  { %15054 = vst [vmem:[#allocation50_spill] sm:$0xff] %v12550_v2  ;;  %15055 = vst [vmem:[#allocation51_spill] sm:$0xff] %v12555_v3  ;;  %v12565_v5 = vld [vmem:[%s15012_s20 + $0x28] sm:$0xff]  ;;  %v12570_v6 = vld [vmem:[%s15012_s20 + $0x30] sm:$0xff] }
  0xee   :  { %15056 = vst [vmem:[#allocation52_spill] sm:$0xff] %v12560_v4  ;;  %15057 = vst [vmem:[#allocation53_spill] sm:$0xff] %v12565_v5  ;;  %v12575_v7 = vld [vmem:[%s15012_s20 + $0x38] sm:$0xff]  ;;  %v12580_v8 = vld [vmem:[%s15012_s20 + $0x40] sm:$0xff] }
  0xef   :  { %15058 = vst [vmem:[#allocation54_spill] sm:$0xff] %v12570_v6  ;;  %15059 = vst [vmem:[#allocation55_spill] sm:$0xff] %v12575_v7  ;;  %v12585_v9 = vld [vmem:[%s15012_s20 + $0x48] sm:$0xff]  ;;  %v12590_v10 = vld [vmem:[%s15012_s20 + $0x50] sm:$0xff] }
  0xf0   :  { %15060 = vst [vmem:[#allocation56_spill] sm:$0xff] %v12580_v8  ;;  %15061 = vst [vmem:[#allocation57_spill] sm:$0xff] %v12585_v9  ;;  %v12595_v11 = vld [vmem:[%s15012_s20 + $0x58] sm:$0xff]  ;;  %v12600_v12 = vld [vmem:[%s15012_s20 + $0x60] sm:$0xff] }
  0xf1   :  { %15062 = vst [vmem:[#allocation58_spill] sm:$0xff] %v12590_v10  ;;  %15063 = vst [vmem:[#allocation59_spill] sm:$0xff] %v12595_v11  ;;  %v12605_v13 = vld [vmem:[%s15012_s20 + $0x68] sm:$0xff]  ;;  %v12610_v14 = vld [vmem:[%s15012_s20 + $0x70] sm:$0xff] }
  0xf2   :  { %15064 = vst [vmem:[#allocation60_spill] sm:$0xff] %v12600_v12  ;;  %15065 = vst [vmem:[#allocation61_spill] sm:$0xff] %v12605_v13  ;;  %v12615_v15 = vld [vmem:[%s15012_s20 + $0x78] sm:$0xff]  ;;  %v12620_v16 = vld [vmem:[%s15012_s20 + $0x80] sm:$0xff] }
  0xf3   :  { %15066 = vst [vmem:[#allocation62_spill] sm:$0xff] %v12610_v14  ;;  %15067 = vst [vmem:[#allocation63_spill] sm:$0xff] %v12615_v15  ;;  %v12625_v17 = vld [vmem:[%s15012_s20 + $0x88] sm:$0xff]  ;;  %v12630_v18 = vld [vmem:[%s15012_s20 + $0x90] sm:$0xff] }
  0xf4   :  { %15068 = vst [vmem:[#allocation64_spill] sm:$0xff] %v12620_v16  ;;  %15069 = vst [vmem:[#allocation65_spill] sm:$0xff] %v12625_v17  ;;  %v12635_v19 = vld [vmem:[%s15012_s20 + $0x98] sm:$0xff]  ;;  %v12640_v20 = vld [vmem:[%s15012_s20 + $0xa0] sm:$0xff] }
  0xf5   :  { %15070 = vst [vmem:[#allocation66_spill] sm:$0xff] %v12630_v18  ;;  %15071 = vst [vmem:[#allocation67_spill] sm:$0xff] %v12635_v19  ;;  %v12645_v21 = vld [vmem:[%s15012_s20 + $0xa8] sm:$0xff]  ;;  %v12650_v22 = vld [vmem:[%s15012_s20 + $0xb0] sm:$0xff] }
  0xf6   :  { %15072 = vst [vmem:[#allocation68_spill] sm:$0xff] %v12640_v20  ;;  %15073 = vst [vmem:[#allocation69_spill] sm:$0xff] %v12645_v21  ;;  %v12655_v23 = vld [vmem:[%s15012_s20 + $0xb8] sm:$0xff]  ;;  %v12660_v24 = vld [vmem:[%s15012_s20 + $0xc0] sm:$0xff] }
  0xf7   :  { %15074 = vst [vmem:[#allocation70_spill] sm:$0xff] %v12650_v22  ;;  %15075 = vst [vmem:[#allocation71_spill] sm:$0xff] %v12655_v23  ;;  %v12665_v25 = vld [vmem:[%s15012_s20 + $0xc8] sm:$0xff]  ;;  %v12670_v26 = vld [vmem:[%s15012_s20 + $0xd0] sm:$0xff] }
  0xf8   :  { %15076 = vst [vmem:[#allocation72_spill] sm:$0xff] %v12660_v24  ;;  %15077 = vst [vmem:[#allocation73_spill] sm:$0xff] %v12665_v25  ;;  %v12675_v27 = vld [vmem:[%s15012_s20 + $0xd8] sm:$0xff]  ;;  %v12680_v28 = vld [vmem:[%s15012_s20 + $0xe0] sm:$0xff] }
  0xf9   :  { %15078 = vst [vmem:[#allocation74_spill] sm:$0xff] %v12670_v26  ;;  %15079 = vst [vmem:[#allocation75_spill] sm:$0xff] %v12675_v27  ;;  %v12685_v29 = vld [vmem:[%s15012_s20 + $0xe8] sm:$0xff]  ;;  %v12690_v30 = vld [vmem:[%s15012_s20 + $0xf0] sm:$0xff] }
  0xfa   :  { %15080 = vst [vmem:[#allocation76_spill] sm:$0xff] %v12680_v28  ;;  %15081 = vst [vmem:[#allocation77_spill] sm:$0xff] %v12685_v29  ;;  %v12695_v31 = vld [vmem:[%s15012_s20 + $0xf8] sm:$0xff]  ;;  %v12700_v32 = vld [vmem:[%s15012_s20 + $0x100] sm:$0xff] }
  0xfb   :  { %15082 = vst [vmem:[#allocation78_spill] sm:$0xff] %v12690_v30  ;;  %15083 = vst [vmem:[#allocation79_spill] sm:$0xff] %v12700_v32  ;;  %v12705_v33 = vld [vmem:[%s15012_s20 + $0x108] sm:$0xff]  ;;  %v12710_v34 = vld [vmem:[%s15012_s20 + $0x110] sm:$0xff] }
  0xfc   :  { %15084 = vst [vmem:[#allocation80_spill] sm:$0xff] %v12705_v33  ;;  %15085 = vst [vmem:[#allocation81_spill] sm:$0xff] %v12710_v34  ;;  %v12715_v35 = vld [vmem:[%s15012_s20 + $0x118] sm:$0xff]  ;;  %v12720_v36 = vld [vmem:[%s15012_s20 + $0x120] sm:$0xff] }
  0xfd   :  { %15086 = vst [vmem:[#allocation82_spill] sm:$0xff] %v12715_v35  ;;  %15087 = vst [vmem:[#allocation83_spill] sm:$0xff] %v12720_v36  ;;  %v12725_v37 = vld [vmem:[%s15012_s20 + $0x128] sm:$0xff]  ;;  %v12730_v38 = vld [vmem:[%s15012_s20 + $0x130] sm:$0xff] }
  0xfe   :  { %15088 = vst [vmem:[#allocation84_spill] sm:$0xff] %v12725_v37  ;;  %15089 = vst [vmem:[#allocation85_spill] sm:$0xff] %v12730_v38  ;;  %v12735_v39 = vld [vmem:[%s15012_s20 + $0x138] sm:$0xff]  ;;  %v12740_v40 = vld [vmem:[%s15012_s20 + $0x140] sm:$0xff] }
  0xff   :  { %15090 = vst [vmem:[#allocation86_spill] sm:$0xff] %v12735_v39  ;;  %15091 = vst [vmem:[#allocation87_spill] sm:$0xff] %v12740_v40  ;;  %v12745_v41 = vld [vmem:[%s15012_s20 + $0x148] sm:$0xff]  ;;  %v12750_v42 = vld [vmem:[%s15012_s20 + $0x150] sm:$0xff] }
 0x100   :  { %15092 = vst [vmem:[#allocation88_spill] sm:$0xff] %v12745_v41  ;;  %15093 = vst [vmem:[#allocation89_spill] sm:$0xff] %v12750_v42  ;;  %v12755_v43 = vld [vmem:[%s15012_s20 + $0x158] sm:$0xff]  ;;  %v12760_v44 = vld [vmem:[%s15012_s20 + $0x160] sm:$0xff] }
 0x101   :  { %15094 = vst [vmem:[#allocation90_spill] sm:$0xff] %v12755_v43  ;;  %15095 = vst [vmem:[#allocation91_spill] sm:$0xff] %v12760_v44  ;;  %v12765_v45 = vld [vmem:[%s15012_s20 + $0x168] sm:$0xff]  ;;  %v12770_v46 = vld [vmem:[%s15012_s20 + $0x170] sm:$0xff] }
 0x102   :  { %15096 = vst [vmem:[#allocation92_spill] sm:$0xff] %v12765_v45  ;;  %15097 = vst [vmem:[#allocation93_spill] sm:$0xff] %v12770_v46  ;;  %v12775_v47 = vld [vmem:[%s15012_s20 + $0x178] sm:$0xff]  ;;  %v12780_v48 = vld [vmem:[%s15012_s20 + $0x180] sm:$0xff] }
 0x103   :  { %15098 = vst [vmem:[#allocation94_spill] sm:$0xff] %v12775_v47  ;;  %15099 = vst [vmem:[#allocation95_spill] sm:$0xff] %v12780_v48  ;;  %v12785_v49 = vld [vmem:[%s15012_s20 + $0x188] sm:$0xff]  ;;  %v12790_v50 = vld [vmem:[%s15012_s20 + $0x190] sm:$0xff] }
 0x104   :  { %15100 = vst [vmem:[#allocation96_spill] sm:$0xff] %v12785_v49  ;;  %15101 = vst [vmem:[#allocation97_spill] sm:$0xff] %v12790_v50  ;;  %v12795_v51 = vld [vmem:[%s15012_s20 + $0x198] sm:$0xff]  ;;  %v12800_v52 = vld [vmem:[%s15012_s20 + $0x1a0] sm:$0xff] }
 0x105   :  { %15102 = vst [vmem:[#allocation98_spill] sm:$0xff] %v12795_v51  ;;  %15103 = vst [vmem:[#allocation99_spill] sm:$0xff] %v12800_v52  ;;  %v12805_v53 = vld [vmem:[%s15012_s20 + $0x1a8] sm:$0xff]  ;;  %v12810_v54 = vld [vmem:[%s15012_s20 + $0x1b0] sm:$0xff] }
 0x106   :  { %15104 = vst [vmem:[#allocation100_spill] sm:$0xff] %v12805_v53  ;;  %15105 = vst [vmem:[#allocation101_spill] sm:$0xff] %v12810_v54  ;;  %v12815_v55 = vld [vmem:[%s15012_s20 + $0x1b8] sm:$0xff]  ;;  %v12820_v56 = vld [vmem:[%s15012_s20 + $0x1c0] sm:$0xff] }
 0x107   :  { %15106 = vst [vmem:[#allocation102_spill] sm:$0xff] %v12815_v55  ;;  %15107 = vst [vmem:[#allocation103_spill] sm:$0xff] %v12820_v56  ;;  %v12825_v57 = vld [vmem:[%s15012_s20 + $0x1c8] sm:$0xff]  ;;  %v12830_v58 = vld [vmem:[%s15012_s20 + $0x1d0] sm:$0xff] }
 0x108   :  { %15108 = vst [vmem:[#allocation104_spill] sm:$0xff] %v12825_v57  ;;  %15109 = vst [vmem:[#allocation105_spill] sm:$0xff] %v12830_v58  ;;  %v12835_v59 = vld [vmem:[%s15012_s20 + $0x1d8] sm:$0xff]  ;;  %v12840_v60 = vld [vmem:[%s15012_s20 + $0x1e0] sm:$0xff] }
 0x109   :  { %15110 = vst [vmem:[#allocation106_spill] sm:$0xff] %v12835_v59  ;;  %15111 = vst [vmem:[#allocation107_spill] sm:$0xff] %v12840_v60  ;;  %v12845_v61 = vld [vmem:[%s15012_s20 + $0x1e8] sm:$0xff]  ;;  %v12850_v62 = vld [vmem:[%s15012_s20 + $0x1f0] sm:$0xff] }
 0x10a   :  { %15112 = vst [vmem:[#allocation108_spill] sm:$0xff] %v12845_v61  ;;  %15113 = vst [vmem:[#allocation109_spill] sm:$0xff] %v12850_v62  ;;  %v12855_v63 = vld [vmem:[%s15012_s20 + $0x1f8] sm:$0xff] }
 0x10b   :  { %15114 = vst [vmem:[#allocation110_spill] sm:$0xff] %v12855_v63 }
 0x10c   :  { %477 = vsyncadd [#allocation5 + $0x1], 8192  ;;  %s15115_s17 = sld [smem:[#allocation113_spill]]  ;;  %v15028_v0 = vmov 0.0   ;;  %vm12312_vm0 = vmmov 0   ;;  %vm487_vm1 = vcmask 261120  }
 0x10d   :  { %10504 = vmatprep.subr.mxu1 %v15028_v0  ;;  %10512 = vmatprep.mubr.msk.f32.mxu1 %vm12312_vm0, %v15028_v0  ;;  %s15116_s4 = sld [smem:[#allocation112_spill]]  ;;  %s12313_s5 = smov 64   ;;  %v12985_v39 = vld [vmem:[#allocation10] ss:$0 sm:$0xff]  ;;  %v13030_v9 = vld [vmem:[#allocation20 + $0x18] sm:$0xff]  ;;  %vm1122_vm2 = vcmask 257024  }
 0x10e   :  { %10526 = vmatprep.subr.mxu0 %v15028_v0  ;;  %10534 = vmatprep.mubr.msk.f32.mxu0 %vm12312_vm0, %v15028_v0  ;;  %s15117_s29 = sld [smem:[#allocation111_spill]]  ;;  %s12314_s30 = smov 32   ;;  %v13033_v25 = vld [vmem:[#allocation20 + $0x10] sm:$0xff]  ;;  %v13113_v28 = vld [vmem:[#allocation19 + $0x18] sm:$0xff]  ;;  %vm1983_vm3 = vcmask 519424   ;;  %vm2173_vm4 = vcmask 781824  }
 0x10f   :  { %s15118_s9 = sld [smem:[#allocation114_spill]]  ;;  %v13115_v45 = vld [vmem:[#allocation19 + $0x10] sm:$0xff]  ;;  %vm3685_vm5 = vcmask 1044224  }
 0x112   :  { %v12860_v32 = vld [vmem:[%s15115_s17 + $0x18] sm:$0xff]  ;;  %v12866_v48 = vld [vmem:[%s15115_s17 + $0x10] sm:$0xff]  ;;  %v12876_v16 = vld [vmem:[%s15115_s17 + $0x8] sm:$0xff] }
 0x113   :  { %10505 = vmatpush3.msra.mxu1 %v12860_v32  ;;  %v12885_v33 = vld [vmem:[%s15115_s17] sm:$0xff]  ;;  %v12892_v1 = vld [vmem:[%s15116_s4 + $0x18] sm:$0xff]  ;;  %v12900_v49 = vld [vmem:[%s15116_s4 + $0x10] sm:$0xff] }
 0x114   :  { %10506 = vmatprep.subr.mxu1 %v15028_v0  ;;  %v12909_v17 = vld [vmem:[%s15116_s4 + $0x8] sm:$0xff]  ;;  %v12916_v34 = vld [vmem:[%s15116_s4] sm:$0xff] }
 0x115   :  { %10507 = vmatpush3.msra.mxu1 %v12866_v48  ;;  %v12922_v2 = vld [vmem:[%s15117_s29] sm:$0xf] }
 0x116   :  { %10508 = vmatprep.subr.mxu1 %v15028_v0  ;;  %v12934_v3 = vld [vmem:[%s15118_s9] ss:$0 sm:$0xff] }
 0x117   :  { %10509 = vmatpush3.msra.mxu1 %v12876_v16 }
 0x118   :  { %10510 = vmatprep.subr.mxu1 %v15028_v0 }
 0x119   :  { %10511 = vmatpush3.msra.mxu1 %v12885_v33 }
 0x11a   :  { %10513 = vmatmul.mubr.f32.vlgmr.msra.gmra.mxu1 %v15028_v0  ;;  %10515 = vmatprep.subr.mxu1 %v15028_v0 }
 0x11b   :  { %10516 = vmatpush3.msra.mxu1 %v12892_v1  ;;  %10523 = vmatprep.mubr.msk.f32.mxu1 %vm12312_vm0, %v15028_v0 }
 0x11c   :  { %10517 = vmatprep.subr.mxu1 %v15028_v0 }
 0x11d   :  { %10518 = vmatpush3.msra.mxu1 %v12900_v49 }
 0x11e   :  { %10519 = vmatprep.subr.mxu1 %v15028_v0 }
 0x11f   :  { %10520 = vmatpush3.msra.mxu1 %v12909_v17 }
 0x120   :  { %10521 = vmatprep.subr.mxu1 %v15028_v0 }
 0x121   :  { %10522 = vmatpush3.msra.mxu1 %v12916_v34 }
 0x122   :  { %10524 = vmatmul.mubr.msk.f32.vlgmr.msra.gmra.mxu1 %vm487_vm1, %v12922_v2  ;;  %10537 = vmatprep.subr.mxu1 %v15028_v0 }
 0x123   :  { %10545 = vmatprep.mubr.msk.f32.mxu1 %vm12312_vm0, %v15028_v0 }
 0x1da   :  { %v557_v50 = vpop.f32.mrf.mxu1 }
 0x1dc   :  { %v10514_v18 = vpop.f32.mrf.mxu1 }
 0x1e2   :  { %v630_v35 = vpop.f32.mrf.mxu1 }
 0x1e3   :  { %v631_v51 = vadd.f32 %v630_v35, %v557_v50 }
 0x1e4   :  { %v10525_v19 = vpop.f32.mrf.mxu1 }
 0x1e5   :  { %v641_v36 = vadd.f32 %v12934_v3, %v631_v51  ;;  %v12942_v51 = vld [vmem:[#allocation8 + $0x18] sm:$0xff] }
 0x1e6   :  { %10527 = vmatpush3.msra.mxu0 %v12942_v51 }
 0x1e7   :  { %11553 = vtanh.f32 %v641_v36  ;;  %v9786_v52 = vmul.f32 -1.442695, %v641_v36  ;;  %v12946_v36 = vld [vmem:[#allocation6 + $0x18] sm:$0xff] }
 0x1e8   :  { %10538 = vmatpush3.msra.mxu1 %v12946_v36 }
 0x1e9   :  { %11555 = vpow2.f32 %v9786_v52  ;;  %v12962_v52 = vld [vmem:[#allocation8] sm:$0xff] }
 0x1f4   :  { %v11554_v4 = vpop.eup %11553 }
 0x1f5   :  { %651 = vrot.lane.b32.xlu0 %v11554_v4, %s12313_s5  ;;  %v12944_v4 = vld [vmem:[#allocation8 + $0x10] sm:$0xff] }
 0x1f6   :  { %v11556_v0 = vpop.eup %11555 }
 0x1f7   :  { %v645_v20 = vadd.f32 1.0, %v11556_v0  ;;  %v12950_v0 = vld [vmem:[#allocation6 + $0x10] sm:$0xff] }
 0x1f9   :  { %11557 = vrcp.f32 %v645_v20  ;;  %v15119_v20 = vmov 0.0  }
 0x1fa   :  { %10528 = vmatprep.subr.mxu0 %v15119_v20  ;;  %10539 = vmatprep.subr.mxu1 %v15119_v20 }
 0x1fb   :  { %10529 = vmatpush3.msra.mxu0 %v12944_v4  ;;  %10540 = vmatpush3.msra.mxu1 %v12950_v0 }
 0x1fc   :  { %10530 = vmatprep.subr.mxu0 %v15119_v20  ;;  %10541 = vmatprep.subr.mxu1 %v15119_v20 }
 0x206   :  { %v11558_v18 = vpop.eup %11557 }
 0x207   :  { %v649_v35 = vmul.f32 0.0, %v11558_v18 }
 0x267   :  { %v652_v37 = vpop.permute.xlu0 %651 }
 0x268   :  { %v654_v5 = vmul.f32 %v11558_v18, %v652_v37  ;;  %v12956_v37 = vld [vmem:[#allocation6 + $0x8] sm:$0xff] }
 0x269   :  { %10542 = vmatpush3.msra.mxu1 %v12956_v37 }
 0x26a   :  { %656 = vrot.lane.b32.xlu0 %v654_v5, %s12314_s30  ;;  %v12954_v5 = vld [vmem:[#allocation8 + $0x8] sm:$0xff]  ;;  %10543 = vmatprep.subr.mxu1 %v15119_v20 }
 0x26b   :  { %10531 = vmatpush3.msra.mxu0 %v12954_v5 }
 0x26c   :  { %10532 = vmatprep.subr.mxu0 %v15119_v20 }
 0x26d   :  { %10533 = vmatpush3.msra.mxu0 %v12962_v52 }
 0x26e   :  { %10535 = vmatmul.mubr.f32.vlgmr.msra.gmra.mxu0 %v15119_v20  ;;  %10548 = vmatprep.subr.mxu0 %v15119_v20 }
 0x26f   :  { %10556 = vmatprep.mubr.msk.f32.mxu0 %vm12312_vm0, %v15119_v20 }
 0x2dc   :  { %v657_v19 = vpop.permute.xlu0 %656 }
 0x2dd   :  { %v12939_v50 = vadd.f32 %v657_v19, %v649_v35  ;;  %v12964_v35 = vld [vmem:[#allocation6] sm:$0xff] }
 0x2de   :  { %10544 = vmatpush3.msra.mxu1 %v12964_v35 }
 0x2df   :  { %11559 = vtanh.f32 %v12939_v50  ;;  %10559 = vmatprep.subr.mxu1 %v15119_v20 }
 0x2ec   :  { %v11560_v19 = vpop.eup %11559 }
 0x2ed   :  { %662 = vrot.lane.b32.xlu1 %v11560_v19, %s12313_s5 }
 0x32e   :  { %v740_v38 = vpop.f32.mrf.mxu0 }
 0x330   :  { %v10536_v6 = vpop.f32.mrf.mxu0 }
 0x35f   :  { %v663_v53 = vpop.permute.xlu1 %662 }
 0x360   :  { %v665_v21 = vmul.f32 %v11558_v18, %v663_v53 }
 0x362   :  { %745 = vrot.lane.b32.xlu1 %v665_v21, %s12314_s30 }
 0x3d4   :  { %v12979_v54 = vpop.permute.xlu1 %745 }
 0x3d5   :  { %10546 = vmatmul.mubr.msk.f32.vlgmr.msra.gmra.mxu1 %vm487_vm1, %v12979_v54 }
 0x3d6   :  { %10567 = vmatprep.mubr.msk.f32.mxu1 %vm12312_vm0, %v15119_v20 }
 0x495   :  { %v815_v22 = vpop.f32.mrf.mxu1 }
 0x496   :  { %v816_v7 = vadd.f32 %v815_v22, %v740_v38  ;;  %v12995_v38 = vld [vmem:[#allocation11 + $0x18] sm:$0xff] }
 0x497   :  { %v10547_v55 = vpop.f32.mrf.mxu1  ;;  %10560 = vmatpush3.msra.mxu1 %v12995_v38 }
 0x498   :  { %v826_v19 = vadd.f32 %v12985_v39, %v816_v7  ;;  %v12993_v7 = vld [vmem:[#allocation13 + $0x18] sm:$0xff]  ;;  %v12997_v55 = vld [vmem:[#allocation13 + $0x10] sm:$0xff]  ;;  %10561 = vmatprep.subr.mxu1 %v15119_v20 }
 0x499   :  { %10549 = vmatpush3.msra.mxu0 %v12993_v7 }
 0x49a   :  { %11561 = vtanh.f32 %v826_v19  ;;  %v9789_v6 = vmul.f32 -1.442695, %v826_v19  ;;  %v13001_v19 = vld [vmem:[#allocation11 + $0x10] sm:$0xff]  ;;  %10550 = vmatprep.subr.mxu0 %v15119_v20 }
 0x49b   :  { %10551 = vmatpush3.msra.mxu0 %v12997_v55  ;;  %10562 = vmatpush3.msra.mxu1 %v13001_v19 }
 0x49c   :  { %11563 = vpow2.f32 %v9789_v6  ;;  %10552 = vmatprep.subr.mxu0 %v15119_v20  ;;  %10563 = vmatprep.subr.mxu1 %v15119_v20 }
 0x4a7   :  { %v11562_v53 = vpop.eup %11561 }
 0x4a8   :  { %836 = vrot.lane.b32.xlu0 %v11562_v53, %s12313_s5 }
 0x4a9   :  { %v11564_v21 = vpop.eup %11563 }
 0x4aa   :  { %v830_v18 = vadd.f32 1.0, %v11564_v21 }
 0x4ac   :  { %11565 = vrcp.f32 %v830_v18 }
 0x4b9   :  { %v11566_v23 = vpop.eup %11565 }
 0x4ba   :  { %v834_v56 = vmul.f32 0.0, %v11566_v23 }
 0x51a   :  { %v837_v40 = vpop.permute.xlu0 %836 }
 0x51b   :  { %v839_v8 = vmul.f32 %v11566_v23, %v837_v40  ;;  %v13013_v40 = vld [vmem:[#allocation13] sm:$0xff] }
 0x51d   :  { %841 = vrot.lane.b32.xlu1 %v839_v8, %s12314_s30  ;;  %v13005_v8 = vld [vmem:[#allocation13 + $0x8] sm:$0xff] }
 0x51e   :  { %10553 = vmatpush3.msra.mxu0 %v13005_v8 }
 0x51f   :  { %10554 = vmatprep.subr.mxu0 %v15119_v20 }
 0x520   :  { %10555 = vmatpush3.msra.mxu0 %v13013_v40 }
 0x521   :  { %10557 = vmatmul.mubr.f32.vlgmr.msra.gmra.mxu0 %v15119_v20  ;;  %10570 = vmatprep.subr.mxu0 %v15119_v20 }
 0x522   :  { %10578 = vmatprep.mubr.msk.f32.mxu0 %vm12312_vm0, %v15119_v20 }
 0x58f   :  { %v842_v24 = vpop.permute.xlu1 %841 }
 0x590   :  { %v12990_v22 = vadd.f32 %v842_v24, %v834_v56  ;;  %v13007_v24 = vld [vmem:[#allocation11 + $0x8] sm:$0xff]  ;;  %v13015_v56 = vld [vmem:[#allocation11] sm:$0xff] }
 0x591   :  { %10564 = vmatpush3.msra.mxu1 %v13007_v24 }
 0x592   :  { %11567 = vtanh.f32 %v12990_v22  ;;  %10565 = vmatprep.subr.mxu1 %v15119_v20 }
 0x593   :  { %10566 = vmatpush3.msra.mxu1 %v13015_v56 }
 0x594   :  { %10581 = vmatprep.subr.mxu1 %v15119_v20 }
 0x59f   :  { %v11568_v53 = vpop.eup %11567 }
 0x5a0   :  { %847 = vrot.lane.b32.xlu0 %v11568_v53, %s12313_s5  ;;  %v13039_v53 = vld [vmem:[#allocation20 + $0x8] sm:$0xff] }
 0x5e1   :  { %v925_v18 = vpop.f32.mrf.mxu0 }
 0x5e3   :  { %v10558_v41 = vpop.f32.mrf.mxu0 }
 0x612   :  { %v848_v6 = vpop.permute.xlu0 %847 }
 0x613   :  { %v850_v21 = vmul.f32 %v11566_v23, %v848_v6  ;;  %v13043_v23 = vld [vmem:[#allocation20] sm:$0xff] }
 0x615   :  { %930 = vrot.lane.b32.xlu1 %v850_v21, %s12314_s30 }
 0x687   :  { %v931_v57 = vpop.permute.xlu1 %930 }
 0x688   :  { %10568 = vmatmul.mubr.msk.f32.vlgmr.msra.gmra.mxu1 %vm487_vm1, %v931_v57 }
 0x689   :  { %10582 = vmatpush3.msra.mxu1 %v13030_v9  ;;  %10589 = vmatprep.mubr.msk.f32.mxu1 %vm12312_vm0, %v15119_v20 }
 0x68a   :  { %10583 = vmatprep.subr.mxu1 %v15119_v20 }
 0x68b   :  { %10584 = vmatpush3.msra.mxu1 %v13033_v25 }
 0x68c   :  { %10585 = vmatprep.subr.mxu1 %v15119_v20 }
 0x68d   :  { %10586 = vmatpush3.msra.mxu1 %v13039_v53 }
 0x68e   :  { %10587 = vmatprep.subr.mxu1 %v15119_v20 }
 0x68f   :  { %10588 = vmatpush3.msra.mxu1 %v13043_v23 }
 0x690   :  { %10603 = vmatprep.subr.mxu1 %v15119_v20  ;;  %10590 = vmatmul.mubr.f32.vlgmr.msra.gmra.mxu1 %v15119_v20 }
 0x691   :  { %10604 = vmatpush3.msra.mxu1 %v12860_v32  ;;  %10611 = vmatprep.mubr.msk.f32.mxu1 %vm12312_vm0, %v15119_v20 }
 0x692   :  { %10605 = vmatprep.subr.mxu1 %v15119_v20 }
 0x693   :  { %10606 = vmatpush3.msra.mxu1 %v12866_v48 }
 0x694   :  { %10607 = vmatprep.subr.mxu1 %v15119_v20 }
 0x695   :  { %10608 = vmatpush3.msra.mxu1 %v12876_v16 }
 0x696   :  { %10609 = vmatprep.subr.mxu1 %v15119_v20 }
 0x697   :  { %10610 = vmatpush3.msra.mxu1 %v12885_v33 }
 0x698   :  { %10612 = vmatmul.mubr.msk.f32.vlgmr.msra.gmra.mxu1 %vm487_vm1, %v12979_v54  ;;  %10625 = vmatprep.subr.mxu1 %v15119_v20  ;;  %v13083_v54 = vld [vmem:[#allocation14] ss:$0 sm:$0xff] }
 0x699   :  { %10626 = vmatpush3.msra.mxu1 %v12942_v51  ;;  %10633 = vmatprep.mubr.msk.f32.mxu1 %vm12312_vm0, %v15119_v20 }
 0x69a   :  { %10627 = vmatprep.subr.mxu1 %v15119_v20 }
 0x69b   :  { %10628 = vmatpush3.msra.mxu1 %v12944_v4 }
 0x69c   :  { %10629 = vmatprep.subr.mxu1 %v15119_v20 }
 0x69d   :  { %10630 = vmatpush3.msra.mxu1 %v12954_v5 }
 0x69e   :  { %10631 = vmatprep.subr.mxu1 %v15119_v20 }
 0x69f   :  { %10632 = vmatpush3.msra.mxu1 %v12962_v52 }
 0x6a0   :  { %10634 = vmatmul.mubr.msk.f32.vlgmr.msra.gmra.mxu1 %vm487_vm1, %v931_v57  ;;  %10647 = vmatprep.subr.mxu1 %v15119_v20 }
 0x6a1   :  { %10648 = vmatpush3.msra.mxu1 %v12993_v7  ;;  %10655 = vmatprep.mubr.msk.f32.mxu1 %vm12312_vm0, %v15119_v20 }
 0x6a2   :  { %10649 = vmatprep.subr.mxu1 %v15119_v20 }
 0x6a3   :  { %10650 = vmatpush3.msra.mxu1 %v12997_v55 }
 0x6a4   :  { %10651 = vmatprep.subr.mxu1 %v15119_v20 }
 0x6a5   :  { %10652 = vmatpush3.msra.mxu1 %v13005_v8 }
 0x6a6   :  { %10653 = vmatprep.subr.mxu1 %v15119_v20 }
 0x6a7   :  { %10654 = vmatpush3.msra.mxu1 %v13013_v40 }
 0x6a8   :  { %10669 = vmatprep.subr.mxu1 %v15119_v20 }
 0x748   :  { %v1000_v41 = vpop.f32.mrf.mxu1 }
 0x749   :  { %v1001_v57 = vadd.f32 %v1000_v41, %v925_v18 }
 0x74a   :  { %v10569_v6 = vpop.f32.mrf.mxu1 }
 0x74b   :  { %v1011_v21 = vadd.f32 %v13083_v54, %v1001_v57 }
 0x74d   :  { %11569 = vtanh.f32 %v1011_v21  ;;  %v9792_v27 = vmul.f32 -1.442695, %v1011_v21 }
 0x74f   :  { %11571 = vpow2.f32 %v9792_v27  ;;  %v1037_v27 = vld [vmem:[#allocation16 + $0x8] sm:$0xff] }
 0x750   :  { %v13086_v42 = vpop.f32.mrf.mxu1 }
 0x752   :  { %v10591_v10 = vpop.f32.mrf.mxu1 }
 0x758   :  { %v13088_v58 = vpop.f32.mrf.mxu1 }
 0x75a   :  { %v11570_v26 = vpop.eup %11569  ;;  %v10613_v43 = vpop.f32.mrf.mxu1 }
 0x75b   :  { %1021 = vrot.lane.b32.xlu0 %v11570_v26, %s12313_s5  ;;  %v1039_v26 = vld [vmem:[#allocation16 + $0x18] sm:$0xff]  ;;  %v1038_v43 = vld [vmem:[#allocation16 + $0x10] sm:$0xff] }
 0x75c   :  { %v11572_v44 = vpop.eup %11571  ;;  %10571 = vmatpush3.msra.mxu0 %v1039_v26 }
 0x75d   :  { %v1015_v18 = vadd.f32 1.0, %v11572_v44  ;;  %10572 = vmatprep.subr.mxu0 %v15119_v20  ;;  %v1036_v44 = vld [vmem:[#allocation16] sm:$0xff] }
 0x75e   :  { %10573 = vmatpush3.msra.mxu0 %v1038_v43 }
 0x75f   :  { %11573 = vrcp.f32 %v1015_v18  ;;  %10574 = vmatprep.subr.mxu0 %v15119_v20 }
 0x760   :  { %v13091_v11 = vpop.f32.mrf.mxu1  ;;  %10575 = vmatpush3.msra.mxu0 %v1037_v27 }
 0x761   :  { %10576 = vmatprep.subr.mxu0 %v15119_v20 }
 0x762   :  { %v10635_v59 = vpop.f32.mrf.mxu1  ;;  %10577 = vmatpush3.msra.mxu0 %v1036_v44 }
 0x763   :  { %10592 = vmatprep.subr.mxu0 %v15119_v20 }
 0x76c   :  { %v11574_v41 = vpop.eup %11573 }
 0x76d   :  { %v1019_v10 = vmul.f32 0.0, %v11574_v41 }
 0x7cd   :  { %v1022_v57 = vpop.permute.xlu0 %1021 }
 0x7ce   :  { %v1024_v6 = vmul.f32 %v11574_v41, %v1022_v57  ;;  %v9793_v57 = vld [vmem:[#allocation17] ss:$0 sm:$0xff] }
 0x7d0   :  { %1026 = vrot.lane.b32.xlu1 %v1024_v6, %s12314_s30 }
 0x842   :  { %v1027_v12 = vpop.permute.xlu1 %1026 }
 0x843   :  { %v13094_v60 = vadd.f32 %v1027_v12, %v1019_v10 }
 0x845   :  { %11575 = vtanh.f32 %v13094_v60 }
 0x852   :  { %v11576_v12 = vpop.eup %11575 }
 0x853   :  { %1032 = vrot.lane.b32.xlu0 %v11576_v12, %s12313_s5 }
 0x8c5   :  { %v1033_v59 = vpop.permute.xlu0 %1032 }
 0x8c6   :  { %v1035_v21 = vmul.f32 %v11574_v41, %v1033_v59 }
 0x8c8   :  { %1048 = vrot.lane.b32.xlu1 %v1035_v21, %s12314_s30 }
 0x93a   :  { %v1049_v18 = vpop.permute.xlu1 %1048 }
 0x93b   :  { %10579 = vmatmul.mubr.msk.f32.vlgmr.msra.gmra.mxu0 %vm487_vm1, %v1049_v18  ;;  %10656 = vmatmul.mubr.msk.f32.vlgmr.msra.gmra.mxu1 %vm487_vm1, %v1049_v18 }
 0x93c   :  { %10600 = vmatprep.mubr.msk.f32.mxu0 %vm12312_vm0, %v15119_v20  ;;  %10677 = vmatprep.mubr.msk.f32.mxu1 %vm12312_vm0, %v15119_v20 }
 0x93d   :  { %10593 = vmatpush3.msra.mxu0 %v13113_v28 }
 0x93e   :  { %10594 = vmatprep.subr.mxu0 %v15119_v20 }
 0x93f   :  { %10595 = vmatpush3.msra.mxu0 %v13115_v45 }
 0x940   :  { %10596 = vmatprep.subr.mxu0 %v15119_v20 }
 0x9fb   :  { %v1118_v6 = vpop.f32.mrf.mxu0  ;;  %v13109_v10 = vpop.f32.mrf.mxu1 }
 0x9fc   :  { %v1119_v26 = vadd.f32 %v9793_v57, %v1118_v6  ;;  %v13119_v57 = vld [vmem:[#allocation19 + $0x8] sm:$0xff]  ;;  %v13123_v6 = vld [vmem:[#allocation19] sm:$0xff] }
 0x9fd   :  { %v10580_v41 = vpop.f32.mrf.mxu0  ;;  %v10657_v43 = vpop.f32.mrf.mxu1  ;;  %10597 = vmatpush3.msra.mxu0 %v13119_v57 }
 0x9fe   :  { %v1123_v27 = vsel %vm1122_vm2, %v1119_v26, -inf  ;;  %10598 = vmatprep.subr.mxu0 %v15119_v20 }
 0x9ff   :  { %1124 = vmax.xlane.f32.xlu0 %v1123_v27  ;;  %10599 = vmatpush3.msra.mxu0 %v13123_v6 }
 0xa00   :  { %10614 = vmatprep.subr.mxu0 %v15119_v20 }
 0xa88   :  { %v1125_v44 = vpop.xlane.xlu0 %1124 }
 0xa89   :  { %v1126_v12 = vsub.f32 %v1119_v26, %v1125_v44 }
 0xa8b   :  { %v1127_v59 = vmul.f32 1.442695, %v1126_v12 }
 0xa8d   :  { %11577 = vpow2.f32 %v1127_v59 }
 0xa9a   :  { %v11578_v21 = vpop.eup %11577 }
 0xa9b   :  { %v1129_v18 = vsel %vm1122_vm2, %v11578_v21, 0.0 }
 0xa9c   :  { %1130 = vadd.xlane.f32.xlu1 %v1129_v18 }
 0xb25   :  { %v1131_v26 = vpop.xlane.xlu1 %1130 }
 0xb26   :  { %11579 = vrcp.f32 %v1131_v26 }
 0xb33   :  { %v11580_v41 = vpop.eup %11579 }
 0xb34   :  { %v1133_v43 = vmul.f32 %v11580_v41, %v11578_v21 }
 0xb36   :  { %v13130_v27 = vmul.f32 %v1133_v43, %v12922_v2  ;;  %v13149_v2 = vld [vmem:[%s15117_s29 + $0x4] sm:$0xf] }
 0xb38   :  { %10601 = vmatmul.mubr.msk.f32.vlgmr.msra.gmra.mxu0 %vm487_vm1, %v13130_v27  ;;  %1135 = vst.msk [vmem:[%s15018_s26] sm:$0xf] %vm1122_vm2, %v13130_v27 }
 0xb39   :  { %10615 = vmatpush3.msra.mxu0 %v12892_v1  ;;  %10622 = vmatprep.mubr.msk.f32.mxu0 %vm12312_vm0, %v15119_v20 }
 0xb3a   :  { %10616 = vmatprep.subr.mxu0 %v15119_v20 }
 0xb3b   :  { %10617 = vmatpush3.msra.mxu0 %v12900_v49 }
 0xb3c   :  { %10618 = vmatprep.subr.mxu0 %v15119_v20 }
 0xb3d   :  { %10619 = vmatpush3.msra.mxu0 %v12909_v17 }
 0xb3e   :  { %10620 = vmatprep.subr.mxu0 %v15119_v20 }
 0xb3f   :  { %10621 = vmatpush3.msra.mxu0 %v12916_v34 }
 0xb40   :  { %10623 = vmatmul.mubr.msk.f32.vlgmr.msra.gmra.mxu0 %vm487_vm1, %v13149_v2  ;;  %10636 = vmatprep.subr.mxu0 %v15119_v20 }
 0xb41   :  { %10637 = vmatpush3.msra.mxu0 %v12946_v36  ;;  %10644 = vmatprep.mubr.msk.f32.mxu0 %vm12312_vm0, %v15119_v20 }
 0xb42   :  { %10638 = vmatprep.subr.mxu0 %v15119_v20 }
 0xb43   :  { %10639 = vmatpush3.msra.mxu0 %v12950_v0 }
 0xb44   :  { %10640 = vmatprep.subr.mxu0 %v15119_v20 }
 0xb45   :  { %10641 = vmatpush3.msra.mxu0 %v12956_v37 }
 0xb46   :  { %10642 = vmatprep.subr.mxu0 %v15119_v20 }
 0xb47   :  { %10643 = vmatpush3.msra.mxu0 %v12964_v35 }
 0xb48   :  { %10658 = vmatprep.subr.mxu0 %v15119_v20 }
 0xbf8   :  { %v13166_v44 = vpop.f32.mrf.mxu0 }
 0xbfa   :  { %v10602_v12 = vpop.f32.mrf.mxu0 }
 0xc00   :  { %v1473_v59 = vpop.f32.mrf.mxu0 }
 0xc01   :  { %v1474_v21 = vadd.f32 %v1473_v59, %v13088_v58 }
 0xc02   :  { %v10624_v18 = vpop.f32.mrf.mxu0 }
 0xc03   :  { %v1484_v26 = vadd.f32 %v12934_v3, %v1474_v21 }
 0xc05   :  { %11581 = vtanh.f32 %v1484_v26  ;;  %v9802_v43 = vmul.f32 -1.442695, %v1484_v26 }
 0xc07   :  { %11583 = vpow2.f32 %v9802_v43 }
 0xc12   :  { %v11582_v41 = vpop.eup %11581 }
 0xc13   :  { %1494 = vrot.lane.b32.xlu0 %v11582_v41, %s12313_s5 }
 0xc14   :  { %v11584_v13 = vpop.eup %11583 }
 0xc15   :  { %v1488_v61 = vadd.f32 1.0, %v11584_v13 }
 0xc17   :  { %11585 = vrcp.f32 %v1488_v61 }
 0xc24   :  { %v11586_v29 = vpop.eup %11585 }
 0xc25   :  { %v1492_v12 = vmul.f32 %v11586_v29, %v12939_v50 }
 0xc85   :  { %v1495_v46 = vpop.permute.xlu0 %1494 }
 0xc86   :  { %v1497_v14 = vmul.f32 %v11586_v29, %v1495_v46 }
 0xc88   :  { %1499 = vrot.lane.b32.xlu1 %v1497_v14, %s12314_s30 }
 0xcfa   :  { %v1500_v58 = vpop.permute.xlu1 %1499 }
 0xcfb   :  { %v13173_v59 = vadd.f32 %v1500_v58, %v1492_v12 }
 0xcfd   :  { %11587 = vtanh.f32 %v13173_v59 }
 0xd0a   :  { %v11588_v21 = vpop.eup %11587 }
 0xd0b   :  { %1505 = vrot.lane.b32.xlu0 %v11588_v21, %s12313_s5 }
 0xd7d   :  { %v1506_v18 = vpop.permute.xlu0 %1505 }
 0xd7e   :  { %v1508_v26 = vmul.f32 %v11586_v29, %v1506_v18 }
 0xd80   :  { %1588 = vrot.lane.b32.xlu1 %v1508_v26, %s12314_s30 }
 0xdf2   :  { %v13178_v13 = vpop.permute.xlu1 %1588 }
 0xdf3   :  { %10645 = vmatmul.mubr.msk.f32.vlgmr.msra.gmra.mxu0 %vm487_vm1, %v13178_v13 }
 0xdf4   :  { %10659 = vmatpush3.msra.mxu0 %v12995_v38  ;;  %10666 = vmatprep.mubr.msk.f32.mxu0 %vm12312_vm0, %v15119_v20 }
 0xdf5   :  { %10660 = vmatprep.subr.mxu0 %v15119_v20 }
 0xdf6   :  { %10661 = vmatpush3.msra.mxu0 %v13001_v19 }
 0xdf7   :  { %10662 = vmatprep.subr.mxu0 %v15119_v20 }
 0xdf8   :  { %10663 = vmatpush3.msra.mxu0 %v13007_v24 }
 0xdf9   :  { %10664 = vmatprep.subr.mxu0 %v15119_v20 }
 0xdfa   :  { %10665 = vmatpush3.msra.mxu0 %v13015_v56 }
 0xdfb   :  { %10680 = vmatprep.subr.mxu0 %v15119_v20 }
 0xeb3   :  { %v1658_v14 = vpop.f32.mrf.mxu0 }
 0xeb4   :  { %v1659_v29 = vadd.f32 %v1658_v14, %v13091_v11 }
 0xeb5   :  { %v10646_v46 = vpop.f32.mrf.mxu0 }
 0xeb6   :  { %v1669_v61 = vadd.f32 %v12985_v39, %v1659_v29 }
 0xeb8   :  { %11589 = vtanh.f32 %v1669_v61  ;;  %v9806_v41 = vmul.f32 -1.442695, %v1669_v61 }
 0xeba   :  { %11591 = vpow2.f32 %v9806_v41 }
 0xec5   :  { %v11590_v50 = vpop.eup %11589 }
 0xec6   :  { %1679 = vrot.lane.b32.xlu0 %v11590_v50, %s12313_s5 }
 0xec7   :  { %v11592_v43 = vpop.eup %11591 }
 0xec8   :  { %v1673_v12 = vadd.f32 1.0, %v11592_v43 }
 0xeca   :  { %11593 = vrcp.f32 %v1673_v12 }
 0xed7   :  { %v11594_v58 = vpop.eup %11593 }
 0xed8   :  { %v1677_v26 = vmul.f32 %v11594_v58, %v12990_v22 }
 0xf38   :  { %v1680_v21 = vpop.permute.xlu0 %1679 }
 0xf39   :  { %v1682_v18 = vmul.f32 %v11594_v58, %v1680_v21 }
 0xf3b   :  { %1684 = vrot.lane.b32.xlu1 %v1682_v18, %s12314_s30 }
 0xfad   :  { %v1685_v11 = vpop.permute.xlu1 %1684 }
 0xfae   :  { %v13197_v14 = vadd.f32 %v1685_v11, %v1677_v26  ;;  %v13223_v11 = vld [vmem:[#allocation22] ss:$0 sm:$0xff] }
 0xfb0   :  { %11595 = vtanh.f32 %v13197_v14 }
 0xfbd   :  { %v11596_v29 = vpop.eup %11595 }
 0xfbe   :  { %1690 = vrot.lane.b32.xlu0 %v11596_v29, %s12313_s5 }
0x1030   :  { %v1691_v46 = vpop.permute.xlu0 %1690 }
0x1031   :  { %v1693_v61 = vmul.f32 %v11594_v58, %v1691_v46 }
0x1033   :  { %1773 = vrot.lane.b32.xlu1 %v1693_v61, %s12314_s30 }
0x10a5   :  { %v13202_v50 = vpop.permute.xlu1 %1773 }
0x10a6   :  { %10667 = vmatmul.mubr.msk.f32.vlgmr.msra.gmra.mxu0 %vm487_vm1, %v13202_v50 }
0x10a7   :  { %10681 = vmatpush3.msra.mxu0 %v13030_v9  ;;  %10688 = vmatprep.mubr.msk.f32.mxu0 %vm12312_vm0, %v15119_v20 }
0x10a8   :  { %10682 = vmatprep.subr.mxu0 %v15119_v20 }
0x10a9   :  { %10683 = vmatpush3.msra.mxu0 %v13033_v25 }
0x10aa   :  { %10684 = vmatprep.subr.mxu0 %v15119_v20 }
0x10ab   :  { %10685 = vmatpush3.msra.mxu0 %v13039_v53 }
0x10ac   :  { %10686 = vmatprep.subr.mxu0 %v15119_v20 }
0x10ad   :  { %10687 = vmatpush3.msra.mxu0 %v13043_v23 }
0x10ae   :  { %10702 = vmatprep.subr.mxu0 %v15119_v20 }
0x1166   :  { %v1843_v22 = vpop.f32.mrf.mxu0 }
0x1167   :  { %v1844_v9 = vadd.f32 %v1843_v22, %v13109_v10  ;;  %v1284_v10 = vadd.f32 %v13166_v44, %v13086_v42  ;;  %v1883_v22 = vld [vmem:[#allocation16 + $0x38] sm:$0xff]  ;;  %v1880_v42 = vld [vmem:[#allocation16 + $0x20] sm:$0xff] }
0x1168   :  { %v10668_v41 = vpop.f32.mrf.mxu0  ;;  %10670 = vmatpush3.msra.mxu1 %v1883_v22 }
0x1169   :  { %v1854_v43 = vadd.f32 %v13083_v54, %v1844_v9  ;;  %v1294_v61 = vadd.f32 %v13223_v11, %v1284_v10  ;;  %v1882_v9 = vld [vmem:[#allocation16 + $0x30] sm:$0xff]  ;;  %10671 = vmatprep.subr.mxu1 %v15119_v20  ;;  %v1881_v41 = vld [vmem:[#allocation16 + $0x28] sm:$0xff] }
0x116a   :  { %10672 = vmatpush3.msra.mxu1 %v1882_v9  ;;  %v9811_v9 = vld [vmem:[#allocation17 + $0x1] ss:$0 sm:$0xff] }
0x116b   :  { %11597 = vtanh.f32 %v1854_v43  ;;  %v9810_v25 = vmul.f32 -1.442695, %v1854_v43  ;;  %10673 = vmatprep.subr.mxu1 %v15119_v20  ;;  %v9797_v43 = vmul.f32 -1.442695, %v1294_v61 }
0x116c   :  { %10674 = vmatpush3.msra.mxu1 %v1881_v41 }
0x116d   :  { %11599 = vpow2.f32 %v9810_v25  ;;  %10675 = vmatprep.subr.mxu1 %v15119_v20 }
0x116e   :  { %10676 = vmatpush3.msra.mxu1 %v1880_v42 }
0x116f   :  { %10691 = vmatprep.subr.mxu1 %v15119_v20 }
0x1178   :  { %v11598_v12 = vpop.eup %11597 }
0x1179   :  { %1864 = vrot.lane.b32.xlu0 %v11598_v12, %s12313_s5 }
0x117a   :  { %v11600_v58 = vpop.eup %11599 }
0x117b   :  { %v1858_v53 = vadd.f32 1.0, %v11600_v58 }
0x117d   :  { %11601 = vrcp.f32 %v1858_v53 }
0x118a   :  { %v11602_v21 = vpop.eup %11601 }
0x118b   :  { %v1862_v26 = vmul.f32 %v11602_v21, %v13094_v60 }
0x11eb   :  { %v1865_v18 = vpop.permute.xlu0 %1864 }
0x11ec   :  { %v1867_v23 = vmul.f32 %v11602_v21, %v1865_v18 }
0x11ee   :  { %1869 = vrot.lane.b32.xlu1 %v1867_v23, %s12314_s30 }
0x1260   :  { %v1870_v29 = vpop.permute.xlu1 %1869 }
0x1261   :  { %v13225_v46 = vadd.f32 %v1870_v29, %v1862_v26 }
0x1263   :  { %11603 = vtanh.f32 %v13225_v46 }
0x1264   :  { %11605 = vtanh.f32 %v1294_v61 }
0x1265   :  { %11607 = vpow2.f32 %v9797_v43 }
0x1270   :  { %v11604_v60 = vpop.eup %11603 }
0x1271   :  { %1875 = vrot.lane.b32.xlu0 %v11604_v60, %s12313_s5  ;;  %v11606_v44 = vpop.eup %11605 }
0x1272   :  { %v11608_v12 = vpop.eup %11607 }
0x1273   :  { %v1298_v25 = vadd.f32 1.0, %v11608_v12 }
0x1275   :  { %1304 = vrot.lane.b32.xlu0 %v11606_v44, %s12313_s5  ;;  %11609 = vrcp.f32 %v1298_v25 }
0x1282   :  { %v11610_v18 = vpop.eup %11609 }
0x1283   :  { %v1302_v29 = vmul.f32 0.0, %v11610_v18 }
0x12e3   :  { %v1876_v58 = vpop.permute.xlu0 %1875 }
0x12e4   :  { %v1878_v53 = vmul.f32 %v11602_v21, %v1876_v58 }
0x12e6   :  { %1893 = vrot.lane.b32.xlu1 %v1878_v53, %s12314_s30 }
0x12e7   :  { %v1305_v23 = vpop.permute.xlu0 %1304 }
0x12e8   :  { %v1307_v10 = vmul.f32 %v11610_v18, %v1305_v23 }
0x12ea   :  { %1309 = vrot.lane.b32.xlu1 %v1307_v10, %s12314_s30 }
0x1358   :  { %v13237_v26 = vpop.permute.xlu1 %1893 }
0x1359   :  { %10678 = vmatmul.mubr.msk.f32.vlgmr.msra.gmra.mxu1 %vm487_vm1, %v13237_v26 }
0x135a   :  { %10692 = vmatpush3.msra.mxu1 %v13113_v28  ;;  %10699 = vmatprep.mubr.msk.f32.mxu1 %vm12312_vm0, %v15119_v20 }
0x135b   :  { %10693 = vmatprep.subr.mxu1 %v15119_v20 }
0x135c   :  { %v1310_v21 = vpop.permute.xlu1 %1309  ;;  %10694 = vmatpush3.msra.mxu1 %v13115_v45 }
0x135d   :  { %v13246_v61 = vadd.f32 %v1310_v21, %v1302_v29  ;;  %10695 = vmatprep.subr.mxu1 %v15119_v20 }
0x135e   :  { %10696 = vmatpush3.msra.mxu1 %v13119_v57 }
0x135f   :  { %11611 = vtanh.f32 %v13246_v61  ;;  %10697 = vmatprep.subr.mxu1 %v15119_v20 }
0x1360   :  { %10698 = vmatpush3.msra.mxu1 %v13123_v6 }
0x1361   :  { %10713 = vmatprep.subr.mxu1 %v15119_v20 }
0x136c   :  { %v11612_v22 = vpop.eup %11611 }
0x136d   :  { %1315 = vrot.lane.b32.xlu1 %v11612_v22, %s12313_s5 }
0x13df   :  { %v1316_v43 = vpop.permute.xlu1 %1315 }
0x13e0   :  { %v1318_v12 = vmul.f32 %v11610_v18, %v1316_v43 }
0x1419   :  { %v1963_v41 = vpop.f32.mrf.mxu1 }
0x141a   :  { %v1964_v42 = vadd.f32 %v9811_v9, %v1963_v41 }
0x141b   :  { %v10679_v60 = vpop.f32.mrf.mxu1 }
0x141c   :  { %v1967_v44 = vsel %vm1122_vm2, %v1964_v42, -inf }
0x141d   :  { %1968 = vmax.xlane.f32.xlu0 %v1967_v44 }
0x1433   :  { %1320 = vrot.lane.b32.xlu0 %v1318_v12, %s12314_s30 }
0x14a6   :  { %v1969_v25 = vpop.xlane.xlu0 %1968 }
0x14a7   :  { %v1970_v58 = vsub.f32 %v1964_v42, %v1969_v25 }
0x14a9   :  { %v1971_v53 = vmul.f32 1.442695, %v1970_v58 }
0x14aa   :  { %v1321_v23 = vpop.permute.xlu0 %1320 }
0x14ab   :  { %11613 = vpow2.f32 %v1971_v53  ;;  %1323 = vst.msk [vmem:[#allocation2] sm:$0xf] %vm1122_vm2, %v1321_v23  ;;  %10689 = vmatmul.mubr.msk.f32.vlgmr.msra.gmra.mxu0 %vm487_vm1, %v1321_v23 }
0x14ac   :  { %10703 = vmatpush3.msra.mxu0 %v12860_v32  ;;  %10710 = vmatprep.mubr.msk.f32.mxu0 %vm12312_vm0, %v15119_v20 }
0x14ad   :  { %10704 = vmatprep.subr.mxu0 %v15119_v20 }
0x14ae   :  { %10705 = vmatpush3.msra.mxu0 %v12866_v48 }
0x14af   :  { %10706 = vmatprep.subr.mxu0 %v15119_v20 }
0x14b0   :  { %10707 = vmatpush3.msra.mxu0 %v12876_v16 }
0x14b1   :  { %10708 = vmatprep.subr.mxu0 %v15119_v20 }
0x14b2   :  { %10709 = vmatpush3.msra.mxu0 %v12885_v33 }
0x14b3   :  { %10711 = vmatmul.mubr.msk.f32.vlgmr.msra.gmra.mxu0 %vm487_vm1, %v13178_v13  ;;  %10724 = vmatprep.subr.mxu0 %v15119_v20 }
0x14b4   :  { %10725 = vmatpush3.msra.mxu0 %v12942_v51  ;;  %10732 = vmatprep.mubr.msk.f32.mxu0 %vm12312_vm0, %v15119_v20 }
0x14b5   :  { %10726 = vmatprep.subr.mxu0 %v15119_v20 }
0x14b6   :  { %10727 = vmatpush3.msra.mxu0 %v12944_v4 }
0x14b7   :  { %10728 = vmatprep.subr.mxu0 %v15119_v20 }
0x14b8   :  { %v11614_v16 = vpop.eup %11613  ;;  %10729 = vmatpush3.msra.mxu0 %v12954_v5  ;;  %v13313_v5 = vld [vmem:[%s15117_s29 + $0x8] sm:$0xf] }
0x14b9   :  { %10730 = vmatprep.subr.mxu0 %v15119_v20  ;;  %v1973_v32 = vsel %vm1122_vm2, %v11614_v16, 0.0 }
0x14ba   :  { %10731 = vmatpush3.msra.mxu0 %v12962_v52  ;;  %1974 = vadd.xlane.f32.xlu1 %v1973_v32 }
0x14bb   :  { %10733 = vmatmul.mubr.msk.f32.vlgmr.msra.gmra.mxu0 %vm487_vm1, %v13202_v50  ;;  %10746 = vmatprep.subr.mxu0 %v15119_v20 }
0x14bc   :  { %10747 = vmatpush3.msra.mxu0 %v12993_v7  ;;  %10754 = vmatprep.mubr.msk.f32.mxu0 %vm12312_vm0, %v15119_v20 }
0x14bd   :  { %10748 = vmatprep.subr.mxu0 %v15119_v20 }
0x14be   :  { %10749 = vmatpush3.msra.mxu0 %v12997_v55 }
0x14bf   :  { %10750 = vmatprep.subr.mxu0 %v15119_v20 }
0x14c0   :  { %10751 = vmatpush3.msra.mxu0 %v13005_v8 }
0x14c1   :  { %10752 = vmatprep.subr.mxu0 %v15119_v20 }
0x14c2   :  { %10753 = vmatpush3.msra.mxu0 %v13013_v40 }
0x14c3   :  { %10755 = vmatmul.mubr.msk.f32.vlgmr.msra.gmra.mxu0 %vm487_vm1, %v13237_v26  ;;  %10768 = vmatprep.subr.mxu0 %v15119_v20 }
0x14c4   :  { %10776 = vmatprep.mubr.msk.f32.mxu0 %vm12312_vm0, %v15119_v20 }
0x1543   :  { %v1975_v33 = vpop.xlane.xlu1 %1974 }
0x1544   :  { %11615 = vrcp.f32 %v1975_v33 }
0x1551   :  { %v11616_v48 = vpop.eup %11615 }
0x1552   :  { %v1977_v51 = vmul.f32 %v11616_v48, %v11614_v16 }
0x1554   :  { %v13299_v4 = vmul.f32 %v13149_v2, %v1977_v51 }
0x1556   :  { %10700 = vmatmul.mubr.msk.f32.vlgmr.msra.gmra.mxu1 %vm487_vm1, %v13299_v4 }
0x1557   :  { %10714 = vmatpush3.msra.mxu1 %v12892_v1  ;;  %10721 = vmatprep.mubr.msk.f32.mxu1 %vm12312_vm0, %v15119_v20 }
0x1558   :  { %10715 = vmatprep.subr.mxu1 %v15119_v20 }
0x1559   :  { %10716 = vmatpush3.msra.mxu1 %v12900_v49 }
0x155a   :  { %10717 = vmatprep.subr.mxu1 %v15119_v20 }
0x155b   :  { %10718 = vmatpush3.msra.mxu1 %v12909_v17 }
0x155c   :  { %10719 = vmatprep.subr.mxu1 %v15119_v20 }
0x155d   :  { %10720 = vmatpush3.msra.mxu1 %v12916_v34 }
0x155e   :  { %10722 = vmatmul.mubr.msk.f32.vlgmr.msra.gmra.mxu1 %vm487_vm1, %v13313_v5  ;;  %10735 = vmatprep.subr.mxu1 %v15119_v20 }
0x155f   :  { %10736 = vmatpush3.msra.mxu1 %v12946_v36  ;;  %10743 = vmatprep.mubr.msk.f32.mxu1 %vm12312_vm0, %v15119_v20 }
0x1560   :  { %10737 = vmatprep.subr.mxu1 %v15119_v20 }
0x1561   :  { %10738 = vmatpush3.msra.mxu1 %v12950_v0 }
0x1562   :  { %10739 = vmatprep.subr.mxu1 %v15119_v20 }
0x1563   :  { %10740 = vmatpush3.msra.mxu1 %v12956_v37 }
0x1564   :  { %10741 = vmatprep.subr.mxu1 %v15119_v20 }
0x1565   :  { %10742 = vmatpush3.msra.mxu1 %v12964_v35 }
0x1566   :  { %10757 = vmatprep.subr.mxu1 %v15119_v20 }
0x156b   :  { %v13330_v1 = vpop.f32.mrf.mxu0 }
0x156d   :  { %v10690_v17 = vpop.f32.mrf.mxu0 }
0x1573   :  { %v2251_v34 = vpop.f32.mrf.mxu0 }
0x1575   :  { %v10712_v49 = vpop.f32.mrf.mxu0 }
0x157b   :  { %v2434_v36 = vpop.f32.mrf.mxu0 }
0x157d   :  { %v10734_v52 = vpop.f32.mrf.mxu0 }
0x1583   :  { %v13332_v7 = vpop.f32.mrf.mxu0 }
0x1585   :  { %v10756_v0 = vpop.f32.mrf.mxu0 }
0x1616   :  { %v13334_v55 = vpop.f32.mrf.mxu1 }
0x1618   :  { %v10701_v8 = vpop.f32.mrf.mxu1 }
0x161e   :  { %v2324_v37 = vpop.f32.mrf.mxu1 }
0x161f   :  { %v2325_v40 = vadd.f32 %v2324_v37, %v2251_v34 }
0x1620   :  { %v10723_v2 = vpop.f32.mrf.mxu1 }
0x1621   :  { %v2335_v35 = vadd.f32 %v12934_v3, %v2325_v40 }
0x1623   :  { %11617 = vtanh.f32 %v2335_v35  ;;  %v9821_v50 = vmul.f32 -1.442695, %v2335_v35 }
0x1625   :  { %11619 = vpow2.f32 %v9821_v50 }
0x1630   :  { %v11618_v13 = vpop.eup %11617 }
0x1631   :  { %2345 = vrot.lane.b32.xlu1 %v11618_v13, %s12313_s5 }
0x1632   :  { %v11620_v18 = vpop.eup %11619 }
0x1633   :  { %v2339_v10 = vadd.f32 1.0, %v11620_v18 }
0x1635   :  { %11621 = vrcp.f32 %v2339_v10  ;;  %v2734_v10 = vld [vmem:[#allocation16 + $0x58] sm:$0xff] }
0x1636   :  { %10769 = vmatpush3.msra.mxu0 %v2734_v10 }
0x1637   :  { %10770 = vmatprep.subr.mxu0 %v15119_v20 }
0x1642   :  { %v11622_v26 = vpop.eup %11621 }
0x1643   :  { %v2343_v22 = vmul.f32 %v11622_v26, %v13173_v59 }
0x16a3   :  { %v2346_v29 = vpop.permute.xlu1 %2345 }
0x16a4   :  { %v2348_v21 = vmul.f32 %v11622_v26, %v2346_v29  ;;  %v2732_v29 = vld [vmem:[#allocation16 + $0x48] sm:$0xff] }
0x16a6   :  { %2350 = vrot.lane.b32.xlu0 %v2348_v21, %s12314_s30 }
0x1718   :  { %v2351_v9 = vpop.permute.xlu0 %2350 }
0x1719   :  { %v13340_v41 = vadd.f32 %v2351_v9, %v2343_v22 }
0x171b   :  { %11623 = vtanh.f32 %v13340_v41 }
0x1728   :  { %v11624_v3 = vpop.eup %11623 }
0x1729   :  { %2356 = vrot.lane.b32.xlu0 %v11624_v3, %s12313_s5 }
0x179b   :  { %v2357_v42 = vpop.permute.xlu0 %2356 }
0x179c   :  { %v2359_v60 = vmul.f32 %v11622_v26, %v2357_v42  ;;  %v2733_v26 = vld [vmem:[#allocation16 + $0x50] sm:$0xff] }
0x179d   :  { %10771 = vmatpush3.msra.mxu0 %v2733_v26 }
0x179e   :  { %2439 = vrot.lane.b32.xlu1 %v2359_v60, %s12314_s30  ;;  %10772 = vmatprep.subr.mxu0 %v15119_v20 }
0x179f   :  { %10773 = vmatpush3.msra.mxu0 %v2732_v29  ;;  %v13515_v29 = vld [vmem:[%s15116_s4 + $0x18] sm:$0xff] }
0x17a0   :  { %10774 = vmatprep.subr.mxu0 %v15119_v20 }
0x1810   :  { %v13345_v44 = vpop.permute.xlu1 %2439 }
0x1811   :  { %10744 = vmatmul.mubr.msk.f32.vlgmr.msra.gmra.mxu1 %vm487_vm1, %v13345_v44 }
0x1812   :  { %10758 = vmatpush3.msra.mxu1 %v12995_v38  ;;  %10765 = vmatprep.mubr.msk.f32.mxu1 %vm12312_vm0, %v15119_v20 }
0x1813   :  { %10759 = vmatprep.subr.mxu1 %v15119_v20 }
0x1814   :  { %10760 = vmatpush3.msra.mxu1 %v13001_v19 }
0x1815   :  { %10761 = vmatprep.subr.mxu1 %v15119_v20 }
0x1816   :  { %10762 = vmatpush3.msra.mxu1 %v13007_v24 }
0x1817   :  { %10763 = vmatprep.subr.mxu1 %v15119_v20 }
0x1818   :  { %10764 = vmatpush3.msra.mxu1 %v13015_v56 }
0x1819   :  { %10779 = vmatprep.subr.mxu1 %v15119_v20 }
0x18d1   :  { %v2509_v59 = vpop.f32.mrf.mxu1 }
0x18d2   :  { %v2510_v43 = vadd.f32 %v2509_v59, %v2434_v36 }
0x18d3   :  { %v10745_v38 = vpop.f32.mrf.mxu1 }
0x18d4   :  { %v2520_v12 = vadd.f32 %v12985_v39, %v2510_v43 }
0x18d6   :  { %11625 = vtanh.f32 %v2520_v12  ;;  %v9825_v19 = vmul.f32 -1.442695, %v2520_v12 }
0x18d8   :  { %11627 = vpow2.f32 %v9825_v19 }
0x18e3   :  { %v11626_v25 = vpop.eup %11625 }
0x18e4   :  { %2530 = vrot.lane.b32.xlu0 %v11626_v25, %s12313_s5 }
0x18e5   :  { %v11628_v58 = vpop.eup %11627 }
0x18e6   :  { %v2524_v53 = vadd.f32 1.0, %v11628_v58 }
0x18e8   :  { %11629 = vrcp.f32 %v2524_v53 }
0x18f5   :  { %v11630_v24 = vpop.eup %11629 }
0x18f6   :  { %v2528_v56 = vmul.f32 %v11630_v24, %v13197_v14 }
0x1956   :  { %v2531_v23 = vpop.permute.xlu0 %2530 }
0x1957   :  { %v2533_v16 = vmul.f32 %v11630_v24, %v2531_v23  ;;  %v13421_v23 = vld [vmem:[#allocation20 + $0x8] sm:$0xff] }
0x1959   :  { %2535 = vrot.lane.b32.xlu1 %v2533_v16, %s12314_s30  ;;  %v13425_v16 = vld [vmem:[#allocation20] sm:$0xff] }
0x19cb   :  { %v2536_v32 = vpop.permute.xlu1 %2535 }
0x19cc   :  { %v13363_v33 = vadd.f32 %v2536_v32, %v2528_v56 }
0x19ce   :  { %11631 = vtanh.f32 %v13363_v33 }
0x19db   :  { %v11632_v39 = vpop.eup %11631 }
0x19dc   :  { %2541 = vrot.lane.b32.xlu0 %v11632_v39, %s12313_s5 }
0x1a4e   :  { %v2542_v48 = vpop.permute.xlu0 %2541 }
0x1a4f   :  { %v2544_v51 = vmul.f32 %v11630_v24, %v2542_v48 }
0x1a51   :  { %2624 = vrot.lane.b32.xlu1 %v2544_v51, %s12314_s30 }
0x1ac3   :  { %v13368_v17 = vpop.permute.xlu1 %2624 }
0x1ac4   :  { %10766 = vmatmul.mubr.msk.f32.vlgmr.msra.gmra.mxu1 %vm487_vm1, %v13368_v17 }
0x1ac5   :  { %10787 = vmatprep.mubr.msk.f32.mxu1 %vm12312_vm0, %v15119_v20 }
0x1b84   :  { %v2694_v14 = vpop.f32.mrf.mxu1 }
0x1b85   :  { %v2695_v34 = vadd.f32 %v2694_v14, %v13332_v7  ;;  %v2134_v7 = vadd.f32 %v13334_v55, %v13330_v1  ;;  %v2731_v1 = vld [vmem:[#allocation16 + $0x40] sm:$0xff] }
0x1b86   :  { %v10767_v49 = vpop.f32.mrf.mxu1  ;;  %10775 = vmatpush3.msra.mxu0 %v2731_v1  ;;  %v13436_v14 = vld [vmem:[%s15115_s17 + $0x18] sm:$0xff]  ;;  %v13522_v1 = vld [vmem:[%s15116_s4 + $0x10] sm:$0xff] }
0x1b87   :  { %v2705_v36 = vadd.f32 %v13083_v54, %v2695_v34  ;;  %v2144_v18 = vadd.f32 %v13223_v11, %v2134_v7  ;;  %10790 = vmatprep.subr.mxu0 %v15119_v20  ;;  %v13442_v49 = vld [vmem:[%s15115_s17 + $0x10] sm:$0xff]  ;;  %v13489_v7 = vld [vmem:[#allocation13 + $0x10] sm:$0xff] }
0x1b89   :  { %11633 = vtanh.f32 %v2705_v36  ;;  %v9829_v0 = vmul.f32 -1.442695, %v2705_v36  ;;  %v9816_v21 = vmul.f32 -1.442695, %v2144_v18  ;;  %v13451_v36 = vld [vmem:[%s15115_s17 + $0x8] sm:$0xff] }
0x1b8b   :  { %11635 = vpow2.f32 %v9829_v0  ;;  %v13462_v0 = vld [vmem:[#allocation8 + $0x18] sm:$0xff] }
0x1b96   :  { %v11634_v52 = vpop.eup %11633 }
0x1b97   :  { %2715 = vrot.lane.b32.xlu0 %v11634_v52, %s12313_s5  ;;  %v13458_v52 = vld [vmem:[%s15115_s17] sm:$0xff] }
0x1b98   :  { %v11636_v8 = vpop.eup %11635 }
0x1b99   :  { %v2709_v37 = vadd.f32 1.0, %v11636_v8  ;;  %v13468_v8 = vld [vmem:[#allocation8 + $0x10] sm:$0xff] }
0x1b9b   :  { %11637 = vrcp.f32 %v2709_v37  ;;  %v13474_v37 = vld [vmem:[#allocation8 + $0x8] sm:$0xff] }
0x1ba8   :  { %v11638_v40 = vpop.eup %11637 }
0x1ba9   :  { %v2713_v13 = vmul.f32 %v11638_v40, %v13225_v46 }
0x1c09   :  { %v2716_v2 = vpop.permute.xlu0 %2715 }
0x1c0a   :  { %v2718_v35 = vmul.f32 %v11638_v40, %v2716_v2 }
0x1c0c   :  { %2720 = vrot.lane.b32.xlu1 %v2718_v35, %s12314_s30  ;;  %v13483_v35 = vld [vmem:[#allocation13 + $0x18] sm:$0xff] }
0x1c7e   :  { %v2721_v54 = vpop.permute.xlu1 %2720 }
0x1c7f   :  { %v13381_v50 = vadd.f32 %v2721_v54, %v2713_v13  ;;  %v13495_v13 = vld [vmem:[#allocation13 + $0x8] sm:$0xff]  ;;  %v13499_v54 = vld [vmem:[#allocation13] sm:$0xff] }
0x1c81   :  { %11639 = vtanh.f32 %v13381_v50 }
0x1c82   :  { %11641 = vtanh.f32 %v2144_v18 }
0x1c83   :  { %11643 = vpow2.f32 %v9816_v21 }
0x1c8e   :  { %v11640_v46 = vpop.eup %11639 }
0x1c8f   :  { %2726 = vrot.lane.b32.xlu0 %v11640_v46, %s12313_s5  ;;  %v11642_v55 = vpop.eup %11641  ;;  %v13538_v46 = vld [vmem:[%s15116_s4] sm:$0xff] }
0x1c90   :  { %v11644_v22 = vpop.eup %11643 }
0x1c91   :  { %v2148_v9 = vadd.f32 1.0, %v11644_v22 }
0x1c93   :  { %2154 = vrot.lane.b32.xlu0 %v11642_v55, %s12313_s5  ;;  %11645 = vrcp.f32 %v2148_v9  ;;  %v13544_v55 = vld [vmem:[%s15117_s29 + $0xc] sm:$0xf] }
0x1ca0   :  { %v11646_v60 = vpop.eup %11645 }
0x1ca1   :  { %v2152_v12 = vmul.f32 %v11646_v60, %v13246_v61  ;;  %v13412_v61 = vld [vmem:[#allocation20 + $0x18] sm:$0xff] }
0x1ca2   :  { %10780 = vmatpush3.msra.mxu1 %v13412_v61 }
0x1ca3   :  { %10781 = vmatprep.subr.mxu1 %v15119_v20 }
0x1d01   :  { %v2727_v3 = vpop.permute.xlu0 %2726 }
0x1d02   :  { %v2729_v42 = vmul.f32 %v11638_v40, %v2727_v3  ;;  %v13478_v40 = vld [vmem:[#allocation8] sm:$0xff] }
0x1d04   :  { %2744 = vrot.lane.b32.xlu1 %v2729_v42, %s12314_s30 }
0x1d05   :  { %v2155_v59 = vpop.permute.xlu0 %2154 }
0x1d06   :  { %v2157_v43 = vmul.f32 %v11646_v60, %v2155_v59 }
0x1d08   :  { %2159 = vrot.lane.b32.xlu1 %v2157_v43, %s12314_s30 }
0x1d76   :  { %v13393_v38 = vpop.permute.xlu1 %2744 }
0x1d77   :  { %10777 = vmatmul.mubr.msk.f32.vlgmr.msra.gmra.mxu0 %vm487_vm1, %v13393_v38 }
0x1d78   :  { %10791 = vmatpush3.msra.mxu0 %v13113_v28  ;;  %10798 = vmatprep.mubr.msk.f32.mxu0 %vm12312_vm0, %v15119_v20 }
0x1d79   :  { %10792 = vmatprep.subr.mxu0 %v15119_v20 }
0x1d7a   :  { %v2160_v25 = vpop.permute.xlu1 %2159  ;;  %10793 = vmatpush3.msra.mxu0 %v13115_v45  ;;  %v13414_v45 = vld [vmem:[#allocation20 + $0x10] sm:$0xff] }
0x1d7b   :  { %v13403_v19 = vadd.f32 %v2160_v25, %v2152_v12  ;;  %10794 = vmatprep.subr.mxu0 %v15119_v20  ;;  %10782 = vmatpush3.msra.mxu1 %v13414_v45 }
0x1d7c   :  { %10795 = vmatpush3.msra.mxu0 %v13119_v57  ;;  %10783 = vmatprep.subr.mxu1 %v15119_v20  ;;  %v9830_v57 = vld [vmem:[#allocation17 + $0x2] ss:$0 sm:$0xff] }
0x1d7d   :  { %11647 = vtanh.f32 %v13403_v19  ;;  %10796 = vmatprep.subr.mxu0 %v15119_v20  ;;  %10784 = vmatpush3.msra.mxu1 %v13421_v23 }
0x1d7e   :  { %10797 = vmatpush3.msra.mxu0 %v13123_v6  ;;  %10785 = vmatprep.subr.mxu1 %v15119_v20 }
0x1d7f   :  { %10812 = vmatprep.subr.mxu0 %v15119_v20  ;;  %10786 = vmatpush3.msra.mxu1 %v13425_v16 }
0x1d80   :  { %10801 = vmatprep.subr.mxu1 %v15119_v20 }
0x1d8a   :  { %v11648_v28 = vpop.eup %11647 }
0x1d8b   :  { %2165 = vrot.lane.b32.xlu1 %v11648_v28, %s12313_s5  ;;  %v13562_v28 = vld [vmem:[%s15118_s9] ss:$0 sm:$0xff] }
0x1dfd   :  { %v2166_v56 = vpop.permute.xlu1 %2165 }
0x1dfe   :  { %v13429_v32 = vmul.f32 %v11646_v60, %v2166_v56 }
0x1e37   :  { %v2814_v58 = vpop.f32.mrf.mxu0 }
0x1e38   :  { %v2815_v6 = vadd.f32 %v9830_v57, %v2814_v58 }
0x1e39   :  { %v10778_v53 = vpop.f32.mrf.mxu0 }
0x1e3a   :  { %v2818_v24 = vsel %vm1122_vm2, %v2815_v6, -inf }
0x1e3b   :  { %2819 = vmax.xlane.f32.xlu0 %v2818_v24 }
0x1e51   :  { %2843 = vrot.lane.b32.xlu0 %v13429_v32, %s12314_s30 }
0x1ec4   :  { %v2820_v39 = vpop.xlane.xlu0 %2819 }
0x1ec5   :  { %v2821_v48 = vsub.f32 %v2815_v6, %v2820_v39 }
0x1ec7   :  { %v2822_v51 = vmul.f32 1.442695, %v2821_v48 }
0x1ec8   :  { %v2844_v34 = vpop.permute.xlu0 %2843 }
0x1ec9   :  { %11649 = vpow2.f32 %v2822_v51  ;;  %10788 = vmatmul.mubr.msk.f32.vlgmr.msra.gmra.mxu1 %vm487_vm1, %v2844_v34 }
0x1eca   :  { %10802 = vmatpush3.msra.mxu1 %v13436_v14  ;;  %10809 = vmatprep.mubr.msk.f32.mxu1 %vm12312_vm0, %v15119_v20 }
0x1ecb   :  { %10803 = vmatprep.subr.mxu1 %v15119_v20 }
0x1ecc   :  { %10804 = vmatpush3.msra.mxu1 %v13442_v49 }
0x1ecd   :  { %10805 = vmatprep.subr.mxu1 %v15119_v20 }
0x1ece   :  { %10806 = vmatpush3.msra.mxu1 %v13451_v36 }
0x1ecf   :  { %10807 = vmatprep.subr.mxu1 %v15119_v20 }
0x1ed0   :  { %10808 = vmatpush3.msra.mxu1 %v13458_v52 }
0x1ed1   :  { %10810 = vmatmul.mubr.msk.f32.vlgmr.msra.gmra.mxu1 %vm487_vm1, %v13345_v44  ;;  %10823 = vmatprep.subr.mxu1 %v15119_v20 }
0x1ed2   :  { %10824 = vmatpush3.msra.mxu1 %v13462_v0  ;;  %10831 = vmatprep.mubr.msk.f32.mxu1 %vm12312_vm0, %v15119_v20 }
0x1ed3   :  { %10825 = vmatprep.subr.mxu1 %v15119_v20 }
0x1ed4   :  { %10826 = vmatpush3.msra.mxu1 %v13468_v8 }
0x1ed5   :  { %10827 = vmatprep.subr.mxu1 %v15119_v20 }
0x1ed6   :  { %v11650_v44 = vpop.eup %11649  ;;  %10828 = vmatpush3.msra.mxu1 %v13474_v37 }
0x1ed7   :  { %10829 = vmatprep.subr.mxu1 %v15119_v20  ;;  %v2824_v2 = vsel %vm1122_vm2, %v11650_v44, 0.0 }
0x1ed8   :  { %10830 = vmatpush3.msra.mxu1 %v13478_v40  ;;  %2825 = vadd.xlane.f32.xlu1 %v2824_v2 }
0x1ed9   :  { %10832 = vmatmul.mubr.msk.f32.vlgmr.msra.gmra.mxu1 %vm487_vm1, %v13368_v17  ;;  %10845 = vmatprep.subr.mxu1 %v15119_v20 }
0x1eda   :  { %10846 = vmatpush3.msra.mxu1 %v13483_v35  ;;  %10853 = vmatprep.mubr.msk.f32.mxu1 %vm12312_vm0, %v15119_v20 }
0x1edb   :  { %10847 = vmatprep.subr.mxu1 %v15119_v20 }
0x1edc   :  { %10848 = vmatpush3.msra.mxu1 %v13489_v7 }
0x1edd   :  { %10849 = vmatprep.subr.mxu1 %v15119_v20 }
0x1ede   :  { %10850 = vmatpush3.msra.mxu1 %v13495_v13 }
0x1edf   :  { %10851 = vmatprep.subr.mxu1 %v15119_v20 }
0x1ee0   :  { %10852 = vmatpush3.msra.mxu1 %v13499_v54 }
0x1ee1   :  { %10854 = vmatmul.mubr.msk.f32.vlgmr.msra.gmra.mxu1 %vm487_vm1, %v13393_v38  ;;  %10867 = vmatprep.subr.mxu1 %v15119_v20 }
0x1ee2   :  { %10875 = vmatprep.mubr.msk.f32.mxu1 %vm12312_vm0, %v15119_v20 }
0x1f61   :  { %v2826_v17 = vpop.xlane.xlu1 %2825 }
0x1f62   :  { %11651 = vrcp.f32 %v2826_v17 }
0x1f6f   :  { %v11652_v18 = vpop.eup %11651 }
0x1f70   :  { %v2828_v10 = vmul.f32 %v11652_v18, %v11650_v44  ;;  %v13571_v18 = vld [vmem:[#allocation6 + $0x18] sm:$0xff] }
0x1f72   :  { %v13510_v26 = vmul.f32 %v13313_v5, %v2828_v10  ;;  %v13531_v5 = vld [vmem:[%s15116_s4 + $0x8] sm:$0xff]  ;;  %v13573_v10 = vld [vmem:[#allocation6 + $0x10] sm:$0xff] }
0x1f74   :  { %10799 = vmatmul.mubr.msk.f32.vlgmr.msra.gmra.mxu0 %vm487_vm1, %v13510_v26 }
0x1f75   :  { %10813 = vmatpush3.msra.mxu0 %v13515_v29  ;;  %10820 = vmatprep.mubr.msk.f32.mxu0 %vm12312_vm0, %v15119_v20 }
0x1f76   :  { %10814 = vmatprep.subr.mxu0 %v15119_v20 }
0x1f77   :  { %10815 = vmatpush3.msra.mxu0 %v13522_v1 }
0x1f78   :  { %10816 = vmatprep.subr.mxu0 %v15119_v20 }
0x1f79   :  { %10817 = vmatpush3.msra.mxu0 %v13531_v5 }
0x1f7a   :  { %10818 = vmatprep.subr.mxu0 %v15119_v20 }
0x1f7b   :  { %10819 = vmatpush3.msra.mxu0 %v13538_v46 }
0x1f7c   :  { %10821 = vmatmul.mubr.msk.f32.vlgmr.msra.gmra.mxu0 %vm487_vm1, %v13544_v55  ;;  %10834 = vmatprep.subr.mxu0 %v15119_v20 }
0x1f7d   :  { %10842 = vmatprep.mubr.msk.f32.mxu0 %vm12312_vm0, %v15119_v20  ;;  %10835 = vmatpush3.msra.mxu0 %v13571_v18 }
0x1f7e   :  { %10836 = vmatprep.subr.mxu0 %v15119_v20 }
0x1f7f   :  { %10837 = vmatpush3.msra.mxu0 %v13573_v10 }
0x1f80   :  { %10838 = vmatprep.subr.mxu0 %v15119_v20 }
0x1f89   :  { %v13553_v21 = vpop.f32.mrf.mxu1 }
0x1f8b   :  { %v10789_v22 = vpop.f32.mrf.mxu1 }
0x1f8c   :  { %v13577_v22 = vld [vmem:[#allocation6 + $0x8] sm:$0xff] }
0x1f8d   :  { %10839 = vmatpush3.msra.mxu0 %v13577_v22 }
0x1f8e   :  { %10840 = vmatprep.subr.mxu0 %v15119_v20 }
0x1f91   :  { %v3102_v9 = vpop.f32.mrf.mxu1 }
0x1f93   :  { %v10811_v3 = vpop.f32.mrf.mxu1 }
0x1f99   :  { %v3285_v42 = vpop.f32.mrf.mxu1 }
0x1f9b   :  { %v10833_v60 = vpop.f32.mrf.mxu1 }
0x1fa1   :  { %v13555_v59 = vpop.f32.mrf.mxu1 }
0x1fa3   :  { %v10855_v43 = vpop.f32.mrf.mxu1 }
0x2034   :  { %v13557_v38 = vpop.f32.mrf.mxu0 }
0x2036   :  { %v10800_v12 = vpop.f32.mrf.mxu0 }
0x203c   :  { %v3175_v25 = vpop.f32.mrf.mxu0 }
0x203d   :  { %v3176_v57 = vadd.f32 %v3175_v25, %v3102_v9  ;;  %v13595_v25 = vld [vmem:[#allocation10] ss:$0 sm:$0xff] }
0x203e   :  { %v10822_v58 = vpop.f32.mrf.mxu0 }
0x203f   :  { %v3186_v6 = vadd.f32 %v13562_v28, %v3176_v57 }
0x2041   :  { %11653 = vtanh.f32 %v3186_v6  ;;  %v9840_v24 = vmul.f32 -1.442695, %v3186_v6 }
0x2043   :  { %11655 = vpow2.f32 %v9840_v24 }
0x204e   :  { %v11654_v53 = vpop.eup %11653 }
0x204f   :  { %3196 = vrot.lane.b32.xlu1 %v11654_v53, %s12313_s5 }
0x2050   :  { %v11656_v56 = vpop.eup %11655 }
0x2051   :  { %v3190_v39 = vadd.f32 1.0, %v11656_v56 }
0x2053   :  { %11657 = vrcp.f32 %v3190_v39 }
0x2060   :  { %v11658_v48 = vpop.eup %11657 }
0x2061   :  { %v3194_v44 = vmul.f32 %v11658_v48, %v13340_v41  ;;  %v13581_v41 = vld [vmem:[#allocation6] sm:$0xff] }
0x2062   :  { %10841 = vmatpush3.msra.mxu0 %v13581_v41 }
0x2063   :  { %10856 = vmatprep.subr.mxu0 %v15119_v20 }
0x20c1   :  { %v3197_v51 = vpop.permute.xlu1 %3196 }
0x20c2   :  { %v3199_v34 = vmul.f32 %v11658_v48, %v3197_v51 }
0x20c4   :  { %3201 = vrot.lane.b32.xlu0 %v3199_v34, %s12314_s30 }
0x2136   :  { %v3202_v2 = vpop.permute.xlu0 %3201 }
0x2137   :  { %v13568_v17 = vadd.f32 %v3202_v2, %v3194_v44 }
0x2139   :  { %11659 = vtanh.f32 %v13568_v17 }
0x2146   :  { %v11660_v9 = vpop.eup %11659 }
0x2147   :  { %3207 = vrot.lane.b32.xlu0 %v11660_v9, %s12313_s5  ;;  %v13604_v9 = vld [vmem:[#allocation11 + $0x18] sm:$0xff] }
0x21b9   :  { %v3208_v3 = vpop.permute.xlu0 %3207 }
0x21ba   :  { %v3210_v60 = vmul.f32 %v11658_v48, %v3208_v3  ;;  %v13606_v3 = vld [vmem:[#allocation11 + $0x10] sm:$0xff] }
0x21bc   :  { %3290 = vrot.lane.b32.xlu1 %v3210_v60, %s12314_s30  ;;  %v13610_v60 = vld [vmem:[#allocation11 + $0x8] sm:$0xff] }
0x222e   :  { %v13589_v43 = vpop.permute.xlu1 %3290 }
0x222f   :  { %10843 = vmatmul.mubr.msk.f32.vlgmr.msra.gmra.mxu0 %vm487_vm1, %v13589_v43 }
0x2230   :  { %10864 = vmatprep.mubr.msk.f32.mxu0 %vm12312_vm0, %v15119_v20  ;;  %10857 = vmatpush3.msra.mxu0 %v13604_v9 }
0x2231   :  { %10858 = vmatprep.subr.mxu0 %v15119_v20 }
0x2232   :  { %10859 = vmatpush3.msra.mxu0 %v13606_v3 }
0x2233   :  { %10860 = vmatprep.subr.mxu0 %v15119_v20 }
0x2234   :  { %10861 = vmatpush3.msra.mxu0 %v13610_v60 }
0x2235   :  { %10862 = vmatprep.subr.mxu0 %v15119_v20 }
0x22ef   :  { %v3360_v12 = vpop.f32.mrf.mxu0 }
0x22f0   :  { %v3361_v57 = vadd.f32 %v3360_v12, %v3285_v42 }
0x22f1   :  { %v10844_v58 = vpop.f32.mrf.mxu0 }
0x22f2   :  { %v3371_v6 = vadd.f32 %v13595_v25, %v3361_v57 }
0x22f4   :  { %11661 = vtanh.f32 %v3371_v6  ;;  %v9844_v24 = vmul.f32 -1.442695, %v3371_v6 }
0x22f6   :  { %11663 = vpow2.f32 %v9844_v24  ;;  %v13636_v24 = vld [vmem:[#allocation14] ss:$0 sm:$0xff] }
0x2301   :  { %v11662_v53 = vpop.eup %11661 }
0x2302   :  { %3381 = vrot.lane.b32.xlu0 %v11662_v53, %s12313_s5 }
0x2303   :  { %v11664_v56 = vpop.eup %11663 }
0x2304   :  { %v3375_v39 = vadd.f32 1.0, %v11664_v56 }
0x2306   :  { %11665 = vrcp.f32 %v3375_v39 }
0x2313   :  { %v11666_v48 = vpop.eup %11665 }
0x2314   :  { %v3379_v44 = vmul.f32 %v11666_v48, %v13363_v33  ;;  %v13614_v33 = vld [vmem:[#allocation11] sm:$0xff] }
0x2315   :  { %10863 = vmatpush3.msra.mxu0 %v13614_v33 }
0x2316   :  { %10878 = vmatprep.subr.mxu0 %v15119_v20 }
0x2374   :  { %v3382_v51 = vpop.permute.xlu0 %3381 }
0x2375   :  { %v3384_v34 = vmul.f32 %v11666_v48, %v3382_v51 }
0x2377   :  { %3386 = vrot.lane.b32.xlu1 %v3384_v34, %s12314_s30 }
0x23e9   :  { %v3387_v42 = vpop.permute.xlu1 %3386 }
0x23ea   :  { %v13601_v2 = vadd.f32 %v3387_v42, %v3379_v44 }
0x23ec   :  { %11667 = vtanh.f32 %v13601_v2 }
0x23f9   :  { %v11668_v12 = vpop.eup %11667 }
0x23fa   :  { %3392 = vrot.lane.b32.xlu0 %v11668_v12, %s12313_s5 }
0x246c   :  { %v3393_v57 = vpop.permute.xlu0 %3392 }
0x246d   :  { %v3395_v58 = vmul.f32 %v11666_v48, %v3393_v57 }
0x246f   :  { %3475 = vrot.lane.b32.xlu1 %v3395_v58, %s12314_s30 }
0x24e1   :  { %v13622_v6 = vpop.permute.xlu1 %3475 }
0x24e2   :  { %10865 = vmatmul.mubr.msk.f32.vlgmr.msra.gmra.mxu0 %vm487_vm1, %v13622_v6 }
0x24e3   :  { %10879 = vmatpush3.msra.mxu0 %v13412_v61  ;;  %10886 = vmatprep.mubr.msk.f32.mxu0 %vm12312_vm0, %v15119_v20 }
0x24e4   :  { %10880 = vmatprep.subr.mxu0 %v15119_v20 }
0x24e5   :  { %10881 = vmatpush3.msra.mxu0 %v13414_v45 }
0x24e6   :  { %10882 = vmatprep.subr.mxu0 %v15119_v20 }
0x24e7   :  { %10883 = vmatpush3.msra.mxu0 %v13421_v23 }
0x24e8   :  { %10884 = vmatprep.subr.mxu0 %v15119_v20 }
0x24e9   :  { %10885 = vmatpush3.msra.mxu0 %v13425_v16 }
0x24ea   :  { %10900 = vmatprep.subr.mxu0 %v15119_v20 }
0x25a2   :  { %v3545_v53 = vpop.f32.mrf.mxu0 }
0x25a3   :  { %v3546_v56 = vadd.f32 %v3545_v53, %v13555_v59  ;;  %v2986_v59 = vadd.f32 %v13557_v38, %v13553_v21  ;;  %v3582_v21 = vld [vmem:[#allocation16 + $0x60] sm:$0xff] }
0x25a4   :  { %v10866_v39 = vpop.f32.mrf.mxu0 }
0x25a5   :  { %v3556_v48 = vadd.f32 %v13636_v24, %v3546_v56 }
0x25a7   :  { %11669 = vtanh.f32 %v3556_v48  ;;  %v9848_v34 = vmul.f32 -1.442695, %v3556_v48  ;;  %v3585_v48 = vld [vmem:[#allocation16 + $0x78] sm:$0xff] }
0x25a8   :  { %10868 = vmatpush3.msra.mxu1 %v3585_v48 }
0x25a9   :  { %11671 = vpow2.f32 %v9848_v34  ;;  %v3584_v34 = vld [vmem:[#allocation16 + $0x70] sm:$0xff]  ;;  %10869 = vmatprep.subr.mxu1 %v15119_v20 }
0x25aa   :  { %10870 = vmatpush3.msra.mxu1 %v3584_v34 }
0x25ab   :  { %10871 = vmatprep.subr.mxu1 %v15119_v20 }
0x25b4   :  { %v11670_v51 = vpop.eup %11669 }
0x25b5   :  { %3566 = vrot.lane.b32.xlu0 %v11670_v51, %s12313_s5  ;;  %v2996_v51 = vadd.f32 %v13223_v11, %v2986_v59 }
0x25b6   :  { %v11672_v44 = vpop.eup %11671 }
0x25b7   :  { %v3560_v42 = vadd.f32 1.0, %v11672_v44  ;;  %v3583_v44 = vld [vmem:[#allocation16 + $0x68] sm:$0xff]  ;;  %v9835_v38 = vmul.f32 -1.442695, %v2996_v51 }
0x25b8   :  { %10872 = vmatpush3.msra.mxu1 %v3583_v44 }
0x25b9   :  { %11673 = vrcp.f32 %v3560_v42  ;;  %10873 = vmatprep.subr.mxu1 %v15119_v20 }
0x25ba   :  { %10874 = vmatpush3.msra.mxu1 %v3582_v21 }
0x25bb   :  { %10889 = vmatprep.subr.mxu1 %v15119_v20 }
0x25c6   :  { %v11674_v12 = vpop.eup %11673 }
0x25c7   :  { %v3564_v53 = vmul.f32 %v11674_v12, %v13381_v50 }
0x2627   :  { %v3567_v57 = vpop.permute.xlu0 %3566 }
0x2628   :  { %v3569_v58 = vmul.f32 %v11674_v12, %v3567_v57 }
0x262a   :  { %3571 = vrot.lane.b32.xlu1 %v3569_v58, %s12314_s30 }
0x269c   :  { %v3572_v56 = vpop.permute.xlu1 %3571 }
0x269d   :  { %v13645_v39 = vadd.f32 %v3572_v56, %v3564_v53 }
0x269f   :  { %11675 = vtanh.f32 %v13645_v39 }
0x26a0   :  { %11677 = vtanh.f32 %v2996_v51 }
0x26a1   :  { %11679 = vpow2.f32 %v9835_v38 }
0x26ac   :  { %v11676_v50 = vpop.eup %11675 }
0x26ad   :  { %3577 = vrot.lane.b32.xlu0 %v11676_v50, %s12313_s5  ;;  %v11678_v11 = vpop.eup %11677  ;;  %v9849_v50 = vld [vmem:[#allocation17 + $0x3] ss:$0 sm:$0xff] }
0x26ae   :  { %v11680_v42 = vpop.eup %11679 }
0x26af   :  { %v3000_v57 = vadd.f32 1.0, %v11680_v42 }
0x26b1   :  { %3006 = vrot.lane.b32.xlu0 %v11678_v11, %s12313_s5  ;;  %11681 = vrcp.f32 %v3000_v57 }
0x26be   :  { %v11682_v53 = vpop.eup %11681 }
0x26bf   :  { %v3004_v51 = vmul.f32 %v11682_v53, %v13403_v19 }
0x271f   :  { %v3578_v58 = vpop.permute.xlu0 %3577 }
0x2720   :  { %v3580_v59 = vmul.f32 %v11674_v12, %v3578_v58 }
0x2722   :  { %3595 = vrot.lane.b32.xlu1 %v3580_v59, %s12314_s30 }
0x2723   :  { %v3007_v56 = vpop.permute.xlu0 %3006 }
0x2724   :  { %v3009_v48 = vmul.f32 %v11682_v53, %v3007_v56 }
0x2726   :  { %3011 = vrot.lane.b32.xlu1 %v3009_v48, %s12314_s30 }
0x2794   :  { %v3596_v34 = vpop.permute.xlu1 %3595 }
0x2795   :  { %10876 = vmatmul.mubr.msk.f32.vlgmr.msra.gmra.mxu1 %vm487_vm1, %v3596_v34 }
0x2796   :  { %10897 = vmatprep.mubr.msk.f32.mxu1 %vm12312_vm0, %v15119_v20 }
0x2798   :  { %v3012_v44 = vpop.permute.xlu1 %3011 }
0x2799   :  { %v13661_v21 = vadd.f32 %v3012_v44, %v3004_v51  ;;  %v13707_v44 = vld [vmem:[#allocation19 + $0x10] sm:$0xff] }
0x279b   :  { %11683 = vtanh.f32 %v13661_v21 }
0x27a8   :  { %v11684_v12 = vpop.eup %11683 }
0x27a9   :  { %3017 = vrot.lane.b32.xlu1 %v11684_v12, %s12313_s5  ;;  %v13713_v12 = vld [vmem:[#allocation19 + $0x8] sm:$0xff] }
0x281b   :  { %v3018_v58 = vpop.permute.xlu1 %3017 }
0x281c   :  { %v3020_v59 = vmul.f32 %v11682_v53, %v3018_v58 }
0x2855   :  { %v3665_v11 = vpop.f32.mrf.mxu1 }
0x2856   :  { %v3666_v38 = vadd.f32 %v9849_v50, %v3665_v11 }
0x2857   :  { %v10877_v42 = vpop.f32.mrf.mxu1 }
0x2858   :  { %v3669_v57 = vsel %vm1122_vm2, %v3666_v38, -inf }
0x2859   :  { %3670 = vmax.xlane.f32.xlu0 %v3669_v57 }
0x286f   :  { %3022 = vrot.lane.b32.xlu0 %v3020_v59, %s12314_s30 }
0x28e2   :  { %v3671_v19 = vpop.xlane.xlu0 %3670 }
0x28e3   :  { %v3672_v56 = vsub.f32 %v3666_v38, %v3671_v19 }
0x28e5   :  { %v3673_v48 = vmul.f32 1.442695, %v3672_v56 }
0x28e6   :  { %v3023_v51 = vpop.permute.xlu0 %3022 }
0x28e7   :  { %11685 = vpow2.f32 %v3673_v48  ;;  %3025 = vst.msk [vmem:[#allocation2 + $0x4] sm:$0xf] %vm1122_vm2, %v3023_v51  ;;  %10887 = vmatmul.mubr.msk.f32.vlgmr.msra.gmra.mxu0 %vm487_vm1, %v3023_v51 }
0x28e8   :  { %10901 = vmatpush3.msra.mxu0 %v13436_v14  ;;  %10908 = vmatprep.mubr.msk.f32.mxu0 %vm12312_vm0, %v15119_v20 }
0x28e9   :  { %10902 = vmatprep.subr.mxu0 %v15119_v20 }
0x28ea   :  { %10903 = vmatpush3.msra.mxu0 %v13442_v49 }
0x28eb   :  { %10904 = vmatprep.subr.mxu0 %v15119_v20 }
0x28ec   :  { %10905 = vmatpush3.msra.mxu0 %v13451_v36 }
0x28ed   :  { %10906 = vmatprep.subr.mxu0 %v15119_v20 }
0x28ee   :  { %10907 = vmatpush3.msra.mxu0 %v13458_v52 }
0x28ef   :  { %10909 = vmatmul.mubr.msk.f32.vlgmr.msra.gmra.mxu0 %vm487_vm1, %v13589_v43  ;;  %10922 = vmatprep.subr.mxu0 %v15119_v20 }
0x28f0   :  { %10923 = vmatpush3.msra.mxu0 %v13462_v0  ;;  %10930 = vmatprep.mubr.msk.f32.mxu0 %vm12312_vm0, %v15119_v20 }
0x28f1   :  { %10924 = vmatprep.subr.mxu0 %v15119_v20 }
0x28f2   :  { %10925 = vmatpush3.msra.mxu0 %v13468_v8 }
0x28f3   :  { %10926 = vmatprep.subr.mxu0 %v15119_v20 }
0x28f4   :  { %v11686_v53 = vpop.eup %11685  ;;  %10927 = vmatpush3.msra.mxu0 %v13474_v37 }
0x28f5   :  { %10928 = vmatprep.subr.mxu0 %v15119_v20  ;;  %v3675_v43 = vsel %vm1122_vm2, %v11686_v53, 0.0 }
0x28f6   :  { %10929 = vmatpush3.msra.mxu0 %v13478_v40  ;;  %3676 = vadd.xlane.f32.xlu1 %v3675_v43 }
0x28f7   :  { %10931 = vmatmul.mubr.msk.f32.vlgmr.msra.gmra.mxu0 %vm487_vm1, %v13622_v6  ;;  %10944 = vmatprep.subr.mxu0 %v15119_v20  ;;  %v13705_v6 = vld [vmem:[#allocation19 + $0x18] sm:$0xff] }
0x28f8   :  { %10945 = vmatpush3.msra.mxu0 %v13483_v35  ;;  %10952 = vmatprep.mubr.msk.f32.mxu0 %vm12312_vm0, %v15119_v20 }
0x28f9   :  { %10946 = vmatprep.subr.mxu0 %v15119_v20  ;;  %10890 = vmatpush3.msra.mxu1 %v13705_v6 }
0x28fa   :  { %10947 = vmatpush3.msra.mxu0 %v13489_v7  ;;  %10891 = vmatprep.subr.mxu1 %v15119_v20 }
0x28fb   :  { %10948 = vmatprep.subr.mxu0 %v15119_v20  ;;  %10892 = vmatpush3.msra.mxu1 %v13707_v44 }
0x28fc   :  { %10949 = vmatpush3.msra.mxu0 %v13495_v13  ;;  %10893 = vmatprep.subr.mxu1 %v15119_v20 }
0x28fd   :  { %10950 = vmatprep.subr.mxu0 %v15119_v20  ;;  %10894 = vmatpush3.msra.mxu1 %v13713_v12 }
0x28fe   :  { %10951 = vmatpush3.msra.mxu0 %v13499_v54  ;;  %10895 = vmatprep.subr.mxu1 %v15119_v20 }
0x28ff   :  { %10953 = vmatmul.mubr.msk.f32.vlgmr.msra.gmra.mxu0 %vm487_vm1, %v3596_v34  ;;  %10966 = vmatprep.subr.mxu0 %v15119_v20  ;;  %v13717_v34 = vld [vmem:[#allocation19] sm:$0xff] }
0x2900   :  { %10974 = vmatprep.mubr.msk.f32.mxu0 %vm12312_vm0, %v15119_v20  ;;  %10896 = vmatpush3.msra.mxu1 %v13717_v34 }
0x2901   :  { %10911 = vmatprep.subr.mxu1 %v15119_v20 }
0x297f   :  { %v3677_v50 = vpop.xlane.xlu1 %3676 }
0x2980   :  { %11687 = vrcp.f32 %v3677_v50 }
0x298d   :  { %v11688_v11 = vpop.eup %11687 }
0x298e   :  { %v3679_v38 = vmul.f32 %v11688_v11, %v11686_v53 }
0x2990   :  { %v13724_v42 = vmul.f32 %v13544_v55, %v3679_v38  ;;  %v13738_v55 = vld [vmem:[%s15117_s29 + $0x10] sm:$0xf] }
0x2992   :  { %10898 = vmatmul.mubr.msk.f32.vlgmr.msra.gmra.mxu1 %vm487_vm1, %v13724_v42 }
0x2993   :  { %10912 = vmatpush3.msra.mxu1 %v13515_v29  ;;  %10919 = vmatprep.mubr.msk.f32.mxu1 %vm12312_vm0, %v15119_v20 }
0x2994   :  { %10913 = vmatprep.subr.mxu1 %v15119_v20 }
0x2995   :  { %10914 = vmatpush3.msra.mxu1 %v13522_v1 }
0x2996   :  { %10915 = vmatprep.subr.mxu1 %v15119_v20 }
0x2997   :  { %10916 = vmatpush3.msra.mxu1 %v13531_v5 }
0x2998   :  { %10917 = vmatprep.subr.mxu1 %v15119_v20 }
0x2999   :  { %10918 = vmatpush3.msra.mxu1 %v13538_v46 }
0x299a   :  { %10920 = vmatmul.mubr.msk.f32.vlgmr.msra.gmra.mxu1 %vm487_vm1, %v13738_v55  ;;  %10933 = vmatprep.subr.mxu1 %v15119_v20 }
0x299b   :  { %10934 = vmatpush3.msra.mxu1 %v13571_v18  ;;  %10941 = vmatprep.mubr.msk.f32.mxu1 %vm12312_vm0, %v15119_v20 }
0x299c   :  { %10935 = vmatprep.subr.mxu1 %v15119_v20 }
0x299d   :  { %10936 = vmatpush3.msra.mxu1 %v13573_v10 }
0x299e   :  { %10937 = vmatprep.subr.mxu1 %v15119_v20 }
0x299f   :  { %10938 = vmatpush3.msra.mxu1 %v13577_v22 }
0x29a0   :  { %10939 = vmatprep.subr.mxu1 %v15119_v20 }
0x29a1   :  { %10940 = vmatpush3.msra.mxu1 %v13581_v41 }
0x29a2   :  { %10955 = vmatprep.subr.mxu1 %v15119_v20 }
0x29a7   :  { %v13755_v57 = vpop.f32.mrf.mxu0 }
0x29a9   :  { %v10888_v58 = vpop.f32.mrf.mxu0 }
0x29af   :  { %v3952_v59 = vpop.f32.mrf.mxu0 }
0x29b1   :  { %v10910_v19 = vpop.f32.mrf.mxu0 }
0x29b7   :  { %v4135_v56 = vpop.f32.mrf.mxu0 }
0x29b9   :  { %v10932_v48 = vpop.f32.mrf.mxu0 }
0x29bf   :  { %v13757_v51 = vpop.f32.mrf.mxu0 }
0x29c1   :  { %v10954_v53 = vpop.f32.mrf.mxu0 }
0x2a52   :  { %v13759_v43 = vpop.f32.mrf.mxu1 }
0x2a54   :  { %v10899_v50 = vpop.f32.mrf.mxu1 }
0x2a5a   :  { %v4025_v11 = vpop.f32.mrf.mxu1 }
0x2a5b   :  { %v4026_v38 = vadd.f32 %v4025_v11, %v3952_v59 }
0x2a5c   :  { %v10921_v62 = vpop.f32.mrf.mxu1 }
0x2a5d   :  { %v4036_v30 = vadd.f32 %v13562_v28, %v4026_v38 }
0x2a5f   :  { %11689 = vtanh.f32 %v4036_v30  ;;  %v9859_v58 = vmul.f32 -1.442695, %v4036_v30 }
0x2a61   :  { %11691 = vpow2.f32 %v9859_v58 }
0x2a6c   :  { %v11690_v47 = vpop.eup %11689 }
0x2a6d   :  { %4046 = vrot.lane.b32.xlu1 %v11690_v47, %s12313_s5 }
0x2a6e   :  { %v11692_v19 = vpop.eup %11691 }
0x2a6f   :  { %v4040_v15 = vadd.f32 1.0, %v11692_v19 }
0x2a71   :  { %11693 = vrcp.f32 %v4040_v15 }
0x2a7e   :  { %v11694_v48 = vpop.eup %11693 }
0x2a7f   :  { %v4044_v50 = vmul.f32 %v11694_v48, %v13568_v17 }
0x2adf   :  { %v4047_v63 = vpop.permute.xlu1 %4046 }
0x2ae0   :  { %v4049_v53 = vmul.f32 %v11694_v48, %v4047_v63 }
0x2ae2   :  { %4051 = vrot.lane.b32.xlu0 %v4049_v53, %s12314_s30 }
0x2b54   :  { %v4052_v59 = vpop.permute.xlu0 %4051 }
0x2b55   :  { %v13765_v62 = vadd.f32 %v4052_v59, %v4044_v50 }
0x2b57   :  { %11695 = vtanh.f32 %v13765_v62 }
0x2b64   :  { %v11696_v11 = vpop.eup %11695 }
0x2b65   :  { %4057 = vrot.lane.b32.xlu0 %v11696_v11, %s12313_s5 }
0x2bd7   :  { %v4058_v30 = vpop.permute.xlu0 %4057 }
0x2bd8   :  { %v4060_v47 = vmul.f32 %v11694_v48, %v4058_v30 }
0x2bda   :  { %4140 = vrot.lane.b32.xlu1 %v4060_v47, %s12314_s30 }
0x2c4c   :  { %v13770_v15 = vpop.permute.xlu1 %4140 }
0x2c4d   :  { %10942 = vmatmul.mubr.msk.f32.vlgmr.msra.gmra.mxu1 %vm487_vm1, %v13770_v15 }
0x2c4e   :  { %10956 = vmatpush3.msra.mxu1 %v13604_v9  ;;  %10963 = vmatprep.mubr.msk.f32.mxu1 %vm12312_vm0, %v15119_v20 }
0x2c4f   :  { %10957 = vmatprep.subr.mxu1 %v15119_v20 }
0x2c50   :  { %10958 = vmatpush3.msra.mxu1 %v13606_v3 }
0x2c51   :  { %10959 = vmatprep.subr.mxu1 %v15119_v20 }
0x2c52   :  { %10960 = vmatpush3.msra.mxu1 %v13610_v60 }
0x2c53   :  { %10961 = vmatprep.subr.mxu1 %v15119_v20 }
0x2c54   :  { %10962 = vmatpush3.msra.mxu1 %v13614_v33 }
0x2c55   :  { %10977 = vmatprep.subr.mxu1 %v15119_v20 }
0x2d0d   :  { %v4210_v63 = vpop.f32.mrf.mxu1 }
0x2d0e   :  { %v4211_v17 = vadd.f32 %v4210_v63, %v4135_v56 }
0x2d0f   :  { %v10943_v38 = vpop.f32.mrf.mxu1 }
0x2d10   :  { %v4221_v58 = vadd.f32 %v13595_v25, %v4211_v17 }
0x2d12   :  { %11697 = vtanh.f32 %v4221_v58  ;;  %v9863_v48 = vmul.f32 -1.442695, %v4221_v58 }
0x2d14   :  { %11699 = vpow2.f32 %v9863_v48 }
0x2d1f   :  { %v11698_v19 = vpop.eup %11697 }
0x2d20   :  { %4231 = vrot.lane.b32.xlu0 %v11698_v19, %s12313_s5 }
0x2d21   :  { %v11700_v53 = vpop.eup %11699 }
0x2d22   :  { %v4225_v50 = vadd.f32 1.0, %v11700_v53 }
0x2d24   :  { %11701 = vrcp.f32 %v4225_v50 }
0x2d31   :  { %v11702_v59 = vpop.eup %11701 }
0x2d32   :  { %v4229_v47 = vmul.f32 %v11702_v59, %v13601_v2 }
0x2d92   :  { %v4232_v11 = vpop.permute.xlu0 %4231 }
0x2d93   :  { %v4234_v30 = vmul.f32 %v11702_v59, %v4232_v11 }
0x2d95   :  { %4236 = vrot.lane.b32.xlu1 %v4234_v30, %s12314_s30 }
0x2e07   :  { %v4237_v56 = vpop.permute.xlu1 %4236 }
0x2e08   :  { %v13788_v63 = vadd.f32 %v4237_v56, %v4229_v47  ;;  %v13814_v56 = vld [vmem:[#allocation22] ss:$0 sm:$0xff] }
0x2e0a   :  { %11703 = vtanh.f32 %v13788_v63 }
0x2e17   :  { %v11704_v17 = vpop.eup %11703 }
0x2e18   :  { %4242 = vrot.lane.b32.xlu0 %v11704_v17, %s12313_s5 }
0x2e8a   :  { %v4243_v38 = vpop.permute.xlu0 %4242 }
0x2e8b   :  { %v4245_v58 = vmul.f32 %v11702_v59, %v4243_v38 }
0x2e8d   :  { %4325 = vrot.lane.b32.xlu1 %v4245_v58, %s12314_s30 }
0x2eff   :  { %v13793_v19 = vpop.permute.xlu1 %4325 }
0x2f00   :  { %10964 = vmatmul.mubr.msk.f32.vlgmr.msra.gmra.mxu1 %vm487_vm1, %v13793_v19 }
0x2f01   :  { %10978 = vmatpush3.msra.mxu1 %v13412_v61  ;;  %10985 = vmatprep.mubr.msk.f32.mxu1 %vm12312_vm0, %v15119_v20 }
0x2f02   :  { %10979 = vmatprep.subr.mxu1 %v15119_v20 }
0x2f03   :  { %10980 = vmatpush3.msra.mxu1 %v13414_v45 }
0x2f04   :  { %10981 = vmatprep.subr.mxu1 %v15119_v20 }
0x2f05   :  { %10982 = vmatpush3.msra.mxu1 %v13421_v23 }
0x2f06   :  { %10983 = vmatprep.subr.mxu1 %v15119_v20 }
0x2f07   :  { %10984 = vmatpush3.msra.mxu1 %v13425_v16 }
0x2f08   :  { %10999 = vmatprep.subr.mxu1 %v15119_v20 }
0x2fc0   :  { %v4395_v2 = vpop.f32.mrf.mxu1 }
0x2fc1   :  { %v4396_v61 = vadd.f32 %v4395_v2, %v13757_v51  ;;  %v3836_v51 = vadd.f32 %v13759_v43, %v13755_v57  ;;  %v4435_v2 = vld [vmem:[#allocation16 + $0x98] sm:$0xff] }
0x2fc2   :  { %v10965_v48 = vpop.f32.mrf.mxu1  ;;  %10967 = vmatpush3.msra.mxu0 %v4435_v2  ;;  %v9868_v2 = vld [vmem:[#allocation17 + $0x4] ss:$0 sm:$0xff] }
0x2fc3   :  { %v4406_v53 = vadd.f32 %v13636_v24, %v4396_v61  ;;  %v3846_v58 = vadd.f32 %v13814_v56, %v3836_v51  ;;  %v4434_v61 = vld [vmem:[#allocation16 + $0x90] sm:$0xff]  ;;  %10968 = vmatprep.subr.mxu0 %v15119_v20  ;;  %v4433_v48 = vld [vmem:[#allocation16 + $0x88] sm:$0xff] }
0x2fc4   :  { %10969 = vmatpush3.msra.mxu0 %v4434_v61 }
0x2fc5   :  { %11705 = vtanh.f32 %v4406_v53  ;;  %v9867_v45 = vmul.f32 -1.442695, %v4406_v53  ;;  %10970 = vmatprep.subr.mxu0 %v15119_v20  ;;  %v9854_v53 = vmul.f32 -1.442695, %v3846_v58 }
0x2fc6   :  { %10971 = vmatpush3.msra.mxu0 %v4433_v48 }
0x2fc7   :  { %11707 = vpow2.f32 %v9867_v45  ;;  %10972 = vmatprep.subr.mxu0 %v15119_v20 }
0x2fd2   :  { %v11706_v50 = vpop.eup %11705 }
0x2fd3   :  { %4416 = vrot.lane.b32.xlu0 %v11706_v50, %s12313_s5 }
0x2fd4   :  { %v11708_v59 = vpop.eup %11707 }
0x2fd5   :  { %v4410_v23 = vadd.f32 1.0, %v11708_v59 }
0x2fd7   :  { %11709 = vrcp.f32 %v4410_v23 }
0x2fe4   :  { %v11710_v11 = vpop.eup %11709 }
0x2fe5   :  { %v4414_v47 = vmul.f32 %v11710_v11, %v13645_v39  ;;  %v4432_v39 = vld [vmem:[#allocation16 + $0x80] sm:$0xff] }
0x2fe6   :  { %10973 = vmatpush3.msra.mxu0 %v4432_v39 }
0x2fe7   :  { %10988 = vmatprep.subr.mxu0 %v15119_v20 }
0x3045   :  { %v4417_v30 = vpop.permute.xlu0 %4416 }
0x3046   :  { %v4419_v16 = vmul.f32 %v11710_v11, %v4417_v30 }
0x3048   :  { %4421 = vrot.lane.b32.xlu1 %v4419_v16, %s12314_s30 }
0x30ba   :  { %v4422_v17 = vpop.permute.xlu1 %4421 }
0x30bb   :  { %v13816_v38 = vadd.f32 %v4422_v17, %v4414_v47 }
0x30bd   :  { %11711 = vtanh.f32 %v13816_v38 }
0x30be   :  { %11713 = vtanh.f32 %v3846_v58 }
0x30bf   :  { %11715 = vpow2.f32 %v9854_v53 }
0x30ca   :  { %v11712_v57 = vpop.eup %11711 }
0x30cb   :  { %4427 = vrot.lane.b32.xlu0 %v11712_v57, %s12313_s5  ;;  %v11714_v43 = vpop.eup %11713 }
0x30cc   :  { %v11716_v50 = vpop.eup %11715 }
0x30cd   :  { %v3850_v45 = vadd.f32 1.0, %v11716_v50 }
0x30cf   :  { %3856 = vrot.lane.b32.xlu0 %v11714_v43, %s12313_s5  ;;  %11717 = vrcp.f32 %v3850_v45 }
0x30dc   :  { %v11718_v30 = vpop.eup %11717 }
0x30dd   :  { %v3854_v17 = vmul.f32 %v11718_v30, %v13661_v21 }
0x313d   :  { %v4428_v59 = vpop.permute.xlu0 %4427 }
0x313e   :  { %v4430_v23 = vmul.f32 %v11710_v11, %v4428_v59 }
0x3140   :  { %4445 = vrot.lane.b32.xlu1 %v4430_v23, %s12314_s30 }
0x3141   :  { %v3857_v16 = vpop.permute.xlu0 %3856 }
0x3142   :  { %v3859_v51 = vmul.f32 %v11718_v30, %v3857_v16 }
0x3144   :  { %3861 = vrot.lane.b32.xlu1 %v3859_v51, %s12314_s30 }
0x31b2   :  { %v13828_v47 = vpop.permute.xlu1 %4445 }
0x31b3   :  { %10975 = vmatmul.mubr.msk.f32.vlgmr.msra.gmra.mxu0 %vm487_vm1, %v13828_v47 }
0x31b4   :  { %10989 = vmatpush3.msra.mxu0 %v13705_v6  ;;  %10996 = vmatprep.mubr.msk.f32.mxu0 %vm12312_vm0, %v15119_v20 }
0x31b5   :  { %10990 = vmatprep.subr.mxu0 %v15119_v20 }
0x31b6   :  { %v3862_v11 = vpop.permute.xlu1 %3861  ;;  %10991 = vmatpush3.msra.mxu0 %v13707_v44 }
0x31b7   :  { %v13838_v58 = vadd.f32 %v3862_v11, %v3854_v17  ;;  %10992 = vmatprep.subr.mxu0 %v15119_v20 }
0x31b8   :  { %10993 = vmatpush3.msra.mxu0 %v13713_v12 }
0x31b9   :  { %11719 = vtanh.f32 %v13838_v58  ;;  %10994 = vmatprep.subr.mxu0 %v15119_v20 }
0x31ba   :  { %10995 = vmatpush3.msra.mxu0 %v13717_v34 }
0x31bb   :  { %11010 = vmatprep.subr.mxu0 %v15119_v20 }
0x31c6   :  { %v11720_v21 = vpop.eup %11719 }
0x31c7   :  { %3867 = vrot.lane.b32.xlu1 %v11720_v21, %s12313_s5 }
0x3239   :  { %v3868_v43 = vpop.permute.xlu1 %3867 }
0x323a   :  { %v13848_v53 = vmul.f32 %v11718_v30, %v3868_v43 }
0x3273   :  { %v4515_v61 = vpop.f32.mrf.mxu0 }
0x3274   :  { %v4516_v48 = vadd.f32 %v9868_v2, %v4515_v61 }
0x3275   :  { %v10976_v39 = vpop.f32.mrf.mxu0 }
0x3276   :  { %v4519_v57 = vsel %vm1122_vm2, %v4516_v48, -inf }
0x3277   :  { %4520 = vmax.xlane.f32.xlu0 %v4519_v57 }
0x328d   :  { %4540 = vrot.lane.b32.xlu0 %v13848_v53, %s12314_s30 }
0x3300   :  { %v4521_v50 = vpop.xlane.xlu0 %4520 }
0x3301   :  { %v4522_v45 = vsub.f32 %v4516_v48, %v4521_v50 }
0x3303   :  { %v4523_v59 = vmul.f32 1.442695, %v4522_v45 }
0x3304   :  { %v4541_v23 = vpop.permute.xlu0 %4540 }
0x3305   :  { %11721 = vpow2.f32 %v4523_v59  ;;  %10986 = vmatmul.mubr.msk.f32.vlgmr.msra.gmra.mxu1 %vm487_vm1, %v4541_v23 }
0x3306   :  { %11000 = vmatpush3.msra.mxu1 %v13436_v14  ;;  %11007 = vmatprep.mubr.msk.f32.mxu1 %vm12312_vm0, %v15119_v20 }
0x3307   :  { %11001 = vmatprep.subr.mxu1 %v15119_v20 }
0x3308   :  { %11002 = vmatpush3.msra.mxu1 %v13442_v49 }
0x3309   :  { %11003 = vmatprep.subr.mxu1 %v15119_v20 }
0x330a   :  { %11004 = vmatpush3.msra.mxu1 %v13451_v36 }
0x330b   :  { %11005 = vmatprep.subr.mxu1 %v15119_v20 }
0x330c   :  { %11006 = vmatpush3.msra.mxu1 %v13458_v52 }
0x330d   :  { %11008 = vmatmul.mubr.msk.f32.vlgmr.msra.gmra.mxu1 %vm487_vm1, %v13770_v15  ;;  %11021 = vmatprep.subr.mxu1 %v15119_v20 }
0x330e   :  { %11022 = vmatpush3.msra.mxu1 %v13462_v0  ;;  %11029 = vmatprep.mubr.msk.f32.mxu1 %vm12312_vm0, %v15119_v20 }
0x330f   :  { %11023 = vmatprep.subr.mxu1 %v15119_v20 }
0x3310   :  { %11024 = vmatpush3.msra.mxu1 %v13468_v8 }
0x3311   :  { %11025 = vmatprep.subr.mxu1 %v15119_v20 }
0x3312   :  { %v11722_v14 = vpop.eup %11721  ;;  %11026 = vmatpush3.msra.mxu1 %v13474_v37  ;;  %v13912_v37 = vld [vmem:[%s15117_s29 + $0x14] sm:$0xf] }
0x3313   :  { %11027 = vmatprep.subr.mxu1 %v15119_v20  ;;  %v4525_v49 = vsel %vm1122_vm2, %v11722_v14, 0.0 }
0x3314   :  { %11028 = vmatpush3.msra.mxu1 %v13478_v40  ;;  %4526 = vadd.xlane.f32.xlu1 %v4525_v49 }
0x3315   :  { %11030 = vmatmul.mubr.msk.f32.vlgmr.msra.gmra.mxu1 %vm487_vm1, %v13793_v19  ;;  %11043 = vmatprep.subr.mxu1 %v15119_v20 }
0x3316   :  { %11044 = vmatpush3.msra.mxu1 %v13483_v35  ;;  %11051 = vmatprep.mubr.msk.f32.mxu1 %vm12312_vm0, %v15119_v20 }
0x3317   :  { %11045 = vmatprep.subr.mxu1 %v15119_v20 }
0x3318   :  { %11046 = vmatpush3.msra.mxu1 %v13489_v7 }
0x3319   :  { %11047 = vmatprep.subr.mxu1 %v15119_v20 }
0x331a   :  { %11048 = vmatpush3.msra.mxu1 %v13495_v13 }
0x331b   :  { %11049 = vmatprep.subr.mxu1 %v15119_v20 }
0x331c   :  { %11050 = vmatpush3.msra.mxu1 %v13499_v54 }
0x331d   :  { %11052 = vmatmul.mubr.msk.f32.vlgmr.msra.gmra.mxu1 %vm487_vm1, %v13828_v47  ;;  %11065 = vmatprep.subr.mxu1 %v15119_v20 }
0x331e   :  { %11073 = vmatprep.mubr.msk.f32.mxu1 %vm12312_vm0, %v15119_v20 }
0x339d   :  { %v4527_v36 = vpop.xlane.xlu1 %4526 }
0x339e   :  { %11723 = vrcp.f32 %v4527_v36 }
0x33ab   :  { %v11724_v52 = vpop.eup %11723 }
0x33ac   :  { %v4529_v0 = vmul.f32 %v11724_v52, %v11722_v14 }
0x33ae   :  { %v13893_v8 = vmul.f32 %v13738_v55, %v4529_v0 }
0x33b0   :  { %10997 = vmatmul.mubr.msk.f32.vlgmr.msra.gmra.mxu0 %vm487_vm1, %v13893_v8  ;;  %4531 = vst.msk [vmem:[%s15018_s26 + $0x4] sm:$0xf] %vm1122_vm2, %v13893_v8 }
0x33b1   :  { %11011 = vmatpush3.msra.mxu0 %v13515_v29  ;;  %11018 = vmatprep.mubr.msk.f32.mxu0 %vm12312_vm0, %v15119_v20 }
0x33b2   :  { %11012 = vmatprep.subr.mxu0 %v15119_v20 }
0x33b3   :  { %11013 = vmatpush3.msra.mxu0 %v13522_v1 }
0x33b4   :  { %11014 = vmatprep.subr.mxu0 %v15119_v20 }
0x33b5   :  { %11015 = vmatpush3.msra.mxu0 %v13531_v5 }
0x33b6   :  { %11016 = vmatprep.subr.mxu0 %v15119_v20 }
0x33b7   :  { %11017 = vmatpush3.msra.mxu0 %v13538_v46 }
0x33b8   :  { %11019 = vmatmul.mubr.msk.f32.vlgmr.msra.gmra.mxu0 %vm487_vm1, %v13912_v37  ;;  %11032 = vmatprep.subr.mxu0 %v15119_v20 }
0x33b9   :  { %11033 = vmatpush3.msra.mxu0 %v13571_v18  ;;  %11040 = vmatprep.mubr.msk.f32.mxu0 %vm12312_vm0, %v15119_v20 }
0x33ba   :  { %11034 = vmatprep.subr.mxu0 %v15119_v20 }
0x33bb   :  { %11035 = vmatpush3.msra.mxu0 %v13573_v10 }
0x33bc   :  { %11036 = vmatprep.subr.mxu0 %v15119_v20 }
0x33bd   :  { %11037 = vmatpush3.msra.mxu0 %v13577_v22 }
0x33be   :  { %11038 = vmatprep.subr.mxu0 %v15119_v20 }
0x33bf   :  { %11039 = vmatpush3.msra.mxu0 %v13581_v41 }
0x33c0   :  { %11054 = vmatprep.subr.mxu0 %v15119_v20 }
0x33c5   :  { %v13929_v40 = vpop.f32.mrf.mxu1 }
0x33c7   :  { %v10987_v35 = vpop.f32.mrf.mxu1 }
0x33cd   :  { %v4800_v7 = vpop.f32.mrf.mxu1 }
0x33cf   :  { %v11009_v13 = vpop.f32.mrf.mxu1 }
0x33d5   :  { %v4983_v54 = vpop.f32.mrf.mxu1 }
0x33d7   :  { %v11031_v29 = vpop.f32.mrf.mxu1 }
0x33dd   :  { %v13931_v1 = vpop.f32.mrf.mxu1 }
0x33df   :  { %v11053_v5 = vpop.f32.mrf.mxu1 }
0x3470   :  { %v13933_v46 = vpop.f32.mrf.mxu0 }
0x3472   :  { %v10998_v18 = vpop.f32.mrf.mxu0 }
0x3478   :  { %v4873_v10 = vpop.f32.mrf.mxu0 }
0x3479   :  { %v4874_v22 = vadd.f32 %v4873_v10, %v4800_v7 }
0x347a   :  { %v11020_v55 = vpop.f32.mrf.mxu0 }
0x347b   :  { %v4884_v41 = vadd.f32 %v13562_v28, %v4874_v22 }
0x347d   :  { %11725 = vtanh.f32 %v4884_v41  ;;  %v9878_v19 = vmul.f32 -1.442695, %v4884_v41 }
0x347f   :  { %11727 = vpow2.f32 %v9878_v19 }
0x348a   :  { %v11726_v15 = vpop.eup %11725 }
0x348b   :  { %4894 = vrot.lane.b32.xlu1 %v11726_v15, %s12313_s5 }
0x348c   :  { %v11728_v30 = vpop.eup %11727 }
0x348d   :  { %v4888_v16 = vadd.f32 1.0, %v11728_v30 }
0x348f   :  { %11729 = vrcp.f32 %v4888_v16  ;;  %v5283_v16 = vld [vmem:[#allocation16 + $0xb8] sm:$0xff] }
0x3490   :  { %11066 = vmatpush3.msra.mxu1 %v5283_v16 }
0x3491   :  { %11067 = vmatprep.subr.mxu1 %v15119_v20 }
0x349c   :  { %v11730_v51 = vpop.eup %11729 }
0x349d   :  { %v4892_v11 = vmul.f32 %v11730_v51, %v13765_v62 }
0x34fd   :  { %v4895_v47 = vpop.permute.xlu1 %4894 }
0x34fe   :  { %v4897_v17 = vmul.f32 %v11730_v51, %v4895_v47  ;;  %v5281_v47 = vld [vmem:[#allocation16 + $0xa8] sm:$0xff] }
0x3500   :  { %4899 = vrot.lane.b32.xlu0 %v4897_v17, %s12314_s30 }
0x3572   :  { %v4900_v21 = vpop.permute.xlu0 %4899 }
0x3573   :  { %v13939_v2 = vadd.f32 %v4900_v21, %v4892_v11 }
0x3575   :  { %11731 = vtanh.f32 %v13939_v2 }
0x3582   :  { %v11732_v28 = vpop.eup %11731 }
0x3583   :  { %4905 = vrot.lane.b32.xlu0 %v11732_v28, %s12313_s5 }
0x35f5   :  { %v4906_v61 = vpop.permute.xlu0 %4905 }
0x35f6   :  { %v4908_v48 = vmul.f32 %v11730_v51, %v4906_v61  ;;  %v5282_v51 = vld [vmem:[#allocation16 + $0xb0] sm:$0xff] }
0x35f7   :  { %11068 = vmatpush3.msra.mxu1 %v5282_v51 }
0x35f8   :  { %4988 = vrot.lane.b32.xlu1 %v4908_v48, %s12314_s30  ;;  %11069 = vmatprep.subr.mxu1 %v15119_v20 }
0x35f9   :  { %11070 = vmatpush3.msra.mxu1 %v5281_v47  ;;  %v14112_v47 = vld [vmem:[%s15116_s4 + $0x18] sm:$0xff] }
0x35fa   :  { %11071 = vmatprep.subr.mxu1 %v15119_v20 }
0x366a   :  { %v13944_v39 = vpop.permute.xlu1 %4988 }
0x366b   :  { %11041 = vmatmul.mubr.msk.f32.vlgmr.msra.gmra.mxu0 %vm487_vm1, %v13944_v39 }
0x366c   :  { %11055 = vmatpush3.msra.mxu0 %v13604_v9  ;;  %11062 = vmatprep.mubr.msk.f32.mxu0 %vm12312_vm0, %v15119_v20 }
0x366d   :  { %11056 = vmatprep.subr.mxu0 %v15119_v20 }
0x366e   :  { %11057 = vmatpush3.msra.mxu0 %v13606_v3 }
0x366f   :  { %11058 = vmatprep.subr.mxu0 %v15119_v20 }
0x3670   :  { %11059 = vmatpush3.msra.mxu0 %v13610_v60 }
0x3671   :  { %11060 = vmatprep.subr.mxu0 %v15119_v20 }
0x3672   :  { %11061 = vmatpush3.msra.mxu0 %v13614_v33 }
0x3673   :  { %11076 = vmatprep.subr.mxu0 %v15119_v20 }
0x372b   :  { %v5058_v62 = vpop.f32.mrf.mxu0 }
0x372c   :  { %v5059_v57 = vadd.f32 %v5058_v62, %v4983_v54 }
0x372d   :  { %v11042_v9 = vpop.f32.mrf.mxu0 }
0x372e   :  { %v5069_v43 = vadd.f32 %v13595_v25, %v5059_v57 }
0x3730   :  { %11733 = vtanh.f32 %v5069_v43  ;;  %v9882_v3 = vmul.f32 -1.442695, %v5069_v43 }
0x3732   :  { %11735 = vpow2.f32 %v9882_v3 }
0x373d   :  { %v11734_v50 = vpop.eup %11733 }
0x373e   :  { %5079 = vrot.lane.b32.xlu0 %v11734_v50, %s12313_s5 }
0x373f   :  { %v11736_v45 = vpop.eup %11735 }
0x3740   :  { %v5073_v59 = vadd.f32 1.0, %v11736_v45 }
0x3742   :  { %11737 = vrcp.f32 %v5073_v59 }
0x374f   :  { %v11738_v60 = vpop.eup %11737 }
0x3750   :  { %v5077_v33 = vmul.f32 %v11738_v60, %v13788_v63 }
0x37b0   :  { %v5080_v23 = vpop.permute.xlu0 %5079 }
0x37b1   :  { %v5082_v14 = vmul.f32 %v11738_v60, %v5080_v23  ;;  %v14020_v23 = vld [vmem:[#allocation20 + $0x8] sm:$0xff] }
0x37b3   :  { %5084 = vrot.lane.b32.xlu1 %v5082_v14, %s12314_s30  ;;  %v14024_v14 = vld [vmem:[#allocation20] sm:$0xff] }
0x3825   :  { %v5085_v49 = vpop.permute.xlu1 %5084 }
0x3826   :  { %v13962_v36 = vadd.f32 %v5085_v49, %v5077_v33 }
0x3828   :  { %11739 = vtanh.f32 %v13962_v36 }
0x3835   :  { %v11740_v25 = vpop.eup %11739 }
0x3836   :  { %5090 = vrot.lane.b32.xlu0 %v11740_v25, %s12313_s5 }
0x38a8   :  { %v5091_v52 = vpop.permute.xlu0 %5090 }
0x38a9   :  { %v5093_v0 = vmul.f32 %v11738_v60, %v5091_v52 }
0x38ab   :  { %5173 = vrot.lane.b32.xlu1 %v5093_v0, %s12314_s30 }
0x391d   :  { %v13967_v35 = vpop.permute.xlu1 %5173 }
0x391e   :  { %11063 = vmatmul.mubr.msk.f32.vlgmr.msra.gmra.mxu0 %vm487_vm1, %v13967_v35 }
0x391f   :  { %11084 = vmatprep.mubr.msk.f32.mxu0 %vm12312_vm0, %v15119_v20 }
0x39de   :  { %v5243_v63 = vpop.f32.mrf.mxu0 }
0x39df   :  { %v5244_v7 = vadd.f32 %v5243_v63, %v13931_v1  ;;  %v4684_v1 = vadd.f32 %v13933_v46, %v13929_v40  ;;  %v5280_v40 = vld [vmem:[#allocation16 + $0xa0] sm:$0xff] }
0x39e0   :  { %v11064_v13 = vpop.f32.mrf.mxu0  ;;  %11072 = vmatpush3.msra.mxu1 %v5280_v40  ;;  %v14032_v63 = vld [vmem:[%s15115_s17 + $0x18] sm:$0xff]  ;;  %v14119_v40 = vld [vmem:[%s15116_s4 + $0x10] sm:$0xff] }
0x39e1   :  { %v5254_v54 = vadd.f32 %v13636_v24, %v5244_v7  ;;  %v4694_v30 = vadd.f32 %v13814_v56, %v4684_v1  ;;  %11087 = vmatprep.subr.mxu1 %v15119_v20  ;;  %v14039_v13 = vld [vmem:[%s15115_s17 + $0x10] sm:$0xff]  ;;  %v14086_v1 = vld [vmem:[#allocation13 + $0x10] sm:$0xff] }
0x39e3   :  { %11741 = vtanh.f32 %v5254_v54  ;;  %v9886_v5 = vmul.f32 -1.442695, %v5254_v54  ;;  %v9873_v17 = vmul.f32 -1.442695, %v4694_v30  ;;  %v14048_v54 = vld [vmem:[%s15115_s17 + $0x8] sm:$0xff] }
0x39e5   :  { %11743 = vpow2.f32 %v9886_v5  ;;  %v14059_v5 = vld [vmem:[#allocation8 + $0x18] sm:$0xff] }
0x39f0   :  { %v11742_v29 = vpop.eup %11741 }
0x39f1   :  { %5264 = vrot.lane.b32.xlu0 %v11742_v29, %s12313_s5  ;;  %v14055_v29 = vld [vmem:[%s15115_s17] sm:$0xff] }
0x39f2   :  { %v11744_v18 = vpop.eup %11743 }
0x39f3   :  { %v5258_v10 = vadd.f32 1.0, %v11744_v18  ;;  %v14065_v18 = vld [vmem:[#allocation8 + $0x10] sm:$0xff] }
0x39f5   :  { %11745 = vrcp.f32 %v5258_v10  ;;  %v14071_v10 = vld [vmem:[#allocation8 + $0x8] sm:$0xff] }
0x3a02   :  { %v11746_v22 = vpop.eup %11745 }
0x3a03   :  { %v5262_v15 = vmul.f32 %v11746_v22, %v13816_v38 }
0x3a63   :  { %v5265_v55 = vpop.permute.xlu0 %5264 }
0x3a64   :  { %v5267_v41 = vmul.f32 %v11746_v22, %v5265_v55 }
0x3a66   :  { %5269 = vrot.lane.b32.xlu1 %v5267_v41, %s12314_s30  ;;  %v14080_v41 = vld [vmem:[#allocation13 + $0x18] sm:$0xff] }
0x3ad8   :  { %v5270_v24 = vpop.permute.xlu1 %5269 }
0x3ad9   :  { %v13980_v19 = vadd.f32 %v5270_v24, %v5262_v15  ;;  %v14092_v15 = vld [vmem:[#allocation13 + $0x8] sm:$0xff]  ;;  %v14096_v24 = vld [vmem:[#allocation13] sm:$0xff] }
0x3adb   :  { %11747 = vtanh.f32 %v13980_v19 }
0x3adc   :  { %11749 = vtanh.f32 %v4694_v30 }
0x3add   :  { %11751 = vpow2.f32 %v9873_v17 }
0x3ae8   :  { %v11748_v38 = vpop.eup %11747 }
0x3ae9   :  { %5275 = vrot.lane.b32.xlu0 %v11748_v38, %s12313_s5  ;;  %v11750_v46 = vpop.eup %11749  ;;  %v14135_v38 = vld [vmem:[%s15116_s4] sm:$0xff] }
0x3aea   :  { %v11752_v11 = vpop.eup %11751 }
0x3aeb   :  { %v4698_v21 = vadd.f32 1.0, %v11752_v11 }
0x3aed   :  { %4704 = vrot.lane.b32.xlu0 %v11750_v46, %s12313_s5  ;;  %11753 = vrcp.f32 %v4698_v21  ;;  %v14141_v46 = vld [vmem:[%s15117_s29 + $0x18] sm:$0xf] }
0x3afa   :  { %v11754_v48 = vpop.eup %11753 }
0x3afb   :  { %v4702_v43 = vmul.f32 %v11754_v48, %v13838_v58  ;;  %v14011_v58 = vld [vmem:[#allocation20 + $0x18] sm:$0xff] }
0x3afc   :  { %11077 = vmatpush3.msra.mxu0 %v14011_v58 }
0x3afd   :  { %11078 = vmatprep.subr.mxu0 %v15119_v20 }
0x3b5b   :  { %v5276_v28 = vpop.permute.xlu0 %5275 }
0x3b5c   :  { %v5278_v61 = vmul.f32 %v11746_v22, %v5276_v28  ;;  %v14075_v22 = vld [vmem:[#allocation8] sm:$0xff] }
0x3b5e   :  { %5293 = vrot.lane.b32.xlu1 %v5278_v61, %s12314_s30 }
0x3b5f   :  { %v4705_v62 = vpop.permute.xlu0 %4704 }
0x3b60   :  { %v4707_v57 = vmul.f32 %v11754_v48, %v4705_v62 }
0x3b62   :  { %4709 = vrot.lane.b32.xlu1 %v4707_v57, %s12314_s30 }
0x3bd0   :  { %v13992_v9 = vpop.permute.xlu1 %5293 }
0x3bd1   :  { %11074 = vmatmul.mubr.msk.f32.vlgmr.msra.gmra.mxu1 %vm487_vm1, %v13992_v9 }
0x3bd2   :  { %11088 = vmatpush3.msra.mxu1 %v13705_v6  ;;  %11095 = vmatprep.mubr.msk.f32.mxu1 %vm12312_vm0, %v15119_v20 }
0x3bd3   :  { %11089 = vmatprep.subr.mxu1 %v15119_v20 }
0x3bd4   :  { %v4710_v50 = vpop.permute.xlu1 %4709  ;;  %11090 = vmatpush3.msra.mxu1 %v13707_v44  ;;  %v14013_v44 = vld [vmem:[#allocation20 + $0x10] sm:$0xff] }
0x3bd5   :  { %v14002_v3 = vadd.f32 %v4710_v50, %v4702_v43  ;;  %11091 = vmatprep.subr.mxu1 %v15119_v20  ;;  %11079 = vmatpush3.msra.mxu0 %v14013_v44 }
0x3bd6   :  { %11092 = vmatpush3.msra.mxu1 %v13713_v12  ;;  %11080 = vmatprep.subr.mxu0 %v15119_v20  ;;  %v9887_v12 = vld [vmem:[#allocation17 + $0x5] ss:$0 sm:$0xff] }
0x3bd7   :  { %11755 = vtanh.f32 %v14002_v3  ;;  %11093 = vmatprep.subr.mxu1 %v15119_v20  ;;  %11081 = vmatpush3.msra.mxu0 %v14020_v23 }
0x3bd8   :  { %11094 = vmatpush3.msra.mxu1 %v13717_v34  ;;  %11082 = vmatprep.subr.mxu0 %v15119_v20 }
0x3bd9   :  { %11109 = vmatprep.subr.mxu1 %v15119_v20  ;;  %11083 = vmatpush3.msra.mxu0 %v14024_v14 }
0x3bda   :  { %11098 = vmatprep.subr.mxu0 %v15119_v20 }
0x3be4   :  { %v11756_v6 = vpop.eup %11755 }
0x3be5   :  { %4715 = vrot.lane.b32.xlu1 %v11756_v6, %s12313_s5  ;;  %v14159_v6 = vld [vmem:[%s15118_s9] ss:$0 sm:$0xff] }
0x3c57   :  { %v4716_v33 = vpop.permute.xlu1 %4715 }
0x3c58   :  { %v4718_v49 = vmul.f32 %v11754_v48, %v4716_v33 }
0x3c91   :  { %v5363_v45 = vpop.f32.mrf.mxu1 }
0x3c92   :  { %v5364_v34 = vadd.f32 %v9887_v12, %v5363_v45 }
0x3c93   :  { %v11075_v59 = vpop.f32.mrf.mxu1 }
0x3c94   :  { %v5367_v60 = vsel %vm1122_vm2, %v5364_v34, -inf }
0x3c95   :  { %5368 = vmax.xlane.f32.xlu0 %v5367_v60 }
0x3cab   :  { %4720 = vrot.lane.b32.xlu0 %v4718_v49, %s12314_s30 }
0x3d1e   :  { %v5369_v25 = vpop.xlane.xlu0 %5368 }
0x3d1f   :  { %v5370_v52 = vsub.f32 %v5364_v34, %v5369_v25 }
0x3d21   :  { %v5371_v0 = vmul.f32 1.442695, %v5370_v52 }
0x3d22   :  { %v4721_v7 = vpop.permute.xlu0 %4720 }
0x3d23   :  { %11757 = vpow2.f32 %v5371_v0  ;;  %4723 = vst.msk [vmem:[#allocation2 + $0x8] sm:$0xf] %vm1122_vm2, %v4721_v7  ;;  %11085 = vmatmul.mubr.msk.f32.vlgmr.msra.gmra.mxu0 %vm487_vm1, %v4721_v7 }
0x3d24   :  { %11099 = vmatpush3.msra.mxu0 %v14032_v63  ;;  %11106 = vmatprep.mubr.msk.f32.mxu0 %vm12312_vm0, %v15119_v20 }
0x3d25   :  { %11100 = vmatprep.subr.mxu0 %v15119_v20 }
0x3d26   :  { %11101 = vmatpush3.msra.mxu0 %v14039_v13 }
0x3d27   :  { %11102 = vmatprep.subr.mxu0 %v15119_v20 }
0x3d28   :  { %11103 = vmatpush3.msra.mxu0 %v14048_v54 }
0x3d29   :  { %11104 = vmatprep.subr.mxu0 %v15119_v20 }
0x3d2a   :  { %11105 = vmatpush3.msra.mxu0 %v14055_v29 }
0x3d2b   :  { %11107 = vmatmul.mubr.msk.f32.vlgmr.msra.gmra.mxu0 %vm487_vm1, %v13944_v39  ;;  %11120 = vmatprep.subr.mxu0 %v15119_v20 }
0x3d2c   :  { %11121 = vmatpush3.msra.mxu0 %v14059_v5  ;;  %11128 = vmatprep.mubr.msk.f32.mxu0 %vm12312_vm0, %v15119_v20 }
0x3d2d   :  { %11122 = vmatprep.subr.mxu0 %v15119_v20 }
0x3d2e   :  { %11123 = vmatpush3.msra.mxu0 %v14065_v18 }
0x3d2f   :  { %11124 = vmatprep.subr.mxu0 %v15119_v20 }
0x3d30   :  { %v11758_v39 = vpop.eup %11757  ;;  %11125 = vmatpush3.msra.mxu0 %v14071_v10 }
0x3d31   :  { %11126 = vmatprep.subr.mxu0 %v15119_v20  ;;  %v5373_v55 = vsel %vm1122_vm2, %v11758_v39, 0.0 }
0x3d32   :  { %11127 = vmatpush3.msra.mxu0 %v14075_v22  ;;  %5374 = vadd.xlane.f32.xlu1 %v5373_v55 }
0x3d33   :  { %11129 = vmatmul.mubr.msk.f32.vlgmr.msra.gmra.mxu0 %vm487_vm1, %v13967_v35  ;;  %11142 = vmatprep.subr.mxu0 %v15119_v20 }
0x3d34   :  { %11143 = vmatpush3.msra.mxu0 %v14080_v41  ;;  %11150 = vmatprep.mubr.msk.f32.mxu0 %vm12312_vm0, %v15119_v20 }
0x3d35   :  { %11144 = vmatprep.subr.mxu0 %v15119_v20 }
0x3d36   :  { %11145 = vmatpush3.msra.mxu0 %v14086_v1 }
0x3d37   :  { %11146 = vmatprep.subr.mxu0 %v15119_v20 }
0x3d38   :  { %11147 = vmatpush3.msra.mxu0 %v14092_v15 }
0x3d39   :  { %11148 = vmatprep.subr.mxu0 %v15119_v20 }
0x3d3a   :  { %11149 = vmatpush3.msra.mxu0 %v14096_v24 }
0x3d3b   :  { %11151 = vmatmul.mubr.msk.f32.vlgmr.msra.gmra.mxu0 %vm487_vm1, %v13992_v9  ;;  %11164 = vmatprep.subr.mxu0 %v15119_v20 }
0x3d3c   :  { %11172 = vmatprep.mubr.msk.f32.mxu0 %vm12312_vm0, %v15119_v20 }
0x3dbb   :  { %v5375_v35 = vpop.xlane.xlu1 %5374 }
0x3dbc   :  { %11759 = vrcp.f32 %v5375_v35  ;;  %v14168_v35 = vld [vmem:[#allocation6 + $0x18] sm:$0xff] }
0x3dc9   :  { %v11760_v30 = vpop.eup %11759 }
0x3dca   :  { %v5377_v16 = vmul.f32 %v11760_v30, %v11758_v39  ;;  %v14170_v30 = vld [vmem:[#allocation6 + $0x10] sm:$0xff] }
0x3dcc   :  { %v14107_v51 = vmul.f32 %v13912_v37, %v5377_v16  ;;  %v14128_v37 = vld [vmem:[%s15116_s4 + $0x8] sm:$0xff]  ;;  %v14174_v16 = vld [vmem:[#allocation6 + $0x8] sm:$0xff] }
0x3dce   :  { %11096 = vmatmul.mubr.msk.f32.vlgmr.msra.gmra.mxu1 %vm487_vm1, %v14107_v51 }
0x3dcf   :  { %11110 = vmatpush3.msra.mxu1 %v14112_v47  ;;  %11117 = vmatprep.mubr.msk.f32.mxu1 %vm12312_vm0, %v15119_v20 }
0x3dd0   :  { %11111 = vmatprep.subr.mxu1 %v15119_v20 }
0x3dd1   :  { %11112 = vmatpush3.msra.mxu1 %v14119_v40 }
0x3dd2   :  { %11113 = vmatprep.subr.mxu1 %v15119_v20 }
0x3dd3   :  { %11114 = vmatpush3.msra.mxu1 %v14128_v37 }
0x3dd4   :  { %11115 = vmatprep.subr.mxu1 %v15119_v20 }
0x3dd5   :  { %11116 = vmatpush3.msra.mxu1 %v14135_v38 }
0x3dd6   :  { %11118 = vmatmul.mubr.msk.f32.vlgmr.msra.gmra.mxu1 %vm487_vm1, %v14141_v46  ;;  %11131 = vmatprep.subr.mxu1 %v15119_v20 }
0x3dd7   :  { %11139 = vmatprep.mubr.msk.f32.mxu1 %vm12312_vm0, %v15119_v20  ;;  %11132 = vmatpush3.msra.mxu1 %v14168_v35 }
0x3dd8   :  { %11133 = vmatprep.subr.mxu1 %v15119_v20 }
0x3dd9   :  { %11134 = vmatpush3.msra.mxu1 %v14170_v30 }
0x3dda   :  { %11135 = vmatprep.subr.mxu1 %v15119_v20 }
0x3ddb   :  { %11136 = vmatpush3.msra.mxu1 %v14174_v16 }
0x3ddc   :  { %11137 = vmatprep.subr.mxu1 %v15119_v20 }
0x3de3   :  { %v14150_v17 = vpop.f32.mrf.mxu0 }
0x3de5   :  { %v11086_v11 = vpop.f32.mrf.mxu0 }
0x3deb   :  { %v5649_v21 = vpop.f32.mrf.mxu0 }
0x3ded   :  { %v11108_v28 = vpop.f32.mrf.mxu0 }
0x3df3   :  { %v5832_v61 = vpop.f32.mrf.mxu0 }
0x3df5   :  { %v11130_v48 = vpop.f32.mrf.mxu0 }
0x3dfb   :  { %v14152_v62 = vpop.f32.mrf.mxu0 }
0x3dfd   :  { %v11152_v57 = vpop.f32.mrf.mxu0 }
0x3e8e   :  { %v14154_v9 = vpop.f32.mrf.mxu1 }
0x3e90   :  { %v11097_v43 = vpop.f32.mrf.mxu1 }
0x3e91   :  { %v14192_v43 = vld [vmem:[#allocation10] ss:$0 sm:$0xff] }
0x3e96   :  { %v5722_v50 = vpop.f32.mrf.mxu1 }
0x3e97   :  { %v5723_v12 = vadd.f32 %v5722_v50, %v5649_v21 }
0x3e98   :  { %v11119_v45 = vpop.f32.mrf.mxu1 }
0x3e99   :  { %v5733_v34 = vadd.f32 %v14159_v6, %v5723_v12 }
0x3e9b   :  { %11761 = vtanh.f32 %v5733_v34  ;;  %v9897_v60 = vmul.f32 -1.442695, %v5733_v34 }
0x3e9d   :  { %11763 = vpow2.f32 %v9897_v60 }
0x3ea8   :  { %v11762_v59 = vpop.eup %11761 }
0x3ea9   :  { %5743 = vrot.lane.b32.xlu1 %v11762_v59, %s12313_s5 }
0x3eaa   :  { %v11764_v33 = vpop.eup %11763 }
0x3eab   :  { %v5737_v49 = vadd.f32 1.0, %v11764_v33 }
0x3ead   :  { %11765 = vrcp.f32 %v5737_v49 }
0x3eba   :  { %v11766_v25 = vpop.eup %11765 }
0x3ebb   :  { %v5741_v7 = vmul.f32 %v11766_v25, %v13939_v2  ;;  %v14178_v2 = vld [vmem:[#allocation6] sm:$0xff] }
0x3ebc   :  { %11138 = vmatpush3.msra.mxu1 %v14178_v2 }
0x3ebd   :  { %11153 = vmatprep.subr.mxu1 %v15119_v20 }
0x3f1b   :  { %v5744_v52 = vpop.permute.xlu1 %5743 }
0x3f1c   :  { %v5746_v0 = vmul.f32 %v11766_v25, %v5744_v52 }
0x3f1e   :  { %5748 = vrot.lane.b32.xlu0 %v5746_v0, %s12314_s30 }
0x3f90   :  { %v5749_v39 = vpop.permute.xlu0 %5748 }
0x3f91   :  { %v14165_v55 = vadd.f32 %v5749_v39, %v5741_v7  ;;  %v14201_v39 = vld [vmem:[#allocation11 + $0x18] sm:$0xff] }
0x3f93   :  { %11767 = vtanh.f32 %v14165_v55 }
0x3fa0   :  { %v11768_v11 = vpop.eup %11767 }
0x3fa1   :  { %5754 = vrot.lane.b32.xlu0 %v11768_v11, %s12313_s5  ;;  %v14203_v11 = vld [vmem:[#allocation11 + $0x10] sm:$0xff] }
0x4013   :  { %v5755_v21 = vpop.permute.xlu0 %5754 }
0x4014   :  { %v5757_v28 = vmul.f32 %v11766_v25, %v5755_v21  ;;  %v14207_v21 = vld [vmem:[#allocation11 + $0x8] sm:$0xff] }
0x4016   :  { %5837 = vrot.lane.b32.xlu1 %v5757_v28, %s12314_s30 }
0x4088   :  { %v14186_v48 = vpop.permute.xlu1 %5837 }
0x4089   :  { %11140 = vmatmul.mubr.msk.f32.vlgmr.msra.gmra.mxu1 %vm487_vm1, %v14186_v48 }
0x408a   :  { %11161 = vmatprep.mubr.msk.f32.mxu1 %vm12312_vm0, %v15119_v20  ;;  %11154 = vmatpush3.msra.mxu1 %v14201_v39 }
0x408b   :  { %11155 = vmatprep.subr.mxu1 %v15119_v20 }
0x408c   :  { %11156 = vmatpush3.msra.mxu1 %v14203_v11 }
0x408d   :  { %11157 = vmatprep.subr.mxu1 %v15119_v20 }
0x408e   :  { %11158 = vmatpush3.msra.mxu1 %v14207_v21 }
0x408f   :  { %11159 = vmatprep.subr.mxu1 %v15119_v20 }
0x4149   :  { %v5907_v57 = vpop.f32.mrf.mxu1 }
0x414a   :  { %v5908_v50 = vadd.f32 %v5907_v57, %v5832_v61 }
0x414b   :  { %v11141_v12 = vpop.f32.mrf.mxu1 }
0x414c   :  { %v5918_v45 = vadd.f32 %v14192_v43, %v5908_v50 }
0x414e   :  { %11769 = vtanh.f32 %v5918_v45  ;;  %v9901_v59 = vmul.f32 -1.442695, %v5918_v45 }
0x4150   :  { %11771 = vpow2.f32 %v9901_v59 }
0x415b   :  { %v11770_v34 = vpop.eup %11769 }
0x415c   :  { %5928 = vrot.lane.b32.xlu0 %v11770_v34, %s12313_s5  ;;  %v14233_v34 = vld [vmem:[#allocation14] ss:$0 sm:$0xff] }
0x415d   :  { %v11772_v60 = vpop.eup %11771 }
0x415e   :  { %v5922_v33 = vadd.f32 1.0, %v11772_v60 }
0x4160   :  { %11773 = vrcp.f32 %v5922_v33 }
0x416d   :  { %v11774_v49 = vpop.eup %11773 }
0x416e   :  { %v5926_v0 = vmul.f32 %v11774_v49, %v13962_v36  ;;  %v14211_v36 = vld [vmem:[#allocation11] sm:$0xff] }
0x416f   :  { %11160 = vmatpush3.msra.mxu1 %v14211_v36 }
0x4170   :  { %11175 = vmatprep.subr.mxu1 %v15119_v20 }
0x41ce   :  { %v5929_v25 = vpop.permute.xlu0 %5928 }
0x41cf   :  { %v5931_v52 = vmul.f32 %v11774_v49, %v5929_v25 }
0x41d1   :  { %5933 = vrot.lane.b32.xlu1 %v5931_v52, %s12314_s30 }
0x4243   :  { %v5934_v61 = vpop.permute.xlu1 %5933 }
0x4244   :  { %v14198_v7 = vadd.f32 %v5934_v61, %v5926_v0 }
0x4246   :  { %11775 = vtanh.f32 %v14198_v7 }
0x4253   :  { %v11776_v28 = vpop.eup %11775 }
0x4254   :  { %5939 = vrot.lane.b32.xlu0 %v11776_v28, %s12313_s5 }
0x42c6   :  { %v5940_v57 = vpop.permute.xlu0 %5939 }
0x42c7   :  { %v5942_v50 = vmul.f32 %v11774_v49, %v5940_v57 }
0x42c9   :  { %6022 = vrot.lane.b32.xlu1 %v5942_v50, %s12314_s30 }
0x433b   :  { %v14219_v12 = vpop.permute.xlu1 %6022 }
0x433c   :  { %11162 = vmatmul.mubr.msk.f32.vlgmr.msra.gmra.mxu1 %vm487_vm1, %v14219_v12 }
0x433d   :  { %11176 = vmatpush3.msra.mxu1 %v14011_v58  ;;  %11183 = vmatprep.mubr.msk.f32.mxu1 %vm12312_vm0, %v15119_v20 }
0x433e   :  { %11177 = vmatprep.subr.mxu1 %v15119_v20 }
0x433f   :  { %11178 = vmatpush3.msra.mxu1 %v14013_v44 }
0x4340   :  { %11179 = vmatprep.subr.mxu1 %v15119_v20 }
0x4341   :  { %11180 = vmatpush3.msra.mxu1 %v14020_v23 }
0x4342   :  { %11181 = vmatprep.subr.mxu1 %v15119_v20 }
0x4343   :  { %11182 = vmatpush3.msra.mxu1 %v14024_v14 }
0x4344   :  { %11197 = vmatprep.subr.mxu1 %v15119_v20 }
0x43fc   :  { %v6092_v45 = vpop.f32.mrf.mxu1 }
0x43fd   :  { %v6093_v59 = vadd.f32 %v6092_v45, %v14152_v62  ;;  %v5533_v62 = vadd.f32 %v14154_v9, %v14150_v17  ;;  %v6129_v17 = vld [vmem:[#allocation16 + $0xc0] sm:$0xff] }
0x43fe   :  { %v11163_v60 = vpop.f32.mrf.mxu1 }
0x43ff   :  { %v6103_v33 = vadd.f32 %v14233_v34, %v6093_v59  ;;  %v5543_v60 = vadd.f32 %v13814_v56, %v5533_v62 }
0x4401   :  { %11777 = vtanh.f32 %v6103_v33  ;;  %v9905_v25 = vmul.f32 -1.442695, %v6103_v33  ;;  %v6132_v33 = vld [vmem:[#allocation16 + $0xd8] sm:$0xff]  ;;  %v9892_v9 = vmul.f32 -1.442695, %v5543_v60 }
0x4402   :  { %11165 = vmatpush3.msra.mxu0 %v6132_v33 }
0x4403   :  { %11779 = vpow2.f32 %v9905_v25  ;;  %11166 = vmatprep.subr.mxu0 %v15119_v20  ;;  %v6130_v25 = vld [vmem:[#allocation16 + $0xc8] sm:$0xff] }
0x440e   :  { %v11778_v49 = vpop.eup %11777 }
0x440f   :  { %6113 = vrot.lane.b32.xlu0 %v11778_v49, %s12313_s5  ;;  %v6131_v49 = vld [vmem:[#allocation16 + $0xd0] sm:$0xff] }
0x4410   :  { %v11780_v52 = vpop.eup %11779  ;;  %11167 = vmatpush3.msra.mxu0 %v6131_v49 }
0x4411   :  { %v6107_v0 = vadd.f32 1.0, %v11780_v52  ;;  %11168 = vmatprep.subr.mxu0 %v15119_v20 }
0x4412   :  { %11169 = vmatpush3.msra.mxu0 %v6130_v25 }
0x4413   :  { %11781 = vrcp.f32 %v6107_v0  ;;  %11170 = vmatprep.subr.mxu0 %v15119_v20 }
0x4414   :  { %11171 = vmatpush3.msra.mxu0 %v6129_v17  ;;  %v9906_v17 = vld [vmem:[#allocation17 + $0x6] ss:$0 sm:$0xff] }
0x4415   :  { %11186 = vmatprep.subr.mxu0 %v15119_v20 }
0x4420   :  { %v11782_v61 = vpop.eup %11781 }
0x4421   :  { %v6111_v50 = vmul.f32 %v11782_v61, %v13980_v19 }
0x4481   :  { %v6114_v28 = vpop.permute.xlu0 %6113 }
0x4482   :  { %v6116_v57 = vmul.f32 %v11782_v61, %v6114_v28 }
0x4484   :  { %6118 = vrot.lane.b32.xlu1 %v6116_v57, %s12314_s30 }
0x44f6   :  { %v6119_v45 = vpop.permute.xlu1 %6118 }
0x44f7   :  { %v14242_v59 = vadd.f32 %v6119_v45, %v6111_v50 }
0x44f9   :  { %11783 = vtanh.f32 %v14242_v59 }
0x44fa   :  { %11785 = vtanh.f32 %v5543_v60 }
0x44fb   :  { %11787 = vpow2.f32 %v9892_v9 }
0x4506   :  { %v11784_v19 = vpop.eup %11783 }
0x4507   :  { %6124 = vrot.lane.b32.xlu0 %v11784_v19, %s12313_s5  ;;  %v11786_v56 = vpop.eup %11785 }
0x4508   :  { %v11788_v52 = vpop.eup %11787 }
0x4509   :  { %v5547_v0 = vadd.f32 1.0, %v11788_v52 }
0x450b   :  { %5553 = vrot.lane.b32.xlu0 %v11786_v56, %s12313_s5  ;;  %11789 = vrcp.f32 %v5547_v0 }
0x4518   :  { %v11790_v62 = vpop.eup %11789 }
0x4519   :  { %v5551_v60 = vmul.f32 %v11790_v62, %v14002_v3 }
0x4579   :  { %v6125_v28 = vpop.permute.xlu0 %6124 }
0x457a   :  { %v6127_v57 = vmul.f32 %v11782_v61, %v6125_v28 }
0x457c   :  { %6142 = vrot.lane.b32.xlu1 %v6127_v57, %s12314_s30 }
0x457d   :  { %v5554_v50 = vpop.permute.xlu0 %5553 }
0x457e   :  { %v5556_v45 = vmul.f32 %v11790_v62, %v5554_v50 }
0x4580   :  { %5558 = vrot.lane.b32.xlu1 %v5556_v45, %s12314_s30 }
0x45ee   :  { %v6143_v33 = vpop.permute.xlu1 %6142 }
0x45ef   :  { %11173 = vmatmul.mubr.msk.f32.vlgmr.msra.gmra.mxu0 %vm487_vm1, %v6143_v33 }
0x45f0   :  { %11194 = vmatprep.mubr.msk.f32.mxu0 %vm12312_vm0, %v15119_v20 }
0x45f2   :  { %v5559_v49 = vpop.permute.xlu1 %5558 }
0x45f3   :  { %v14258_v25 = vadd.f32 %v5559_v49, %v5551_v60 }
0x45f5   :  { %11791 = vtanh.f32 %v14258_v25 }
0x4602   :  { %v11792_v61 = vpop.eup %11791 }
0x4603   :  { %5564 = vrot.lane.b32.xlu1 %v11792_v61, %s12313_s5 }
0x4675   :  { %v5565_v0 = vpop.permute.xlu1 %5564 }
0x4676   :  { %v14263_v28 = vmul.f32 %v11790_v62, %v5565_v0 }
0x46af   :  { %v6212_v19 = vpop.f32.mrf.mxu0 }
0x46b0   :  { %v6213_v56 = vadd.f32 %v9906_v17, %v6212_v19 }
0x46b1   :  { %v11174_v9 = vpop.f32.mrf.mxu0 }
0x46b2   :  { %v6216_v52 = vsel %vm1122_vm2, %v6213_v56, -inf }
0x46b3   :  { %6217 = vmax.xlane.f32.xlu0 %v6216_v52 }
0x46c9   :  { %6241 = vrot.lane.b32.xlu0 %v14263_v28, %s12314_s30 }
0x473c   :  { %v6218_v3 = vpop.xlane.xlu0 %6217 }
0x473d   :  { %v6219_v57 = vsub.f32 %v6213_v56, %v6218_v3 }
0x473f   :  { %v6220_v50 = vmul.f32 1.442695, %v6219_v57 }
0x4740   :  { %v6242_v45 = vpop.permute.xlu0 %6241 }
0x4741   :  { %11793 = vpow2.f32 %v6220_v50  ;;  %11184 = vmatmul.mubr.msk.f32.vlgmr.msra.gmra.mxu1 %vm487_vm1, %v6242_v45 }
0x4742   :  { %11198 = vmatpush3.msra.mxu1 %v14032_v63  ;;  %11205 = vmatprep.mubr.msk.f32.mxu1 %vm12312_vm0, %v15119_v20 }
0x4743   :  { %11199 = vmatprep.subr.mxu1 %v15119_v20 }
0x4744   :  { %11200 = vmatpush3.msra.mxu1 %v14039_v13 }
0x4745   :  { %11201 = vmatprep.subr.mxu1 %v15119_v20 }
0x4746   :  { %11202 = vmatpush3.msra.mxu1 %v14048_v54  ;;  %v14304_v54 = vld [vmem:[#allocation19 + $0x18] sm:$0xff] }
0x4747   :  { %11203 = vmatprep.subr.mxu1 %v15119_v20  ;;  %11187 = vmatpush3.msra.mxu0 %v14304_v54 }
0x4748   :  { %11204 = vmatpush3.msra.mxu1 %v14055_v29  ;;  %v14306_v29 = vld [vmem:[#allocation19 + $0x10] sm:$0xff]  ;;  %11188 = vmatprep.subr.mxu0 %v15119_v20 }
0x4749   :  { %11206 = vmatmul.mubr.msk.f32.vlgmr.msra.gmra.mxu1 %vm487_vm1, %v14186_v48  ;;  %11219 = vmatprep.subr.mxu1 %v15119_v20 }
0x474a   :  { %11220 = vmatpush3.msra.mxu1 %v14059_v5  ;;  %11227 = vmatprep.mubr.msk.f32.mxu1 %vm12312_vm0, %v15119_v20  ;;  %v14312_v5 = vld [vmem:[#allocation19 + $0x8] sm:$0xff] }
0x474b   :  { %11221 = vmatprep.subr.mxu1 %v15119_v20  ;;  %11189 = vmatpush3.msra.mxu0 %v14306_v29 }
0x474c   :  { %11222 = vmatpush3.msra.mxu1 %v14065_v18  ;;  %11190 = vmatprep.subr.mxu0 %v15119_v20  ;;  %v14316_v18 = vld [vmem:[#allocation19] sm:$0xff] }
0x474d   :  { %11223 = vmatprep.subr.mxu1 %v15119_v20  ;;  %11191 = vmatpush3.msra.mxu0 %v14312_v5 }
0x474e   :  { %v11794_v63 = vpop.eup %11793  ;;  %11224 = vmatpush3.msra.mxu1 %v14071_v10  ;;  %11192 = vmatprep.subr.mxu0 %v15119_v20 }
0x474f   :  { %11225 = vmatprep.subr.mxu1 %v15119_v20  ;;  %v6222_v13 = vsel %vm1122_vm2, %v11794_v63, 0.0  ;;  %11193 = vmatpush3.msra.mxu0 %v14316_v18 }
0x4750   :  { %11226 = vmatpush3.msra.mxu1 %v14075_v22  ;;  %6223 = vadd.xlane.f32.xlu1 %v6222_v13 }
0x4751   :  { %11228 = vmatmul.mubr.msk.f32.vlgmr.msra.gmra.mxu1 %vm487_vm1, %v14219_v12  ;;  %11241 = vmatprep.subr.mxu1 %v15119_v20 }
0x4752   :  { %11242 = vmatpush3.msra.mxu1 %v14080_v41  ;;  %11249 = vmatprep.mubr.msk.f32.mxu1 %vm12312_vm0, %v15119_v20 }
0x4753   :  { %11243 = vmatprep.subr.mxu1 %v15119_v20  ;;  %11208 = vmatprep.subr.mxu0 %v15119_v20 }
0x4754   :  { %11244 = vmatpush3.msra.mxu1 %v14086_v1 }
0x4755   :  { %11245 = vmatprep.subr.mxu1 %v15119_v20 }
0x4756   :  { %11246 = vmatpush3.msra.mxu1 %v14092_v15  ;;  %v14337_v15 = vld [vmem:[%s15117_s29 + $0x1c] sm:$0xf]  ;;  %s12315_s29 = smov 96  }
0x4757   :  { %11247 = vmatprep.subr.mxu1 %v15119_v20 }
0x4758   :  { %11248 = vmatpush3.msra.mxu1 %v14096_v24 }
0x4759   :  { %11250 = vmatmul.mubr.msk.f32.vlgmr.msra.gmra.mxu1 %vm487_vm1, %v6143_v33  ;;  %11263 = vmatprep.subr.mxu1 %v15119_v20 }
0x475a   :  { %11271 = vmatprep.mubr.msk.f32.mxu1 %vm12312_vm0, %v15119_v20 }
0x47d9   :  { %v6224_v10 = vpop.xlane.xlu1 %6223 }
0x47da   :  { %11795 = vrcp.f32 %v6224_v10 }
0x47e7   :  { %v11796_v22 = vpop.eup %11795 }
0x47e8   :  { %v6226_v41 = vmul.f32 %v11796_v22, %v11794_v63 }
0x47ea   :  { %v14323_v1 = vmul.f32 %v14141_v46, %v6226_v41 }
0x47ec   :  { %11195 = vmatmul.mubr.msk.f32.vlgmr.msra.gmra.mxu0 %vm487_vm1, %v14323_v1 }
0x47ed   :  { %11209 = vmatpush3.msra.mxu0 %v14112_v47  ;;  %11216 = vmatprep.mubr.msk.f32.mxu0 %vm12312_vm0, %v15119_v20 }
0x47ee   :  { %11210 = vmatprep.subr.mxu0 %v15119_v20 }
0x47ef   :  { %11211 = vmatpush3.msra.mxu0 %v14119_v40 }
0x47f0   :  { %11212 = vmatprep.subr.mxu0 %v15119_v20 }
0x47f1   :  { %11213 = vmatpush3.msra.mxu0 %v14128_v37 }
0x47f2   :  { %11214 = vmatprep.subr.mxu0 %v15119_v20 }
0x47f3   :  { %11215 = vmatpush3.msra.mxu0 %v14135_v38 }
0x47f4   :  { %11217 = vmatmul.mubr.msk.f32.vlgmr.msra.gmra.mxu0 %vm487_vm1, %v14337_v15  ;;  %11230 = vmatprep.subr.mxu0 %v15119_v20 }
0x47f5   :  { %11231 = vmatpush3.msra.mxu0 %v14168_v35  ;;  %11238 = vmatprep.mubr.msk.f32.mxu0 %vm12312_vm0, %v15119_v20 }
0x47f6   :  { %11232 = vmatprep.subr.mxu0 %v15119_v20 }
0x47f7   :  { %11233 = vmatpush3.msra.mxu0 %v14170_v30 }
0x47f8   :  { %11234 = vmatprep.subr.mxu0 %v15119_v20 }
0x47f9   :  { %11235 = vmatpush3.msra.mxu0 %v14174_v16 }
0x47fa   :  { %11236 = vmatprep.subr.mxu0 %v15119_v20 }
0x47fb   :  { %11237 = vmatpush3.msra.mxu0 %v14178_v2 }
0x47fc   :  { %11252 = vmatprep.subr.mxu0 %v15119_v20 }
0x4801   :  { %v14354_v24 = vpop.f32.mrf.mxu1 }
0x4803   :  { %v11185_v47 = vpop.f32.mrf.mxu1 }
0x4809   :  { %v6500_v40 = vpop.f32.mrf.mxu1 }
0x480b   :  { %v11207_v37 = vpop.f32.mrf.mxu1 }
0x4811   :  { %v6683_v38 = vpop.f32.mrf.mxu1 }
0x4813   :  { %v11229_v46 = vpop.f32.mrf.mxu1 }
0x4819   :  { %v14356_v35 = vpop.f32.mrf.mxu1 }
0x481b   :  { %v11251_v30 = vpop.f32.mrf.mxu1 }
0x48ac   :  { %v14358_v48 = vpop.f32.mrf.mxu0 }
0x48ae   :  { %v11196_v12 = vpop.f32.mrf.mxu0 }
0x48b4   :  { %v6573_v16 = vpop.f32.mrf.mxu0 }
0x48b5   :  { %v6574_v62 = vadd.f32 %v6573_v16, %v6500_v40 }
0x48b6   :  { %v11218_v33 = vpop.f32.mrf.mxu0 }
0x48b7   :  { %v6584_v2 = vadd.f32 %v14159_v6, %v6574_v62 }
0x48b9   :  { %11797 = vtanh.f32 %v6584_v2  ;;  %v9916_v49 = vmul.f32 -1.442695, %v6584_v2 }
0x48bb   :  { %11799 = vpow2.f32 %v9916_v49 }
0x48c6   :  { %v11798_v60 = vpop.eup %11797 }
0x48c7   :  { %6594 = vrot.lane.b32.xlu1 %v11798_v60, %s12313_s5 }
0x48c8   :  { %v11800_v61 = vpop.eup %11799 }
0x48c9   :  { %v6588_v17 = vadd.f32 1.0, %v11800_v61 }
0x48cb   :  { %11801 = vrcp.f32 %v6588_v17 }
0x48d8   :  { %v11802_v19 = vpop.eup %11801 }
0x48d9   :  { %v6592_v52 = vmul.f32 %v11802_v19, %v14165_v55 }
0x4939   :  { %v6595_v56 = vpop.permute.xlu1 %6594 }
0x493a   :  { %v6597_v9 = vmul.f32 %v11802_v19, %v6595_v56 }
0x493c   :  { %6599 = vrot.lane.b32.xlu0 %v6597_v9, %s12314_s30  ;;  %v6983_v9 = vld [vmem:[#allocation16 + $0xf8] sm:$0xff] }
0x493d   :  { %11264 = vmatpush3.msra.mxu1 %v6983_v9 }
0x493e   :  { %11265 = vmatprep.subr.mxu1 %v15119_v20 }
0x49ae   :  { %v6600_v0 = vpop.permute.xlu0 %6599 }
0x49af   :  { %v6602_v3 = vadd.f32 %v6600_v0, %v6592_v52  ;;  %v6982_v52 = vld [vmem:[#allocation16 + $0xf0] sm:$0xff]  ;;  %v6981_v0 = vld [vmem:[#allocation16 + $0xe8] sm:$0xff] }
0x49b0   :  { %11266 = vmatpush3.msra.mxu1 %v6982_v52 }
0x49b1   :  { %11803 = vtanh.f32 %v6602_v3  ;;  %11267 = vmatprep.subr.mxu1 %v15119_v20 }
0x49b2   :  { %11268 = vmatpush3.msra.mxu1 %v6981_v0 }
0x49b3   :  { %11269 = vmatprep.subr.mxu1 %v15119_v20 }
0x49be   :  { %v11804_v6 = vpop.eup %11803 }
0x49bf   :  { %6605 = vrot.lane.b32.xlu0 %v11804_v6, %s12313_s5 }
0x4a31   :  { %v6606_v57 = vpop.permute.xlu0 %6605 }
0x4a32   :  { %v6608_v50 = vmul.f32 %v11802_v19, %v6606_v57 }
0x4a34   :  { %6688 = vrot.lane.b32.xlu1 %v6608_v50, %s12314_s30 }
0x4aa6   :  { %v6689_v45 = vpop.permute.xlu1 %6688 }
0x4aa7   :  { %11239 = vmatmul.mubr.msk.f32.vlgmr.msra.gmra.mxu0 %vm487_vm1, %v6689_v45 }
0x4aa8   :  { %11253 = vmatpush3.msra.mxu0 %v14201_v39  ;;  %11260 = vmatprep.mubr.msk.f32.mxu0 %vm12312_vm0, %v15119_v20 }
0x4aa9   :  { %11254 = vmatprep.subr.mxu0 %v15119_v20 }
0x4aaa   :  { %11255 = vmatpush3.msra.mxu0 %v14203_v11 }
0x4aab   :  { %11256 = vmatprep.subr.mxu0 %v15119_v20 }
0x4aac   :  { %11257 = vmatpush3.msra.mxu0 %v14207_v21 }
0x4aad   :  { %11258 = vmatprep.subr.mxu0 %v15119_v20 }
0x4aae   :  { %11259 = vmatpush3.msra.mxu0 %v14211_v36 }
0x4aaf   :  { %11274 = vmatprep.subr.mxu0 %v15119_v20 }
0x4b67   :  { %v6758_v55 = vpop.f32.mrf.mxu0 }
0x4b68   :  { %v6759_v63 = vadd.f32 %v6758_v55, %v6683_v38 }
0x4b69   :  { %v11240_v39 = vpop.f32.mrf.mxu0 }
0x4b6a   :  { %v6769_v13 = vadd.f32 %v14192_v43, %v6759_v63 }
0x4b6c   :  { %11805 = vtanh.f32 %v6769_v13  ;;  %v9920_v11 = vmul.f32 -1.442695, %v6769_v13 }
0x4b6e   :  { %11807 = vpow2.f32 %v9920_v11 }
0x4b79   :  { %v11806_v10 = vpop.eup %11805 }
0x4b7a   :  { %6779 = vrot.lane.b32.xlu0 %v11806_v10, %s12313_s5 }
0x4b7b   :  { %v11808_v22 = vpop.eup %11807 }
0x4b7c   :  { %v6773_v41 = vadd.f32 1.0, %v11808_v22 }
0x4b7e   :  { %11809 = vrcp.f32 %v6773_v41 }
0x4b8b   :  { %v11810_v21 = vpop.eup %11809 }
0x4b8c   :  { %v6777_v36 = vmul.f32 %v11810_v21, %v14198_v7 }
0x4bec   :  { %v6780_v47 = vpop.permute.xlu0 %6779 }
0x4bed   :  { %v6782_v40 = vmul.f32 %v11810_v21, %v6780_v47 }
0x4bef   :  { %6784 = vrot.lane.b32.xlu1 %v6782_v40, %s12314_s30 }
0x4c61   :  { %v6785_v37 = vpop.permute.xlu1 %6784 }
0x4c62   :  { %v6787_v38 = vadd.f32 %v6785_v37, %v6777_v36 }
0x4c64   :  { %11811 = vtanh.f32 %v6787_v38 }
0x4c71   :  { %v11812_v43 = vpop.eup %11811 }
0x4c72   :  { %6790 = vrot.lane.b32.xlu0 %v11812_v43, %s12313_s5 }
0x4ce4   :  { %v6791_v46 = vpop.permute.xlu0 %6790 }
0x4ce5   :  { %v6793_v30 = vmul.f32 %v11810_v21, %v6791_v46 }
0x4ce7   :  { %6873 = vrot.lane.b32.xlu1 %v6793_v30, %s12314_s30  ;;  %v14435_v30 = vld [vmem:[#allocation25 + $0x18] sm:$0xff] }
0x4d59   :  { %v6874_v12 = vpop.permute.xlu1 %6873 }
0x4d5a   :  { %11261 = vmatmul.mubr.msk.f32.vlgmr.msra.gmra.mxu0 %vm487_vm1, %v6874_v12  ;;  %v14439_v12 = vld [vmem:[#allocation25 + $0x10] sm:$0xff] }
0x4d5b   :  { %11275 = vmatpush3.msra.mxu0 %v14011_v58  ;;  %11282 = vmatprep.mubr.msk.f32.mxu0 %vm12312_vm0, %v15119_v20 }
0x4d5c   :  { %11276 = vmatprep.subr.mxu0 %v15119_v20 }
0x4d5d   :  { %11277 = vmatpush3.msra.mxu0 %v14013_v44 }
0x4d5e   :  { %11278 = vmatprep.subr.mxu0 %v15119_v20 }
0x4d5f   :  { %11279 = vmatpush3.msra.mxu0 %v14020_v23 }
0x4d60   :  { %11280 = vmatprep.subr.mxu0 %v15119_v20 }
0x4d61   :  { %11281 = vmatpush3.msra.mxu0 %v14024_v14 }
0x4d62   :  { %11296 = vmatprep.subr.mxu0 %v15119_v20 }
0x4e1a   :  { %v6943_v7 = vpop.f32.mrf.mxu0 }
0x4e1b   :  { %v6944_v58 = vadd.f32 %v6943_v7, %v14356_v35  ;;  %v6384_v35 = vadd.f32 %v14358_v48, %v14354_v24  ;;  %v6980_v24 = vld [vmem:[#allocation16 + $0xe0] sm:$0xff]  ;;  %v14443_v7 = vld [vmem:[#allocation25 + $0x8] sm:$0xff] }
0x4e1c   :  { %v11262_v16 = vpop.f32.mrf.mxu0  ;;  %11270 = vmatpush3.msra.mxu1 %v6980_v24 }
0x4e1d   :  { %v6954_v62 = vadd.f32 %v14233_v34, %v6944_v58  ;;  %v14401_v34 = vld [vmem:[#allocation22] ss:$0 sm:$0xff]  ;;  %11285 = vmatprep.subr.mxu1 %v15119_v20  ;;  %v14447_v58 = vld [vmem:[#allocation25] sm:$0xff] }
0x4e1e   :  { %v6394_v56 = vadd.f32 %v14401_v34, %v6384_v35 }
0x4e1f   :  { %11813 = vtanh.f32 %v6954_v62  ;;  %v9924_v44 = vmul.f32 -1.442695, %v6954_v62 }
0x4e20   :  { %v9911_v3 = vmul.f32 -1.442695, %v6394_v56 }
0x4e21   :  { %11815 = vpow2.f32 %v9924_v44 }
0x4e2c   :  { %v11814_v33 = vpop.eup %11813 }
0x4e2d   :  { %6964 = vrot.lane.b32.xlu0 %v11814_v33, %s12313_s5 }
0x4e2e   :  { %v11816_v2 = vpop.eup %11815 }
0x4e2f   :  { %v6958_v23 = vadd.f32 1.0, %v11816_v2  ;;  %v14465_v2 = vld [vmem:[#allocation23 + $0x18] sm:$0xff] }
0x4e31   :  { %11817 = vrcp.f32 %v6958_v23  ;;  %v14469_v23 = vld [vmem:[#allocation23 + $0x10] sm:$0xff] }
0x4e3e   :  { %v11818_v60 = vpop.eup %11817 }
0x4e3f   :  { %v6962_v61 = vmul.f32 %v11818_v60, %v14242_v59 }
0x4e9f   :  { %v6965_v49 = vpop.permute.xlu0 %6964 }
0x4ea0   :  { %v6967_v14 = vmul.f32 %v11818_v60, %v6965_v49 }
0x4ea2   :  { %6969 = vrot.lane.b32.xlu1 %v6967_v14, %s12314_s30 }
0x4f14   :  { %v6970_v17 = vpop.permute.xlu1 %6969 }
0x4f15   :  { %v6972_v19 = vadd.f32 %v6970_v17, %v6962_v61 }
0x4f17   :  { %11819 = vtanh.f32 %v6972_v19 }
0x4f18   :  { %11821 = vtanh.f32 %v6394_v56  ;;  %v14574_v56 = vld [vmem:[#allocation26] ss:$0 sm:$0xff] }
0x4f19   :  { %11823 = vpow2.f32 %v9911_v3 }
0x4f24   :  { %v11820_v59 = vpop.eup %11819 }
0x4f25   :  { %6975 = vrot.lane.b32.xlu0 %v11820_v59, %s12313_s5  ;;  %v11822_v48 = vpop.eup %11821 }
0x4f26   :  { %v11824_v6 = vpop.eup %11823 }
0x4f27   :  { %v6398_v57 = vadd.f32 1.0, %v11824_v6 }
0x4f29   :  { %6404 = vrot.lane.b32.xlu0 %v11822_v48, %s12313_s5  ;;  %11825 = vrcp.f32 %v6398_v57 }
0x4f36   :  { %v11826_v55 = vpop.eup %11825 }
0x4f37   :  { %v6402_v10 = vmul.f32 %v11826_v55, %v14258_v25 }
0x4f97   :  { %v6976_v50 = vpop.permute.xlu0 %6975 }
0x4f98   :  { %v6978_v45 = vmul.f32 %v11818_v60, %v6976_v50  ;;  %v14475_v60 = vld [vmem:[#allocation23 + $0x8] sm:$0xff] }
0x4f9a   :  { %6993 = vrot.lane.b32.xlu1 %v6978_v45, %s12314_s30 }
0x4f9b   :  { %v6405_v63 = vpop.permute.xlu0 %6404 }
0x4f9c   :  { %v6407_v39 = vmul.f32 %v11826_v55, %v6405_v63 }
0x4f9e   :  { %6409 = vrot.lane.b32.xlu1 %v6407_v39, %s12314_s30 }
0x500c   :  { %v6994_v13 = vpop.permute.xlu1 %6993 }
0x500d   :  { %11272 = vmatmul.mubr.msk.f32.vlgmr.msra.gmra.mxu1 %vm487_vm1, %v6994_v13 }
0x500e   :  { %11286 = vmatpush3.msra.mxu1 %v14304_v54  ;;  %11293 = vmatprep.mubr.msk.f32.mxu1 %vm12312_vm0, %v15119_v20  ;;  %v9925_v54 = vld [vmem:[#allocation17 + $0x7] ss:$0 sm:$0xff] }
0x500f   :  { %11287 = vmatprep.subr.mxu1 %v15119_v20 }
0x5010   :  { %v6410_v11 = vpop.permute.xlu1 %6409  ;;  %11288 = vmatpush3.msra.mxu1 %v14306_v29 }
0x5011   :  { %v14419_v22 = vadd.f32 %v6410_v11, %v6402_v10  ;;  %11289 = vmatprep.subr.mxu1 %v15119_v20 }
0x5012   :  { %11290 = vmatpush3.msra.mxu1 %v14312_v5 }
0x5013   :  { %11827 = vtanh.f32 %v14419_v22  ;;  %11291 = vmatprep.subr.mxu1 %v15119_v20 }
0x5014   :  { %11292 = vmatpush3.msra.mxu1 %v14316_v18 }
0x5015   :  { %11307 = vmatprep.subr.mxu1 %v15119_v20 }
0x5020   :  { %v11828_v25 = vpop.eup %11827 }
0x5021   :  { %6415 = vrot.lane.b32.xlu1 %v11828_v25, %s12313_s5 }
0x5093   :  { %v6416_v40 = vpop.permute.xlu1 %6415 }
0x5094   :  { %v6418_v5 = vmul.f32 %v11826_v55, %v6416_v40 }
0x50cd   :  { %v7063_v41 = vpop.f32.mrf.mxu1 }
0x50ce   :  { %v7064_v29 = vadd.f32 %v9925_v54, %v7063_v41 }
0x50cf   :  { %v11273_v21 = vpop.f32.mrf.mxu1 }
0x50d0   :  { %v7067_v47 = vsel %vm1122_vm2, %v7064_v29, -inf }
0x50d1   :  { %7068 = vmax.xlane.f32.xlu0 %v7067_v47 }
0x50e7   :  { %6420 = vrot.lane.b32.xlu0 %v6418_v5, %s12314_s30 }
0x515a   :  { %v7069_v36 = vpop.xlane.xlu0 %7068 }
0x515b   :  { %v7070_v37 = vsub.f32 %v7064_v29, %v7069_v36 }
0x515d   :  { %v7071_v38 = vmul.f32 1.442695, %v7070_v37 }
0x515e   :  { %v6421_v18 = vpop.permute.xlu0 %6420 }
0x515f   :  { %11829 = vpow2.f32 %v7071_v38  ;;  %6423 = vst.msk [vmem:[#allocation2 + $0xc] sm:$0xf] %vm1122_vm2, %v6421_v18  ;;  %11283 = vmatmul.mubr.msk.f32.vlgmr.msra.gmra.mxu0 %vm487_vm1, %v6421_v18 }
0x5160   :  { %11304 = vmatprep.mubr.msk.f32.mxu0 %vm12312_vm0, %v15119_v20  ;;  %11297 = vmatpush3.msra.mxu0 %v14435_v30 }
0x5161   :  { %11298 = vmatprep.subr.mxu0 %v15119_v20 }
0x5162   :  { %11299 = vmatpush3.msra.mxu0 %v14439_v12 }
0x5163   :  { %11300 = vmatprep.subr.mxu0 %v15119_v20 }
0x5164   :  { %11301 = vmatpush3.msra.mxu0 %v14443_v7 }
0x5165   :  { %11302 = vmatprep.subr.mxu0 %v15119_v20 }
0x5166   :  { %11303 = vmatpush3.msra.mxu0 %v14447_v58 }
0x5167   :  { %11305 = vmatmul.mubr.f32.vlgmr.msra.gmra.mxu0 %v15119_v20  ;;  %11318 = vmatprep.subr.mxu0 %v15119_v20 }
0x5168   :  { %11319 = vmatpush3.msra.mxu0 %v14435_v30  ;;  %11326 = vmatprep.mubr.msk.f32.mxu0 %vm12312_vm0, %v15119_v20 }
0x5169   :  { %11320 = vmatprep.subr.mxu0 %v15119_v20 }
0x516a   :  { %11321 = vmatpush3.msra.mxu0 %v14439_v12 }
0x516b   :  { %11322 = vmatprep.subr.mxu0 %v15119_v20 }
0x516c   :  { %v11830_v43 = vpop.eup %11829  ;;  %11323 = vmatpush3.msra.mxu0 %v14443_v7 }
0x516d   :  { %v7073_v46 = vsel %vm1122_vm2, %v11830_v43, 0.0  ;;  %11324 = vmatprep.subr.mxu0 %v15119_v20 }
0x516e   :  { %7074 = vadd.xlane.f32.xlu1 %v7073_v46  ;;  %11325 = vmatpush3.msra.mxu0 %v14447_v58 }
0x516f   :  { %11340 = vmatprep.subr.mxu0 %v15119_v20 }
0x51f7   :  { %v7075_v16 = vpop.xlane.xlu1 %7074 }
0x51f8   :  { %11831 = vrcp.f32 %v7075_v16 }
0x5205   :  { %v11832_v62 = vpop.eup %11831 }
0x5206   :  { %v7077_v33 = vmul.f32 %v11832_v62, %v11830_v43 }
0x5208   :  { %v14463_v44 = vmul.f32 %v14337_v15, %v7077_v33  ;;  %v14479_v15 = vld [vmem:[#allocation23] sm:$0xff] }
0x520a   :  { %11294 = vmatmul.mubr.msk.f32.vlgmr.msra.gmra.mxu1 %vm487_vm1, %v14463_v44 }
0x520b   :  { %11308 = vmatpush3.msra.mxu1 %v14465_v2  ;;  %11315 = vmatprep.mubr.msk.f32.mxu1 %vm12312_vm0, %v15119_v20 }
0x520c   :  { %11309 = vmatprep.subr.mxu1 %v15119_v20 }
0x520d   :  { %11310 = vmatpush3.msra.mxu1 %v14469_v23 }
0x520e   :  { %11311 = vmatprep.subr.mxu1 %v15119_v20 }
0x520f   :  { %11312 = vmatpush3.msra.mxu1 %v14475_v60 }
0x5210   :  { %11313 = vmatprep.subr.mxu1 %v15119_v20 }
0x5211   :  { %11314 = vmatpush3.msra.mxu1 %v14479_v15 }
0x5212   :  { %11316 = vmatmul.mubr.msk.f32.vlgmr.msra.gmra.mxu1 %vm487_vm1, %v14463_v44  ;;  %11329 = vmatprep.subr.mxu1 %v15119_v20 }
0x5213   :  { %11330 = vmatpush3.msra.mxu1 %v14465_v2  ;;  %11337 = vmatprep.mubr.msk.f32.mxu1 %vm12312_vm0, %v15119_v20 }
0x5214   :  { %11331 = vmatprep.subr.mxu1 %v15119_v20 }
0x5215   :  { %11332 = vmatpush3.msra.mxu1 %v14469_v23 }
0x5216   :  { %11333 = vmatprep.subr.mxu1 %v15119_v20 }
0x5217   :  { %11334 = vmatpush3.msra.mxu1 %v14475_v60 }
0x5218   :  { %11335 = vmatprep.subr.mxu1 %v15119_v20 }
0x5219   :  { %11336 = vmatpush3.msra.mxu1 %v14479_v15 }
0x521a   :  { %11338 = vmatmul.mubr.msk.f32.vlgmr.msra.gmra.mxu1 %vm487_vm1, %v14323_v1  ;;  %11351 = vmatprep.subr.mxu1 %v15119_v20 }
0x521b   :  { %11352 = vmatpush3.msra.mxu1 %v14465_v2  ;;  %11359 = vmatprep.mubr.msk.f32.mxu1 %vm12312_vm0, %v15119_v20 }
0x521c   :  { %11353 = vmatprep.subr.mxu1 %v15119_v20 }
0x521d   :  { %11354 = vmatpush3.msra.mxu1 %v14469_v23 }
0x521e   :  { %11355 = vmatprep.subr.mxu1 %v15119_v20 }
0x521f   :  { %11356 = vmatpush3.msra.mxu1 %v14475_v60  ;;  %v14506_v49 = vpop.f32.mrf.mxu0 }
0x5220   :  { %11357 = vmatprep.subr.mxu1 %v15119_v20 }
0x5221   :  { %11358 = vmatpush3.msra.mxu1 %v14479_v15  ;;  %v11284_v14 = vpop.f32.mrf.mxu0 }
0x5222   :  { %11360 = vmatmul.mubr.msk.f32.vlgmr.msra.gmra.mxu1 %vm487_vm1, %v14107_v51  ;;  %11373 = vmatprep.subr.mxu1 %v15119_v20 }
0x5223   :  { %11374 = vmatpush3.msra.mxu1 %v14465_v2  ;;  %11381 = vmatprep.mubr.msk.f32.mxu1 %vm12312_vm0, %v15119_v20 }
0x5224   :  { %11375 = vmatprep.subr.mxu1 %v15119_v20 }
0x5225   :  { %11376 = vmatpush3.msra.mxu1 %v14469_v23 }
0x5226   :  { %11377 = vmatprep.subr.mxu1 %v15119_v20 }
0x5227   :  { %11378 = vmatpush3.msra.mxu1 %v14475_v60 }
0x5228   :  { %11379 = vmatprep.subr.mxu1 %v15119_v20 }
0x5229   :  { %11380 = vmatpush3.msra.mxu1 %v14479_v15 }
0x522a   :  { %11382 = vmatmul.mubr.msk.f32.vlgmr.msra.gmra.mxu1 %vm487_vm1, %v13893_v8  ;;  %11395 = vmatprep.subr.mxu1 %v15119_v20  ;;  %v7347_v8 = vpop.f32.mrf.mxu0 }
0x522b   :  { %11396 = vmatpush3.msra.mxu1 %v14465_v2  ;;  %11403 = vmatprep.mubr.msk.f32.mxu1 %vm12312_vm0, %v15119_v20 }
0x522c   :  { %11397 = vmatprep.subr.mxu1 %v15119_v20  ;;  %v11306_v35 = vpop.f32.mrf.mxu0 }
0x522d   :  { %11398 = vmatpush3.msra.mxu1 %v14469_v23 }
0x522e   :  { %11399 = vmatprep.subr.mxu1 %v15119_v20 }
0x522f   :  { %11400 = vmatpush3.msra.mxu1 %v14475_v60 }
0x5230   :  { %11401 = vmatprep.subr.mxu1 %v15119_v20 }
0x5231   :  { %11402 = vmatpush3.msra.mxu1 %v14479_v15 }
0x5232   :  { %11404 = vmatmul.mubr.msk.f32.vlgmr.msra.gmra.mxu1 %vm487_vm1, %v13724_v42  ;;  %11417 = vmatprep.subr.mxu1 %v15119_v20 }
0x5233   :  { %11418 = vmatpush3.msra.mxu1 %v14465_v2  ;;  %11425 = vmatprep.mubr.msk.f32.mxu1 %vm12312_vm0, %v15119_v20 }
0x5234   :  { %11419 = vmatprep.subr.mxu1 %v15119_v20 }
0x5235   :  { %11420 = vmatpush3.msra.mxu1 %v14469_v23 }
0x5236   :  { %11421 = vmatprep.subr.mxu1 %v15119_v20 }
0x5237   :  { %11422 = vmatpush3.msra.mxu1 %v14475_v60 }
0x5238   :  { %11423 = vmatprep.subr.mxu1 %v15119_v20 }
0x5239   :  { %11424 = vmatpush3.msra.mxu1 %v14479_v15 }
0x523a   :  { %11426 = vmatmul.mubr.msk.f32.vlgmr.msra.gmra.mxu1 %vm487_vm1, %v13510_v26  ;;  %11439 = vmatprep.subr.mxu1 %v15119_v20 }
0x523b   :  { %11440 = vmatpush3.msra.mxu1 %v14465_v2  ;;  %11447 = vmatprep.mubr.msk.f32.mxu1 %vm12312_vm0, %v15119_v20 }
0x523c   :  { %11441 = vmatprep.subr.mxu1 %v15119_v20 }
0x523d   :  { %11442 = vmatpush3.msra.mxu1 %v14469_v23 }
0x523e   :  { %11443 = vmatprep.subr.mxu1 %v15119_v20 }
0x523f   :  { %11444 = vmatpush3.msra.mxu1 %v14475_v60 }
0x5240   :  { %11445 = vmatprep.subr.mxu1 %v15119_v20 }
0x5241   :  { %11446 = vmatpush3.msra.mxu1 %v14479_v15 }
0x5242   :  { %11448 = vmatmul.mubr.msk.f32.vlgmr.msra.gmra.mxu1 %vm487_vm1, %v13299_v4  ;;  %11461 = vmatprep.subr.mxu1 %v15119_v20 }
0x5243   :  { %11462 = vmatpush3.msra.mxu1 %v14465_v2  ;;  %11469 = vmatprep.mubr.msk.f32.mxu1 %vm12312_vm0, %v15119_v20 }
0x5244   :  { %11463 = vmatprep.subr.mxu1 %v15119_v20 }
0x5245   :  { %11464 = vmatpush3.msra.mxu1 %v14469_v23 }
0x5246   :  { %11465 = vmatprep.subr.mxu1 %v15119_v20 }
0x5247   :  { %11466 = vmatpush3.msra.mxu1 %v14475_v60 }
0x5248   :  { %11467 = vmatprep.subr.mxu1 %v15119_v20 }
0x5249   :  { %11468 = vmatpush3.msra.mxu1 %v14479_v15 }
0x524a   :  { %11470 = vmatmul.mubr.msk.f32.vlgmr.msra.gmra.mxu1 %vm487_vm1, %v13130_v27 }
0x52ca   :  { %v14572_v61 = vpop.f32.mrf.mxu1 }
0x52cc   :  { %v11295_v17 = vpop.f32.mrf.mxu1 }
0x52d2   :  { %v7417_v19 = vpop.f32.mrf.mxu1 }
0x52d3   :  { %v7418_v9 = vadd.f32 %v7417_v19, %v7347_v8 }
0x52d4   :  { %v11317_v52 = vpop.f32.mrf.mxu1 }
0x52d5   :  { %v7428_v0 = vadd.f32 %v14574_v56, %v7418_v9 }
0x52d7   :  { %11833 = vtanh.f32 %v7428_v0  ;;  %v9933_v25 = vmul.f32 -1.442695, %v7428_v0 }
0x52d9   :  { %11835 = vpow2.f32 %v9933_v25 }
0x52da   :  { %v7603_v24 = vpop.f32.mrf.mxu1 }
0x52dc   :  { %v11339_v59 = vpop.f32.mrf.mxu1 }
0x52e2   :  { %v14577_v48 = vpop.f32.mrf.mxu1 }
0x52e4   :  { %v11834_v3 = vpop.eup %11833  ;;  %v11361_v6 = vpop.f32.mrf.mxu1 }
0x52e5   :  { %7438 = vrot.lane.b32.xlu1 %v11834_v3, %s12313_s5 }
0x52e6   :  { %v11836_v54 = vpop.eup %11835 }
0x52e7   :  { %v7432_v41 = vadd.f32 1.0, %v11836_v54 }
0x52e9   :  { %11837 = vrcp.f32 %v7432_v41 }
0x52ea   :  { %v14580_v27 = vpop.f32.mrf.mxu1 }
0x52ec   :  { %v11383_v57 = vpop.f32.mrf.mxu1 }
0x52f2   :  { %v14582_v50 = vpop.f32.mrf.mxu1 }
0x52f4   :  { %v11405_v45 = vpop.f32.mrf.mxu1 }
0x52f6   :  { %v11838_v29 = vpop.eup %11837 }
0x52f7   :  { %v7436_v40 = vmul.f32 0.0, %v11838_v29 }
0x52fa   :  { %v14584_v55 = vpop.f32.mrf.mxu1 }
0x52fc   :  { %v11427_v63 = vpop.f32.mrf.mxu1 }
0x5302   :  { %v14586_v39 = vpop.f32.mrf.mxu1 }
0x5304   :  { %v11449_v13 = vpop.f32.mrf.mxu1 }
0x530a   :  { %v14588_v10 = vpop.f32.mrf.mxu1 }
0x530c   :  { %v11471_v11 = vpop.f32.mrf.mxu1 }
0x5357   :  { %v7439_v21 = vpop.permute.xlu1 %7438 }
0x5358   :  { %v7441_v47 = vmul.f32 %v11838_v29, %v7439_v21 }
0x535a   :  { %7443 = vrot.lane.b32.xlu0 %v7441_v47, %s12314_s30 }
0x53cc   :  { %v7444_v5 = vpop.permute.xlu0 %7443 }
0x53cd   :  { %v7446_v36 = vadd.f32 %v7444_v5, %v7436_v40 }
0x53cf   :  { %11839 = vtanh.f32 %v7446_v36 }
0x53dc   :  { %v11840_v37 = vpop.eup %11839 }
0x53dd   :  { %7449 = vrot.lane.b32.xlu0 %v11840_v37, %s12313_s5 }
0x544f   :  { %v7450_v38 = vpop.permute.xlu0 %7449 }
0x5450   :  { %v14592_v18 = vmul.f32 %v11838_v29, %v7450_v38 }
0x5452   :  { %7463 = vrot.lane.b32.xlu1 %v14592_v18, %s12314_s30 }
0x54c4   :  { %v7464_v43 = vpop.permute.xlu1 %7463 }
0x54c5   :  { %11327 = vmatmul.mubr.msk.f32.vlgmr.msra.gmra.mxu0 %vm487_vm1, %v7464_v43 }
0x54c6   :  { %11341 = vmatpush3.msra.mxu0 %v14435_v30  ;;  %11348 = vmatprep.mubr.msk.f32.mxu0 %vm12312_vm0, %v15119_v20 }
0x54c7   :  { %11342 = vmatprep.subr.mxu0 %v15119_v20 }
0x54c8   :  { %11343 = vmatpush3.msra.mxu0 %v14439_v12 }
0x54c9   :  { %11344 = vmatprep.subr.mxu0 %v15119_v20 }
0x54ca   :  { %11345 = vmatpush3.msra.mxu0 %v14443_v7 }
0x54cb   :  { %11346 = vmatprep.subr.mxu0 %v15119_v20 }
0x54cc   :  { %11347 = vmatpush3.msra.mxu0 %v14447_v58 }
0x54cd   :  { %11362 = vmatprep.subr.mxu0 %v15119_v20 }
0x5585   :  { %v7533_v46 = vpop.f32.mrf.mxu0 }
0x5586   :  { %v7604_v16 = vadd.f32 %v7603_v24, %v7533_v46 }
0x5587   :  { %v11328_v62 = vpop.f32.mrf.mxu0 }
0x5588   :  { %v7614_v33 = vadd.f32 %v14574_v56, %v7604_v16 }
0x558a   :  { %11841 = vtanh.f32 %v7614_v33  ;;  %v9937_v23 = vmul.f32 -1.442695, %v7614_v33 }
0x558c   :  { %11843 = vpow2.f32 %v9937_v23 }
0x5597   :  { %v11842_v2 = vpop.eup %11841 }
0x5598   :  { %7624 = vrot.lane.b32.xlu0 %v11842_v2, %s12313_s5 }
0x5599   :  { %v11844_v60 = vpop.eup %11843 }
0x559a   :  { %v7618_v15 = vadd.f32 1.0, %v11844_v60 }
0x559c   :  { %11845 = vrcp.f32 %v7618_v15 }
0x55a9   :  { %v11846_v14 = vpop.eup %11845 }
0x55aa   :  { %v7622_v17 = vmul.f32 %v11846_v14, %v7446_v36 }
0x560a   :  { %v7625_v8 = vpop.permute.xlu0 %7624 }
0x560b   :  { %v7627_v35 = vmul.f32 %v11846_v14, %v7625_v8 }
0x560d   :  { %7629 = vrot.lane.b32.xlu1 %v7627_v35, %s12314_s30 }
0x567f   :  { %v7630_v19 = vpop.permute.xlu1 %7629 }
0x5680   :  { %v7632_v9 = vadd.f32 %v7630_v19, %v7622_v17 }
0x5682   :  { %11847 = vtanh.f32 %v7632_v9 }
0x568f   :  { %v11848_v52 = vpop.eup %11847 }
0x5690   :  { %7635 = vrot.lane.b32.xlu0 %v11848_v52, %s12313_s5 }
0x5702   :  { %v7636_v0 = vpop.permute.xlu0 %7635 }
0x5703   :  { %v14611_v24 = vmul.f32 %v11846_v14, %v7636_v0 }
0x5705   :  { %7652 = vrot.lane.b32.xlu1 %v14611_v24, %s12314_s30 }
0x5777   :  { %v7653_v59 = vpop.permute.xlu1 %7652 }
0x5778   :  { %11349 = vmatmul.mubr.msk.f32.vlgmr.msra.gmra.mxu0 %vm487_vm1, %v7653_v59 }
0x5779   :  { %11363 = vmatpush3.msra.mxu0 %v14435_v30  ;;  %11370 = vmatprep.mubr.msk.f32.mxu0 %vm12312_vm0, %v15119_v20 }
0x577a   :  { %11364 = vmatprep.subr.mxu0 %v15119_v20 }
0x577b   :  { %11365 = vmatpush3.msra.mxu0 %v14439_v12 }
0x577c   :  { %11366 = vmatprep.subr.mxu0 %v15119_v20 }
0x577d   :  { %11367 = vmatpush3.msra.mxu0 %v14443_v7 }
0x577e   :  { %11368 = vmatprep.subr.mxu0 %v15119_v20 }
0x577f   :  { %11369 = vmatpush3.msra.mxu0 %v14447_v58 }
0x5780   :  { %11384 = vmatprep.subr.mxu0 %v15119_v20 }
0x5838   :  { %v7722_v3 = vpop.f32.mrf.mxu0 }
0x5839   :  { %v7793_v6 = vadd.f32 %v14577_v48, %v7722_v3 }
0x583a   :  { %v11350_v57 = vpop.f32.mrf.mxu0 }
0x583b   :  { %v7803_v45 = vadd.f32 %v14574_v56, %v7793_v6 }
0x583d   :  { %11849 = vtanh.f32 %v7803_v45  ;;  %v9941_v13 = vmul.f32 -1.442695, %v7803_v45 }
0x583f   :  { %11851 = vpow2.f32 %v9941_v13 }
0x584a   :  { %v11850_v63 = vpop.eup %11849 }
0x584b   :  { %7813 = vrot.lane.b32.xlu0 %v11850_v63, %s12313_s5 }
0x584c   :  { %v11852_v11 = vpop.eup %11851 }
0x584d   :  { %v7807_v25 = vadd.f32 1.0, %v11852_v11 }
0x584f   :  { %11853 = vrcp.f32 %v7807_v25 }
0x585c   :  { %v11854_v54 = vpop.eup %11853 }
0x585d   :  { %v7811_v21 = vmul.f32 %v11854_v54, %v7632_v9 }
0x58bd   :  { %v7814_v41 = vpop.permute.xlu0 %7813 }
0x58be   :  { %v7816_v29 = vmul.f32 %v11854_v54, %v7814_v41 }
0x58c0   :  { %7818 = vrot.lane.b32.xlu1 %v7816_v29, %s12314_s30 }
0x5932   :  { %v7819_v47 = vpop.permute.xlu1 %7818 }
0x5933   :  { %v7821_v48 = vadd.f32 %v7819_v47, %v7811_v21 }
0x5935   :  { %11855 = vtanh.f32 %v7821_v48 }
0x5942   :  { %v11856_v40 = vpop.eup %11855 }
0x5943   :  { %7824 = vrot.lane.b32.xlu0 %v11856_v40, %s12313_s5 }
0x59b5   :  { %v7825_v5 = vpop.permute.xlu0 %7824 }
0x59b6   :  { %v14631_v36 = vmul.f32 %v11854_v54, %v7825_v5 }
0x59b8   :  { %7838 = vrot.lane.b32.xlu1 %v14631_v36, %s12314_s30 }
0x5a2a   :  { %v7839_v37 = vpop.permute.xlu1 %7838 }
0x5a2b   :  { %11371 = vmatmul.mubr.msk.f32.vlgmr.msra.gmra.mxu0 %vm487_vm1, %v7839_v37 }
0x5a2c   :  { %11385 = vmatpush3.msra.mxu0 %v14435_v30  ;;  %11392 = vmatprep.mubr.msk.f32.mxu0 %vm12312_vm0, %v15119_v20 }
0x5a2d   :  { %11386 = vmatprep.subr.mxu0 %v15119_v20 }
0x5a2e   :  { %11387 = vmatpush3.msra.mxu0 %v14439_v12 }
0x5a2f   :  { %11388 = vmatprep.subr.mxu0 %v15119_v20 }
0x5a30   :  { %11389 = vmatpush3.msra.mxu0 %v14443_v7 }
0x5a31   :  { %11390 = vmatprep.subr.mxu0 %v15119_v20 }
0x5a32   :  { %11391 = vmatpush3.msra.mxu0 %v14447_v58 }
0x5a33   :  { %11406 = vmatprep.subr.mxu0 %v15119_v20 }
0x5aeb   :  { %v7908_v38 = vpop.f32.mrf.mxu0 }
0x5aec   :  { %v7979_v43 = vadd.f32 %v14580_v27, %v7908_v38 }
0x5aed   :  { %v11372_v46 = vpop.f32.mrf.mxu0 }
0x5aee   :  { %v7989_v16 = vadd.f32 %v14574_v56, %v7979_v43 }
0x5af0   :  { %11857 = vtanh.f32 %v7989_v16  ;;  %v9945_v33 = vmul.f32 -1.442695, %v7989_v16 }
0x5af2   :  { %11859 = vpow2.f32 %v9945_v33 }
0x5afd   :  { %v11858_v62 = vpop.eup %11857 }
0x5afe   :  { %7999 = vrot.lane.b32.xlu0 %v11858_v62, %s12313_s5 }
0x5aff   :  { %v11860_v2 = vpop.eup %11859 }
0x5b00   :  { %v7993_v23 = vadd.f32 1.0, %v11860_v2 }
0x5b02   :  { %11861 = vrcp.f32 %v7993_v23 }
0x5b0f   :  { %v11862_v60 = vpop.eup %11861 }
0x5b10   :  { %v7997_v8 = vmul.f32 %v11862_v60, %v7821_v48 }
0x5b70   :  { %v8000_v15 = vpop.permute.xlu0 %7999 }
0x5b71   :  { %v8002_v14 = vmul.f32 %v11862_v60, %v8000_v15 }
0x5b73   :  { %8004 = vrot.lane.b32.xlu1 %v8002_v14, %s12314_s30 }
0x5be5   :  { %v8005_v35 = vpop.permute.xlu1 %8004 }
0x5be6   :  { %v8007_v27 = vadd.f32 %v8005_v35, %v7997_v8 }
0x5be8   :  { %11863 = vtanh.f32 %v8007_v27 }
0x5bf5   :  { %v11864_v17 = vpop.eup %11863 }
0x5bf6   :  { %8010 = vrot.lane.b32.xlu0 %v11864_v17, %s12313_s5 }
0x5c68   :  { %v8011_v19 = vpop.permute.xlu0 %8010 }
0x5c69   :  { %v14651_v9 = vmul.f32 %v11862_v60, %v8011_v19 }
0x5c6b   :  { %8027 = vrot.lane.b32.xlu1 %v14651_v9, %s12314_s30 }
0x5cdd   :  { %v8028_v52 = vpop.permute.xlu1 %8027 }
0x5cde   :  { %11393 = vmatmul.mubr.msk.f32.vlgmr.msra.gmra.mxu0 %vm487_vm1, %v8028_v52 }
0x5cdf   :  { %11407 = vmatpush3.msra.mxu0 %v14435_v30  ;;  %11414 = vmatprep.mubr.msk.f32.mxu0 %vm12312_vm0, %v15119_v20 }
0x5ce0   :  { %11408 = vmatprep.subr.mxu0 %v15119_v20 }
0x5ce1   :  { %11409 = vmatpush3.msra.mxu0 %v14439_v12 }
0x5ce2   :  { %11410 = vmatprep.subr.mxu0 %v15119_v20 }
0x5ce3   :  { %11411 = vmatpush3.msra.mxu0 %v14443_v7 }
0x5ce4   :  { %11412 = vmatprep.subr.mxu0 %v15119_v20 }
0x5ce5   :  { %11413 = vmatpush3.msra.mxu0 %v14447_v58 }
0x5ce6   :  { %11428 = vmatprep.subr.mxu0 %v15119_v20 }
0x5d9e   :  { %v8097_v0 = vpop.f32.mrf.mxu0 }
0x5d9f   :  { %v8168_v59 = vadd.f32 %v14582_v50, %v8097_v0 }
0x5da0   :  { %v11394_v3 = vpop.f32.mrf.mxu0 }
0x5da1   :  { %v8178_v6 = vadd.f32 %v14574_v56, %v8168_v59 }
0x5da3   :  { %11865 = vtanh.f32 %v8178_v6  ;;  %v9949_v45 = vmul.f32 -1.442695, %v8178_v6 }
0x5da5   :  { %11867 = vpow2.f32 %v9949_v45 }
0x5db0   :  { %v11866_v57 = vpop.eup %11865 }
0x5db1   :  { %8188 = vrot.lane.b32.xlu0 %v11866_v57, %s12313_s5 }
0x5db2   :  { %v11868_v63 = vpop.eup %11867 }
0x5db3   :  { %v8182_v13 = vadd.f32 1.0, %v11868_v63 }
0x5db5   :  { %11869 = vrcp.f32 %v8182_v13 }
0x5dc2   :  { %v11870_v11 = vpop.eup %11869 }
0x5dc3   :  { %v8186_v41 = vmul.f32 %v11870_v11, %v8007_v27 }
0x5e23   :  { %v8189_v25 = vpop.permute.xlu0 %8188 }
0x5e24   :  { %v8191_v54 = vmul.f32 %v11870_v11, %v8189_v25 }
0x5e26   :  { %8193 = vrot.lane.b32.xlu1 %v8191_v54, %s12314_s30 }
0x5e98   :  { %v8194_v29 = vpop.permute.xlu1 %8193 }
0x5e99   :  { %v8196_v50 = vadd.f32 %v8194_v29, %v8186_v41 }
0x5e9b   :  { %11871 = vtanh.f32 %v8196_v50 }
0x5ea8   :  { %v11872_v21 = vpop.eup %11871 }
0x5ea9   :  { %8199 = vrot.lane.b32.xlu0 %v11872_v21, %s12313_s5 }
0x5f1b   :  { %v8200_v47 = vpop.permute.xlu0 %8199 }
0x5f1c   :  { %v14671_v48 = vmul.f32 %v11870_v11, %v8200_v47 }
0x5f1e   :  { %8213 = vrot.lane.b32.xlu1 %v14671_v48, %s12314_s30 }
0x5f90   :  { %v8214_v40 = vpop.permute.xlu1 %8213 }
0x5f91   :  { %11415 = vmatmul.mubr.msk.f32.vlgmr.msra.gmra.mxu0 %vm487_vm1, %v8214_v40 }
0x5f92   :  { %11429 = vmatpush3.msra.mxu0 %v14435_v30  ;;  %11436 = vmatprep.mubr.msk.f32.mxu0 %vm12312_vm0, %v15119_v20 }
0x5f93   :  { %11430 = vmatprep.subr.mxu0 %v15119_v20 }
0x5f94   :  { %11431 = vmatpush3.msra.mxu0 %v14439_v12 }
0x5f95   :  { %11432 = vmatprep.subr.mxu0 %v15119_v20 }
0x5f96   :  { %11433 = vmatpush3.msra.mxu0 %v14443_v7 }
0x5f97   :  { %11434 = vmatprep.subr.mxu0 %v15119_v20 }
0x5f98   :  { %11435 = vmatpush3.msra.mxu0 %v14447_v58 }
0x5f99   :  { %11450 = vmatprep.subr.mxu0 %v15119_v20 }
0x6051   :  { %v8283_v5 = vpop.f32.mrf.mxu0 }
0x6052   :  { %v8354_v37 = vadd.f32 %v14584_v55, %v8283_v5 }
0x6053   :  { %v11416_v38 = vpop.f32.mrf.mxu0 }
0x6054   :  { %v8364_v43 = vadd.f32 %v14574_v56, %v8354_v37 }
0x6056   :  { %11873 = vtanh.f32 %v8364_v43  ;;  %v9953_v16 = vmul.f32 -1.442695, %v8364_v43 }
0x6058   :  { %11875 = vpow2.f32 %v9953_v16 }
0x6063   :  { %v11874_v46 = vpop.eup %11873 }
0x6064   :  { %8374 = vrot.lane.b32.xlu0 %v11874_v46, %s12313_s5 }
0x6065   :  { %v11876_v62 = vpop.eup %11875 }
0x6066   :  { %v8368_v33 = vadd.f32 1.0, %v11876_v62 }
0x6068   :  { %11877 = vrcp.f32 %v8368_v33 }
0x6075   :  { %v11878_v2 = vpop.eup %11877 }
0x6076   :  { %v8372_v15 = vmul.f32 %v11878_v2, %v8196_v50 }
0x60d6   :  { %v8375_v23 = vpop.permute.xlu0 %8374 }
0x60d7   :  { %v8377_v60 = vmul.f32 %v11878_v2, %v8375_v23 }
0x60d9   :  { %8379 = vrot.lane.b32.xlu1 %v8377_v60, %s12314_s30 }
0x614b   :  { %v8380_v14 = vpop.permute.xlu1 %8379 }
0x614c   :  { %v8382_v55 = vadd.f32 %v8380_v14, %v8372_v15 }
0x614e   :  { %11879 = vtanh.f32 %v8382_v55 }
0x615b   :  { %v11880_v8 = vpop.eup %11879 }
0x615c   :  { %8385 = vrot.lane.b32.xlu0 %v11880_v8, %s12313_s5 }
0x61ce   :  { %v8386_v35 = vpop.permute.xlu0 %8385 }
0x61cf   :  { %v14691_v27 = vmul.f32 %v11878_v2, %v8386_v35 }
0x61d1   :  { %8402 = vrot.lane.b32.xlu1 %v14691_v27, %s12314_s30 }
0x6243   :  { %v8403_v17 = vpop.permute.xlu1 %8402 }
0x6244   :  { %11437 = vmatmul.mubr.msk.f32.vlgmr.msra.gmra.mxu0 %vm487_vm1, %v8403_v17 }
0x6245   :  { %11451 = vmatpush3.msra.mxu0 %v14435_v30  ;;  %11458 = vmatprep.mubr.msk.f32.mxu0 %vm12312_vm0, %v15119_v20 }
0x6246   :  { %11452 = vmatprep.subr.mxu0 %v15119_v20 }
0x6247   :  { %11453 = vmatpush3.msra.mxu0 %v14439_v12 }
0x6248   :  { %11454 = vmatprep.subr.mxu0 %v15119_v20 }
0x6249   :  { %11455 = vmatpush3.msra.mxu0 %v14443_v7 }
0x624a   :  { %11456 = vmatprep.subr.mxu0 %v15119_v20 }
0x624b   :  { %11457 = vmatpush3.msra.mxu0 %v14447_v58  ;;  %v7233_v58 = vadd.f32 %v14572_v61, %v14506_v49 }
0x624d   :  { %v7243_v11 = vadd.f32 %v14401_v34, %v7233_v58 }
0x624f   :  { %v9930_v41 = vmul.f32 -1.442695, %v7243_v11 }
0x6304   :  { %v8472_v19 = vpop.f32.mrf.mxu0 }
0x6305   :  { %v8543_v52 = vadd.f32 %v14586_v39, %v8472_v19 }
0x6306   :  { %v11438_v0 = vpop.f32.mrf.mxu0 }
0x6307   :  { %v8553_v30 = vadd.f32 %v14574_v56, %v8543_v52 }
0x6309   :  { %11881 = vtanh.f32 %v8553_v30  ;;  %v9957_v3 = vmul.f32 -1.442695, %v8553_v30 }
0x630b   :  { %11883 = vpow2.f32 %v9957_v3 }
0x6316   :  { %v11882_v59 = vpop.eup %11881 }
0x6317   :  { %8563 = vrot.lane.b32.xlu0 %v11882_v59, %s12313_s5 }
0x6318   :  { %v11884_v12 = vpop.eup %11883 }
0x6319   :  { %v8557_v6 = vadd.f32 1.0, %v11884_v12 }
0x631b   :  { %11885 = vrcp.f32 %v8557_v6 }
0x6328   :  { %v11886_v7 = vpop.eup %11885 }
0x6329   :  { %v8561_v39 = vmul.f32 %v11886_v7, %v8382_v55 }
0x6389   :  { %v8564_v57 = vpop.permute.xlu0 %8563 }
0x638a   :  { %v8566_v45 = vmul.f32 %v11886_v7, %v8564_v57 }
0x638c   :  { %8568 = vrot.lane.b32.xlu1 %v8566_v45, %s12314_s30 }
0x63fe   :  { %v8569_v63 = vpop.permute.xlu1 %8568 }
0x63ff   :  { %v14711_v13 = vadd.f32 %v8569_v63, %v8561_v39 }
0x6401   :  { %11887 = vtanh.f32 %v14711_v13 }
0x6402   :  { %11889 = vtanh.f32 %v7243_v11 }
0x6403   :  { %11891 = vpow2.f32 %v9930_v41 }
0x640e   :  { %v11888_v25 = vpop.eup %11887 }
0x640f   :  { %8574 = vrot.lane.b32.xlu0 %v11888_v25, %s12313_s5  ;;  %v11890_v54 = vpop.eup %11889 }
0x6410   :  { %v11892_v29 = vpop.eup %11891 }
0x6411   :  { %v7247_v50 = vadd.f32 1.0, %v11892_v29 }
0x6413   :  { %7253 = vrot.lane.b32.xlu0 %v11890_v54, %s12313_s5  ;;  %11893 = vrcp.f32 %v7247_v50 }
0x6420   :  { %v14721_v34 = vpop.eup %11893 }
0x6421   :  { %v7251_v5 = vmul.f32 %v14721_v34, %v14419_v22 }
0x6481   :  { %v8575_v49 = vpop.permute.xlu0 %8574 }
0x6482   :  { %v14717_v61 = vmul.f32 %v11886_v7, %v8575_v49 }
0x6484   :  { %8588 = vrot.lane.b32.xlu1 %v14717_v61, %s12314_s30 }
0x6485   :  { %v7254_v21 = vpop.permute.xlu0 %7253 }
0x6486   :  { %v7256_v47 = vmul.f32 %v14721_v34, %v7254_v21 }
0x6488   :  { %7258 = vrot.lane.b32.xlu0 %v7256_v47, %s12314_s30 }
0x64f6   :  { %v8589_v40 = vpop.permute.xlu1 %8588 }
0x64f7   :  { %11459 = vmatmul.mubr.msk.f32.vlgmr.msra.gmra.mxu0 %vm487_vm1, %v8589_v40 }
0x64fa   :  { %v7259_v37 = vpop.permute.xlu0 %7258 }
0x64fb   :  { %v7261_v38 = vadd.f32 %v7259_v37, %v7251_v5 }
0x64fd   :  { %11895 = vtanh.f32 %v7261_v38 }
0x650a   :  { %v11896_v43 = vpop.eup %11895 }
0x650b   :  { %7264 = vrot.lane.b32.xlu0 %v11896_v43, %s12313_s5 }
0x650f   :  { %1980 = vrot.lane.b32.xlu0 %v13299_v4, %s12314_s30 }
0x6513   :  { %3872 = vrot.lane.b32.xlu0 %v13848_v53, %s12315_s29 }
0x6517   :  { %5569 = vrot.lane.b32.xlu0 %v14263_v28, %s12315_s29 }
0x651b   :  { %2831 = vrot.lane.b32.xlu0 %v13510_v26, %s12313_s5 }
0x651f   :  { %3682 = vrot.lane.b32.xlu0 %v13724_v42, %s12315_s29 }
0x6523   :  { %7640 = vrot.lane.b32.xlu0 %v14611_v24, %s12313_s5 }
0x6527   :  { %8390 = vrot.lane.b32.xlu0 %v14691_v27, %s12313_s5 }
0x657d   :  { %v7265_v4 = vpop.permute.xlu0 %7264 }
0x657e   :  { %v7267_v27 = vmul.f32 %v14721_v34, %v7265_v4 }
0x6581   :  { %v1981_v22 = vpop.permute.xlu0 %1980 }
0x6582   :  { %1984 = vst.msk [vmem:[%s15018_s26] sm:$0xf] %vm1983_vm3, %v1981_v22 }
0x6585   :  { %v3873_v26 = vpop.permute.xlu0 %3872 }
0x6586   :  { %3875 = vst.msk [vmem:[#allocation2 + $0x4] sm:$0xf] %vm2173_vm4, %v3873_v26 }
0x6587   :  { %8203 = vst.msk [vmem:[#allocation2 + $0x4] sm:$0xf] %vm3685_vm5, %v14671_v48 }
0x6589   :  { %v5570_v42 = vpop.permute.xlu0 %5569 }
0x658a   :  { %5572 = vst.msk [vmem:[#allocation2 + $0x8] sm:$0xf] %vm2173_vm4, %v5570_v42 }
0x658b   :  { %7828 = vst.msk [vmem:[#allocation2 + $0x8] sm:$0xf] %vm3685_vm5, %v14631_v36 }
0x658d   :  { %v2832_v53 = vpop.permute.xlu0 %2831 }
0x658e   :  { %2834 = vst.msk [vmem:[%s15018_s26] sm:$0xf] %vm2173_vm4, %v2832_v53 }
0x6591   :  { %v3683_v28 = vpop.permute.xlu0 %3682 }
0x6592   :  { %3686 = vst.msk [vmem:[%s15018_s26] sm:$0xf] %vm3685_vm5, %v3683_v28 }
0x6595   :  { %v7641_v24 = vpop.permute.xlu0 %7640 }
0x6599   :  { %v8391_v48 = vpop.permute.xlu0 %8390 }
0x659a   :  { %8393 = vst.msk [vmem:[#allocation2 + $0x4] sm:$0xf] %vm1983_vm3, %v8391_v48 }
0x65b7   :  { %v8658_v46 = vpop.f32.mrf.mxu0 }
0x65b8   :  { %v8729_v16 = vadd.f32 %v14588_v10, %v8658_v46 }
0x65b9   :  { %v11460_v36 = vpop.f32.mrf.mxu0 }
0x65ba   :  { %v8739_v62 = vadd.f32 %v14574_v56, %v8729_v16 }
0x65bc   :  { %11897 = vtanh.f32 %v8739_v62  ;;  %v9961_v2 = vmul.f32 -1.442695, %v8739_v62 }
0x65be   :  { %11899 = vpow2.f32 %v9961_v2 }
0x65c9   :  { %v11898_v33 = vpop.eup %11897 }
0x65ca   :  { %8749 = vrot.lane.b32.xlu1 %v11898_v33, %s12313_s5 }
0x65cb   :  { %v11900_v23 = vpop.eup %11899 }
0x65cc   :  { %v8743_v60 = vadd.f32 1.0, %v11900_v23 }
0x65ce   :  { %11901 = vrcp.f32 %v8743_v60 }
0x65db   :  { %v11902_v15 = vpop.eup %11901 }
0x65dc   :  { %v8747_v8 = vmul.f32 %v11902_v15, %v14711_v13 }
0x663c   :  { %v8750_v14 = vpop.permute.xlu1 %8749 }
0x663d   :  { %v8752_v55 = vmul.f32 %v11902_v15, %v8750_v14 }
0x663f   :  { %8754 = vrot.lane.b32.xlu1 %v8752_v55, %s12314_s30 }
0x66b1   :  { %v8755_v10 = vpop.permute.xlu1 %8754 }
0x66b2   :  { %v8757_v35 = vadd.f32 %v8755_v10, %v8747_v8 }
0x66b4   :  { %11903 = vtanh.f32 %v8757_v35 }
0x66c1   :  { %v11904_v56 = vpop.eup %11903 }
0x66c2   :  { %8760 = vrot.lane.b32.xlu1 %v11904_v56, %s12313_s5 }
0x66c6   :  { %2170 = vrot.lane.b32.xlu1 %v13429_v32, %s12315_s29 }
0x66ca   :  { %5380 = vrot.lane.b32.xlu1 %v14107_v51, %s12314_s30 }
0x66ce   :  { %7269 = vrot.lane.b32.xlu1 %v7267_v27, %s12315_s29 }
0x66d2   :  { %6229 = vrot.lane.b32.xlu1 %v14323_v1, %s12313_s5 }
0x66d6   :  { %7080 = vrot.lane.b32.xlu1 %v14463_v44, %s12315_s29 }
0x66da   :  { %8015 = vrot.lane.b32.xlu1 %v14651_v9, %s12313_s5 }
0x6734   :  { %v8761_v17 = vpop.permute.xlu1 %8760 }
0x6735   :  { %v8763_v19 = vmul.f32 %v11902_v15, %v8761_v17 }
0x6737   :  { %8765 = vrot.lane.b32.xlu1 %v8763_v19, %s12313_s5 }
0x6738   :  { %v2171_v32 = vpop.permute.xlu1 %2170 }
0x6739   :  { %2174 = vst.msk [vmem:[#allocation2] sm:$0xf] %vm2173_vm4, %v2171_v32 }
0x673a   :  { %8578 = vst.msk [vmem:[#allocation2] sm:$0xf] %vm3685_vm5, %v14717_v61 }
0x673c   :  { %v5381_v51 = vpop.permute.xlu1 %5380 }
0x673d   :  { %5383 = vst.msk [vmem:[%s15018_s26 + $0x4] sm:$0xf] %vm1983_vm3, %v5381_v51 }
0x6740   :  { %v7270_v1 = vpop.permute.xlu1 %7269 }
0x6741   :  { %7272 = vst.msk [vmem:[#allocation2 + $0xc] sm:$0xf] %vm2173_vm4, %v7270_v1 }
0x6742   :  { %7453 = vst.msk [vmem:[#allocation2 + $0xc] sm:$0xf] %vm3685_vm5, %v14592_v18 }
0x6743   :  { %7643 = vst.msk [vmem:[#allocation2 + $0xc] sm:$0xf] %vm1983_vm3, %v7641_v24 }
0x6744   :  { %v6230_v44 = vpop.permute.xlu1 %6229 }
0x6745   :  { %6232 = vst.msk [vmem:[%s15018_s26 + $0x4] sm:$0xf] %vm2173_vm4, %v6230_v44 }
0x6748   :  { %v7081_v9 = vpop.permute.xlu1 %7080 }
0x6749   :  { %7083 = vst.msk [vmem:[%s15018_s26 + $0x4] sm:$0xf] %vm3685_vm5, %v7081_v9 }
0x674c   :  { %v8016_v52 = vpop.permute.xlu1 %8015 }
0x674d   :  { %8018 = vst.msk [vmem:[#allocation2 + $0x8] sm:$0xf] %vm1983_vm3, %v8016_v52 }
0x67a9   :  { %v8766_v0 = vpop.permute.xlu1 %8765 }
0x67aa   :  { %8768 = vst.msk [vmem:[#allocation2] sm:$0xf] %vm1983_vm3, %v8766_v0 }
0x67ab   :  { %12285 = dma.done.wait [#allocation5], 32768 }
0x67ac   :  { %12286 = vsyncadd [#allocation5], 4294934528 }
0x67ad   :  { %12287 = dma.done.wait [#allocation5 + $0x1], 8192 }
0x67ae   :  { %12288 = vsyncadd [#allocation5 + $0x1], 4294959104  ;;  %v8839_v18 = vld [vmem:[#allocation3 + $0x1e8] sm:$0xff]  ;;  %v8838_v59 = vld [vmem:[#allocation3 + $0x1e0] sm:$0xff]  ;;  %vm9671_vm6 = vcmask 523264  }
0x67af   :  { %v8967_v30 = vld [vmem:[#allocation3 + $0x5e8] sm:$0xff]  ;;  %9062 = vmatprep.subr.mxu0 %v8839_v18  ;;  %v8966_v3 = vld [vmem:[#allocation3 + $0x5e0] sm:$0xff] }
0x67b0   :  { %9133 = vmatprep.subr.mxu1 %v8967_v30  ;;  %v8835_v12 = vld [vmem:[#allocation3 + $0x1c8] sm:$0xff]  ;;  %9063 = vmatpush1.msra.mxu0 %v8838_v59  ;;  %v8834_v7 = vld [vmem:[#allocation3 + $0x1c0] sm:$0xff] }
0x67b1   :  { %v8963_v6 = vld [vmem:[#allocation3 + $0x5c8] sm:$0xff]  ;;  %9134 = vmatpush1.msra.mxu1 %v8966_v3  ;;  %v8962_v57 = vld [vmem:[#allocation3 + $0x5c0] sm:$0xff]  ;;  %9064 = vmatprep.subr.mxu0 %v8835_v12 }
0x67b2   :  { %v8831_v45 = vld [vmem:[#allocation3 + $0x1a8] sm:$0xff]  ;;  %9135 = vmatprep.subr.mxu1 %v8963_v6  ;;  %v8830_v39 = vld [vmem:[#allocation3 + $0x1a0] sm:$0xff]  ;;  %9065 = vmatpush1.msra.mxu0 %v8834_v7 }
0x67b3   :  { %v8959_v58 = vld [vmem:[#allocation3 + $0x5a8] sm:$0xff]  ;;  %v8958_v63 = vld [vmem:[#allocation3 + $0x5a0] sm:$0xff]  ;;  %9136 = vmatpush1.msra.mxu1 %v8962_v57  ;;  %9066 = vmatprep.subr.mxu0 %v8831_v45 }
0x67b4   :  { %v8827_v13 = vld [vmem:[#allocation3 + $0x188] sm:$0xff]  ;;  %9137 = vmatprep.subr.mxu1 %v8959_v58  ;;  %v8826_v25 = vld [vmem:[#allocation3 + $0x180] sm:$0xff]  ;;  %9067 = vmatpush1.msra.mxu0 %v8830_v39 }
0x67b5   :  { %v8955_v11 = vld [vmem:[#allocation3 + $0x588] sm:$0xff]  ;;  %v8954_v54 = vld [vmem:[#allocation3 + $0x580] sm:$0xff]  ;;  %9138 = vmatpush1.msra.mxu1 %v8958_v63  ;;  %9068 = vmatprep.subr.mxu0 %v8827_v13 }
0x67b6   :  { %v8823_v41 = vld [vmem:[#allocation3 + $0x168] sm:$0xff]  ;;  %9139 = vmatprep.subr.mxu1 %v8955_v11  ;;  %v8822_v50 = vld [vmem:[#allocation3 + $0x160] sm:$0xff]  ;;  %9069 = vmatpush1.msra.mxu0 %v8826_v25 }
0x67b7   :  { %v8951_v29 = vld [vmem:[#allocation3 + $0x568] sm:$0xff]  ;;  %v8950_v49 = vld [vmem:[#allocation3 + $0x560] sm:$0xff]  ;;  %9140 = vmatpush1.msra.mxu1 %v8954_v54  ;;  %9070 = vmatprep.subr.mxu0 %v8823_v41 }
0x67b8   :  { %v8819_v61 = vld [vmem:[#allocation3 + $0x148] sm:$0xff]  ;;  %9141 = vmatprep.subr.mxu1 %v8951_v29  ;;  %v8818_v21 = vld [vmem:[#allocation3 + $0x140] sm:$0xff]  ;;  %9071 = vmatpush1.msra.mxu0 %v8822_v50 }
0x67b9   :  { %v8947_v34 = vld [vmem:[#allocation3 + $0x548] sm:$0xff]  ;;  %v8946_v47 = vld [vmem:[#allocation3 + $0x540] sm:$0xff]  ;;  %9142 = vmatpush1.msra.mxu1 %v8950_v49  ;;  %9072 = vmatprep.subr.mxu0 %v8819_v61 }
0x67ba   :  { %v8815_v40 = vld [vmem:[#allocation3 + $0x128] sm:$0xff]  ;;  %9143 = vmatprep.subr.mxu1 %v8947_v34  ;;  %v8814_v37 = vld [vmem:[#allocation3 + $0x120] sm:$0xff]  ;;  %9073 = vmatpush1.msra.mxu0 %v8818_v21 }
0x67bb   :  { %v8943_v5 = vld [vmem:[#allocation3 + $0x528] sm:$0xff]  ;;  %v8942_v38 = vld [vmem:[#allocation3 + $0x520] sm:$0xff]  ;;  %9144 = vmatpush1.msra.mxu1 %v8946_v47  ;;  %9074 = vmatprep.subr.mxu0 %v8815_v40 }
0x67bc   :  { %v8811_v43 = vld [vmem:[#allocation3 + $0x108] sm:$0xff]  ;;  %9145 = vmatprep.subr.mxu1 %v8943_v5  ;;  %v8810_v22 = vld [vmem:[#allocation3 + $0x100] sm:$0xff]  ;;  %9075 = vmatpush1.msra.mxu0 %v8814_v37 }
0x67bd   :  { %v8939_v4 = vld [vmem:[#allocation3 + $0x508] sm:$0xff]  ;;  %v8938_v26 = vld [vmem:[#allocation3 + $0x500] sm:$0xff]  ;;  %9146 = vmatpush1.msra.mxu1 %v8942_v38  ;;  %9076 = vmatprep.subr.mxu0 %v8811_v43 }
0x67be   :  { %v8807_v42 = vld [vmem:[#allocation3 + $0xe8] sm:$0xff]  ;;  %9147 = vmatprep.subr.mxu1 %v8939_v4  ;;  %v8806_v28 = vld [vmem:[#allocation3 + $0xe0] sm:$0xff]  ;;  %9077 = vmatpush1.msra.mxu0 %v8810_v22 }
0x67bf   :  { %v8935_v53 = vld [vmem:[#allocation3 + $0x4e8] sm:$0xff]  ;;  %v8934_v24 = vld [vmem:[#allocation3 + $0x4e0] sm:$0xff]  ;;  %9148 = vmatpush1.msra.mxu1 %v8938_v26  ;;  %9078 = vmatprep.subr.mxu0 %v8807_v42 }
0x67c0   :  { %v8803_v48 = vld [vmem:[#allocation3 + $0xc8] sm:$0xff]  ;;  %9149 = vmatprep.subr.mxu1 %v8935_v53  ;;  %v8802_v16 = vld [vmem:[#allocation3 + $0xc0] sm:$0xff]  ;;  %9079 = vmatpush1.msra.mxu0 %v8806_v28 }
0x67c1   :  { %v8931_v46 = vld [vmem:[#allocation3 + $0x4c8] sm:$0xff]  ;;  %v8930_v36 = vld [vmem:[#allocation3 + $0x4c0] sm:$0xff]  ;;  %9150 = vmatpush1.msra.mxu1 %v8934_v24  ;;  %9080 = vmatprep.subr.mxu0 %v8803_v48 }
0x67c2   :  { %v8799_v62 = vld [vmem:[#allocation3 + $0xa8] sm:$0xff]  ;;  %9151 = vmatprep.subr.mxu1 %v8931_v46  ;;  %v8798_v2 = vld [vmem:[#allocation3 + $0xa0] sm:$0xff]  ;;  %9081 = vmatpush1.msra.mxu0 %v8802_v16 }
0x67c3   :  { %v8927_v33 = vld [vmem:[#allocation3 + $0x4a8] sm:$0xff]  ;;  %v8926_v23 = vld [vmem:[#allocation3 + $0x4a0] sm:$0xff]  ;;  %9152 = vmatpush1.msra.mxu1 %v8930_v36  ;;  %9082 = vmatprep.subr.mxu0 %v8799_v62 }
0x67c4   :  { %v8795_v60 = vld [vmem:[#allocation3 + $0x88] sm:$0xff]  ;;  %9153 = vmatprep.subr.mxu1 %v8927_v33  ;;  %v8794_v14 = vld [vmem:[#allocation3 + $0x80] sm:$0xff]  ;;  %9083 = vmatpush1.msra.mxu0 %v8798_v2 }
0x67c5   :  { %v8923_v15 = vld [vmem:[#allocation3 + $0x488] sm:$0xff]  ;;  %v8922_v55 = vld [vmem:[#allocation3 + $0x480] sm:$0xff]  ;;  %9154 = vmatpush1.msra.mxu1 %v8926_v23  ;;  %9084 = vmatprep.subr.mxu0 %v8795_v60 }
0x67c6   :  { %v8791_v8 = vld [vmem:[#allocation3 + $0x68] sm:$0xff]  ;;  %9155 = vmatprep.subr.mxu1 %v8923_v15  ;;  %v8790_v35 = vld [vmem:[#allocation3 + $0x60] sm:$0xff]  ;;  %9085 = vmatpush1.msra.mxu0 %v8794_v14 }
0x67c7   :  { %v8919_v10 = vld [vmem:[#allocation3 + $0x468] sm:$0xff]  ;;  %v8918_v56 = vld [vmem:[#allocation3 + $0x460] sm:$0xff]  ;;  %9156 = vmatpush1.msra.mxu1 %v8922_v55  ;;  %9086 = vmatprep.subr.mxu0 %v8791_v8 }
0x67c8   :  { %v8787_v27 = vld [vmem:[#allocation3 + $0x48] sm:$0xff]  ;;  %9157 = vmatprep.subr.mxu1 %v8919_v10  ;;  %v8786_v19 = vld [vmem:[#allocation3 + $0x40] sm:$0xff]  ;;  %9087 = vmatpush1.msra.mxu0 %v8790_v35 }
0x67c9   :  { %v8915_v17 = vld [vmem:[#allocation3 + $0x448] sm:$0xff]  ;;  %v8914_v32 = vld [vmem:[#allocation3 + $0x440] sm:$0xff]  ;;  %9158 = vmatpush1.msra.mxu1 %v8918_v56  ;;  %9088 = vmatprep.subr.mxu0 %v8787_v27 }
0x67ca   :  { %v8783_v51 = vld [vmem:[#allocation3 + $0x28] sm:$0xff]  ;;  %9159 = vmatprep.subr.mxu1 %v8915_v17  ;;  %v8782_v44 = vld [vmem:[#allocation3 + $0x20] sm:$0xff]  ;;  %9089 = vmatpush1.msra.mxu0 %v8786_v19 }
0x67cb   :  { %v8911_v1 = vld [vmem:[#allocation3 + $0x428] sm:$0xff]  ;;  %v8910_v9 = vld [vmem:[#allocation3 + $0x420] sm:$0xff]  ;;  %9160 = vmatpush1.msra.mxu1 %v8914_v32  ;;  %9090 = vmatprep.subr.mxu0 %v8783_v51 }
0x67cc   :  { %v8779_v52 = vld [vmem:[#allocation3 + $0x8] sm:$0xff]  ;;  %9161 = vmatprep.subr.mxu1 %v8911_v1  ;;  %v8778_v18 = vld [vmem:[#allocation3] sm:$0xff]  ;;  %9091 = vmatpush1.msra.mxu0 %v8782_v44  ;;  %v14802_v44 = vld [vmem:[#allocation2] sm:$0xff] }
0x67cd   :  { %v8907_v0 = vld [vmem:[#allocation3 + $0x408] sm:$0xff]  ;;  %v8906_v30 = vld [vmem:[#allocation3 + $0x400] sm:$0xff]  ;;  %9162 = vmatpush1.msra.mxu1 %v8910_v9  ;;  %9092 = vmatprep.subr.mxu0 %v8779_v52 }
0x67ce   :  { %v8903_v59 = vld [vmem:[#allocation3 + $0x3e8] sm:$0xff]  ;;  %9163 = vmatprep.subr.mxu1 %v8907_v0  ;;  %v8902_v12 = vld [vmem:[#allocation3 + $0x3e0] sm:$0xff]  ;;  %9093 = vmatpush1.msra.mxu0 %v8778_v18 }
0x67cf   :  { %v9031_v3 = vld [vmem:[#allocation3 + $0x7e8] sm:$0xff]  ;;  %v9030_v6 = vld [vmem:[#allocation3 + $0x7e0] sm:$0xff]  ;;  %9164 = vmatpush1.msra.mxu1 %v8906_v30  ;;  %9094 = vmatprep.subr.mxu0 %v8903_v59  ;;  %v14804_v30 = vld [vmem:[#allocation2 + $0x8] sm:$0xff] }
0x67d0   :  { %v8899_v7 = vld [vmem:[#allocation3 + $0x3c8] sm:$0xff]  ;;  %9165 = vmatprep.subr.mxu1 %v9031_v3  ;;  %v8898_v45 = vld [vmem:[#allocation3 + $0x3c0] sm:$0xff]  ;;  %9095 = vmatpush2.msra.mxu0 %v8902_v12  ;;  %v14808_v12 = vcombine.high %v14802_v44, %v14802_v44 }
0x67d1   :  { %v9027_v57 = vld [vmem:[#allocation3 + $0x7c8] sm:$0xff]  ;;  %v9026_v58 = vld [vmem:[#allocation3 + $0x7c0] sm:$0xff]  ;;  %9166 = vmatpush2.msra.mxu1 %v9030_v6  ;;  %9096 = vmatprep.subr.mxu0 %v8899_v7 }
0x67d2   :  { %v8895_v39 = vld [vmem:[#allocation3 + $0x3a8] sm:$0xff]  ;;  %9167 = vmatprep.subr.mxu1 %v9027_v57  ;;  %v8894_v13 = vld [vmem:[#allocation3 + $0x3a0] sm:$0xff]  ;;  %9097 = vmatpush2.msra.mxu0 %v8898_v45  ;;  %v14812_v57 = vcombine.high %v14804_v30, %v14804_v30  ;;  %v8841_v45 = vld [vmem:[#allocation3 + $0x1f8] sm:$0xff] }
0x67d3   :  { %v9023_v63 = vld [vmem:[#allocation3 + $0x7a8] sm:$0xff]  ;;  %v9022_v11 = vld [vmem:[#allocation3 + $0x7a0] sm:$0xff]  ;;  %9168 = vmatpush2.msra.mxu1 %v9026_v58  ;;  %9098 = vmatprep.subr.mxu0 %v8895_v39  ;;  %v8969_v58 = vld [vmem:[#allocation3 + $0x5f8] sm:$0xff] }
0x67d4   :  { %v8891_v25 = vld [vmem:[#allocation3 + $0x388] sm:$0xff]  ;;  %9169 = vmatprep.subr.mxu1 %v9023_v63  ;;  %v8890_v41 = vld [vmem:[#allocation3 + $0x380] sm:$0xff]  ;;  %9099 = vmatpush2.msra.mxu0 %v8894_v13  ;;  %v8840_v39 = vld [vmem:[#allocation3 + $0x1f0] sm:$0xff] }
0x67d5   :  { %v9019_v54 = vld [vmem:[#allocation3 + $0x788] sm:$0xff]  ;;  %v9018_v29 = vld [vmem:[#allocation3 + $0x780] sm:$0xff]  ;;  %9170 = vmatpush2.msra.mxu1 %v9022_v11  ;;  %9100 = vmatprep.subr.mxu0 %v8891_v25  ;;  %v8968_v63 = vld [vmem:[#allocation3 + $0x5f0] sm:$0xff] }
0x67d6   :  { %v8887_v50 = vld [vmem:[#allocation3 + $0x368] sm:$0xff]  ;;  %9171 = vmatprep.subr.mxu1 %v9019_v54  ;;  %v8886_v61 = vld [vmem:[#allocation3 + $0x360] sm:$0xff]  ;;  %9101 = vmatpush2.msra.mxu0 %v8890_v41  ;;  %v8837_v13 = vld [vmem:[#allocation3 + $0x1d8] sm:$0xff] }
0x67d7   :  { %v9015_v49 = vld [vmem:[#allocation3 + $0x768] sm:$0xff]  ;;  %v9014_v34 = vld [vmem:[#allocation3 + $0x760] sm:$0xff]  ;;  %9172 = vmatpush2.msra.mxu1 %v9018_v29  ;;  %9102 = vmatprep.subr.mxu0 %v8887_v50  ;;  %v8965_v11 = vld [vmem:[#allocation3 + $0x5d8] sm:$0xff] }
0x67d8   :  { %v8883_v21 = vld [vmem:[#allocation3 + $0x348] sm:$0xff]  ;;  %9173 = vmatprep.subr.mxu1 %v9015_v49  ;;  %v8882_v40 = vld [vmem:[#allocation3 + $0x340] sm:$0xff]  ;;  %9103 = vmatpush2.msra.mxu0 %v8886_v61  ;;  %v8836_v25 = vld [vmem:[#allocation3 + $0x1d0] sm:$0xff] }
0x67d9   :  { %v9011_v47 = vld [vmem:[#allocation3 + $0x748] sm:$0xff]  ;;  %v9010_v5 = vld [vmem:[#allocation3 + $0x740] sm:$0xff]  ;;  %9174 = vmatpush2.msra.mxu1 %v9014_v34  ;;  %9104 = vmatprep.subr.mxu0 %v8883_v21  ;;  %v8964_v54 = vld [vmem:[#allocation3 + $0x5d0] sm:$0xff] }
0x67da   :  { %v8879_v37 = vld [vmem:[#allocation3 + $0x328] sm:$0xff]  ;;  %9175 = vmatprep.subr.mxu1 %v9011_v47  ;;  %v8878_v43 = vld [vmem:[#allocation3 + $0x320] sm:$0xff]  ;;  %9105 = vmatpush2.msra.mxu0 %v8882_v40  ;;  %v8833_v41 = vld [vmem:[#allocation3 + $0x1b8] sm:$0xff] }
0x67db   :  { %v9007_v38 = vld [vmem:[#allocation3 + $0x728] sm:$0xff]  ;;  %v9006_v4 = vld [vmem:[#allocation3 + $0x720] sm:$0xff]  ;;  %9176 = vmatpush2.msra.mxu1 %v9010_v5  ;;  %9106 = vmatprep.subr.mxu0 %v8879_v37  ;;  %v8961_v29 = vld [vmem:[#allocation3 + $0x5b8] sm:$0xff] }
0x67dc   :  { %v8875_v22 = vld [vmem:[#allocation3 + $0x308] sm:$0xff]  ;;  %9177 = vmatprep.subr.mxu1 %v9007_v38  ;;  %v8874_v42 = vld [vmem:[#allocation3 + $0x300] sm:$0xff]  ;;  %9107 = vmatpush2.msra.mxu0 %v8878_v43  ;;  %v8832_v50 = vld [vmem:[#allocation3 + $0x1b0] sm:$0xff] }
0x67dd   :  { %v9003_v26 = vld [vmem:[#allocation3 + $0x708] sm:$0xff]  ;;  %v9002_v53 = vld [vmem:[#allocation3 + $0x700] sm:$0xff]  ;;  %9178 = vmatpush2.msra.mxu1 %v9006_v4  ;;  %9108 = vmatprep.subr.mxu0 %v8875_v22  ;;  %v8960_v49 = vld [vmem:[#allocation3 + $0x5b0] sm:$0xff] }
0x67de   :  { %v8871_v28 = vld [vmem:[#allocation3 + $0x2e8] sm:$0xff]  ;;  %9179 = vmatprep.subr.mxu1 %v9003_v26  ;;  %v8870_v48 = vld [vmem:[#allocation3 + $0x2e0] sm:$0xff]  ;;  %9109 = vmatpush2.msra.mxu0 %v8874_v42  ;;  %v8829_v61 = vld [vmem:[#allocation3 + $0x198] sm:$0xff] }
0x67df   :  { %v8999_v24 = vld [vmem:[#allocation3 + $0x6e8] sm:$0xff]  ;;  %v8998_v46 = vld [vmem:[#allocation3 + $0x6e0] sm:$0xff]  ;;  %9180 = vmatpush2.msra.mxu1 %v9002_v53  ;;  %9110 = vmatprep.subr.mxu0 %v8871_v28  ;;  %v8957_v34 = vld [vmem:[#allocation3 + $0x598] sm:$0xff] }
0x67e0   :  { %v8867_v16 = vld [vmem:[#allocation3 + $0x2c8] sm:$0xff]  ;;  %9181 = vmatprep.subr.mxu1 %v8999_v24  ;;  %v8866_v62 = vld [vmem:[#allocation3 + $0x2c0] sm:$0xff]  ;;  %9111 = vmatpush2.msra.mxu0 %v8870_v48  ;;  %v8828_v21 = vld [vmem:[#allocation3 + $0x190] sm:$0xff] }
0x67e1   :  { %v8995_v36 = vld [vmem:[#allocation3 + $0x6c8] sm:$0xff]  ;;  %v8994_v33 = vld [vmem:[#allocation3 + $0x6c0] sm:$0xff]  ;;  %9182 = vmatpush2.msra.mxu1 %v8998_v46  ;;  %9112 = vmatprep.subr.mxu0 %v8867_v16  ;;  %v8956_v47 = vld [vmem:[#allocation3 + $0x590] sm:$0xff] }
0x67e2   :  { %v8863_v2 = vld [vmem:[#allocation3 + $0x2a8] sm:$0xff]  ;;  %9183 = vmatprep.subr.mxu1 %v8995_v36  ;;  %v8862_v60 = vld [vmem:[#allocation3 + $0x2a0] sm:$0xff]  ;;  %9113 = vmatpush2.msra.mxu0 %v8866_v62  ;;  %v8825_v40 = vld [vmem:[#allocation3 + $0x178] sm:$0xff] }
0x67e3   :  { %v8991_v23 = vld [vmem:[#allocation3 + $0x6a8] sm:$0xff]  ;;  %v8990_v15 = vld [vmem:[#allocation3 + $0x6a0] sm:$0xff]  ;;  %9184 = vmatpush2.msra.mxu1 %v8994_v33  ;;  %9114 = vmatprep.subr.mxu0 %v8863_v2  ;;  %v8953_v5 = vld [vmem:[#allocation3 + $0x578] sm:$0xff] }
0x67e4   :  { %v8859_v14 = vld [vmem:[#allocation3 + $0x288] sm:$0xff]  ;;  %9185 = vmatprep.subr.mxu1 %v8991_v23  ;;  %v8858_v8 = vld [vmem:[#allocation3 + $0x280] sm:$0xff]  ;;  %9115 = vmatpush2.msra.mxu0 %v8862_v60  ;;  %v8824_v37 = vld [vmem:[#allocation3 + $0x170] sm:$0xff] }
0x67e5   :  { %v8987_v55 = vld [vmem:[#allocation3 + $0x688] sm:$0xff]  ;;  %v8986_v10 = vld [vmem:[#allocation3 + $0x680] sm:$0xff]  ;;  %9186 = vmatpush2.msra.mxu1 %v8990_v15  ;;  %9116 = vmatprep.subr.mxu0 %v8859_v14  ;;  %v8952_v38 = vld [vmem:[#allocation3 + $0x570] sm:$0xff] }
0x67e6   :  { %v8855_v35 = vld [vmem:[#allocation3 + $0x268] sm:$0xff]  ;;  %9187 = vmatprep.subr.mxu1 %v8987_v55  ;;  %v8854_v27 = vld [vmem:[#allocation3 + $0x260] sm:$0xff]  ;;  %9117 = vmatpush2.msra.mxu0 %v8858_v8  ;;  %v8821_v43 = vld [vmem:[#allocation3 + $0x158] sm:$0xff] }
0x67e7   :  { %v8983_v56 = vld [vmem:[#allocation3 + $0x668] sm:$0xff]  ;;  %v8982_v17 = vld [vmem:[#allocation3 + $0x660] sm:$0xff]  ;;  %9188 = vmatpush2.msra.mxu1 %v8986_v10  ;;  %9118 = vmatprep.subr.mxu0 %v8855_v35  ;;  %v8949_v4 = vld [vmem:[#allocation3 + $0x558] sm:$0xff] }
0x67e8   :  { %v8851_v19 = vld [vmem:[#allocation3 + $0x248] sm:$0xff]  ;;  %9189 = vmatprep.subr.mxu1 %v8983_v56  ;;  %v8850_v51 = vld [vmem:[#allocation3 + $0x240] sm:$0xff]  ;;  %9119 = vmatpush2.msra.mxu0 %v8854_v27  ;;  %v8820_v22 = vld [vmem:[#allocation3 + $0x150] sm:$0xff] }
0x67e9   :  { %v8979_v32 = vld [vmem:[#allocation3 + $0x648] sm:$0xff]  ;;  %v8978_v1 = vld [vmem:[#allocation3 + $0x640] sm:$0xff]  ;;  %9190 = vmatpush2.msra.mxu1 %v8982_v17  ;;  %9120 = vmatprep.subr.mxu0 %v8851_v19  ;;  %v8948_v26 = vld [vmem:[#allocation3 + $0x550] sm:$0xff] }
0x67ea   :  { %v8847_v9 = vld [vmem:[#allocation3 + $0x228] sm:$0xff]  ;;  %9191 = vmatprep.subr.mxu1 %v8979_v32  ;;  %v8846_v0 = vld [vmem:[#allocation3 + $0x220] sm:$0xff]  ;;  %9121 = vmatpush2.msra.mxu0 %v8850_v51  ;;  %v8817_v42 = vld [vmem:[#allocation3 + $0x138] sm:$0xff] }
0x67eb   :  { %v8975_v52 = vld [vmem:[#allocation3 + $0x628] sm:$0xff]  ;;  %v8974_v18 = vld [vmem:[#allocation3 + $0x620] sm:$0xff]  ;;  %9192 = vmatpush2.msra.mxu1 %v8978_v1  ;;  %9122 = vmatprep.subr.mxu0 %v8847_v9  ;;  %v8945_v53 = vld [vmem:[#allocation3 + $0x538] sm:$0xff] }
0x67ec   :  { %v8843_v59 = vld [vmem:[#allocation3 + $0x208] sm:$0xff]  ;;  %9193 = vmatprep.subr.mxu1 %v8975_v52  ;;  %v8842_v6 = vld [vmem:[#allocation3 + $0x200] sm:$0xff]  ;;  %9123 = vmatpush2.msra.mxu0 %v8846_v0  ;;  %v8816_v28 = vld [vmem:[#allocation3 + $0x130] sm:$0xff] }
0x67ed   :  { %v8971_v3 = vld [vmem:[#allocation3 + $0x608] sm:$0xff]  ;;  %9194 = vmatpush2.msra.mxu1 %v8974_v18  ;;  %v8970_v7 = vld [vmem:[#allocation3 + $0x600] sm:$0xff]  ;;  %9124 = vmatprep.subr.mxu0 %v8843_v59  ;;  %v8944_v24 = vld [vmem:[#allocation3 + $0x530] sm:$0xff] }
0x67ee   :  { %9195 = vmatprep.subr.mxu1 %v8971_v3  ;;  %9125 = vmatpush2.msra.mxu0 %v8842_v6  ;;  %v8813_v48 = vld [vmem:[#allocation3 + $0x118] sm:$0xff]  ;;  %v8812_v16 = vld [vmem:[#allocation3 + $0x110] sm:$0xff] }
0x67ef   :  { %9126 = vmatprep.mubr.f32.mxu0 %v14808_v12  ;;  %9196 = vmatpush2.msra.mxu1 %v8970_v7  ;;  %v8941_v46 = vld [vmem:[#allocation3 + $0x518] sm:$0xff]  ;;  %v8940_v36 = vld [vmem:[#allocation3 + $0x510] sm:$0xff] }
0x67f0   :  { %9127 = vmatmul.mubr.f32.vlgmr.msra.gmra.mxu0 %v14802_v44  ;;  %9197 = vmatprep.mubr.f32.mxu1 %v14812_v57  ;;  %v8809_v62 = vld [vmem:[#allocation3 + $0xf8] sm:$0xff]  ;;  %v8808_v2 = vld [vmem:[#allocation3 + $0xf0] sm:$0xff] }
0x67f1   :  { %9204 = vmatprep.subr.mxu0 %v8841_v45  ;;  %9275 = vmatprep.subr.mxu1 %v8969_v58  ;;  %v8937_v33 = vld [vmem:[#allocation3 + $0x4f8] sm:$0xff]  ;;  %v8936_v23 = vld [vmem:[#allocation3 + $0x4f0] sm:$0xff] }
0x67f2   :  { %9198 = vmatmul.mubr.f32.vlgmr.msra.gmra.mxu1 %v14804_v30  ;;  %9205 = vmatpush1.msra.mxu0 %v8840_v39  ;;  %v8805_v60 = vld [vmem:[#allocation3 + $0xd8] sm:$0xff]  ;;  %v8804_v14 = vld [vmem:[#allocation3 + $0xd0] sm:$0xff] }
0x67f3   :  { %9276 = vmatpush1.msra.mxu1 %v8968_v63  ;;  %9206 = vmatprep.subr.mxu0 %v8837_v13  ;;  %v8933_v15 = vld [vmem:[#allocation3 + $0x4d8] sm:$0xff]  ;;  %v8932_v55 = vld [vmem:[#allocation3 + $0x4d0] sm:$0xff] }
0x67f4   :  { %9277 = vmatprep.subr.mxu1 %v8965_v11  ;;  %9207 = vmatpush1.msra.mxu0 %v8836_v25  ;;  %v8801_v8 = vld [vmem:[#allocation3 + $0xb8] sm:$0xff]  ;;  %v8800_v35 = vld [vmem:[#allocation3 + $0xb0] sm:$0xff] }
0x67f5   :  { %9278 = vmatpush1.msra.mxu1 %v8964_v54  ;;  %9208 = vmatprep.subr.mxu0 %v8833_v41  ;;  %v8929_v10 = vld [vmem:[#allocation3 + $0x4b8] sm:$0xff]  ;;  %v8928_v56 = vld [vmem:[#allocation3 + $0x4b0] sm:$0xff] }
0x67f6   :  { %9279 = vmatprep.subr.mxu1 %v8961_v29  ;;  %9209 = vmatpush1.msra.mxu0 %v8832_v50  ;;  %v8797_v27 = vld [vmem:[#allocation3 + $0x98] sm:$0xff]  ;;  %v8796_v19 = vld [vmem:[#allocation3 + $0x90] sm:$0xff] }
0x67f7   :  { %9280 = vmatpush1.msra.mxu1 %v8960_v49  ;;  %9210 = vmatprep.subr.mxu0 %v8829_v61  ;;  %v8925_v17 = vld [vmem:[#allocation3 + $0x498] sm:$0xff]  ;;  %v8924_v32 = vld [vmem:[#allocation3 + $0x490] sm:$0xff] }
0x67f8   :  { %9281 = vmatprep.subr.mxu1 %v8957_v34  ;;  %9211 = vmatpush1.msra.mxu0 %v8828_v21  ;;  %v8793_v51 = vld [vmem:[#allocation3 + $0x78] sm:$0xff]  ;;  %v8792_v9 = vld [vmem:[#allocation3 + $0x70] sm:$0xff] }
0x67f9   :  { %9282 = vmatpush1.msra.mxu1 %v8956_v47  ;;  %9212 = vmatprep.subr.mxu0 %v8825_v40  ;;  %v8921_v1 = vld [vmem:[#allocation3 + $0x478] sm:$0xff]  ;;  %v8920_v52 = vld [vmem:[#allocation3 + $0x470] sm:$0xff] }
0x67fa   :  { %9283 = vmatprep.subr.mxu1 %v8953_v5  ;;  %9213 = vmatpush1.msra.mxu0 %v8824_v37  ;;  %v8789_v0 = vld [vmem:[#allocation3 + $0x58] sm:$0xff]  ;;  %v8788_v59 = vld [vmem:[#allocation3 + $0x50] sm:$0xff] }
0x67fb   :  { %9284 = vmatpush1.msra.mxu1 %v8952_v38  ;;  %9214 = vmatprep.subr.mxu0 %v8821_v43  ;;  %v8917_v18 = vld [vmem:[#allocation3 + $0x458] sm:$0xff]  ;;  %v8916_v3 = vld [vmem:[#allocation3 + $0x450] sm:$0xff] }
0x67fc   :  { %9285 = vmatprep.subr.mxu1 %v8949_v4  ;;  %9215 = vmatpush1.msra.mxu0 %v8820_v22  ;;  %v8785_v6 = vld [vmem:[#allocation3 + $0x38] sm:$0xff]  ;;  %v8784_v45 = vld [vmem:[#allocation3 + $0x30] sm:$0xff] }
0x67fd   :  { %9286 = vmatpush1.msra.mxu1 %v8948_v26  ;;  %9216 = vmatprep.subr.mxu0 %v8817_v42  ;;  %v8913_v7 = vld [vmem:[#allocation3 + $0x438] sm:$0xff]  ;;  %v8912_v58 = vld [vmem:[#allocation3 + $0x430] sm:$0xff] }
0x67fe   :  { %9287 = vmatprep.subr.mxu1 %v8945_v53  ;;  %9217 = vmatpush1.msra.mxu0 %v8816_v28  ;;  %v8781_v39 = vld [vmem:[#allocation3 + $0x18] sm:$0xff]  ;;  %v8780_v13 = vld [vmem:[#allocation3 + $0x10] sm:$0xff] }
0x67ff   :  { %9288 = vmatpush1.msra.mxu1 %v8944_v24  ;;  %9218 = vmatprep.subr.mxu0 %v8813_v48  ;;  %v8909_v63 = vld [vmem:[#allocation3 + $0x418] sm:$0xff]  ;;  %v8908_v11 = vld [vmem:[#allocation3 + $0x410] sm:$0xff] }
0x6800   :  { %9289 = vmatprep.subr.mxu1 %v8941_v46  ;;  %9219 = vmatpush1.msra.mxu0 %v8812_v16  ;;  %v8905_v25 = vld [vmem:[#allocation3 + $0x3f8] sm:$0xff]  ;;  %v8904_v41 = vld [vmem:[#allocation3 + $0x3f0] sm:$0xff] }
0x6801   :  { %9290 = vmatpush1.msra.mxu1 %v8940_v36  ;;  %9220 = vmatprep.subr.mxu0 %v8809_v62  ;;  %v9033_v54 = vld [vmem:[#allocation3 + $0x7f8] sm:$0xff]  ;;  %v9032_v29 = vld [vmem:[#allocation3 + $0x7f0] sm:$0xff] }
0x6802   :  { %9291 = vmatprep.subr.mxu1 %v8937_v33  ;;  %9221 = vmatpush1.msra.mxu0 %v8808_v2  ;;  %v8901_v50 = vld [vmem:[#allocation3 + $0x3d8] sm:$0xff]  ;;  %v8900_v61 = vld [vmem:[#allocation3 + $0x3d0] sm:$0xff] }
0x6803   :  { %9292 = vmatpush1.msra.mxu1 %v8936_v23  ;;  %9222 = vmatprep.subr.mxu0 %v8805_v60  ;;  %v9029_v49 = vld [vmem:[#allocation3 + $0x7d8] sm:$0xff]  ;;  %v9028_v34 = vld [vmem:[#allocation3 + $0x7d0] sm:$0xff] }
0x6804   :  { %9293 = vmatprep.subr.mxu1 %v8933_v15  ;;  %9223 = vmatpush1.msra.mxu0 %v8804_v14  ;;  %v8897_v21 = vld [vmem:[#allocation3 + $0x3b8] sm:$0xff]  ;;  %v8896_v40 = vld [vmem:[#allocation3 + $0x3b0] sm:$0xff] }
0x6805   :  { %9294 = vmatpush1.msra.mxu1 %v8932_v55  ;;  %9224 = vmatprep.subr.mxu0 %v8801_v8  ;;  %v9025_v47 = vld [vmem:[#allocation3 + $0x7b8] sm:$0xff]  ;;  %v9024_v5 = vld [vmem:[#allocation3 + $0x7b0] sm:$0xff] }
0x6806   :  { %9295 = vmatprep.subr.mxu1 %v8929_v10  ;;  %9225 = vmatpush1.msra.mxu0 %v8800_v35  ;;  %v8893_v37 = vld [vmem:[#allocation3 + $0x398] sm:$0xff]  ;;  %v8892_v43 = vld [vmem:[#allocation3 + $0x390] sm:$0xff] }
0x6807   :  { %9296 = vmatpush1.msra.mxu1 %v8928_v56  ;;  %9226 = vmatprep.subr.mxu0 %v8797_v27  ;;  %v9021_v38 = vld [vmem:[#allocation3 + $0x798] sm:$0xff]  ;;  %v9020_v4 = vld [vmem:[#allocation3 + $0x790] sm:$0xff] }
0x6808   :  { %9297 = vmatprep.subr.mxu1 %v8925_v17  ;;  %9227 = vmatpush1.msra.mxu0 %v8796_v19  ;;  %v8889_v22 = vld [vmem:[#allocation3 + $0x378] sm:$0xff]  ;;  %v8888_v42 = vld [vmem:[#allocation3 + $0x370] sm:$0xff] }
0x6809   :  { %9298 = vmatpush1.msra.mxu1 %v8924_v32  ;;  %9228 = vmatprep.subr.mxu0 %v8793_v51  ;;  %v9017_v26 = vld [vmem:[#allocation3 + $0x778] sm:$0xff]  ;;  %v9016_v53 = vld [vmem:[#allocation3 + $0x770] sm:$0xff] }
0x680a   :  { %9299 = vmatprep.subr.mxu1 %v8921_v1  ;;  %9229 = vmatpush1.msra.mxu0 %v8792_v9  ;;  %v8885_v28 = vld [vmem:[#allocation3 + $0x358] sm:$0xff]  ;;  %v8884_v48 = vld [vmem:[#allocation3 + $0x350] sm:$0xff] }
0x680b   :  { %9300 = vmatpush1.msra.mxu1 %v8920_v52  ;;  %9230 = vmatprep.subr.mxu0 %v8789_v0  ;;  %v9013_v24 = vld [vmem:[#allocation3 + $0x758] sm:$0xff]  ;;  %v9012_v46 = vld [vmem:[#allocation3 + $0x750] sm:$0xff] }
0x680c   :  { %9301 = vmatprep.subr.mxu1 %v8917_v18  ;;  %9231 = vmatpush1.msra.mxu0 %v8788_v59  ;;  %v8881_v16 = vld [vmem:[#allocation3 + $0x338] sm:$0xff]  ;;  %v8880_v62 = vld [vmem:[#allocation3 + $0x330] sm:$0xff] }
0x680d   :  { %9302 = vmatpush1.msra.mxu1 %v8916_v3  ;;  %9232 = vmatprep.subr.mxu0 %v8785_v6  ;;  %v9009_v36 = vld [vmem:[#allocation3 + $0x738] sm:$0xff]  ;;  %v9008_v33 = vld [vmem:[#allocation3 + $0x730] sm:$0xff] }
0x680e   :  { %9303 = vmatprep.subr.mxu1 %v8913_v7  ;;  %9233 = vmatpush1.msra.mxu0 %v8784_v45  ;;  %v8877_v2 = vld [vmem:[#allocation3 + $0x318] sm:$0xff]  ;;  %v8876_v60 = vld [vmem:[#allocation3 + $0x310] sm:$0xff] }
0x680f   :  { %9304 = vmatpush1.msra.mxu1 %v8912_v58  ;;  %9234 = vmatprep.subr.mxu0 %v8781_v39  ;;  %v9005_v23 = vld [vmem:[#allocation3 + $0x718] sm:$0xff]  ;;  %v9004_v15 = vld [vmem:[#allocation3 + $0x710] sm:$0xff] }
0x6810   :  { %9305 = vmatprep.subr.mxu1 %v8909_v63  ;;  %9235 = vmatpush1.msra.mxu0 %v8780_v13  ;;  %v8873_v14 = vld [vmem:[#allocation3 + $0x2f8] sm:$0xff]  ;;  %v8872_v8 = vld [vmem:[#allocation3 + $0x2f0] sm:$0xff] }
0x6811   :  { %9306 = vmatpush1.msra.mxu1 %v8908_v11  ;;  %9236 = vmatprep.subr.mxu0 %v8905_v25  ;;  %v9001_v55 = vld [vmem:[#allocation3 + $0x6f8] sm:$0xff]  ;;  %v9000_v10 = vld [vmem:[#allocation3 + $0x6f0] sm:$0xff] }
0x6812   :  { %9307 = vmatprep.subr.mxu1 %v9033_v54  ;;  %9237 = vmatpush2.msra.mxu0 %v8904_v41  ;;  %v8869_v35 = vld [vmem:[#allocation3 + $0x2d8] sm:$0xff]  ;;  %v8868_v27 = vld [vmem:[#allocation3 + $0x2d0] sm:$0xff] }
0x6813   :  { %9308 = vmatpush2.msra.mxu1 %v9032_v29  ;;  %9238 = vmatprep.subr.mxu0 %v8901_v50  ;;  %v8997_v56 = vld [vmem:[#allocation3 + $0x6d8] sm:$0xff]  ;;  %v8996_v17 = vld [vmem:[#allocation3 + $0x6d0] sm:$0xff] }
0x6814   :  { %9309 = vmatprep.subr.mxu1 %v9029_v49  ;;  %9239 = vmatpush2.msra.mxu0 %v8900_v61  ;;  %v8865_v19 = vld [vmem:[#allocation3 + $0x2b8] sm:$0xff]  ;;  %v8864_v51 = vld [vmem:[#allocation3 + $0x2b0] sm:$0xff]  ;;  %v15120_v61 = vld [vmem:[#allocation110_spill] sm:$0xff] }
0x6815   :  { %9310 = vmatpush2.msra.mxu1 %v9028_v34  ;;  %9240 = vmatprep.subr.mxu0 %v8897_v21  ;;  %v8993_v32 = vld [vmem:[#allocation3 + $0x6b8] sm:$0xff]  ;;  %v8992_v1 = vld [vmem:[#allocation3 + $0x6b0] sm:$0xff]  ;;  %v15122_v21 = vld [vmem:[#allocation94_spill] sm:$0xff] }
0x6816   :  { %9311 = vmatprep.subr.mxu1 %v9025_v47  ;;  %9241 = vmatpush2.msra.mxu0 %v8896_v40  ;;  %v8861_v9 = vld [vmem:[#allocation3 + $0x298] sm:$0xff]  ;;  %v8860_v0 = vld [vmem:[#allocation3 + $0x290] sm:$0xff]  ;;  %v15123_v47 = vld [vmem:[#allocation78_spill] sm:$0xff] }
0x6817   :  { %9312 = vmatpush2.msra.mxu1 %v9024_v5  ;;  %9242 = vmatprep.subr.mxu0 %v8893_v37  ;;  %v8989_v52 = vld [vmem:[#allocation3 + $0x698] sm:$0xff]  ;;  %v8988_v18 = vld [vmem:[#allocation3 + $0x690] sm:$0xff] }
0x6818   :  { %9313 = vmatprep.subr.mxu1 %v9021_v38  ;;  %9243 = vmatpush2.msra.mxu0 %v8892_v43  ;;  %v8857_v59 = vld [vmem:[#allocation3 + $0x278] sm:$0xff]  ;;  %v8856_v6 = vld [vmem:[#allocation3 + $0x270] sm:$0xff] }
0x6819   :  { %9314 = vmatpush2.msra.mxu1 %v9020_v4  ;;  %9244 = vmatprep.subr.mxu0 %v8889_v22  ;;  %v8985_v3 = vld [vmem:[#allocation3 + $0x678] sm:$0xff]  ;;  %v8984_v7 = vld [vmem:[#allocation3 + $0x670] sm:$0xff] }
0x681a   :  { %9315 = vmatprep.subr.mxu1 %v9017_v26  ;;  %9245 = vmatpush2.msra.mxu0 %v8888_v42  ;;  %v8853_v45 = vld [vmem:[#allocation3 + $0x258] sm:$0xff]  ;;  %v8852_v39 = vld [vmem:[#allocation3 + $0x250] sm:$0xff]  ;;  %v15136_v26 = vld [vmem:[#allocation106_spill] sm:$0xff] }
0x681b   :  { %9316 = vmatpush2.msra.mxu1 %v9016_v53  ;;  %9246 = vmatprep.subr.mxu0 %v8885_v28  ;;  %v8981_v58 = vld [vmem:[#allocation3 + $0x658] sm:$0xff]  ;;  %v8980_v63 = vld [vmem:[#allocation3 + $0x650] sm:$0xff]  ;;  %v15138_v53 = vld [vmem:[#allocation90_spill] sm:$0xff] }
0x681c   :  { %9317 = vmatprep.subr.mxu1 %v9013_v24  ;;  %9247 = vmatpush2.msra.mxu0 %v8884_v48  ;;  %v8849_v13 = vld [vmem:[#allocation3 + $0x238] sm:$0xff]  ;;  %v8848_v25 = vld [vmem:[#allocation3 + $0x230] sm:$0xff]  ;;  %v15139_v28 = vld [vmem:[#allocation74_spill] sm:$0xff] }
0x681d   :  { %9318 = vmatpush2.msra.mxu1 %v9012_v46  ;;  %9248 = vmatprep.subr.mxu0 %v8881_v16  ;;  %v8977_v11 = vld [vmem:[#allocation3 + $0x638] sm:$0xff]  ;;  %v8976_v54 = vld [vmem:[#allocation3 + $0x630] sm:$0xff]  ;;  %v15141_v48 = vld [vmem:[#allocation58_spill] sm:$0xff] }
0x681e   :  { %9319 = vmatprep.subr.mxu1 %v9009_v36  ;;  %9249 = vmatpush2.msra.mxu0 %v8880_v62  ;;  %v8845_v41 = vld [vmem:[#allocation3 + $0x218] sm:$0xff]  ;;  %v8844_v50 = vld [vmem:[#allocation3 + $0x210] sm:$0xff] }
0x681f   :  { %9320 = vmatpush2.msra.mxu1 %v9008_v33  ;;  %9250 = vmatprep.subr.mxu0 %v8877_v2  ;;  %v8973_v29 = vld [vmem:[#allocation3 + $0x618] sm:$0xff]  ;;  %v8972_v49 = vld [vmem:[#allocation3 + $0x610] sm:$0xff] }
0x6820   :  { %9321 = vmatprep.subr.mxu1 %v9005_v23  ;;  %9251 = vmatpush2.msra.mxu0 %v8876_v60  ;;  %v15121_v34 = vld [vmem:[#allocation63_spill] sm:$0xff]  ;;  %v15124_v40 = vld [vmem:[#allocation109_spill] sm:$0xff]  ;;  %v15131_v37 = vld [vmem:[#allocation76_spill] sm:$0xff] }
0x6821   :  { %9322 = vmatpush2.msra.mxu1 %v9004_v15  ;;  %9252 = vmatprep.subr.mxu0 %v8873_v14  ;;  %v15126_v5 = vld [vmem:[#allocation93_spill] sm:$0xff]  ;;  %v15132_v38 = vld [vmem:[#allocation107_spill] sm:$0xff]  ;;  %v15133_v43 = vld [vmem:[#allocation60_spill] sm:$0xff] }
0x6822   :  { %9323 = vmatprep.subr.mxu1 %v9001_v55  ;;  %9253 = vmatpush2.msra.mxu0 %v8872_v8  ;;  %v15134_v4 = vld [vmem:[#allocation91_spill] sm:$0xff]  ;;  %v15140_v24 = vld [vmem:[#allocation105_spill] sm:$0xff]  ;;  %v15144_v36 = vld [vmem:[#allocation104_spill] sm:$0xff] }
0x6823   :  { %9324 = vmatpush2.msra.mxu1 %v9000_v10  ;;  %9254 = vmatprep.subr.mxu0 %v8869_v35  ;;  %v15135_v22 = vld [vmem:[#allocation75_spill] sm:$0xff]  ;;  %v15142_v46 = vld [vmem:[#allocation89_spill] sm:$0xff]  ;;  %v15146_v33 = vld [vmem:[#allocation88_spill] sm:$0xff] }
0x6824   :  { %9325 = vmatprep.subr.mxu1 %v8997_v56  ;;  %9255 = vmatpush2.msra.mxu0 %v8868_v27  ;;  %v15137_v42 = vld [vmem:[#allocation59_spill] sm:$0xff]  ;;  %v15143_v16 = vld [vmem:[#allocation73_spill] sm:$0xff]  ;;  %v15147_v2 = vld [vmem:[#allocation72_spill] sm:$0xff] }
0x6825   :  { %9326 = vmatpush2.msra.mxu1 %v8996_v17  ;;  %9256 = vmatprep.subr.mxu0 %v8865_v19  ;;  %v15145_v62 = vld [vmem:[#allocation57_spill] sm:$0xff]  ;;  %v15148_v23 = vld [vmem:[#allocation103_spill] sm:$0xff]  ;;  %v15149_v60 = vld [vmem:[#allocation56_spill] sm:$0xff] }
0x6826   :  { %9327 = vmatprep.subr.mxu1 %v8993_v32  ;;  %9257 = vmatpush2.msra.mxu0 %v8864_v51  ;;  %v15150_v15 = vld [vmem:[#allocation87_spill] sm:$0xff]  ;;  %v15152_v55 = vld [vmem:[#allocation102_spill] sm:$0xff]  ;;  %v15156_v56 = vld [vmem:[#allocation101_spill] sm:$0xff] }
0x6827   :  { %9328 = vmatpush2.msra.mxu1 %v8992_v1  ;;  %9258 = vmatprep.subr.mxu0 %v8861_v9  ;;  %v15151_v14 = vld [vmem:[#allocation71_spill] sm:$0xff]  ;;  %v15154_v10 = vld [vmem:[#allocation86_spill] sm:$0xff]  ;;  %v15158_v17 = vld [vmem:[#allocation85_spill] sm:$0xff] }
0x6828   :  { %9329 = vmatprep.subr.mxu1 %v8989_v52  ;;  %9259 = vmatpush2.msra.mxu0 %v8860_v0  ;;  %v15153_v8 = vld [vmem:[#allocation55_spill] sm:$0xff]  ;;  %v15155_v35 = vld [vmem:[#allocation70_spill] sm:$0xff]  ;;  %v15159_v19 = vld [vmem:[#allocation69_spill] sm:$0xff] }
0x6829   :  { %9330 = vmatpush2.msra.mxu1 %v8988_v18  ;;  %9260 = vmatprep.subr.mxu0 %v8857_v59  ;;  %v15157_v27 = vld [vmem:[#allocation54_spill] sm:$0xff]  ;;  %v15160_v32 = vld [vmem:[#allocation100_spill] sm:$0xff]  ;;  %v15161_v51 = vld [vmem:[#allocation53_spill] sm:$0xff] }
0x682a   :  { %9331 = vmatprep.subr.mxu1 %v8985_v3  ;;  %9261 = vmatpush2.msra.mxu0 %v8856_v6  ;;  %v15162_v1 = vld [vmem:[#allocation84_spill] sm:$0xff]  ;;  %v15164_v52 = vld [vmem:[#allocation99_spill] sm:$0xff]  ;;  %v15168_v3 = vld [vmem:[#allocation98_spill] sm:$0xff] }
0x682b   :  { %9332 = vmatpush2.msra.mxu1 %v8984_v7  ;;  %9262 = vmatprep.subr.mxu0 %v8853_v45  ;;  %v15163_v9 = vld [vmem:[#allocation68_spill] sm:$0xff]  ;;  %v15166_v18 = vld [vmem:[#allocation83_spill] sm:$0xff]  ;;  %v15170_v7 = vld [vmem:[#allocation82_spill] sm:$0xff] }
0x682c   :  { %9333 = vmatprep.subr.mxu1 %v8981_v58  ;;  %9263 = vmatpush2.msra.mxu0 %v8852_v39  ;;  %v15165_v0 = vld [vmem:[#allocation52_spill] sm:$0xff]  ;;  %v15167_v59 = vld [vmem:[#allocation67_spill] sm:$0xff]  ;;  %v15171_v45 = vld [vmem:[#allocation66_spill] sm:$0xff] }
0x682d   :  { %9334 = vmatpush2.msra.mxu1 %v8980_v63  ;;  %9264 = vmatprep.subr.mxu0 %v8849_v13  ;;  %v15169_v6 = vld [vmem:[#allocation51_spill] sm:$0xff]  ;;  %v15172_v58 = vld [vmem:[#allocation97_spill] sm:$0xff]  ;;  %v15173_v39 = vld [vmem:[#allocation50_spill] sm:$0xff] }
0x682e   :  { %9335 = vmatprep.subr.mxu1 %v8977_v11  ;;  %9265 = vmatpush2.msra.mxu0 %v8848_v25  ;;  %v15174_v63 = vld [vmem:[#allocation81_spill] sm:$0xff]  ;;  %v15176_v11 = vld [vmem:[#allocation96_spill] sm:$0xff] }
0x682f   :  { %9336 = vmatpush2.msra.mxu1 %v8976_v54  ;;  %9266 = vmatprep.subr.mxu0 %v8845_v41  ;;  %v15175_v13 = vld [vmem:[#allocation65_spill] sm:$0xff]  ;;  %v15178_v54 = vld [vmem:[#allocation80_spill] sm:$0xff] }
0x6830   :  { %9337 = vmatprep.subr.mxu1 %v8973_v29  ;;  %9267 = vmatpush2.msra.mxu0 %v8844_v50  ;;  %v15177_v25 = vld [vmem:[#allocation49_spill] sm:$0xff]  ;;  %v15179_v41 = vld [vmem:[#allocation64_spill] sm:$0xff]  ;;  %v15180_v29 = vld [vmem:[#allocation95_spill] sm:$0xff] }
0x6831   :  { %9268 = vmatprep.mubr.f32.mxu0 %v14808_v12  ;;  %9338 = vmatpush2.msra.mxu1 %v8972_v49  ;;  %v15125_v12 = vld [vmem:[#allocation62_spill] sm:$0xff]  ;;  %v15181_v50 = vld [vmem:[#allocation48_spill] sm:$0xff]  ;;  %v15182_v49 = vld [vmem:[#allocation79_spill] sm:$0xff] }
0x6832   :  { %9339 = vmatprep.mubr.f32.mxu1 %v14812_v57  ;;  %9269 = vmatmul.mubr.f32.vlgmr.msra.gmra.mxu0 %v14802_v44  ;;  %v15127_v57 = vld [vmem:[#allocation77_spill] sm:$0xff]  ;;  %v15128_v44 = vld [vmem:[#allocation108_spill] sm:$0xff] }
0x6833   :  { %9340 = vmatmul.mubr.f32.vlgmr.msra.gmra.mxu1 %v14804_v30  ;;  %10408 = vmatprep.subr.mxu0 %v12695_v31  ;;  %v15129_v30 = vld [vmem:[#allocation61_spill] sm:$0xff]  ;;  %v15130_v31 = vld [vmem:[#allocation92_spill] sm:$0xff] }
0x6834   :  { %10443 = vmatprep.subr.mxu1 %v15120_v61  ;;  %10409 = vmatpush3.msra.mxu0 %v15121_v34  ;;  %v9036_v61 = vlaneseq }
0x6835   :  { %10444 = vmatpush3.msra.mxu1 %v15122_v21  ;;  %10410 = vmatprep.subr.mxu0 %v15123_v47  ;;  %v9034_v47 = vld [vmem:[%s15011_s19] sm:$0xf] }
0x6836   :  { %10445 = vmatprep.subr.mxu1 %v15124_v40  ;;  %10411 = vmatpush3.msra.mxu0 %v15125_v12  ;;  %v9037_v34 = vshrl.u32 %v9036_v61, 7  ;;  %v9657_v61 = vld [vmem:[%s15016_s24 + $0x8] sm:$0xff] }
0x6837   :  { %10446 = vmatpush3.msra.mxu1 %v15126_v5  ;;  %10412 = vmatprep.subr.mxu0 %v15127_v57 }
0x6838   :  { %10447 = vmatprep.subr.mxu1 %v15128_v44  ;;  %10413 = vmatpush3.msra.mxu0 %v15129_v30  ;;  %v9038_v21 = vsub.s32 0, %v9037_v34  ;;  %v9042_v40 = vsub.s32 1, %v9037_v34 }
0x6839   :  { %10448 = vmatpush3.msra.mxu1 %v15130_v31  ;;  %10414 = vmatprep.subr.mxu0 %v15131_v37 }
0x683a   :  { %10449 = vmatprep.subr.mxu1 %v15132_v38  ;;  %10415 = vmatpush3.msra.mxu0 %v15133_v43  ;;  %v9039_v12 = vrot.slane %v9034_v47, %v9038_v21  ;;  %v9043_v5 = vrot.slane %v9034_v47, %v9042_v40  ;;  %v9963_v21 = vld [vmem:[#allocation29] ss:$0 sm:$0xff] }
0x683b   :  { %10450 = vmatpush3.msra.mxu1 %v15134_v4  ;;  %10416 = vmatprep.subr.mxu0 %v15135_v22 }
0x683c   :  { %10451 = vmatprep.subr.mxu1 %v15136_v26  ;;  %10417 = vmatpush3.msra.mxu0 %v15137_v42  ;;  %v9046_v42 = vsub.s32 2, %v9037_v34 }
0x683d   :  { %10452 = vmatpush3.msra.mxu1 %v15138_v53  ;;  %10418 = vmatprep.subr.mxu0 %v15139_v28  ;;  %v9050_v53 = vsub.s32 3, %v9037_v34  ;;  %v9656_v34 = vld [vmem:[%s15016_s24] sm:$0xff] }
0x683e   :  { %10453 = vmatprep.subr.mxu1 %v15140_v24  ;;  %10419 = vmatpush3.msra.mxu0 %v15141_v48  ;;  %v9047_v28 = vrot.slane %v9034_v47, %v9046_v42 }
0x683f   :  { %10454 = vmatpush3.msra.mxu1 %v15142_v46  ;;  %10420 = vmatprep.subr.mxu0 %v15143_v16  ;;  %v9051_v24 = vrot.slane %v9034_v47, %v9050_v53 }
0x6840   :  { %10455 = vmatprep.subr.mxu1 %v15144_v36  ;;  %10421 = vmatpush3.msra.mxu0 %v15145_v62 }
0x6841   :  { %10456 = vmatpush3.msra.mxu1 %v15146_v33  ;;  %10422 = vmatprep.subr.mxu0 %v15147_v2 }
0x6842   :  { %10457 = vmatprep.subr.mxu1 %v15148_v23  ;;  %10423 = vmatpush3.msra.mxu0 %v15149_v60 }
0x6843   :  { %10458 = vmatpush3.msra.mxu1 %v15150_v15  ;;  %10424 = vmatprep.subr.mxu0 %v15151_v14  ;;  %v9577_v14 = vld [vmem:[%s15014_s22 + $0x78] sm:$0xff] }
0x6844   :  { %10459 = vmatprep.subr.mxu1 %v15152_v55  ;;  %10425 = vmatpush3.msra.mxu0 %v15153_v8  ;;  %v9576_v55 = vld [vmem:[%s15014_s22 + $0x70] sm:$0xff]  ;;  %v9575_v8 = vld [vmem:[%s15014_s22 + $0x68] sm:$0xff] }
0x6845   :  { %10460 = vmatpush3.msra.mxu1 %v15154_v10  ;;  %10426 = vmatprep.subr.mxu0 %v15155_v35  ;;  %v9574_v10 = vld [vmem:[%s15014_s22 + $0x60] sm:$0xff]  ;;  %v9573_v35 = vld [vmem:[%s15014_s22 + $0x58] sm:$0xff] }
0x6846   :  { %10461 = vmatprep.subr.mxu1 %v15156_v56  ;;  %10427 = vmatpush3.msra.mxu0 %v15157_v27  ;;  %v9572_v56 = vld [vmem:[%s15014_s22 + $0x50] sm:$0xff]  ;;  %v9571_v27 = vld [vmem:[%s15014_s22 + $0x48] sm:$0xff] }
0x6847   :  { %10462 = vmatpush3.msra.mxu1 %v15158_v17  ;;  %10428 = vmatprep.subr.mxu0 %v15159_v19  ;;  %v9570_v17 = vld [vmem:[%s15014_s22 + $0x40] sm:$0xff]  ;;  %v9569_v19 = vld [vmem:[%s15014_s22 + $0x38] sm:$0xff] }
0x6848   :  { %10463 = vmatprep.subr.mxu1 %v15160_v32  ;;  %10429 = vmatpush3.msra.mxu0 %v15161_v51  ;;  %v9568_v32 = vld [vmem:[%s15014_s22 + $0x30] sm:$0xff]  ;;  %v9567_v51 = vld [vmem:[%s15014_s22 + $0x28] sm:$0xff] }
0x6849   :  { %10464 = vmatpush3.msra.mxu1 %v15162_v1  ;;  %10430 = vmatprep.subr.mxu0 %v15163_v9  ;;  %v9566_v1 = vld [vmem:[%s15014_s22 + $0x20] sm:$0xff]  ;;  %v9565_v9 = vld [vmem:[%s15014_s22 + $0x18] sm:$0xff] }
0x684a   :  { %10465 = vmatprep.subr.mxu1 %v15164_v52  ;;  %10431 = vmatpush3.msra.mxu0 %v15165_v0  ;;  %v9564_v52 = vld [vmem:[%s15014_s22 + $0x10] sm:$0xff]  ;;  %v9563_v0 = vld [vmem:[%s15014_s22 + $0x8] sm:$0xff] }
0x684b   :  { %10466 = vmatpush3.msra.mxu1 %v15166_v18  ;;  %10432 = vmatprep.subr.mxu0 %v15167_v59  ;;  %v9562_v18 = vld [vmem:[%s15014_s22] sm:$0xff]  ;;  %v9663_v59 = vld [vmem:[%s15016_s24 + $0x38] sm:$0xff] }
0x684c   :  { %10467 = vmatprep.subr.mxu1 %v15168_v3  ;;  %10433 = vmatpush3.msra.mxu0 %v15169_v6  ;;  %v9662_v3 = vld [vmem:[%s15016_s24 + $0x30] sm:$0xff]  ;;  %v9661_v6 = vld [vmem:[%s15016_s24 + $0x28] sm:$0xff] }
0x684d   :  { %10468 = vmatpush3.msra.mxu1 %v15170_v7  ;;  %10434 = vmatprep.subr.mxu0 %v15171_v45  ;;  %v9660_v7 = vld [vmem:[%s15016_s24 + $0x20] sm:$0xff]  ;;  %v9659_v45 = vld [vmem:[%s15016_s24 + $0x18] sm:$0xff] }
0x684e   :  { %10469 = vmatprep.subr.mxu1 %v15172_v58  ;;  %10435 = vmatpush3.msra.mxu0 %v15173_v39 }
0x684f   :  { %10470 = vmatpush3.msra.mxu1 %v15174_v63  ;;  %10436 = vmatprep.subr.mxu0 %v15175_v13  ;;  %v9962_v13 = vld [vmem:[#allocation28] ss:$0 sm:$0xff] }
0x6850   :  { %10471 = vmatprep.subr.mxu1 %v15176_v11  ;;  %10437 = vmatpush3.msra.mxu0 %v15177_v25 }
0x6851   :  { %10472 = vmatpush3.msra.mxu1 %v15178_v54  ;;  %10438 = vmatprep.subr.mxu0 %v15179_v41 }
0x6852   :  { %10473 = vmatprep.subr.mxu1 %v15180_v29  ;;  %10439 = vmatpush3.msra.mxu0 %v15181_v50 }
0x6853   :  { %10474 = vmatpush3.msra.mxu1 %v15182_v49  ;;  %11472 = vmatprep.subr.mxu0 %v15119_v20  ;;  %v9658_v49 = vld [vmem:[%s15016_s24 + $0x10] sm:$0xff] }
0x6854   :  { %11507 = vmatprep.subr.mxu1 %v15119_v20 }
0x68b0   :  { %v9128_v57 = vpop.f32.mrf.mxu0 }
0x68b1   :  { %v9129_v44 = vadd.f32 %v9128_v57, %v9039_v12  ;;  %v9964_v57 = vld [vmem:[#allocation31] ss:$0 sm:$0xff] }
0x68b2   :  { %v9199_v30 = vpop.f32.mrf.mxu1  ;;  %v9130_v31 = vpop.f32.mrf.mxu0 }
0x68b3   :  { %v9131_v37 = vadd.f32 %v9130_v31, %v9043_v5  ;;  %v9200_v38 = vadd.f32 %v9199_v30, %v9129_v44 }
0x68b4   :  { %v9201_v43 = vpop.f32.mrf.mxu1 }
0x68b5   :  { %v9202_v4 = vadd.f32 %v9201_v43, %v9131_v37  ;;  %v9346_v26 = vmax.f32 %v9200_v38, 0.0 }
0x68b7   :  { %v9347_v22 = vmax.f32 %v9202_v4, 0.0 }
0x68b9   :  { %9485 = vmatprep.mubr.f32.mxu0 %v9347_v22 }
0x68ba   :  { %9486 = vmatmul.mubr.f32.vlgmr.msra.gmra.mxu0 %v9346_v26 }
0x68bb   :  { %11504 = vmatprep.mubr.msk.f32.mxu0 %vm12312_vm0, %v15119_v20  ;;  %11473 = vmatpush3.msra.mxu0 %v9577_v14 }
0x68bc   :  { %11474 = vmatprep.subr.mxu0 %v15119_v20 }
0x68bd   :  { %11475 = vmatpush3.msra.mxu0 %v9576_v55 }
0x68be   :  { %11476 = vmatprep.subr.mxu0 %v15119_v20 }
0x68bf   :  { %11477 = vmatpush3.msra.mxu0 %v9575_v8 }
0x68c0   :  { %11478 = vmatprep.subr.mxu0 %v15119_v20 }
0x68c1   :  { %11479 = vmatpush3.msra.mxu0 %v9574_v10 }
0x68c2   :  { %11480 = vmatprep.subr.mxu0 %v15119_v20 }
0x68c3   :  { %11481 = vmatpush3.msra.mxu0 %v9573_v35 }
0x68c4   :  { %11482 = vmatprep.subr.mxu0 %v15119_v20 }
0x68c5   :  { %11483 = vmatpush3.msra.mxu0 %v9572_v56 }
0x68c6   :  { %11484 = vmatprep.subr.mxu0 %v15119_v20 }
0x68c7   :  { %11485 = vmatpush3.msra.mxu0 %v9571_v27 }
0x68c8   :  { %11486 = vmatprep.subr.mxu0 %v15119_v20 }
0x68c9   :  { %11487 = vmatpush3.msra.mxu0 %v9570_v17 }
0x68ca   :  { %11488 = vmatprep.subr.mxu0 %v15119_v20 }
0x68cb   :  { %11489 = vmatpush3.msra.mxu0 %v9569_v19 }
0x68cc   :  { %11490 = vmatprep.subr.mxu0 %v15119_v20 }
0x68cd   :  { %11491 = vmatpush3.msra.mxu0 %v9568_v32 }
0x68ce   :  { %11492 = vmatprep.subr.mxu0 %v15119_v20 }
0x68cf   :  { %11493 = vmatpush3.msra.mxu0 %v9567_v51 }
0x68d0   :  { %11494 = vmatprep.subr.mxu0 %v15119_v20 }
0x68d1   :  { %11495 = vmatpush3.msra.mxu0 %v9566_v1 }
0x68d2   :  { %11496 = vmatprep.subr.mxu0 %v15119_v20 }
0x68d3   :  { %11497 = vmatpush3.msra.mxu0 %v9565_v9 }
0x68d4   :  { %11498 = vmatprep.subr.mxu0 %v15119_v20 }
0x68d5   :  { %11499 = vmatpush3.msra.mxu0 %v9564_v52 }
0x68d6   :  { %11500 = vmatprep.subr.mxu0 %v15119_v20 }
0x68d7   :  { %11501 = vmatpush3.msra.mxu0 %v9563_v0 }
0x68d8   :  { %11502 = vmatprep.subr.mxu0 %v15119_v20 }
0x68d9   :  { %11503 = vmatpush3.msra.mxu0 %v9562_v18 }
0x68f2   :  { %v9270_v48 = vpop.f32.mrf.mxu0 }
0x68f3   :  { %v9341_v46 = vpop.f32.mrf.mxu1  ;;  %v9271_v16 = vadd.f32 %v9270_v48, %v9047_v28 }
0x68f4   :  { %v9272_v36 = vpop.f32.mrf.mxu0 }
0x68f5   :  { %v9273_v62 = vadd.f32 %v9272_v36, %v9051_v24  ;;  %v9342_v33 = vadd.f32 %v9341_v46, %v9271_v16  ;;  %v9343_v2 = vpop.f32.mrf.mxu1 }
0x68f7   :  { %v9344_v23 = vadd.f32 %v9343_v2, %v9273_v62  ;;  %v9348_v15 = vmax.f32 %v9342_v33, 0.0 }
0x68f9   :  { %v9349_v60 = vmax.f32 %v9344_v23, 0.0 }
0x68fb   :  { %9555 = vmatprep.mubr.f32.mxu1 %v9349_v60 }
0x68fc   :  { %9556 = vmatmul.mubr.f32.vlgmr.msra.gmra.mxu1 %v9348_v15 }
0x68fd   :  { %11523 = vmatprep.mubr.msk.f32.mxu1 %vm12312_vm0, %v15119_v20  ;;  %11508 = vmatpush3.msra.mxu1 %v9663_v59 }
0x68fe   :  { %11509 = vmatprep.subr.mxu1 %v15119_v20 }
0x68ff   :  { %11510 = vmatpush3.msra.mxu1 %v9662_v3 }
0x6900   :  { %11511 = vmatprep.subr.mxu1 %v15119_v20 }
0x6901   :  { %11512 = vmatpush3.msra.mxu1 %v9661_v6 }
0x6902   :  { %11513 = vmatprep.subr.mxu1 %v15119_v20 }
0x6903   :  { %11514 = vmatpush3.msra.mxu1 %v9660_v7 }
0x6904   :  { %11515 = vmatprep.subr.mxu1 %v15119_v20 }
0x6905   :  { %11516 = vmatpush3.msra.mxu1 %v9659_v45 }
0x6906   :  { %11517 = vmatprep.subr.mxu1 %v15119_v20 }
0x6907   :  { %11518 = vmatpush3.msra.mxu1 %v9658_v49 }
0x6908   :  { %11519 = vmatprep.subr.mxu1 %v15119_v20 }
0x6909   :  { %11520 = vmatpush3.msra.mxu1 %v9657_v61 }
0x690a   :  { %11521 = vmatprep.subr.mxu1 %v15119_v20 }
0x690b   :  { %11522 = vmatpush3.msra.mxu1 %v9656_v34 }
0x697a   :  { %v10440_v58 = vpop.f32.mrf.mxu0 }
0x697c   :  { %v10441_v39 = vpop.f32.mrf.mxu0 }
0x697d   :  { %v10442_v63 = vadd.f32 %v10441_v39, %v10440_v58 }
0x697f   :  { %v9488_v54 = vadd.f32 %v10442_v63, %v9962_v13 }
0x69bc   :  { %v10475_v11 = vpop.f32.mrf.mxu1 }
0x69be   :  { %v10476_v25 = vpop.f32.mrf.mxu1 }
0x69bf   :  { %v10477_v41 = vadd.f32 %v10476_v25, %v10475_v11 }
0x69c1   :  { %v9558_v29 = vadd.f32 %v10477_v41, %v9488_v54 }
0x69c3   :  { %v9561_v50 = vmax.f32 %v9558_v29, 0.0 }
0x69c5   :  { %11505 = vmatmul.mubr.f32.vlgmr.msra.gmra.mxu0 %v9561_v50 }
0x6a85   :  { %v9651_v47 = vpop.f32.mrf.mxu0 }
0x6a86   :  { %v9652_v40 = vadd.f32 %v9963_v21, %v9651_v47 }
0x6a87   :  { %v11506_v12 = vpop.f32.mrf.mxu0 }
0x6a88   :  { %v9655_v5 = vmax.f32 %v9652_v40, 0.0 }
0x6a8a   :  { %11524 = vmatmul.mubr.msk.f32.vlgmr.msra.gmra.mxu1 %vm9671_vm6, %v9655_v5 }
0x6b4a   :  { %v9741_v44 = vpop.f32.mrf.mxu1 }
0x6b4b   :  { %v9742_v30 = vadd.f32 %v9964_v57, %v9741_v44 }
0x6b4c   :  { %v11525_v31 = vpop.f32.mrf.mxu1 }
0x6b4d   :  { %9745 = vst [vmem:[%s15019_s27] sm:$0xf] %v9742_v30 }
0x6b4e   :  { %9754 = vsyncpa [#allocation7], 1 }
0x6b4f   :  { %9755 = vsyncpa [#allocation9], 1 }
0x6b50   :  { %9756 = vsyncpa [#allocation12], 1 }
0x6b51   :  { %9757 = vsyncpa [#allocation15], 1 }
0x6b52   :  { %9758 = vsyncpa [#allocation18], 1 }
0x6b53   :  { %9759 = vsyncpa [#allocation21], 1 }
0x6b54   :  { %9760 = vsyncpa [#allocation24], 1 }
0x6b55   :  { %9761 = vsyncpa [#allocation27], 1 }
0x6b56   :  { %9762 = vsyncpa [#allocation30], 1 }
0x6b57   :  { %9763 = vsyncmov [#allocation5] }
0x6b5a   :  { %s9764_s24 = vpop.sfrf %9763 }
0x6b5b   :  { %p9966_p6 = scmp.ne.s32.totalorder %s9764_s24, 0 }
0x6b5d   :  { %9768 = shalt.err (%p9966_p6)  }
0x6b5e   :  { %9770 = vsyncmov [#allocation5 + $0x1] }
0x6b61   :  { %s9771_s25 = vpop.sfrf %9770 }
0x6b62   :  { %p9967_p7 = scmp.ne.s32.totalorder %s9771_s25, 0 }
0x6b64   :  { %9775 = shalt.err (%p9967_p7)  }

</bundles_post_ra>
